<compile_context>
chip_gen: v5e
topology: v5e:2x2
jax: 0.10.0
libtpu: 0.0.40
codegen_flags: <defaults>
</compile_context>

<pallas_src>
import functools

import jax
import jax.numpy as jnp
from jax.experimental import pallas as pl
from jax.experimental.pallas import tpu as pltpu


# ----------------------------- chip-aware config --------------------------------

def _tpu_generation():
    try:
        kind = jax.devices()[0].device_kind.lower()
    except Exception:
        return "unknown"
    if "v7" in kind:
        return "v7x"
    if "v6" in kind:
        return "v6e"
    if "v5e" in kind or "v5 lite" in kind or "v5lite" in kind:
        return "v5e"
    return "unknown"


_GEN = _tpu_generation()

# bf16 elementwise (bias/ReLU/pool) only where the VPU has native bf16 (v6e/v7x);
# on v5e (no bf16 VPU) and unknown chips stay f32.
_EW_DTYPE = jnp.bfloat16 if _GEN in ("v6e", "v7x") else jnp.float32


def _compiler_params():
    if _GEN in ("v5e", "v6e"):
        # 128 MiB physical VMEM, single TC: raise the scoped limit for big tiles.
        return pltpu.CompilerParams(dimension_semantics=("parallel",),
                                    vmem_limit_bytes=96 * 1024 * 1024)
    # v7x: only 64 MiB / TC physical -> stay within the default scoped limit.
    return pltpu.CompilerParams(dimension_semantics=("parallel",))


# ----------------------------- helpers ------------------------------------------

def _round_up(x, m):
    return ((x + m - 1) // m) * m


def _choose_tile_pts(M, ns):
    """Per-grid-step number of query points for the SA kernels (multiple of 16)."""
    if _GEN == "v7x":
        target_rows, min_rows, min_steps = 2048, 512, 4   # >=2 steps per TC -> pipelined
    elif _GEN == "v5e":
        target_rows, min_rows, min_steps = 8192, 1024, 1  # single TC, go big
    elif _GEN == "v6e":
        target_rows, min_rows, min_steps = 4096, 1024, 2
    else:
        target_rows, min_rows, min_steps = 2048, 512, 2
    tp_target = max(16, target_rows // ns)
    tp_min = max(16, min_rows // ns)
    tp_full = _round_up(M, 16)
    if min_steps > 1:
        tp_split = (M // min_steps) // 16 * 16
        if tp_split >= tp_min:
            tp = min(tp_target, tp_split)
        else:
            tp = min(tp_full, tp_target)
    else:
        tp = min(tp_full, tp_target)
    return max(16, (tp // 16) * 16)


def _choose_tile_rows(R):
    """Row tile for the FP per-point MLP (multiple of 16)."""
    if _GEN == "v7x":
        target, minimum, min_steps = 2048, 512, 4
    elif _GEN == "v5e":
        target, minimum, min_steps = 2048, 256, 1
    elif _GEN == "v6e":
        target, minimum, min_steps = 2048, 512, 2
    else:
        target, minimum, min_steps = 1024, 256, 2
    full = _round_up(R, 16)
    if min_steps > 1:
        split = (R // min_steps) // 16 * 16
        if split >= minimum:
            t = min(target, split)
        else:
            t = min(full, target)
    else:
        t = min(full, target)
    return max(16, (t // 16) * 16)


def _gf_block_spec(rows, cf, num_steps):
    """Grouped-feature stream spec; deeper buffering once the grid is long enough."""
    if num_steps >= 4:
        try:
            return pl.BlockSpec((rows, cf), lambda i: (i, 0),
                                pipeline_mode=pl.Buffered(3))
        except TypeError:  # older BlockSpec signature without pipeline_mode
            pass
    return pl.BlockSpec((rows, cf), lambda i: (i, 0))


# ----------------------------- Pallas kernels ------------------------------------

def _sa_mlp_pool_kernel(gxyz_ref, gfeat_ref, w1x_ref, w1f_ref, b1_ref,
                        w2_ref, b2_ref, w3_ref, b3_ref, out_ref,
                        *, tile_pts, nsample, c_out, ew_dtype):
    """SA shared 3-layer MLP + neighborhood max-pool (feature-bearing stages).

    Layer 1 = bf16 MXU dot on the wide feature operand (K = 128/256) plus a
    second bf16 MXU dot on the 8-channel zero-padded xyz operand (K = 8), both
    accumulated in f32.  Bias / ReLU / max-pool run in `ew_dtype`."""
    h = jnp.dot(gfeat_ref[...], w1f_ref[...], preferred_element_type=jnp.float32)
    h = h + jnp.dot(gxyz_ref[...], w1x_ref[...], preferred_element_type=jnp.float32)
    h = jnp.maximum(h.astype(ew_dtype) + b1_ref[...].astype(ew_dtype), 0)
    h = jnp.dot(h.astype(jnp.bfloat16), w2_ref[...], preferred_element_type=jnp.float32)
    h = jnp.maximum(h.astype(ew_dtype) + b2_ref[...].astype(ew_dtype), 0)
    h = jnp.dot(h.astype(jnp.bfloat16), w3_ref[...], preferred_element_type=jnp.float32)
    h = jnp.maximum(h.astype(ew_dtype) + b3_ref[...].astype(ew_dtype), 0)
    # max-pool over the nsample neighbors (nsample is a multiple of 8)
    pooled = jnp.max(h.reshape(tile_pts, nsample, c_out), axis=1)
    out_ref[...] = pooled.astype(out_ref.dtype)


def _sa_mlp_pool_xyz_kernel(gxyz_ref, w1x_ref, b1_ref, w2_ref, b2_ref,
                            w3_ref, b3_ref, out_ref,
                            *, tile_pts, nsample, c_out, ew_dtype):
    """SA MLP + pool for sa1 (input = xyz only): layer 1 is a single K=8 MXU dot."""
    h = jnp.dot(gxyz_ref[...], w1x_ref[...], preferred_element_type=jnp.float32)
    h = jnp.maximum(h.astype(ew_dtype) + b1_ref[...].astype(ew_dtype), 0)
    h = jnp.dot(h.astype(jnp.bfloat16), w2_ref[...], preferred_element_type=jnp.float32)
    h = jnp.maximum(h.astype(ew_dtype) + b2_ref[...].astype(ew_dtype), 0)
    h = jnp.dot(h.astype(jnp.bfloat16), w3_ref[...], preferred_element_type=jnp.float32)
    h = jnp.maximum(h.astype(ew_dtype) + b3_ref[...].astype(ew_dtype), 0)
    pooled = jnp.max(h.reshape(tile_pts, nsample, c_out), axis=1)
    out_ref[...] = pooled.astype(out_ref.dtype)


def _fp_mlp_kernel(a_ref, b_ref, w1a_ref, w1b_ref, b1_ref, w2_ref, b2_ref, out_ref,
                   *, ew_dtype):
    """FP 2-layer per-point MLP; the (interp, skip) concat is two aligned dots."""
    h = jnp.dot(a_ref[...], w1a_ref[...], preferred_element_type=jnp.float32)
    h = h + jnp.dot(b_ref[...], w1b_ref[...], preferred_element_type=jnp.float32)
    h = jnp.maximum(h.astype(ew_dtype) + b1_ref[...].astype(ew_dtype), 0)
    h = jnp.dot(h.astype(jnp.bfloat16), w2_ref[...], preferred_element_type=jnp.float32)
    h = jnp.maximum(h.astype(ew_dtype) + b2_ref[...].astype(ew_dtype), 0)
    out_ref[...] = h.astype(out_ref.dtype)


# ----------------------------- kernel wrappers ------------------------------------

def sa_mlp_maxpool(grouped_xyz, grouped_feat, p, *, nsample):
    """grouped_xyz: (M, ns, 3) f32; grouped_feat: (M, ns, Cf) bf16 or None -> (M, Cout) bf16."""
    M = grouped_xyz.shape[0]
    ns = nsample
    c1, c2 = p["w2"].shape
    c3 = p["w3"].shape[1]

    tile_pts = _choose_tile_pts(M, ns)
    Mp = _round_up(M, tile_pts)
    rows = tile_pts * ns
    num_steps = pl.cdiv(Mp, tile_pts)
    grid = (num_steps,)

    # zero-pad tail query points and the xyz channels 3 -> 8, cast to bf16 (MXU operand)
    gx = grouped_xyz.reshape(M * ns, 3)
    gx = jnp.pad(gx, ((0, (Mp - M) * ns), (0, 5))).astype(jnp.bfloat16)

    comp = _compiler_params()
    out_shape = jax.ShapeDtypeStruct((Mp, c3), jnp.bfloat16)
    out_spec = pl.BlockSpec((tile_pts, c3), lambda i: (i, 0))
    kern_kw = dict(tile_pts=tile_pts, nsample=ns, c_out=c3, ew_dtype=_EW_DTYPE)

    if grouped_feat is None:
        kern = functools.partial(_sa_mlp_pool_xyz_kernel, **kern_kw)
        out = pl.pallas_call(
            kern,
            out_shape=out_shape,
            grid=grid,
            in_specs=[
                pl.BlockSpec((rows, 8), lambda i: (i, 0)),
                pl.BlockSpec((8, c1), lambda i: (0, 0)),
                pl.BlockSpec((1, c1), lambda i: (0, 0)),
                pl.BlockSpec((c1, c2), lambda i: (0, 0)),
                pl.BlockSpec((1, c2), lambda i: (0, 0)),
                pl.BlockSpec((c2, c3), lambda i: (0, 0)),
                pl.BlockSpec((1, c3), lambda i: (0, 0)),
            ],
            out_specs=out_spec,
            compiler_params=comp,
        )(gx, p["w1x"], p["b1"], p["w2"], p["b2"], p["w3"], p["b3"])
    else:
        cf = grouped_feat.shape[-1]
        gf = grouped_feat.reshape(M * ns, cf)
        if Mp != M:
            gf = jnp.pad(gf, ((0, (Mp - M) * ns), (0, 0)))
        kern = functools.partial(_sa_mlp_pool_kernel, **kern_kw)
        out = pl.pallas_call(
            kern,
            out_shape=out_shape,
            grid=grid,
            in_specs=[
                pl.BlockSpec((rows, 8), lambda i: (i, 0)),
                _gf_block_spec(rows, cf, num_steps),
                pl.BlockSpec((8, c1), lambda i: (0, 0)),
                pl.BlockSpec((cf, c1), lambda i: (0, 0)),
                pl.BlockSpec((1, c1), lambda i: (0, 0)),
                pl.BlockSpec((c1, c2), lambda i: (0, 0)),
                pl.BlockSpec((1, c2), lambda i: (0, 0)),
                pl.BlockSpec((c2, c3), lambda i: (0, 0)),
                pl.BlockSpec((1, c3), lambda i: (0, 0)),
            ],
            out_specs=out_spec,
            compiler_params=comp,
        )(gx, gf, p["w1x"], p["w1f"], p["b1"], p["w2"], p["b2"], p["w3"], p["b3"])
    return out[:M]


def fp_mlp(a, b, p, *, out_dtype):
    """a: (R, Ca) bf16 interpolated feats, b: (R, Cb) bf16 skip feats -> (R, Cout)."""
    R, ca = a.shape
    cb = b.shape[1]
    c1, c2 = p["w2"].shape
    tile_rows = _choose_tile_rows(R)
    Rp = _round_up(R, tile_rows)
    if Rp != R:
        a = jnp.pad(a, ((0, Rp - R), (0, 0)))
        b = jnp.pad(b, ((0, Rp - R), (0, 0)))

    kern = functools.partial(_fp_mlp_kernel, ew_dtype=_EW_DTYPE)
    out = pl.pallas_call(
        kern,
        out_shape=jax.ShapeDtypeStruct((Rp, c2), out_dtype),
        grid=(pl.cdiv(Rp, tile_rows),),
        in_specs=[
            pl.BlockSpec((tile_rows, ca), lambda i: (i, 0)),
            pl.BlockSpec((tile_rows, cb), lambda i: (i, 0)),
            pl.BlockSpec((ca, c1), lambda i: (0, 0)),
            pl.BlockSpec((cb, c1), lambda i: (0, 0)),
            pl.BlockSpec((1, c1), lambda i: (0, 0)),
            pl.BlockSpec((c1, c2), lambda i: (0, 0)),
            pl.BlockSpec((1, c2), lambda i: (0, 0)),
        ],
        out_specs=pl.BlockSpec((tile_rows, c2), lambda i: (i, 0)),
        compiler_params=_compiler_params(),
    )(a, b, p["w1a"], p["w1b"], p["b1"], p["w2"], p["b2"])
    return out[:R]


# ------------------------------- JAX glue ------------------------------------------

def gather_points(points, idx):
    """points (B, N, C), idx (B, ...) int -> (B, ..., C)."""
    B, _, C = points.shape
    flat = idx.reshape(B, -1)
    out = jnp.take_along_axis(points, flat[..., None], axis=1)
    return out.reshape(idx.shape + (C,))


def furthest_point_sample(xyz, npoint):
    """Deterministic FPS starting from index 0 (matches the CUDA kernel)."""
    B, N, _ = xyz.shape
    inds = jnp.zeros((B, npoint), jnp.int32)
    dist = jnp.full((B, N), 1e10, jnp.float32)
    farthest = jnp.zeros((B,), jnp.int32)

    def body(i, carry):
        dist, inds, farthest = carry
        inds = inds.at[:, i].set(farthest)
        centroid = gather_points(xyz, farthest[:, None])[:, 0]      # (B, 3)
        d = jnp.sum((xyz - centroid[:, None, :]) ** 2, axis=-1)
        dist = jnp.minimum(dist, d)
        farthest = jnp.argmax(dist, axis=-1).astype(jnp.int32)
        return dist, inds, farthest

    _, inds, _ = jax.lax.fori_loop(0, npoint, body, (dist, inds, farthest))
    return inds


def ball_query(radius, nsample, xyz, new_xyz):
    """First `nsample` points within `radius` of each query (padded with first hit)."""
    B, N, _ = xyz.shape
    d2 = jnp.sum((new_xyz[:, :, None, :] - xyz[:, None, :, :]) ** 2, axis=-1)   # (B,S,N)
    in_ball = d2 < radius * radius
    key = jnp.where(in_ball, jnp.arange(N, dtype=jnp.int32)[None, None, :], jnp.int32(N))
    # top_k over -key == smallest nsample keys (avoids a full sort over N)
    ordered = -jax.lax.top_k(-key, nsample)[0]                                   # (B,S,ns)
    first = ordered[..., :1]
    first = jnp.where(first >= N, 0, first)
    return jnp.where(ordered >= N, first, ordered)                               # (B,S,ns)


def sa_module(xyz, features, params, *, npoint, radius, nsample):
    """PointnetSAModuleVotes: FPS -> ball-query grouping -> shared MLP -> pooling."""
    B = xyz.shape[0]
    fps_inds = furthest_point_sample(xyz, npoint)                   # (B, npoint)
    new_xyz = gather_points(xyz, fps_inds)                          # (B, npoint, 3)
    idx = ball_query(radius, nsample, xyz, new_xyz)                 # (B, npoint, ns)
    grouped_xyz = (gather_points(xyz, idx) - new_xyz[:, :, None, :]) / radius  # normalize_xyz
    M = B * npoint
    gx = grouped_xyz.reshape(M, nsample, 3)
    gf = None
    if features is not None:
        # TODO(synk): move this gather into the SA kernel via PrefetchScalarGridSpec
        # (idx in SMEM + resident feature table) to avoid the nsample-fold HBM blowup.
        gf = gather_points(features, idx).reshape(M, nsample, -1).astype(jnp.bfloat16)
    # TODO(synk): exact 'pointconv' weighted pooling (WeightNet + density) source not
    # available in the reference module; using max pooling over the neighborhood.
    pooled = sa_mlp_maxpool(gx, gf, params, nsample=nsample)        # (M, Cout) bf16
    return new_xyz, pooled.reshape(B, npoint, -1), fps_inds


def three_interpolate(unknown_xyz, known_xyz, known_feats):
    d2 = jnp.sum((unknown_xyz[:, :, None, :] - known_xyz[:, None, :, :]) ** 2, axis=-1)
    neg_d2, idx = jax.lax.top_k(-d2, 3)                             # (B,n,3)
    dist_recip = 1.0 / (-neg_d2 + 1e-8)
    weight = dist_recip / jnp.sum(dist_recip, axis=-1, keepdims=True)
    neighb = gather_points(known_feats, idx)                        # (B,n,3,C)
    return jnp.sum(weight[..., None] * neighb.astype(jnp.float32), axis=2)       # (B,n,C)


def fp_module(unknown_xyz, known_xyz, unknown_feats, known_feats, params, *, out_dtype):
    # TODO(synk): PointconvFPModule's radius/nsample grouped propagation source not
    # available; using standard 3-NN inverse-distance interpolation + shared MLP.
    interp = three_interpolate(unknown_xyz, known_xyz, known_feats)          # (B,n,Ck) f32
    B, n, ck = interp.shape
    cu = unknown_feats.shape[-1]
    a = interp.reshape(B * n, ck).astype(jnp.bfloat16)
    b = unknown_feats.reshape(B * n, cu).astype(jnp.bfloat16)
    out = fp_mlp(a, b, params, out_dtype=out_dtype)
    return out.reshape(B, n, -1)


# ------------------------- deterministic parameters --------------------------------

def init_sa_params(key, c_feat, dims):
    """3-layer SA MLP; first-layer weight split into xyz (padded to 8 rows, bf16)
    + feature part (bf16).  BatchNorm represented by a fused bias only."""
    c1, c2, c3 = dims
    k = jax.random.split(key, 7)
    fan1 = float(c_feat + 3)
    w1x = jax.random.normal(k[0], (3, c1), jnp.float32) / jnp.sqrt(fan1)
    w1x = jnp.pad(w1x, ((0, 5), (0, 0))).astype(jnp.bfloat16)       # (8, c1), rows 3..7 zero
    w1f = None
    if c_feat > 0:
        w1f = (jax.random.normal(k[1], (c_feat, c1), jnp.float32)
               / jnp.sqrt(fan1)).astype(jnp.bfloat16)
    b1 = jax.random.normal(k[2], (1, c1), jnp.float32) * 0.01       # fused BN beta
    w2 = (jax.random.normal(k[3], (c1, c2), jnp.float32) / jnp.sqrt(float(c1))).astype(jnp.bfloat16)
    b2 = jax.random.normal(k[4], (1, c2), jnp.float32) * 0.01
    w3 = (jax.random.normal(k[5], (c2, c3), jnp.float32) / jnp.sqrt(float(c2))).astype(jnp.bfloat16)
    b3 = jax.random.normal(k[6], (1, c3), jnp.float32) * 0.01
    return dict(w1x=w1x, w1f=w1f, b1=b1, w2=w2, b2=b2, w3=w3, b3=b3)


def init_fp_params(key, c_interp, c_skip, dims):
    """2-layer FP MLP; first-layer weight split into interp / skip halves (both bf16)."""
    c1, c2 = dims
    k = jax.random.split(key, 5)
    fan1 = float(c_interp + c_skip)
    w1a = (jax.random.normal(k[0], (c_interp, c1), jnp.float32) / jnp.sqrt(fan1)).astype(jnp.bfloat16)
    w1b = (jax.random.normal(k[1], (c_skip, c1), jnp.float32) / jnp.sqrt(fan1)).astype(jnp.bfloat16)
    b1 = jax.random.normal(k[2], (1, c1), jnp.float32) * 0.01
    w2 = (jax.random.normal(k[3], (c1, c2), jnp.float32) / jnp.sqrt(float(c1))).astype(jnp.bfloat16)
    b2 = jax.random.normal(k[4], (1, c2), jnp.float32) * 0.01
    return dict(w1a=w1a, w1b=w1b, b1=b1, w2=w2, b2=b2)


# ------------------------------- Backbone -------------------------------------------

class PointconvBackbonePallas:
    """Scaled-down point counts, original channel widths from the PyTorch module."""

    def __init__(self, key, input_feature_dim=0,
                 sa_npoints=(128, 64, 32, 16),
                 sa_nsamples=(16, 16, 8, 8),
                 sa_radii=(0.2, 0.4, 0.8, 1.2)):
        self.sa_npoints = sa_npoints
        self.sa_nsamples = sa_nsamples
        self.sa_radii = sa_radii
        k = jax.random.split(key, 6)
        # use_xyz=True => first layer consumes the 3 xyz channels via the split w1x part.
        self.sa1_p = init_sa_params(k[0], input_feature_dim, [64, 64, 128])
        self.sa2_p = init_sa_params(k[1], 128, [128, 128, 256])
        self.sa3_p = init_sa_params(k[2], 256, [128, 128, 256])
        self.sa4_p = init_sa_params(k[3], 256, [128, 128, 256])
        self.fp1_p = init_fp_params(k[4], 256, 256, [256, 256])
        self.fp2_p = init_fp_params(k[5], 256, 256, [256, 256])

    def _break_up_pc(self, pc):
        xyz = pc[..., 0:3]
        features = pc[..., 3:] if pc.shape[-1] > 3 else None   # channels-last (B, N, C)
        return xyz, features

    def __call__(self, pointcloud):
        end_points = {}
        xyz, features = self._break_up_pc(pointcloud)

        sa_params = (self.sa1_p, self.sa2_p, self.sa3_p, self.sa4_p)
        names = ("sa1", "sa2", "sa3", "sa4")
        for name, params, npnt, ns, rad in zip(names, sa_params, self.sa_npoints,
                                               self.sa_nsamples, self.sa_radii):
            xyz, features, fps_inds = sa_module(xyz, features, params,
                                                npoint=npnt, radius=rad, nsample=ns)
            if name == "sa1":
                end_points["sa1_inds"] = fps_inds
            end_points[name + "_xyz"] = xyz
            end_points[name + "_features"] = features

        # fp1 feeds fp2 -> emit bf16; fp2 is the module output -> emit f32.
        features = fp_module(end_points["sa3_xyz"], end_points["sa4_xyz"],
                             end_points["sa3_features"], end_points["sa4_features"],
                             self.fp1_p, out_dtype=jnp.bfloat16)
        features = fp_module(end_points["sa2_xyz"], end_points["sa3_xyz"],
                             end_points["sa2_features"], features,
                             self.fp2_p, out_dtype=jnp.float32)
        end_points["fp2_features"] = features
        end_points["fp2_xyz"] = end_points["sa2_xyz"]
        num_seed = end_points["fp2_xyz"].shape[1]
        end_points["fp2_inds"] = end_points["sa1_inds"][:, 0:num_seed]
        return end_points


# --------------------------------- main ---------------------------------------------

if __name__ == "__main__":
    key = jax.random.PRNGKey(0)
    kparams, kdata = jax.random.split(key)

    B, N, input_feature_dim = 2, 256, 0
    pointcloud = jax.random.uniform(kdata, (B, N, 3 + input_feature_dim), jnp.float32)

    model = PointconvBackbonePallas(kparams, input_feature_dim=input_feature_dim)
    end_points = model(pointcloud)

    jax.block_until_ready(end_points["fp2_features"])

    assert end_points["sa1_xyz"].shape == (B, 128, 3)
    assert end_points["sa1_features"].shape == (B, 128, 128)
    assert end_points["sa4_features"].shape == (B, 16, 256)
    assert end_points["fp2_xyz"].shape == (B, 64, 3)
    assert end_points["fp2_features"].shape == (B, 64, 256)
    assert end_points["fp2_inds"].shape == (B, 64)

    print("KERNEL_OK")
</pallas_src>

<mosaic_0001>
module attributes {stable_mosaic.version = 11 : i64} {
  func.func @_sa_mlp_pool_xyz_kernel(%arg0: i32, %arg1: memref<2048x8xbf16, #tpu.memory_space<vmem>>, %arg2: memref<8x64xbf16, #tpu.memory_space<vmem>>, %arg3: memref<1x64xf32, #tpu.memory_space<vmem>>, %arg4: memref<64x64xbf16, #tpu.memory_space<vmem>>, %arg5: memref<1x64xf32, #tpu.memory_space<vmem>>, %arg6: memref<64x128xbf16, #tpu.memory_space<vmem>>, %arg7: memref<1x128xf32, #tpu.memory_space<vmem>>, %arg8: memref<128x128xbf16, #tpu.memory_space<vmem>>) attributes {dimension_semantics = [#tpu.dimension_semantics<parallel>], iteration_bounds = array<i64: 2>, scalar_prefetch = 0 : i64, scratch_operands = 0 : i64, tpu.core_type = #tpu.core_type<tc>, window_params = [{transform_indices = @transform_0, window_bounds = array<i64: 2048, 8>}, {pipeline_mode = #tpu.pipeline_mode<synchronous>, transform_indices = @transform_1, window_bounds = array<i64: 8, 64>}, {pipeline_mode = #tpu.pipeline_mode<synchronous>, transform_indices = @transform_2, window_bounds = array<i64: 1, 64>}, {pipeline_mode = #tpu.pipeline_mode<synchronous>, transform_indices = @transform_3, window_bounds = array<i64: 64, 64>}, {pipeline_mode = #tpu.pipeline_mode<synchronous>, transform_indices = @transform_4, window_bounds = array<i64: 1, 64>}, {pipeline_mode = #tpu.pipeline_mode<synchronous>, transform_indices = @transform_5, window_bounds = array<i64: 64, 128>}, {pipeline_mode = #tpu.pipeline_mode<synchronous>, transform_indices = @transform_6, window_bounds = array<i64: 1, 128>}, {transform_indices = @transform_7, window_bounds = array<i64: 128, 128>}]} {
    %c0 = arith.constant 0 : index
    %c0_0 = arith.constant 0 : index
    %0 = vector.load %arg1[%c0, %c0_0] : memref<2048x8xbf16, #tpu.memory_space<vmem>>, vector<2048x8xbf16>
    %c0_1 = arith.constant 0 : index
    %c0_2 = arith.constant 0 : index
    %1 = vector.load %arg2[%c0_1, %c0_2] : memref<8x64xbf16, #tpu.memory_space<vmem>>, vector<8x64xbf16>
    %cst = arith.constant dense<0.000000e+00> : vector<2048x64xf32>
    %2 = tpu.matmul %0, %1, %cst {dimension_numbers = #tpu.dot_dimension_numbers<[1], [0], [0], [1], [0, 0, 1, 1], [], []>} : vector<2048x8xbf16>, vector<8x64xbf16>, vector<2048x64xf32> -> vector<2048x64xf32>
    %c0_3 = arith.constant 0 : index
    %c0_4 = arith.constant 0 : index
    %3 = vector.load %arg3[%c0_3, %c0_4] : memref<1x64xf32, #tpu.memory_space<vmem>>, vector<1x64xf32>
    %4 = vector.broadcast %3 : vector<1x64xf32> to vector<2048x64xf32>
    %5 = arith.addf %2, %4 : vector<2048x64xf32>
    %cst_5 = arith.constant 0.000000e+00 : f32
    %6 = vector.broadcast %cst_5 : f32 to vector<2048x64xf32>
    %7 = arith.maximumf %5, %6 : vector<2048x64xf32>
    %8 = arith.truncf %7 : vector<2048x64xf32> to vector<2048x64xbf16>
    %c0_6 = arith.constant 0 : index
    %c0_7 = arith.constant 0 : index
    %9 = vector.load %arg4[%c0_6, %c0_7] : memref<64x64xbf16, #tpu.memory_space<vmem>>, vector<64x64xbf16>
    %cst_8 = arith.constant dense<0.000000e+00> : vector<2048x64xf32>
    %10 = tpu.matmul %8, %9, %cst_8 {dimension_numbers = #tpu.dot_dimension_numbers<[1], [0], [0], [1], [0, 0, 1, 1], [], []>} : vector<2048x64xbf16>, vector<64x64xbf16>, vector<2048x64xf32> -> vector<2048x64xf32>
    %c0_9 = arith.constant 0 : index
    %c0_10 = arith.constant 0 : index
    %11 = vector.load %arg5[%c0_9, %c0_10] : memref<1x64xf32, #tpu.memory_space<vmem>>, vector<1x64xf32>
    %12 = vector.broadcast %11 : vector<1x64xf32> to vector<2048x64xf32>
    %13 = arith.addf %10, %12 : vector<2048x64xf32>
    %cst_11 = arith.constant 0.000000e+00 : f32
    %14 = vector.broadcast %cst_11 : f32 to vector<2048x64xf32>
    %15 = arith.maximumf %13, %14 : vector<2048x64xf32>
    %16 = arith.truncf %15 : vector<2048x64xf32> to vector<2048x64xbf16>
    %c0_12 = arith.constant 0 : index
    %c0_13 = arith.constant 0 : index
    %17 = vector.load %arg6[%c0_12, %c0_13] : memref<64x128xbf16, #tpu.memory_space<vmem>>, vector<64x128xbf16>
    %cst_14 = arith.constant dense<0.000000e+00> : vector<2048x128xf32>
    %18 = tpu.matmul %16, %17, %cst_14 {dimension_numbers = #tpu.dot_dimension_numbers<[1], [0], [0], [1], [0, 0, 1, 1], [], []>} : vector<2048x64xbf16>, vector<64x128xbf16>, vector<2048x128xf32> -> vector<2048x128xf32>
    %c0_15 = arith.constant 0 : index
    %c0_16 = arith.constant 0 : index
    %19 = vector.load %arg7[%c0_15, %c0_16] : memref<1x128xf32, #tpu.memory_space<vmem>>, vector<1x128xf32>
    %20 = vector.broadcast %19 : vector<1x128xf32> to vector<2048x128xf32>
    %21 = arith.addf %18, %20 : vector<2048x128xf32>
    %cst_17 = arith.constant 0.000000e+00 : f32
    %22 = vector.broadcast %cst_17 : f32 to vector<2048x128xf32>
    %23 = arith.maximumf %21, %22 : vector<2048x128xf32>
    %24 = vector.shape_cast %23 : vector<2048x128xf32> to vector<128x16x128xf32>
    %cst_18 = arith.constant dense<0xFF800000> : vector<128x128xf32>
    %25 = vector.multi_reduction <maximumf>, %24, %cst_18 [1] : vector<128x16x128xf32> to vector<128x128xf32>
    %26 = arith.truncf %25 : vector<128x128xf32> to vector<128x128xbf16>
    %c0_19 = arith.constant 0 : index
    %c0_20 = arith.constant 0 : index
    %27 = vector.load %arg8[%c0_19, %c0_20] : memref<128x128xbf16, #tpu.memory_space<vmem>>, vector<128x128xbf16>
    tpu.vector_store %arg8[%c0_19, %c0_20], %26 {strides = array<i32>} : memref<128x128xbf16, #tpu.memory_space<vmem>>, vector<128x128xbf16>,
    return
  }
  func.func @transform_0(%arg0: i32) -> (i32, i32) {
    %c0_i32 = arith.constant 0 : i32
    %c0_i32_0 = arith.constant 0 : i32
    return %arg0, %c0_i32 : i32, i32
  }
  func.func @transform_1(%arg0: i32) -> (i32, i32) {
    %c0_i32 = arith.constant 0 : i32
    %c0_i32_0 = arith.constant 0 : i32
    %c0_i32_1 = arith.constant 0 : i32
    return %c0_i32, %c0_i32_0 : i32, i32
  }
  func.func @transform_2(%arg0: i32) -> (i32, i32) {
    %c0_i32 = arith.constant 0 : i32
    %c0_i32_0 = arith.constant 0 : i32
    %c0_i32_1 = arith.constant 0 : i32
    return %c0_i32, %c0_i32_0 : i32, i32
  }
  func.func @transform_3(%arg0: i32) -> (i32, i32) {
    %c0_i32 = arith.constant 0 : i32
    %c0_i32_0 = arith.constant 0 : i32
    %c0_i32_1 = arith.constant 0 : i32
    return %c0_i32, %c0_i32_0 : i32, i32
  }
  func.func @transform_4(%arg0: i32) -> (i32, i32) {
    %c0_i32 = arith.constant 0 : i32
    %c0_i32_0 = arith.constant 0 : i32
    %c0_i32_1 = arith.constant 0 : i32
    return %c0_i32, %c0_i32_0 : i32, i32
  }
  func.func @transform_5(%arg0: i32) -> (i32, i32) {
    %c0_i32 = arith.constant 0 : i32
    %c0_i32_0 = arith.constant 0 : i32
    %c0_i32_1 = arith.constant 0 : i32
    return %c0_i32, %c0_i32_0 : i32, i32
  }
  func.func @transform_6(%arg0: i32) -> (i32, i32) {
    %c0_i32 = arith.constant 0 : i32
    %c0_i32_0 = arith.constant 0 : i32
    %c0_i32_1 = arith.constant 0 : i32
    return %c0_i32, %c0_i32_0 : i32, i32
  }
  func.func @transform_7(%arg0: i32) -> (i32, i32) {
    %c0_i32 = arith.constant 0 : i32
    %c0_i32_0 = arith.constant 0 : i32
    return %arg0, %c0_i32 : i32, i32
  }
}

</mosaic_0001>

<bundles_post_ra>
// kernel: tpu_custom_call.1
= control target key start
LH: loop header
LB: loop body
LE: loop exit
PB: predicated region body
PF: predicated region fallthrough
CT: control target
= control target key end

     0   :  { %12 = vsyncpa [#allocation3], 0  ;;  %s10083_s0 = inlined_call_operand.vmem [shape: bf16[4096,8], index: 0, kind: input, shape index: {}]   ;;  %s10084_s1 = inlined_call_operand.vmem [shape: bf16[8,64], index: 1, kind: input, shape index: {}]   ;;  %s10085_s2 = inlined_call_operand.vmem [shape: f32[1,64], index: 2, kind: input, shape index: {}]   ;;  %s10086_s3 = inlined_call_operand.vmem [shape: bf16[64,64], index: 3, kind: input, shape index: {}]   ;;  %s10087_s4 = inlined_call_operand.vmem [shape: f32[1,64], index: 4, kind: input, shape index: {}]   ;;  %s10088_s5 = inlined_call_operand.vmem [shape: bf16[64,128], index: 5, kind: input, shape index: {}]   ;;  %s10089_s6 = inlined_call_operand.vmem [shape: f32[1,128], index: 6, kind: input, shape index: {}]   ;;  %s10090_s7 = inlined_call_operand.hbm [shape: bf16[256,128], index: 7, kind: output, shape index: {}]  }
   0x1   :  { %14 = vsyncpa [#allocation3 + $0x1], 0  ;;  %s8168_s24 = smov 0   ;;  %s8170_s25 = smov 0  }
   0x2   :  { %s8172_s26 = smov 0   ;;  %s8174_s27 = smov 0  }
   0x3 LB: > { %s8189_s28 = sadd.s32 4294967295, %s8124_s27   ;;  %s6908_s29 = sadd.s32 4294967294, %s8124_s27   ;;  %s8124_s27 = sphi %s8174_s27, %s10096_s27   ;;  %s8120_s26 = sphi %s8172_s26, %s10095_s26   ;;  %s8116_s25 = sphi %s8170_s25, %s10094_s25   ;;  %s8112_s24 = sphi %s8168_s24, %s10093_s24  }
   0x4   : > { %s8193_s30 = sadd.s32 1, %s8124_s27   ;;  %s179_s8 = sadd.s32 1, %s8120_s26 }
   0x5   : > { %s176_s9 = ssub.s32 %s8124_s27, %s8193_s30  ;;  %p189_p0 = scmp.ne.s32.totalorder %s8120_s26, %s8116_s25 }
   0x6   : > { %p177_p1 = scmp.eq.s32.totalorder %s176_s9, 0  ;;  %p190_p2 = scmp.eq.s32.totalorder %s8189_s28, 1 }
   0x7   : > { %p195_p3 = scmp.ne.s32.totalorder %s8116_s25, %s8112_s24  ;;  %p196_p4 = scmp.eq.s32.totalorder %s6908_s29, 1 }
   0x8   : > { %s8204_s10 = scalar_select %p177_p1, %s8120_s26, %s179_s8  }
   0x9   : > { %p8206_p5 = por %p190_p2, %p189_p0  ;;  %p8210_p6 = por %p196_p4, %p195_p3 }
   0xa   : > { %p6911_p7 = scmp.ge.s32.totalorder %s8124_s27, 1  ;;  %p241_p8 = scmp.lt.s32.totalorder %s8124_s27, 3 }
   0xc   : > { %p242_p9 = pnand %p6911_p7, %p241_p8 }
   0xd   : > { %s6913_s15 = sshll.u32 (!%p242_p9), %s8189_s28, 8  ;;  %s7984_s22 = sshll.u32 (!%p242_p9), %s8189_s28, 6 }
   0xe   : > { %245 = sbr.rel (%p242_p9) target bundleno = 2877 (0xb3d), region = 48  ;;  %p274_p10 = scmp.lt.s32.totalorder (!%p242_p9), %s6913_s15, 511 }
   0xf   : > { %s6842_s29 = scalar_lea.hbm (!%p242_p9), %s10090_s7, %s7984_s22 }
  0x10   : > { %s6845_s9 = sshll.u32 (!%p242_p9), %s6842_s29, 4  ;;  %s6846_s9 = int_to_ptr.hbm [resolvable:$true] %s6845_s9 }
  0x11   : > { %s8076_s13 = sshra.s32 (!%p242_p9), %s6846_s9, 4  ;;  %s8077_s13 = int_to_ptr.hbm [resolvable:$true] %s8076_s13 }
  0x12   : > { %s8078_s14 = scalar_lea.hbm (!%p242_p9), %s8077_s13, 64  ;;  %p8083_p0 = scmp.lt.s32.totalorder (!%p242_p9), %s8077_s13, %s10090_s7 }
  0x13   : > { %v537_v0 = vld [vmem:[%s10084_s1] sm:$0xf]  ;;  %vm1567_vm0 = vcmask 1043456   ;;  %s10098_s15 = smov (!%p274_p10, %s6913_s15), 511  ;;  %vm1182_vm1 = vcmask 64512   ;;  %v7979_v8 = vld [vmem:[%s10086_s3 + $0x18] sm:$0xff]  ;;  %p8079_p11 = scmp.ne.s32.totalorder %s8077_s13, %s8078_s14 }
  0x14   : > { %v1569_v1 = vsel %vm1567_vm0, %v537_v0, 0  ;;  %s6914_s16 = sshll.u32 %s10098_s15, 2  ;;  %3029 = vmatpush.bf16.msra.mxu1 %v7979_v8  ;;  %v7978_v10 = vld [vmem:[%s10086_s3 + $0x10] sm:$0xff]  ;;  %v7977_v11 = vld [vmem:[%s10086_s3 + $0x8] sm:$0xff]  ;;  %v7976_v12 = vld [vmem:[%s10086_s3] sm:$0xff]  ;;  %vm2640_vm2 = vcmask 523264  }
  0x15   : > { %1578 = vmatpush.bf16.msra.mxu0 %v1569_v1  ;;  %7985 = vmatpush.bf16.msra.mxu3 %v1569_v1  ;;  %s8223_s19 = scalar_lea.vmem %s10083_s0, %s6914_s16  ;;  %v8257_v16 = vld [vmem:[%s10085_s2] ss:$0 sm:$0xff]  ;;  %vm6663_vm3 = vcmask 1041409   ;;  %vm6665_vm4 = vcmask 1042434   ;;  %vm6667_vm5 = vcmask 1043459   ;;  %vm6669_vm6 = vcmask 1044484   ;;  %p8080_p12 = pnand %p8079_p11, %p8206_p5 }
  0x16   : > { %v7848_v2 = vld [vmem:[%s8223_s19] sm:$0xff]  ;;  %v7849_v3 = vld [vmem:[%s8223_s19 + $0x8] sm:$0xff]  ;;  %v7850_v4 = vld [vmem:[%s8223_s19 + $0x10] sm:$0xff]  ;;  %vm6671_vm7 = vcmask 1045509   ;;  %s270_s15 = sand.u32 1, %s8116_s25   ;;  %vm6673_vm8 = vcmask 1046534  }
  0x17   : > { %v7851_v5 = vld [vmem:[%s8223_s19 + $0x18] sm:$0xff]  ;;  %v7852_v6 = vld [vmem:[%s8223_s19 + $0x20] sm:$0xff]  ;;  %v7853_v7 = vld [vmem:[%s8223_s19 + $0x28] sm:$0xff]  ;;  %s6912_s18 = sshll.u32 %s270_s15, 6  ;;  %vm6675_vm9 = vcmask 1047559   ;;  %s6831_s28 = scalar_lea.sflag [#allocation3], %s270_s15 }
  0x18   : > { %7427 = vmatmul.msk.bf16.vlgmr.msra.gmra.mxu0 %vm1182_vm1, %v7848_v2  ;;  %v7854_v9 = vld [vmem:[%s8223_s19 + $0x30] sm:$0xff]  ;;  %3030 = vmatpush.bf16.msra.mxu1 %v7978_v10  ;;  %v7855_v13 = vld [vmem:[%s8223_s19 + $0x38] sm:$0xff]  ;;  %v7856_v14 = vld [vmem:[%s8223_s19 + $0x40] sm:$0xff]  ;;  %s8506_s20 = scalar_lea.vmem [#allocation2], %s6912_s18  ;;  %p8081_p13 = pneg %p8080_p12 }
  0x19   : > { %7986 = vmatpush.bf16.msrb.mxu3 %v7979_v8  ;;  %v7857_v23 = vld [vmem:[%s8223_s19 + $0x48] sm:$0xff]  ;;  %v7858_v31 = vld [vmem:[%s8223_s19 + $0x50] sm:$0xff]  ;;  %v7859_v39 = vld [vmem:[%s8223_s19 + $0x58] sm:$0xff]  ;;  %s6843_s8 = sshll.u32 %s8506_s20, 4  ;;  %s8082_s18 = scalar_lea.hbm %s10090_s7, 128  ;;  %s6844_s8 = int_to_ptr.vmem [resolvable:$true] %s6843_s8 }
  0x1a   : > { %v7860_v47 = vld [vmem:[%s8223_s19 + $0x60] sm:$0xff]  ;;  %v7861_v55 = vld [vmem:[%s8223_s19 + $0x68] sm:$0xff]  ;;  %v7862_v63 = vld [vmem:[%s8223_s19 + $0x70] sm:$0xff]  ;;  %p8084_p1 = scmp.lt.s32.totalorder %s8082_s18, %s8078_s14 }
  0x1b   : > { %v7982_v8 = vld [vmem:[%s10088_s5 + $0x10] sm:$0xff] }
  0x1c   : > { %3031 = vmatpush.bf16.msra.mxu1 %v7977_v11  ;;  %p8085_p2 = por %p8084_p1, %p8083_p0 }
  0x1d   : > { %7987 = vmatpush.bf16.msrb.mxu3 %v7978_v10 }
  0x1e   : > { %p8086_p3 = pnand %p8085_p2, %p8081_p13 }
  0x20   : > { %3032 = vmatpush.bf16.msra.mxu1 %v7976_v12 }
  0x21   : > { %7988 = vmatpush.bf16.msrb.mxu3 %v7977_v11  ;;  %v7981_v11 = vld [vmem:[%s10088_s5 + $0x8] sm:$0xff] }
  0x25   : > { %7989 = vmatpush.bf16.msrb.mxu3 %v7976_v12  ;;  %v7980_v12 = vld [vmem:[%s10088_s5] sm:$0xff] }
  0x28   : > { %7428 = vmatmul.msk.bf16.gmra.mxu0 %vm1182_vm1, %v7849_v3 }
  0x38   : > { %7429 = vmatmul.msk.bf16.gmra.mxu0 %vm1182_vm1, %v7850_v4  ;;  %v7983_v4 = vld [vmem:[%s10088_s5 + $0x18] sm:$0xff] }
  0x39   : > { %4482 = vmatpush.bf16.msra.mxu2 %v7983_v4 }
  0x3d   : > { %4483 = vmatpush.bf16.msra.mxu2 %v7982_v8 }
  0x41   : > { %4484 = vmatpush.bf16.msra.mxu2 %v7981_v11  ;;  %v7868_v11 = vld [vmem:[%s8223_s19 + $0xa0] sm:$0xff] }
  0x45   : > { %4485 = vmatpush.bf16.msra.mxu2 %v7980_v12 }
  0x48   : > { %7430 = vmatmul.msk.bf16.gmra.mxu0 %vm1182_vm1, %v7851_v5 }
  0x58   : > { %7431 = vmatmul.msk.bf16.gmra.mxu0 %vm1182_vm1, %v7852_v6 }
  0x68   : > { %7432 = vmatmul.msk.bf16.gmra.mxu0 %vm1182_vm1, %v7853_v7 }
  0x78   : > { %7433 = vmatmul.msk.bf16.gmra.mxu0 %vm1182_vm1, %v7854_v9  ;;  %v7863_v9 = vld [vmem:[%s8223_s19 + $0x78] sm:$0xff] }
  0x88   : > { %7434 = vmatmul.msk.bf16.gmra.mxu0 %vm1182_vm1, %v7855_v13 }
  0x95   : > { %v1580_v15 = vpop.f32.mrf.mxu0 }
  0x96   : > { %v1581_v17 = vadd.f32 %v8257_v16, %v1580_v15 }
  0x98   : > { %7435 = vmatmul.msk.bf16.gmra.mxu0 %vm1182_vm1, %v7856_v14  ;;  %v2220_v20 = vmax.f32 %v1581_v17, 0.0 }
  0x9d   : > { %v1582_v18 = vpop.f32.mrf.mxu0 }
  0x9e   : > { %v1583_v19 = vadd.f32 %v8257_v16, %v1582_v18 }
  0xa0   : > { %v2221_v21 = vmax.f32 %v1583_v19, 0.0 }
  0xa2   : > { %v2476_v22 = vpack.c.bf16 %v2221_v21, %v2220_v20  ;;  %v7864_v20 = vld [vmem:[%s8223_s19 + $0x80] sm:$0xff] }
  0xa4   : > { %7571 = vmatmul.msk.bf16.vlgmr.msra.gmra.mxu1 %vm2640_vm2, %v2476_v22 }
  0xa5   : > { %v1585_v24 = vpop.f32.mrf.mxu0 }
  0xa6   : > { %v1586_v25 = vadd.f32 %v8257_v16, %v1585_v24 }
  0xa8   : > { %7436 = vmatmul.msk.bf16.gmra.mxu0 %vm1182_vm1, %v7857_v23  ;;  %v2222_v28 = vmax.f32 %v1586_v25, 0.0 }
  0xad   : > { %v1587_v26 = vpop.f32.mrf.mxu0 }
  0xae   : > { %v1588_v27 = vadd.f32 %v8257_v16, %v1587_v26 }
  0xb0   : > { %v2223_v29 = vmax.f32 %v1588_v27, 0.0 }
  0xb2   : > { %v2477_v30 = vpack.c.bf16 %v2223_v29, %v2222_v28  ;;  %v8317_v29 = vld [vmem:[%s10087_s4] ss:$0 sm:$0xff] }
  0xb4   : > { %7572 = vmatmul.msk.bf16.gmra.mxu1 %vm2640_vm2, %v2477_v30  ;;  %v7865_v30 = vld [vmem:[%s8223_s19 + $0x88] sm:$0xff] }
  0xb5   : > { %v1590_v32 = vpop.f32.mrf.mxu0 }
  0xb6   : > { %v1591_v33 = vadd.f32 %v8257_v16, %v1590_v32 }
  0xb8   : > { %7437 = vmatmul.msk.bf16.gmra.mxu0 %vm1182_vm1, %v7858_v31  ;;  %v2224_v36 = vmax.f32 %v1591_v33, 0.0 }
  0xbd   : > { %v1592_v34 = vpop.f32.mrf.mxu0 }
  0xbe   : > { %v1593_v35 = vadd.f32 %v8257_v16, %v1592_v34 }
  0xc0   : > { %v2225_v37 = vmax.f32 %v1593_v35, 0.0 }
  0xc2   : > { %v2478_v38 = vpack.c.bf16 %v2225_v37, %v2224_v36 }
  0xc4   : > { %7573 = vmatmul.msk.bf16.gmra.mxu1 %vm2640_vm2, %v2478_v38 }
  0xc5   : > { %v1595_v40 = vpop.f32.mrf.mxu0 }
  0xc6   : > { %v1596_v41 = vadd.f32 %v8257_v16, %v1595_v40 }
  0xc8   : > { %7438 = vmatmul.msk.bf16.gmra.mxu0 %vm1182_vm1, %v7859_v39  ;;  %v2226_v44 = vmax.f32 %v1596_v41, 0.0 }
  0xcd   : > { %v1597_v42 = vpop.f32.mrf.mxu0 }
  0xce   : > { %v1598_v43 = vadd.f32 %v8257_v16, %v1597_v42 }
  0xd0   : > { %v2227_v45 = vmax.f32 %v1598_v43, 0.0 }
  0xd2   : > { %v2479_v46 = vpack.c.bf16 %v2227_v45, %v2226_v44  ;;  %v7866_v45 = vld [vmem:[%s8223_s19 + $0x90] sm:$0xff] }
  0xd4   : > { %7574 = vmatmul.msk.bf16.gmra.mxu1 %vm2640_vm2, %v2479_v46 }
  0xd5   : > { %v1600_v48 = vpop.f32.mrf.mxu0 }
  0xd6   : > { %v1601_v49 = vadd.f32 %v8257_v16, %v1600_v48 }
  0xd8   : > { %7439 = vmatmul.msk.bf16.gmra.mxu0 %vm1182_vm1, %v7860_v47  ;;  %v2228_v52 = vmax.f32 %v1601_v49, 0.0 }
  0xdd   : > { %v1602_v50 = vpop.f32.mrf.mxu0 }
  0xde   : > { %v1603_v51 = vadd.f32 %v8257_v16, %v1602_v50 }
  0xe0   : > { %v2229_v53 = vmax.f32 %v1603_v51, 0.0 }
  0xe2   : > { %v2480_v54 = vpack.c.bf16 %v2229_v53, %v2228_v52 }
  0xe4   : > { %7575 = vmatmul.msk.bf16.gmra.mxu1 %vm2640_vm2, %v2480_v54 }
  0xe5   : > { %v1605_v56 = vpop.f32.mrf.mxu0 }
  0xe6   : > { %v1606_v57 = vadd.f32 %v8257_v16, %v1605_v56 }
  0xe8   : > { %7440 = vmatmul.msk.bf16.gmra.mxu0 %vm1182_vm1, %v7861_v55  ;;  %v2230_v60 = vmax.f32 %v1606_v57, 0.0 }
  0xed   : > { %v1607_v58 = vpop.f32.mrf.mxu0 }
  0xee   : > { %v1608_v59 = vadd.f32 %v8257_v16, %v1607_v58 }
  0xf0   : > { %v2231_v61 = vmax.f32 %v1608_v59, 0.0 }
  0xf2   : > { %v2481_v62 = vpack.c.bf16 %v2231_v61, %v2230_v60  ;;  %v7867_v60 = vld [vmem:[%s8223_s19 + $0x98] sm:$0xff] }
  0xf4   : > { %7576 = vmatmul.msk.bf16.gmra.mxu1 %vm2640_vm2, %v2481_v62 }
  0xf5   : > { %v1610_v0 = vpop.f32.mrf.mxu0 }
  0xf6   : > { %v1611_v1 = vadd.f32 %v8257_v16, %v1610_v0 }
  0xf8   : > { %7441 = vmatmul.msk.bf16.gmra.mxu0 %vm1182_vm1, %v7862_v63  ;;  %v2232_v5 = vmax.f32 %v1611_v1, 0.0 }
  0xfd   : > { %v1612_v2 = vpop.f32.mrf.mxu0 }
  0xfe   : > { %v1613_v3 = vadd.f32 %v8257_v16, %v1612_v2 }
 0x100   : > { %v2233_v6 = vmax.f32 %v1613_v3, 0.0 }
 0x102   : > { %v2482_v7 = vpack.c.bf16 %v2233_v6, %v2232_v5 }
 0x104   : > { %7577 = vmatmul.msk.bf16.gmra.mxu1 %vm2640_vm2, %v2482_v7 }
 0x105   : > { %v1615_v10 = vpop.f32.mrf.mxu0 }
 0x106   : > { %v1616_v13 = vadd.f32 %v8257_v16, %v1615_v10 }
 0x108   : > { %7442 = vmatmul.msk.bf16.gmra.mxu0 %vm1182_vm1, %v7863_v9  ;;  %v2234_v17 = vmax.f32 %v1616_v13, 0.0 }
 0x10d   : > { %v1617_v14 = vpop.f32.mrf.mxu0 }
 0x10e   : > { %v1618_v15 = vadd.f32 %v8257_v16, %v1617_v14 }
 0x110   : > { %v2235_v18 = vmax.f32 %v1618_v15, 0.0 }
 0x112   : > { %v2483_v19 = vpack.c.bf16 %v2235_v18, %v2234_v17 }
 0x114   : > { %7578 = vmatmul.msk.bf16.gmra.mxu1 %vm2640_vm2, %v2483_v19 }
 0x115   : > { %v1620_v21 = vpop.f32.mrf.mxu0 }
 0x116   : > { %v1621_v22 = vadd.f32 %v8257_v16, %v1620_v21 }
 0x118   : > { %7443 = vmatmul.msk.bf16.gmra.mxu0 %vm1182_vm1, %v7864_v20  ;;  %v2236_v25 = vmax.f32 %v1621_v22, 0.0 }
 0x11d   : > { %v1622_v23 = vpop.f32.mrf.mxu0 }
 0x11e   : > { %v1623_v24 = vadd.f32 %v8257_v16, %v1622_v23 }
 0x120   : > { %v2237_v26 = vmax.f32 %v1623_v24, 0.0 }
 0x121   : > { %v3034_v27 = vpop.f32.mrf.mxu1 }
 0x122   : > { %v2484_v28 = vpack.c.bf16 %v2237_v26, %v2236_v25  ;;  %v3035_v32 = vadd.f32 %v8317_v29, %v3034_v27  ;;  %v7869_v27 = vld [vmem:[%s8223_s19 + $0xa8] sm:$0xff] }
 0x124   : > { %7579 = vmatmul.msk.bf16.gmra.mxu1 %vm2640_vm2, %v2484_v28  ;;  %v3674_v35 = vmax.f32 %v3035_v32, 0.0 }
 0x125   : > { %v1625_v31 = vpop.f32.mrf.mxu0 }
 0x126   : > { %v1626_v36 = vadd.f32 %v8257_v16, %v1625_v31 }
 0x128   : > { %7444 = vmatmul.msk.bf16.gmra.mxu0 %vm1182_vm1, %v7865_v30  ;;  %v2238_v41 = vmax.f32 %v1626_v36, 0.0 }
 0x129   : > { %v3036_v33 = vpop.f32.mrf.mxu1 }
 0x12a   : > { %v3037_v34 = vadd.f32 %v8317_v29, %v3036_v33 }
 0x12c   : > { %v3675_v37 = vmax.f32 %v3037_v34, 0.0 }
 0x12d   : > { %v1627_v38 = vpop.f32.mrf.mxu0 }
 0x12e   : > { %v1628_v39 = vadd.f32 %v8257_v16, %v1627_v38  ;;  %v3930_v40 = vpack.c.bf16 %v3675_v37, %v3674_v35 }
 0x130   : > { %v2239_v42 = vmax.f32 %v1628_v39, 0.0  ;;  %7715 = vmatmul.msk.bf16.vlgmr.msra.gmra.mxu2 %vm2640_vm2, %v3930_v40 }
 0x131   : > { %v3039_v43 = vpop.f32.mrf.mxu1 }
 0x132   : > { %v2485_v44 = vpack.c.bf16 %v2239_v42, %v2238_v41  ;;  %v3040_v47 = vadd.f32 %v8317_v29, %v3039_v43  ;;  %v7870_v43 = vld [vmem:[%s8223_s19 + $0xb0] sm:$0xff] }
 0x134   : > { %7580 = vmatmul.msk.bf16.gmra.mxu1 %vm2640_vm2, %v2485_v44  ;;  %v3676_v50 = vmax.f32 %v3040_v47, 0.0 }
 0x135   : > { %v1630_v46 = vpop.f32.mrf.mxu0 }
 0x136   : > { %v1631_v51 = vadd.f32 %v8257_v16, %v1630_v46 }
 0x138   : > { %7445 = vmatmul.msk.bf16.gmra.mxu0 %vm1182_vm1, %v7866_v45  ;;  %v2240_v56 = vmax.f32 %v1631_v51, 0.0 }
 0x139   : > { %v3041_v48 = vpop.f32.mrf.mxu1 }
 0x13a   : > { %v3042_v49 = vadd.f32 %v8317_v29, %v3041_v48 }
 0x13c   : > { %v3677_v52 = vmax.f32 %v3042_v49, 0.0 }
 0x13d   : > { %v1632_v53 = vpop.f32.mrf.mxu0 }
 0x13e   : > { %v1633_v54 = vadd.f32 %v8257_v16, %v1632_v53  ;;  %v3931_v55 = vpack.c.bf16 %v3677_v52, %v3676_v50 }
 0x140   : > { %v2241_v57 = vmax.f32 %v1633_v54, 0.0  ;;  %7716 = vmatmul.msk.bf16.gmra.mxu2 %vm2640_vm2, %v3931_v55 }
 0x141   : > { %v3044_v58 = vpop.f32.mrf.mxu1 }
 0x142   : > { %v2486_v59 = vpack.c.bf16 %v2241_v57, %v2240_v56  ;;  %v3045_v62 = vadd.f32 %v8317_v29, %v3044_v58  ;;  %v7871_v58 = vld [vmem:[%s8223_s19 + $0xb8] sm:$0xff] }
 0x144   : > { %7581 = vmatmul.msk.bf16.gmra.mxu1 %vm2640_vm2, %v2486_v59  ;;  %v3678_v1 = vmax.f32 %v3045_v62, 0.0 }
 0x145   : > { %v1635_v61 = vpop.f32.mrf.mxu0 }
 0x146   : > { %v1636_v2 = vadd.f32 %v8257_v16, %v1635_v61 }
 0x148   : > { %7446 = vmatmul.msk.bf16.gmra.mxu0 %vm1182_vm1, %v7867_v60  ;;  %v2242_v7 = vmax.f32 %v1636_v2, 0.0 }
 0x149   : > { %v3046_v63 = vpop.f32.mrf.mxu1 }
 0x14a   : > { %v3047_v0 = vadd.f32 %v8317_v29, %v3046_v63 }
 0x14c   : > { %v3679_v3 = vmax.f32 %v3047_v0, 0.0 }
 0x14d   : > { %v1637_v4 = vpop.f32.mrf.mxu0 }
 0x14e   : > { %v1638_v5 = vadd.f32 %v8257_v16, %v1637_v4  ;;  %v3932_v6 = vpack.c.bf16 %v3679_v3, %v3678_v1 }
 0x150   : > { %v2243_v8 = vmax.f32 %v1638_v5, 0.0  ;;  %7717 = vmatmul.msk.bf16.gmra.mxu2 %vm2640_vm2, %v3932_v6 }
 0x151   : > { %v3049_v9 = vpop.f32.mrf.mxu1 }
 0x152   : > { %v2487_v10 = vpack.c.bf16 %v2243_v8, %v2242_v7  ;;  %v3050_v13 = vadd.f32 %v8317_v29, %v3049_v9  ;;  %v7872_v9 = vld [vmem:[%s8223_s19 + $0xc0] sm:$0xff] }
 0x154   : > { %7582 = vmatmul.msk.bf16.gmra.mxu1 %vm2640_vm2, %v2487_v10  ;;  %v3680_v17 = vmax.f32 %v3050_v13, 0.0 }
 0x155   : > { %v1640_v12 = vpop.f32.mrf.mxu0 }
 0x156   : > { %v1641_v18 = vadd.f32 %v8257_v16, %v1640_v12 }
 0x158   : > { %7447 = vmatmul.msk.bf16.gmra.mxu0 %vm1182_vm1, %v7868_v11  ;;  %v2244_v23 = vmax.f32 %v1641_v18, 0.0 }
 0x159   : > { %v3051_v14 = vpop.f32.mrf.mxu1 }
 0x15a   : > { %v3052_v15 = vadd.f32 %v8317_v29, %v3051_v14 }
 0x15c   : > { %v3681_v19 = vmax.f32 %v3052_v15, 0.0 }
 0x15d   : > { %v1642_v20 = vpop.f32.mrf.mxu0 }
 0x15e   : > { %v1643_v21 = vadd.f32 %v8257_v16, %v1642_v20  ;;  %v3933_v22 = vpack.c.bf16 %v3681_v19, %v3680_v17 }
 0x160   : > { %v2245_v24 = vmax.f32 %v1643_v21, 0.0  ;;  %7718 = vmatmul.msk.bf16.gmra.mxu2 %vm2640_vm2, %v3933_v22 }
 0x161   : > { %v3054_v25 = vpop.f32.mrf.mxu1 }
 0x162   : > { %v2488_v26 = vpack.c.bf16 %v2245_v24, %v2244_v23  ;;  %v3055_v30 = vadd.f32 %v8317_v29, %v3054_v25  ;;  %v7873_v25 = vld [vmem:[%s8223_s19 + $0xc8] sm:$0xff] }
 0x164   : > { %7583 = vmatmul.msk.bf16.gmra.mxu1 %vm2640_vm2, %v2488_v26  ;;  %v3682_v33 = vmax.f32 %v3055_v30, 0.0 }
 0x165   : > { %v1645_v28 = vpop.f32.mrf.mxu0 }
 0x166   : > { %v1646_v34 = vadd.f32 %v8257_v16, %v1645_v28 }
 0x168   : > { %7448 = vmatmul.msk.bf16.gmra.mxu0 %vm1182_vm1, %v7869_v27  ;;  %v2246_v39 = vmax.f32 %v1646_v34, 0.0 }
 0x169   : > { %v3056_v31 = vpop.f32.mrf.mxu1 }
 0x16a   : > { %v3057_v32 = vadd.f32 %v8317_v29, %v3056_v31 }
 0x16c   : > { %v3683_v35 = vmax.f32 %v3057_v32, 0.0 }
 0x16d   : > { %v1647_v36 = vpop.f32.mrf.mxu0 }
 0x16e   : > { %v1648_v37 = vadd.f32 %v8257_v16, %v1647_v36  ;;  %v3934_v38 = vpack.c.bf16 %v3683_v35, %v3682_v33 }
 0x170   : > { %v2247_v40 = vmax.f32 %v1648_v37, 0.0  ;;  %7719 = vmatmul.msk.bf16.gmra.mxu2 %vm2640_vm2, %v3934_v38 }
 0x171   : > { %v3059_v41 = vpop.f32.mrf.mxu1 }
 0x172   : > { %v2489_v42 = vpack.c.bf16 %v2247_v40, %v2246_v39  ;;  %v3060_v45 = vadd.f32 %v8317_v29, %v3059_v41 }
 0x174   : > { %7584 = vmatmul.msk.bf16.gmra.mxu1 %vm2640_vm2, %v2489_v42  ;;  %v3684_v48 = vmax.f32 %v3060_v45, 0.0  ;;  %v7874_v42 = vld [vmem:[%s8223_s19 + $0xd0] sm:$0xff] }
 0x175   : > { %v1650_v44 = vpop.f32.mrf.mxu0 }
 0x176   : > { %v1651_v49 = vadd.f32 %v8257_v16, %v1650_v44  ;;  %v8396_v44 = vld [vmem:[%s10089_s6] ss:$0 sm:$0xff] }
 0x178   : > { %7449 = vmatmul.msk.bf16.gmra.mxu0 %vm1182_vm1, %v7870_v43  ;;  %v2248_v54 = vmax.f32 %v1651_v49, 0.0 }
 0x179   : > { %v3061_v46 = vpop.f32.mrf.mxu1 }
 0x17a   : > { %v3062_v47 = vadd.f32 %v8317_v29, %v3061_v46 }
 0x17c   : > { %v3685_v50 = vmax.f32 %v3062_v47, 0.0 }
 0x17d   : > { %v1652_v51 = vpop.f32.mrf.mxu0 }
 0x17e   : > { %v1653_v52 = vadd.f32 %v8257_v16, %v1652_v51  ;;  %v3935_v53 = vpack.c.bf16 %v3685_v50, %v3684_v48 }
 0x180   : > { %v2249_v55 = vmax.f32 %v1653_v52, 0.0  ;;  %7720 = vmatmul.msk.bf16.gmra.mxu2 %vm2640_vm2, %v3935_v53 }
 0x181   : > { %v3064_v56 = vpop.f32.mrf.mxu1 }
 0x182   : > { %v2490_v57 = vpack.c.bf16 %v2249_v55, %v2248_v54  ;;  %v3065_v60 = vadd.f32 %v8317_v29, %v3064_v56 }
 0x184   : > { %7585 = vmatmul.msk.bf16.gmra.mxu1 %vm2640_vm2, %v2490_v57  ;;  %v3686_v63 = vmax.f32 %v3065_v60, 0.0 }
 0x185   : > { %v1655_v59 = vpop.f32.mrf.mxu0 }
 0x186   : > { %v1656_v0 = vadd.f32 %v8257_v16, %v1655_v59 }
 0x188   : > { %7450 = vmatmul.msk.bf16.gmra.mxu0 %vm1182_vm1, %v7871_v58  ;;  %v2250_v5 = vmax.f32 %v1656_v0, 0.0 }
 0x189   : > { %v3066_v61 = vpop.f32.mrf.mxu1 }
 0x18a   : > { %v3067_v62 = vadd.f32 %v8317_v29, %v3066_v61 }
 0x18c   : > { %v3687_v1 = vmax.f32 %v3067_v62, 0.0 }
 0x18d   : > { %v1657_v2 = vpop.f32.mrf.mxu0 }
 0x18e   : > { %v1658_v3 = vadd.f32 %v8257_v16, %v1657_v2  ;;  %v3936_v4 = vpack.c.bf16 %v3687_v1, %v3686_v63  ;;  %v7875_v2 = vld [vmem:[%s8223_s19 + $0xd8] sm:$0xff] }
 0x190   : > { %v2251_v6 = vmax.f32 %v1658_v3, 0.0  ;;  %7721 = vmatmul.msk.bf16.gmra.mxu2 %vm2640_vm2, %v3936_v4 }
 0x191   : > { %v3069_v7 = vpop.f32.mrf.mxu1 }
 0x192   : > { %v2491_v8 = vpack.c.bf16 %v2251_v6, %v2250_v5  ;;  %v3070_v11 = vadd.f32 %v8317_v29, %v3069_v7 }
 0x194   : > { %7586 = vmatmul.msk.bf16.gmra.mxu1 %vm2640_vm2, %v2491_v8  ;;  %v3688_v14 = vmax.f32 %v3070_v11, 0.0 }
 0x195   : > { %v1660_v10 = vpop.f32.mrf.mxu0 }
 0x196   : > { %v1661_v15 = vadd.f32 %v8257_v16, %v1660_v10 }
 0x198   : > { %7451 = vmatmul.msk.bf16.gmra.mxu0 %vm1182_vm1, %v7872_v9  ;;  %v2252_v21 = vmax.f32 %v1661_v15, 0.0 }
 0x199   : > { %v3071_v12 = vpop.f32.mrf.mxu1 }
 0x19a   : > { %v3072_v13 = vadd.f32 %v8317_v29, %v3071_v12 }
 0x19c   : > { %v3689_v17 = vmax.f32 %v3072_v13, 0.0 }
 0x19d   : > { %v1662_v18 = vpop.f32.mrf.mxu0 }
 0x19e   : > { %v1663_v19 = vadd.f32 %v8257_v16, %v1662_v18  ;;  %v3937_v20 = vpack.c.bf16 %v3689_v17, %v3688_v14 }
 0x1a0   : > { %v2253_v22 = vmax.f32 %v1663_v19, 0.0  ;;  %7722 = vmatmul.msk.bf16.gmra.mxu2 %vm2640_vm2, %v3937_v20 }
 0x1a1   : > { %v3074_v23 = vpop.f32.mrf.mxu1 }
 0x1a2   : > { %v2492_v24 = vpack.c.bf16 %v2253_v22, %v2252_v21  ;;  %v3075_v27 = vadd.f32 %v8317_v29, %v3074_v23 }
 0x1a4   : > { %7587 = vmatmul.msk.bf16.gmra.mxu1 %vm2640_vm2, %v2492_v24  ;;  %v3690_v31 = vmax.f32 %v3075_v27, 0.0 }
 0x1a5   : > { %v1665_v26 = vpop.f32.mrf.mxu0 }
 0x1a6   : > { %v1666_v32 = vadd.f32 %v8257_v16, %v1665_v26 }
 0x1a8   : > { %7452 = vmatmul.msk.bf16.gmra.mxu0 %vm1182_vm1, %v7873_v25  ;;  %v2254_v37 = vmax.f32 %v1666_v32, 0.0  ;;  %v7876_v32 = vld [vmem:[%s8223_s19 + $0xe0] sm:$0xff] }
 0x1a9   : > { %v3076_v28 = vpop.f32.mrf.mxu1 }
 0x1aa   : > { %v3077_v30 = vadd.f32 %v8317_v29, %v3076_v28 }
 0x1ac   : > { %v3691_v33 = vmax.f32 %v3077_v30, 0.0 }
 0x1ad   : > { %v1667_v34 = vpop.f32.mrf.mxu0 }
 0x1ae   : > { %v1668_v35 = vadd.f32 %v8257_v16, %v1667_v34  ;;  %v3938_v36 = vpack.c.bf16 %v3691_v33, %v3690_v31 }
 0x1b0   : > { %v2255_v38 = vmax.f32 %v1668_v35, 0.0  ;;  %7723 = vmatmul.msk.bf16.gmra.mxu2 %vm2640_vm2, %v3938_v36 }
 0x1b1   : > { %v3079_v39 = vpop.f32.mrf.mxu1 }
 0x1b2   : > { %v2493_v40 = vpack.c.bf16 %v2255_v38, %v2254_v37  ;;  %v3080_v45 = vadd.f32 %v8317_v29, %v3079_v39 }
 0x1b3   : > { %v4487_v41 = vpop.f32.mrf.mxu2 }
 0x1b4   : > { %7588 = vmatmul.msk.bf16.gmra.mxu1 %vm2640_vm2, %v2493_v40  ;;  %v4488_v47 = vadd.f32 %v8396_v44, %v4487_v41  ;;  %v3692_v50 = vmax.f32 %v3080_v45, 0.0 }
 0x1b5   : > { %v1670_v43 = vpop.f32.mrf.mxu0 }
 0x1b6   : > { %v1671_v51 = vadd.f32 %v8257_v16, %v1670_v43  ;;  %v5127_v55 = vmax.f32 %v4488_v47, 0.0 }
 0x1b8   : > { %7453 = vmatmul.msk.bf16.gmra.mxu0 %vm1182_vm1, %v7874_v42  ;;  %v2256_v59 = vmax.f32 %v1671_v51, 0.0 }
 0x1b9   : > { %v3081_v46 = vpop.f32.mrf.mxu1 }
 0x1ba   : > { %v3082_v48 = vadd.f32 %v8317_v29, %v3081_v46 }
 0x1bb   : > { %v4489_v49 = vpop.f32.mrf.mxu2 }
 0x1bc   : > { %v3693_v52 = vmax.f32 %v3082_v48, 0.0  ;;  %v4490_v53 = vadd.f32 %v8396_v44, %v4489_v49 }
 0x1bd   : > { %v1672_v54 = vpop.f32.mrf.mxu0 }
 0x1be   : > { %v5128_v56 = vmax.f32 %v4490_v53, 0.0  ;;  %v1673_v57 = vadd.f32 %v8257_v16, %v1672_v54  ;;  %v3939_v58 = vpack.c.bf16 %v3693_v52, %v3692_v50 }
 0x1c0   : > { %v5383_v60 = vmax.f32 %v5127_v55, %v5128_v56  ;;  %v2257_v61 = vmax.f32 %v1673_v57, 0.0  ;;  %7724 = vmatmul.msk.bf16.gmra.mxu2 %vm2640_vm2, %v3939_v58 }
 0x1c1   : > { %v3084_v62 = vpop.f32.mrf.mxu1 }
 0x1c2   : > { %v2494_v63 = vpack.c.bf16 %v2257_v61, %v2256_v59  ;;  %v5384_v0 = vrot.slane %v5383_v60, 4  ;;  %v3085_v5 = vadd.f32 %v8317_v29, %v3084_v62 }
 0x1c3   : > { %v4492_v1 = vpop.f32.mrf.mxu2 }
 0x1c4   : > { %7589 = vmatmul.msk.bf16.gmra.mxu1 %vm2640_vm2, %v2494_v63  ;;  %v5385_v4 = vmax.f32 %v5383_v60, %v5384_v0  ;;  %v4493_v7 = vadd.f32 %v8396_v44, %v4492_v1  ;;  %v3694_v11 = vmax.f32 %v3085_v5, 0.0 }
 0x1c5   : > { %v1675_v3 = vpop.f32.mrf.mxu0 }
 0x1c6   : > { %v5386_v9 = vrot.slane %v5385_v4, 2  ;;  %v1676_v12 = vadd.f32 %v8257_v16, %v1675_v3  ;;  %v5129_v17 = vmax.f32 %v4493_v7, 0.0  ;;  %v7877_v3 = vld [vmem:[%s8223_s19 + $0xe8] sm:$0xff] }
 0x1c8   : > { %7454 = vmatmul.msk.bf16.gmra.mxu0 %vm1182_vm1, %v7875_v2  ;;  %v5387_v21 = vmax.f32 %v5385_v4, %v5386_v9  ;;  %v2258_v22 = vmax.f32 %v1676_v12, 0.0 }
 0x1c9   : > { %v3086_v6 = vpop.f32.mrf.mxu1 }
 0x1ca   : > { %v3087_v8 = vadd.f32 %v8317_v29, %v3086_v6  ;;  %v5388_v28 = vrot.slane %v5387_v21, 1 }
 0x1cb   : > { %v4494_v10 = vpop.f32.mrf.mxu2 }
 0x1cc   : > { %v3695_v13 = vmax.f32 %v3087_v8, 0.0  ;;  %v4495_v14 = vadd.f32 %v8396_v44, %v4494_v10  ;;  %v5389_v35 = vmax.f32 %v5387_v21, %v5388_v28 }
 0x1cd   : > { %v1677_v15 = vpop.f32.mrf.mxu0 }
 0x1ce   : > { %v5130_v18 = vmax.f32 %v4495_v14, 0.0  ;;  %v1678_v19 = vadd.f32 %v8257_v16, %v1677_v15  ;;  %v3940_v20 = vpack.c.bf16 %v3695_v13, %v3694_v11  ;;  %v6279_v42 = vpack.c.bf16 %v5389_v35, %v5389_v35 }
 0x1d0   : > { %v5390_v23 = vmax.f32 %v5129_v17, %v5130_v18  ;;  %v2259_v24 = vmax.f32 %v1678_v19, 0.0  ;;  %7725 = vmatmul.msk.bf16.gmra.mxu2 %vm2640_vm2, %v3940_v20  ;;  %v6535_v56 = vunpack.c.l.b16 %v6279_v42 }
 0x1d1   : > { %v3089_v25 = vpop.f32.mrf.mxu1 }
 0x1d2   : > { %v5391_v26 = vrot.slane %v5390_v23, 4  ;;  %v2495_v27 = vpack.c.bf16 %v2259_v24, %v2258_v22  ;;  %v3090_v36 = vadd.f32 %v8317_v29, %v3089_v25 }
 0x1d3   : > { %v4497_v30 = vpop.f32.mrf.mxu2 }
 0x1d4   : > { %v5392_v31 = vmax.f32 %v5390_v23, %v5391_v26  ;;  %7590 = vmatmul.msk.bf16.gmra.mxu1 %vm2640_vm2, %v2495_v27  ;;  %v4498_v38 = vadd.f32 %v8396_v44, %v4497_v30  ;;  %v3696_v43 = vmax.f32 %v3090_v36, 0.0  ;;  %v7878_v36 = vld [vmem:[%s8223_s19 + $0xf0] sm:$0xff] }
 0x1d5   : > { %v1680_v33 = vpop.f32.mrf.mxu0 }
 0x1d6   : > { %v5393_v34 = vrot.slane %v5392_v31, 2  ;;  %v1681_v47 = vadd.f32 %v8257_v16, %v1680_v33  ;;  %v5131_v50 = vmax.f32 %v4498_v38, 0.0 }
 0x1d8   : > { %v5394_v37 = vmax.f32 %v5392_v31, %v5393_v34  ;;  %7455 = vmatmul.msk.bf16.gmra.mxu0 %vm1182_vm1, %v7876_v32  ;;  %v2260_v58 = vmax.f32 %v1681_v47, 0.0 }
 0x1d9   : > { %v3091_v39 = vpop.f32.mrf.mxu1 }
 0x1da   : > { %v5395_v40 = vrot.slane %v5394_v37, 1  ;;  %v3092_v41 = vadd.f32 %v8317_v29, %v3091_v39 }
 0x1db   : > { %v4499_v45 = vpop.f32.mrf.mxu2 }
 0x1dc   : > { %v5396_v46 = vmax.f32 %v5394_v37, %v5395_v40  ;;  %v3697_v48 = vmax.f32 %v3092_v41, 0.0  ;;  %v4500_v49 = vadd.f32 %v8396_v44, %v4499_v45 }
 0x1dd   : > { %v1682_v51 = vpop.f32.mrf.mxu0 }
 0x1de   : > { %v6280_v52 = vpack.c.bf16 %v5396_v46, %v5396_v46  ;;  %v5132_v53 = vmax.f32 %v4500_v49, 0.0  ;;  %v1683_v54 = vadd.f32 %v8257_v16, %v1682_v51  ;;  %v3941_v55 = vpack.c.bf16 %v3697_v48, %v3696_v43 }
 0x1e0   : > { %v6536_v57 = vunpack.c.l.b16 %v6280_v52  ;;  %v5397_v59 = vmax.f32 %v5131_v50, %v5132_v53  ;;  %v2261_v60 = vmax.f32 %v1683_v54, 0.0  ;;  %7726 = vmatmul.msk.bf16.gmra.mxu2 %vm2640_vm2, %v3941_v55 }
 0x1e1   : > { %v3094_v61 = vpop.f32.mrf.mxu1 }
 0x1e2   : > { %v6664_v62 = vsel %vm6663_vm3, %v6536_v57, %v6535_v56  ;;  %v5398_v63 = vrot.slane %v5397_v59, 4  ;;  %v2496_v0 = vpack.c.bf16 %v2261_v60, %v2260_v58  ;;  %v3095_v6 = vadd.f32 %v8317_v29, %v3094_v61  ;;  %v7879_v61 = vld [vmem:[%s8223_s19 + $0xf8] sm:$0xff] }
 0x1e3   : > { %v4502_v1 = vpop.f32.mrf.mxu2 }
 0x1e4   : > { %v5399_v2 = vmax.f32 %v5397_v59, %v5398_v63  ;;  %7591 = vmatmul.msk.bf16.gmra.mxu1 %vm2640_vm2, %v2496_v0  ;;  %v4503_v8 = vadd.f32 %v8396_v44, %v4502_v1  ;;  %v3698_v12 = vmax.f32 %v3095_v6, 0.0 }
 0x1e5   : > { %v1685_v4 = vpop.f32.mrf.mxu0 }
 0x1e6   : > { %v5400_v5 = vrot.slane %v5399_v2, 2  ;;  %v1686_v15 = vadd.f32 %v8257_v16, %v1685_v4  ;;  %v5133_v19 = vmax.f32 %v4503_v8, 0.0 }
 0x1e8   : > { %v5401_v7 = vmax.f32 %v5399_v2, %v5400_v5  ;;  %7456 = vmatmul.msk.bf16.gmra.mxu0 %vm1182_vm1, %v7877_v3  ;;  %v2262_v26 = vmax.f32 %v1686_v15, 0.0 }
 0x1e9   : > { %v3096_v9 = vpop.f32.mrf.mxu1 }
 0x1ea   : > { %v5402_v10 = vrot.slane %v5401_v7, 1  ;;  %v3097_v11 = vadd.f32 %v8317_v29, %v3096_v9 }
 0x1eb   : > { %v4504_v13 = vpop.f32.mrf.mxu2 }
 0x1ec   : > { %v5403_v14 = vmax.f32 %v5401_v7, %v5402_v10  ;;  %v3699_v17 = vmax.f32 %v3097_v11, 0.0  ;;  %v4505_v18 = vadd.f32 %v8396_v44, %v4504_v13 }
 0x1ed   : > { %v1687_v20 = vpop.f32.mrf.mxu0 }
 0x1ee   : > { %v6281_v21 = vpack.c.bf16 %v5403_v14, %v5403_v14  ;;  %v3942_v22 = vpack.c.bf16 %v3699_v17, %v3698_v12  ;;  %v5134_v23 = vmax.f32 %v4505_v18, 0.0  ;;  %v1688_v24 = vadd.f32 %v8257_v16, %v1687_v20  ;;  %v7880_v18 = vld [vmem:[%s8223_s19 + $0x100] sm:$0xff] }
 0x1f0   : > { %v6537_v25 = vunpack.c.l.b16 %v6281_v21  ;;  %v5404_v27 = vmax.f32 %v5133_v19, %v5134_v23  ;;  %v2263_v28 = vmax.f32 %v1688_v24, 0.0  ;;  %7727 = vmatmul.msk.bf16.gmra.mxu2 %vm2640_vm2, %v3942_v22 }
 0x1f1   : > { %v3099_v30 = vpop.f32.mrf.mxu1 }
 0x1f2   : > { %v6666_v31 = vsel %vm6665_vm4, %v6537_v25, %v6664_v62  ;;  %v5405_v32 = vrot.slane %v5404_v27, 4  ;;  %v2497_v33 = vpack.c.bf16 %v2263_v28, %v2262_v26  ;;  %v3100_v40 = vadd.f32 %v8317_v29, %v3099_v30 }
 0x1f3   : > { %v4507_v34 = vpop.f32.mrf.mxu2 }
 0x1f4   : > { %v5406_v35 = vmax.f32 %v5404_v27, %v5405_v32  ;;  %7592 = vmatmul.msk.bf16.gmra.mxu1 %vm2640_vm2, %v2497_v33  ;;  %v3700_v47 = vmax.f32 %v3100_v40, 0.0  ;;  %v4508_v14 = vadd.f32 %v8396_v44, %v4507_v34 }
 0x1f5   : > { %v1690_v37 = vpop.f32.mrf.mxu0 }
 0x1f6   : > { %v5407_v38 = vrot.slane %v5406_v35, 2  ;;  %v1691_v48 = vadd.f32 %v8257_v16, %v1690_v37  ;;  %v5135_v22 = vmax.f32 %v4508_v14, 0.0 }
 0x1f8   : > { %v5408_v39 = vmax.f32 %v5406_v35, %v5407_v38  ;;  %7457 = vmatmul.msk.bf16.gmra.mxu0 %vm1182_vm1, %v7878_v36  ;;  %v2264_v55 = vmax.f32 %v1691_v48, 0.0 }
 0x1f9   : > { %v3101_v41 = vpop.f32.mrf.mxu1 }
 0x1fa   : > { %v5409_v42 = vrot.slane %v5408_v39, 1  ;;  %v3102_v43 = vadd.f32 %v8317_v29, %v3101_v41 }
 0x1fb   : > { %v4509_v45 = vpop.f32.mrf.mxu2 }
 0x1fc   : > { %v5410_v46 = vmax.f32 %v5408_v39, %v5409_v42  ;;  %v3701_v49 = vmax.f32 %v3102_v43, 0.0  ;;  %v4510_v11 = vadd.f32 %v8396_v44, %v4509_v45 }
 0x1fd   : > { %v1692_v50 = vpop.f32.mrf.mxu0 }
 0x1fe   : > { %v6282_v51 = vpack.c.bf16 %v5410_v46, %v5410_v46  ;;  %v3943_v52 = vpack.c.bf16 %v3701_v49, %v3700_v47  ;;  %v1693_v53 = vadd.f32 %v8257_v16, %v1692_v50  ;;  %v5136_v19 = vmax.f32 %v4510_v11, 0.0 }
 0x200   : > { %v6538_v54 = vunpack.c.l.b16 %v6282_v51  ;;  %v2265_v56 = vmax.f32 %v1693_v53, 0.0  ;;  %7728 = vmatmul.msk.bf16.gmra.mxu2 %vm2640_vm2, %v3943_v52  ;;  %v5411_v25 = vmax.f32 %v5135_v22, %v5136_v19 }
 0x201   : > { %v3104_v57 = vpop.f32.mrf.mxu1 }
 0x202   : > { %v8447_v58 = vsel %vm6667_vm5, %v6538_v54, %v6666_v31  ;;  %v2498_v59 = vpack.c.bf16 %v2265_v56, %v2264_v55  ;;  %v3105_v63 = vadd.f32 %v8317_v29, %v3104_v57  ;;  %v5412_v37 = vrot.slane %v5411_v25, 4  ;;  %v7881_v54 = vld [vmem:[%s8223_s19 + $0x108] sm:$0xff] }
 0x203   : > { %v4512_v60 = vpop.f32.mrf.mxu2 }
 0x204   : > { %7593 = vmatmul.msk.bf16.gmra.mxu1 %vm2640_vm2, %v2498_v59  ;;  %v3702_v3 = vmax.f32 %v3105_v63, 0.0  ;;  %v4513_v20 = vadd.f32 %v8396_v44, %v4512_v60  ;;  %v5413_v48 = vmax.f32 %v5411_v25, %v5412_v37 }
 0x205   : > { %v1695_v62 = vpop.f32.mrf.mxu0 }
 0x206   : > { %v1696_v4 = vadd.f32 %v8257_v16, %v1695_v62  ;;  %v5137_v26 = vmax.f32 %v4513_v20, 0.0  ;;  %v5414_v55 = vrot.slane %v5413_v48, 2 }
 0x208   : > { %7458 = vmatmul.msk.bf16.gmra.mxu0 %vm1182_vm1, %v7879_v61  ;;  %v2266_v9 = vmax.f32 %v1696_v4, 0.0  ;;  %v5415_v61 = vmax.f32 %v5413_v48, %v5414_v55 }
 0x209   : > { %v3106_v0 = vpop.f32.mrf.mxu1 }
 0x20a   : > { %v3107_v1 = vadd.f32 %v8317_v29, %v3106_v0 }
 0x20b   : > { %v4514_v2 = vpop.f32.mrf.mxu2 }
 0x20c   : > { %v3703_v5 = vmax.f32 %v3107_v1, 0.0  ;;  %v4515_v15 = vadd.f32 %v8396_v44, %v4514_v2 }
 0x20d   : > { %v1697_v6 = vpop.f32.mrf.mxu0 }
 0x20e   : > { %v3944_v7 = vpack.c.bf16 %v3703_v5, %v3702_v3  ;;  %v1698_v8 = vadd.f32 %v8257_v16, %v1697_v6  ;;  %v5138_v23 = vmax.f32 %v4515_v15, 0.0 }
 0x210   : > { %v2267_v10 = vmax.f32 %v1698_v8, 0.0  ;;  %7729 = vmatmul.msk.bf16.gmra.mxu2 %vm2640_vm2, %v3944_v7  ;;  %v5418_v31 = vmax.f32 %v5137_v26, %v5138_v23  ;;  %v5416_v8 = vrot.slane %v5415_v61, 1 }
 0x211   : > { %v3109_v12 = vpop.f32.mrf.mxu1 }
 0x212   : > { %v2499_v13 = vpack.c.bf16 %v2267_v10, %v2266_v9  ;;  %v3110_v24 = vadd.f32 %v8317_v29, %v3109_v12  ;;  %v5419_v43 = vrot.slane %v5418_v31, 4  ;;  %v5417_v20 = vmax.f32 %v5415_v61, %v5416_v8 }
 0x213   : > { %v4517_v17 = vpop.f32.mrf.mxu2 }
 0x214   : > { %7594 = vmatmul.msk.bf16.gmra.mxu1 %vm2640_vm2, %v2499_v13  ;;  %v4518_v28 = vadd.f32 %v8396_v44, %v4517_v17  ;;  %v3704_v33 = vmax.f32 %v3110_v24, 0.0  ;;  %v5420_v52 = vmax.f32 %v5418_v31, %v5419_v43 }
 0x215   : > { %v1700_v21 = vpop.f32.mrf.mxu0 }
 0x216   : > { %v1701_v34 = vadd.f32 %v8257_v16, %v1700_v21  ;;  %v5139_v39 = vmax.f32 %v4518_v28, 0.0  ;;  %v5421_v59 = vrot.slane %v5420_v52, 2  ;;  %v7882_v28 = vld [vmem:[%s8223_s19 + $0x110] sm:$0xff] }
 0x218   : > { %7459 = vmatmul.msk.bf16.gmra.mxu0 %vm1182_vm1, %v7880_v18  ;;  %v2268_v45 = vmax.f32 %v1701_v34, 0.0  ;;  %v5422_v2 = vmax.f32 %v5420_v52, %v5421_v59 }
 0x219   : > { %v3111_v27 = vpop.f32.mrf.mxu1 }
 0x21a   : > { %v3112_v30 = vadd.f32 %v8317_v29, %v3111_v27  ;;  %v5423_v15 = vrot.slane %v5422_v2, 1 }
 0x21b   : > { %v4519_v32 = vpop.f32.mrf.mxu2 }
 0x21c   : > { %v3705_v35 = vmax.f32 %v3112_v30, 0.0  ;;  %v4520_v36 = vadd.f32 %v8396_v44, %v4519_v32  ;;  %v5424_v25 = vmax.f32 %v5422_v2, %v5423_v15  ;;  %v6283_v30 = vpack.c.bf16 %v5417_v20, %v5417_v20 }
 0x21d   : > { %v1702_v38 = vpop.f32.mrf.mxu0 }
 0x21e   : > { %v3945_v40 = vpack.c.bf16 %v3705_v35, %v3704_v33  ;;  %v5140_v41 = vmax.f32 %v4520_v36, 0.0  ;;  %v1703_v42 = vadd.f32 %v8257_v16, %v1702_v38  ;;  %v6284_v33 = vpack.c.bf16 %v5424_v25, %v5424_v25 }
 0x21f   : > { %v6539_v36 = vunpack.c.l.b16 %v6283_v30 }
 0x220   : > { %v5425_v46 = vmax.f32 %v5139_v39, %v5140_v41  ;;  %v2269_v47 = vmax.f32 %v1703_v42, 0.0  ;;  %7730 = vmatmul.msk.bf16.gmra.mxu2 %vm2640_vm2, %v3945_v40  ;;  %v6540_v42 = vunpack.c.l.b16 %v6284_v33 }
 0x221   : > { %v3114_v49 = vpop.f32.mrf.mxu1 }
 0x222   : > { %v5426_v50 = vrot.slane %v5425_v46, 4  ;;  %v2500_v51 = vpack.c.bf16 %v2269_v47, %v2268_v45  ;;  %v3115_v60 = vadd.f32 %v8317_v29, %v3114_v49  ;;  %v8491_v47 = vld [vmem:[%s10085_s2] ss:$0 sm:$0xff] }
 0x223   : > { %v4522_v53 = vpop.f32.mrf.mxu2 }
 0x224   : > { %7595 = vmatmul.msk.bf16.gmra.mxu1 %vm2640_vm2, %v2500_v51  ;;  %v5427_v56 = vmax.f32 %v5425_v46, %v5426_v50  ;;  %v4523_v0 = vadd.f32 %v8396_v44, %v4522_v53  ;;  %v3706_v4 = vmax.f32 %v3115_v60, 0.0  ;;  %v6670_v51 = vsel %vm6669_vm6, %v6539_v36, %v8447_v58  ;;  %v7884_v36 = vld [vmem:[%s8223_s19 + $0x120] sm:$0xff] }
 0x225   : > { %v1705_v57 = vpop.f32.mrf.mxu0  ;;  %v6672_v60 = vsel %vm6671_vm7, %v6540_v42, %v6670_v51 }
 0x226   : > { %v5428_v62 = vrot.slane %v5427_v56, 2  ;;  %v1706_v5 = vadd.f32 %v8257_v16, %v1705_v57  ;;  %v5141_v11 = vmax.f32 %v4523_v0, 0.0 }
 0x228   : > { %7460 = vmatmul.msk.bf16.gmra.mxu0 %vm1182_vm1, %v7881_v54  ;;  %v5429_v9 = vmax.f32 %v5427_v56, %v5428_v62  ;;  %v2270_v17 = vmax.f32 %v1706_v5, 0.0 }
 0x229   : > { %v3116_v63 = vpop.f32.mrf.mxu1 }
 0x22a   : > { %v3117_v1 = vadd.f32 %v8317_v29, %v3116_v63  ;;  %v5430_v21 = vrot.slane %v5429_v9, 1 }
 0x22b   : > { %v4524_v3 = vpop.f32.mrf.mxu2 }
 0x22c   : > { %v3707_v6 = vmax.f32 %v3117_v1, 0.0  ;;  %v4525_v7 = vadd.f32 %v8396_v44, %v4524_v3  ;;  %v5431_v31 = vmax.f32 %v5429_v9, %v5430_v21 }
 0x22d   : > { %v1707_v10 = vpop.f32.mrf.mxu0 }
 0x22e   : > { %v3946_v12 = vpack.c.bf16 %v3707_v6, %v3706_v4  ;;  %v5142_v13 = vmax.f32 %v4525_v7, 0.0  ;;  %v1708_v14 = vadd.f32 %v8257_v16, %v1707_v10  ;;  %v6285_v37 = vpack.c.bf16 %v5431_v31, %v5431_v31  ;;  %v7883_v7 = vld [vmem:[%s8223_s19 + $0x118] sm:$0xff] }
 0x230   : > { %v5432_v18 = vmax.f32 %v5141_v11, %v5142_v13  ;;  %v2271_v19 = vmax.f32 %v1708_v14, 0.0  ;;  %7731 = vmatmul.msk.bf16.gmra.mxu2 %vm2640_vm2, %v3946_v12  ;;  %v6541_v52 = vunpack.c.l.b16 %v6285_v37 }
 0x231   : > { %v3119_v22 = vpop.f32.mrf.mxu1 }
 0x232   : > { %v5433_v23 = vrot.slane %v5432_v18, 4  ;;  %v2501_v24 = vpack.c.bf16 %v2271_v19, %v2270_v17  ;;  %v3120_v34 = vadd.f32 %v8317_v29, %v3119_v22  ;;  %v6674_v58 = vsel %vm6673_vm8, %v6541_v52, %v6672_v60 }
 0x233   : > { %v4527_v26 = vpop.f32.mrf.mxu2 }
 0x234   : > { %v5434_v27 = vmax.f32 %v5432_v18, %v5433_v23  ;;  %7596 = vmatmul.msk.bf16.gmra.mxu1 %vm2640_vm2, %v2501_v24  ;;  %v4528_v38 = vadd.f32 %v8396_v44, %v4527_v26  ;;  %v3708_v43 = vmax.f32 %v3120_v34, 0.0 }
 0x235   : > { %v1710_v16 = vpop.f32.mrf.mxu0 }
 0x236   : > { %v5435_v32 = vrot.slane %v5434_v27, 2  ;;  %v1711_v48 = vadd.f32 %v8491_v47, %v1710_v16  ;;  %v5143_v53 = vmax.f32 %v4528_v38, 0.0 }
 0x238   : > { %v5436_v35 = vmax.f32 %v5434_v27, %v5435_v32  ;;  %7461 = vmatmul.msk.bf16.gmra.mxu0 %vm1182_vm1, %v7882_v28  ;;  %v2272_v62 = vmax.f32 %v1711_v48, 0.0 }
 0x239   : > { %v3121_v39 = vpop.f32.mrf.mxu1 }
 0x23a   : > { %v5437_v40 = vrot.slane %v5436_v35, 1  ;;  %v3122_v41 = vadd.f32 %v8317_v29, %v3121_v39 }
 0x23b   : > { %v4529_v45 = vpop.f32.mrf.mxu2 }
 0x23c   : > { %v5438_v46 = vmax.f32 %v5436_v35, %v5437_v40  ;;  %v3709_v49 = vmax.f32 %v3122_v41, 0.0  ;;  %v4530_v50 = vadd.f32 %v8396_v44, %v4529_v45 }
 0x23d   : > { %v1712_v54 = vpop.f32.mrf.mxu0 }
 0x23e   : > { %v6286_v55 = vpack.c.bf16 %v5438_v46, %v5438_v46  ;;  %v3947_v56 = vpack.c.bf16 %v3709_v49, %v3708_v43  ;;  %v5144_v57 = vmax.f32 %v4530_v50, 0.0  ;;  %v1713_v59 = vadd.f32 %v8491_v47, %v1712_v54  ;;  %v8525_v46 = vld [vmem:[%s10087_s4] ss:$0 sm:$0xff] }
 0x240   : > { %v6542_v61 = vunpack.c.l.b16 %v6286_v55  ;;  %v5439_v63 = vmax.f32 %v5143_v53, %v5144_v57  ;;  %v2273_v0 = vmax.f32 %v1713_v59, 0.0  ;;  %7732 = vmatmul.msk.bf16.gmra.mxu2 %vm2640_vm2, %v3947_v56 }
 0x241   : > { %v3124_v1 = vpop.f32.mrf.mxu1 }
 0x242   : > { %v6676_v2 = vsel %vm6675_vm9, %v6542_v61, %v6674_v58  ;;  %v2502_v3 = vpack.c.bf16 %v2273_v0, %v2272_v62  ;;  %v5440_v5 = vrot.slane %v5439_v63, 4  ;;  %v3125_v10 = vadd.f32 %v8317_v29, %v3124_v1 }
 0x243   : > { %v6782_v4 = vpack.c.b16 %v6676_v2, %v6676_v2  ;;  %v4532_v6 = vpop.f32.mrf.mxu2 }
 0x244   : > { %7597 = vmatmul.msk.bf16.gmra.mxu1 %vm2640_vm2, %v2502_v3  ;;  %v5441_v9 = vmax.f32 %v5439_v63, %v5440_v5  ;;  %v4533_v12 = vadd.f32 %v8396_v44, %v4532_v6  ;;  %v3710_v17 = vmax.f32 %v3125_v10, 0.0 }
 0x245   : > { %6814 = vst [vmem:[%s8506_s20] sm:$0xf] %v6782_v4  ;;  %v1715_v8 = vpop.f32.mrf.mxu0 }
 0x246   : > { %v5442_v14 = vrot.slane %v5441_v9, 2  ;;  %v1716_v18 = vadd.f32 %v8491_v47, %v1715_v8  ;;  %v5145_v22 = vmax.f32 %v4533_v12, 0.0  ;;  %v7885_v8 = vld [vmem:[%s8223_s19 + $0x128] sm:$0xff] }
 0x248   : > { %7462 = vmatmul.msk.bf16.gmra.mxu0 %vm1182_vm1, %v7883_v7  ;;  %v5443_v26 = vmax.f32 %v5441_v9, %v5442_v14  ;;  %v2274_v27 = vmax.f32 %v1716_v18, 0.0 }
 0x249   : > { %v3126_v11 = vpop.f32.mrf.mxu1 }
 0x24a   : > { %v3127_v13 = vadd.f32 %v8317_v29, %v3126_v11  ;;  %v5444_v33 = vrot.slane %v5443_v26, 1 }
 0x24b   : > { %v4534_v15 = vpop.f32.mrf.mxu2 }
 0x24c   : > { %v3711_v19 = vmax.f32 %v3127_v13, 0.0  ;;  %v4535_v20 = vadd.f32 %v8396_v44, %v4534_v15  ;;  %v5445_v39 = vmax.f32 %v5443_v26, %v5444_v33 }
 0x24d   : > { %v1717_v21 = vpop.f32.mrf.mxu0 }
 0x24e   : > { %v3948_v23 = vpack.c.bf16 %v3711_v19, %v3710_v17  ;;  %v5146_v24 = vmax.f32 %v4535_v20, 0.0  ;;  %v1718_v25 = vadd.f32 %v8491_v47, %v1717_v21  ;;  %v6287_v49 = vpack.c.bf16 %v5445_v39, %v5445_v39 }
 0x250   : > { %v5446_v28 = vmax.f32 %v5145_v22, %v5146_v24  ;;  %v2275_v30 = vmax.f32 %v1718_v25, 0.0  ;;  %7733 = vmatmul.msk.bf16.gmra.mxu2 %vm2640_vm2, %v3948_v23  ;;  %v6543_v62 = vunpack.c.l.b16 %v6287_v49 }
 0x251   : > { %v3129_v31 = vpop.f32.mrf.mxu1 }
 0x252   : > { %v5447_v16 = vrot.slane %v5446_v28, 4  ;;  %v2503_v32 = vpack.c.bf16 %v2275_v30, %v2274_v27  ;;  %v3130_v40 = vadd.f32 %v8317_v29, %v3129_v31 }
 0x253   : > { %v4537_v34 = vpop.f32.mrf.mxu2 }
 0x254   : > { %v5448_v35 = vmax.f32 %v5446_v28, %v5447_v16  ;;  %7598 = vmatmul.msk.bf16.gmra.mxu1 %vm2640_vm2, %v2503_v32  ;;  %v4538_v42 = vadd.f32 %v8396_v44, %v4537_v34  ;;  %v3712_v50 = vmax.f32 %v3130_v40, 0.0  ;;  %v7886_v40 = vld [vmem:[%s8223_s19 + $0x130] sm:$0xff] }
 0x255   : > { %v1720_v37 = vpop.f32.mrf.mxu0 }
 0x256   : > { %v5449_v38 = vrot.slane %v5448_v35, 2  ;;  %v1721_v29 = vadd.f32 %v8491_v47, %v1720_v37  ;;  %v5147_v55 = vmax.f32 %v4538_v42, 0.0 }
 0x258   : > { %v5450_v41 = vmax.f32 %v5448_v35, %v5449_v38  ;;  %7463 = vmatmul.msk.bf16.gmra.mxu0 %vm1182_vm1, %v7884_v36  ;;  %v2276_v0 = vmax.f32 %v1721_v29, 0.0 }
 0x259   : > { %v3131_v43 = vpop.f32.mrf.mxu1 }
 0x25a   : > { %v5451_v45 = vrot.slane %v5450_v41, 1  ;;  %v3132_v48 = vadd.f32 %v8525_v46, %v3131_v43 }
 0x25b   : > { %v4539_v51 = vpop.f32.mrf.mxu2 }
 0x25c   : > { %v5452_v52 = vmax.f32 %v5450_v41, %v5451_v45  ;;  %v3713_v53 = vmax.f32 %v3132_v48, 0.0  ;;  %v4540_v54 = vadd.f32 %v8396_v44, %v4539_v51 }
 0x25d   : > { %v1722_v56 = vpop.f32.mrf.mxu0 }
 0x25e   : > { %v6288_v57 = vpack.c.bf16 %v5452_v52, %v5452_v52  ;;  %v3949_v59 = vpack.c.bf16 %v3713_v53, %v3712_v50  ;;  %v5148_v60 = vmax.f32 %v4540_v54, 0.0  ;;  %v1723_v61 = vadd.f32 %v8491_v47, %v1722_v56 }
 0x260   : > { %v6544_v63 = vunpack.c.l.b16 %v6288_v57  ;;  %v5453_v58 = vmax.f32 %v5147_v55, %v5148_v60  ;;  %v2277_v1 = vmax.f32 %v1723_v61, 0.0  ;;  %7734 = vmatmul.msk.bf16.gmra.mxu2 %vm2640_vm2, %v3949_v59 }
 0x261   : > { %v3134_v2 = vpop.f32.mrf.mxu1 }
 0x262   : > { %v6677_v3 = vsel %vm6663_vm3, %v6544_v63, %v6543_v62  ;;  %v5454_v4 = vrot.slane %v5453_v58, 4  ;;  %v2504_v5 = vpack.c.bf16 %v2277_v1, %v2276_v0  ;;  %v3135_v11 = vadd.f32 %v8525_v46, %v3134_v2  ;;  %v7887_v2 = vld [vmem:[%s8223_s19 + $0x138] sm:$0xff] }
 0x263   : > { %v4542_v6 = vpop.f32.mrf.mxu2 }
 0x264   : > { %v5455_v7 = vmax.f32 %v5453_v58, %v5454_v4  ;;  %7599 = vmatmul.msk.bf16.gmra.mxu1 %vm2640_vm2, %v2504_v5  ;;  %v4543_v13 = vadd.f32 %v8396_v44, %v4542_v6  ;;  %v3714_v18 = vmax.f32 %v3135_v11, 0.0 }
 0x265   : > { %v1725_v9 = vpop.f32.mrf.mxu0 }
 0x266   : > { %v5456_v10 = vrot.slane %v5455_v7, 2  ;;  %v1726_v21 = vadd.f32 %v8491_v47, %v1725_v9  ;;  %v5149_v24 = vmax.f32 %v4543_v13, 0.0 }
 0x268   : > { %v5457_v12 = vmax.f32 %v5455_v7, %v5456_v10  ;;  %7464 = vmatmul.msk.bf16.gmra.mxu0 %vm1182_vm1, %v7885_v8  ;;  %v2278_v16 = vmax.f32 %v1726_v21, 0.0 }
 0x269   : > { %v3136_v14 = vpop.f32.mrf.mxu1 }
 0x26a   : > { %v5458_v15 = vrot.slane %v5457_v12, 1  ;;  %v3137_v17 = vadd.f32 %v8525_v46, %v3136_v14 }
 0x26b   : > { %v4544_v19 = vpop.f32.mrf.mxu2 }
 0x26c   : > { %v5459_v20 = vmax.f32 %v5457_v12, %v5458_v15  ;;  %v3715_v22 = vmax.f32 %v3137_v17, 0.0  ;;  %v4545_v23 = vadd.f32 %v8396_v44, %v4544_v19 }
 0x26d   : > { %v1727_v25 = vpop.f32.mrf.mxu0 }
 0x26e   : > { %v6289_v26 = vpack.c.bf16 %v5459_v20, %v5459_v20  ;;  %v3950_v27 = vpack.c.bf16 %v3715_v22, %v3714_v18  ;;  %v5150_v28 = vmax.f32 %v4545_v23, 0.0  ;;  %v1728_v30 = vadd.f32 %v8491_v47, %v1727_v25  ;;  %v7888_v23 = vld [vmem:[%s8223_s19 + $0x140] sm:$0xff] }
 0x270   : > { %v6545_v31 = vunpack.c.l.b16 %v6289_v26  ;;  %v5460_v32 = vmax.f32 %v5149_v24, %v5150_v28  ;;  %v2279_v33 = vmax.f32 %v1728_v30, 0.0  ;;  %7735 = vmatmul.msk.bf16.gmra.mxu2 %vm2640_vm2, %v3950_v27 }
 0x271   : > { %v3139_v34 = vpop.f32.mrf.mxu1 }
 0x272   : > { %v6678_v35 = vsel %vm6665_vm4, %v6545_v31, %v6677_v3  ;;  %v5461_v36 = vrot.slane %v5460_v32, 4  ;;  %v2505_v37 = vpack.c.bf16 %v2279_v33, %v2278_v16  ;;  %v3140_v45 = vadd.f32 %v8525_v46, %v3139_v34 }
 0x273   : > { %v4547_v38 = vpop.f32.mrf.mxu2 }
 0x274   : > { %v5462_v39 = vmax.f32 %v5460_v32, %v5461_v36  ;;  %7600 = vmatmul.msk.bf16.gmra.mxu1 %vm2640_vm2, %v2505_v37  ;;  %v3716_v29 = vmax.f32 %v3140_v45, 0.0  ;;  %v4548_v20 = vadd.f32 %v8396_v44, %v4547_v38 }
 0x275   : > { %v1730_v41 = vpop.f32.mrf.mxu0 }
 0x276   : > { %v5463_v42 = vrot.slane %v5462_v39, 2  ;;  %v1731_v53 = vadd.f32 %v8491_v47, %v1730_v41  ;;  %v5151_v27 = vmax.f32 %v4548_v20, 0.0 }
 0x278   : > { %v5464_v43 = vmax.f32 %v5462_v39, %v5463_v42  ;;  %7465 = vmatmul.msk.bf16.gmra.mxu0 %vm1182_vm1, %v7886_v40  ;;  %v2280_v61 = vmax.f32 %v1731_v53, 0.0 }
 0x279   : > { %v3141_v48 = vpop.f32.mrf.mxu1 }
 0x27a   : > { %v5465_v49 = vrot.slane %v5464_v43, 1  ;;  %v3142_v50 = vadd.f32 %v8525_v46, %v3141_v48 }
 0x27b   : > { %v4549_v51 = vpop.f32.mrf.mxu2 }
 0x27c   : > { %v5466_v52 = vmax.f32 %v5464_v43, %v5465_v49  ;;  %v3717_v54 = vmax.f32 %v3142_v50, 0.0  ;;  %v4550_v17 = vadd.f32 %v8396_v44, %v4549_v51 }
 0x27d   : > { %v1732_v55 = vpop.f32.mrf.mxu0 }
 0x27e   : > { %v6290_v56 = vpack.c.bf16 %v5466_v52, %v5466_v52  ;;  %v3951_v57 = vpack.c.bf16 %v3717_v54, %v3716_v29  ;;  %v1733_v59 = vadd.f32 %v8491_v47, %v1732_v55  ;;  %v5152_v24 = vmax.f32 %v4550_v17, 0.0 }
 0x280   : > { %v6546_v60 = vunpack.c.l.b16 %v6290_v56  ;;  %v2281_v62 = vmax.f32 %v1733_v59, 0.0  ;;  %7736 = vmatmul.msk.bf16.gmra.mxu2 %vm2640_vm2, %v3951_v57  ;;  %v5467_v31 = vmax.f32 %v5151_v27, %v5152_v24 }
 0x281   : > { %v3144_v63 = vpop.f32.mrf.mxu1 }
 0x282   : > { %v8553_v0 = vsel %vm6667_vm5, %v6546_v60, %v6678_v35  ;;  %v2506_v58 = vpack.c.bf16 %v2281_v62, %v2280_v61  ;;  %v3145_v4 = vadd.f32 %v8525_v46, %v3144_v63  ;;  %v5468_v41 = vrot.slane %v5467_v31, 4  ;;  %v7889_v60 = vld [vmem:[%s8223_s19 + $0x148] sm:$0xff] }
 0x283   : > { %v4552_v1 = vpop.f32.mrf.mxu2 }
 0x284   : > { %7601 = vmatmul.msk.bf16.gmra.mxu1 %vm2640_vm2, %v2506_v58  ;;  %v3718_v8 = vmax.f32 %v3145_v4, 0.0  ;;  %v4553_v25 = vadd.f32 %v8396_v44, %v4552_v1  ;;  %v5469_v53 = vmax.f32 %v5467_v31, %v5468_v41 }
 0x285   : > { %v1735_v3 = vpop.f32.mrf.mxu0 }
 0x286   : > { %v1736_v9 = vadd.f32 %v8491_v47, %v1735_v3  ;;  %v5153_v16 = vmax.f32 %v4553_v25, 0.0  ;;  %v5470_v61 = vrot.slane %v5469_v53, 2 }
 0x288   : > { %7466 = vmatmul.msk.bf16.gmra.mxu0 %vm1182_vm1, %v7887_v2  ;;  %v2282_v14 = vmax.f32 %v1736_v9, 0.0  ;;  %v5471_v2 = vmax.f32 %v5469_v53, %v5470_v61 }
 0x289   : > { %v3146_v5 = vpop.f32.mrf.mxu1 }
 0x28a   : > { %v3147_v6 = vadd.f32 %v8525_v46, %v3146_v5 }
 0x28b   : > { %v4554_v7 = vpop.f32.mrf.mxu2 }
 0x28c   : > { %v3719_v10 = vmax.f32 %v3147_v6, 0.0  ;;  %v4555_v21 = vadd.f32 %v8396_v44, %v4554_v7 }
 0x28d   : > { %v1737_v11 = vpop.f32.mrf.mxu0 }
 0x28e   : > { %v3952_v12 = vpack.c.bf16 %v3719_v10, %v3718_v8  ;;  %v1738_v13 = vadd.f32 %v8491_v47, %v1737_v11  ;;  %v5154_v28 = vmax.f32 %v4555_v21, 0.0 }
 0x290   : > { %v2283_v15 = vmax.f32 %v1738_v13, 0.0  ;;  %7737 = vmatmul.msk.bf16.gmra.mxu2 %vm2640_vm2, %v3952_v12  ;;  %v5474_v35 = vmax.f32 %v5153_v16, %v5154_v28  ;;  %v8587_v12 = vld [vmem:[%s10089_s6] ss:$0 sm:$0xff] }
 0x291   : > { %v3149_v18 = vpop.f32.mrf.mxu1 }
 0x292   : > { %v2507_v19 = vpack.c.bf16 %v2283_v15, %v2282_v14  ;;  %v3150_v30 = vadd.f32 %v8525_v46, %v3149_v18  ;;  %v5475_v50 = vrot.slane %v5474_v35, 4  ;;  %v5472_v14 = vrot.slane %v5471_v2, 1 }
 0x293   : > { %v4557_v22 = vpop.f32.mrf.mxu2 }
 0x294   : > { %7602 = vmatmul.msk.bf16.gmra.mxu1 %vm2640_vm2, %v2507_v19  ;;  %v4558_v33 = vadd.f32 %v8396_v44, %v4557_v22  ;;  %v3720_v37 = vmax.f32 %v3150_v30, 0.0  ;;  %v5476_v57 = vmax.f32 %v5474_v35, %v5475_v50  ;;  %v5473_v25 = vmax.f32 %v5471_v2, %v5472_v14 }
 0x295   : > { %v1740_v26 = vpop.f32.mrf.mxu0 }
 0x296   : > { %v1741_v38 = vadd.f32 %v8491_v47, %v1740_v26  ;;  %v5155_v43 = vmax.f32 %v4558_v33, 0.0  ;;  %v5477_v58 = vrot.slane %v5476_v57, 2  ;;  %v7890_v33 = vld [vmem:[%s8223_s19 + $0x150] sm:$0xff] }
 0x298   : > { %7467 = vmatmul.msk.bf16.gmra.mxu0 %vm1182_vm1, %v7888_v23  ;;  %v2284_v51 = vmax.f32 %v1741_v38, 0.0  ;;  %v5478_v7 = vmax.f32 %v5476_v57, %v5477_v58 }
 0x299   : > { %v3151_v32 = vpop.f32.mrf.mxu1 }
 0x29a   : > { %v3152_v34 = vadd.f32 %v8525_v46, %v3151_v32  ;;  %v5479_v21 = vrot.slane %v5478_v7, 1 }
 0x29b   : > { %v4559_v36 = vpop.f32.mrf.mxu2 }
 0x29c   : > { %v3721_v39 = vmax.f32 %v3152_v34, 0.0  ;;  %v4560_v40 = vadd.f32 %v8396_v44, %v4559_v36  ;;  %v5480_v31 = vmax.f32 %v5478_v7, %v5479_v21  ;;  %v6291_v34 = vpack.c.bf16 %v5473_v25, %v5473_v25 }
 0x29d   : > { %v1742_v42 = vpop.f32.mrf.mxu0 }
 0x29e   : > { %v3953_v45 = vpack.c.bf16 %v3721_v39, %v3720_v37  ;;  %v5156_v48 = vmax.f32 %v4560_v40, 0.0  ;;  %v1743_v49 = vadd.f32 %v8491_v47, %v1742_v42  ;;  %v6292_v38 = vpack.c.bf16 %v5480_v31, %v5480_v31 }
 0x29f   : > { %v6547_v41 = vunpack.c.l.b16 %v6291_v34 }
 0x2a0   : > { %v5481_v52 = vmax.f32 %v5155_v43, %v5156_v48  ;;  %v2285_v29 = vmax.f32 %v1743_v49, 0.0  ;;  %7738 = vmatmul.msk.bf16.gmra.mxu2 %vm2640_vm2, %v3953_v45  ;;  %v6548_v50 = vunpack.c.l.b16 %v6292_v38 }
 0x2a1   : > { %v3154_v54 = vpop.f32.mrf.mxu1 }
 0x2a2   : > { %v5482_v55 = vrot.slane %v5481_v52, 4  ;;  %v2508_v56 = vpack.c.bf16 %v2285_v29, %v2284_v51  ;;  %v3155_v1 = vadd.f32 %v8525_v46, %v3154_v54 }
 0x2a3   : > { %v4562_v59 = vpop.f32.mrf.mxu2 }
 0x2a4   : > { %7603 = vmatmul.msk.bf16.gmra.mxu1 %vm2640_vm2, %v2508_v56  ;;  %v5483_v62 = vmax.f32 %v5481_v52, %v5482_v55  ;;  %v4563_v5 = vadd.f32 %v8396_v44, %v4562_v59  ;;  %v3722_v9 = vmax.f32 %v3155_v1, 0.0  ;;  %v6680_v56 = vsel %vm6669_vm6, %v6547_v41, %v8553_v0  ;;  %v7892_v41 = vld [vmem:[%s8223_s19 + $0x160] sm:$0xff] }
 0x2a5   : > { %v1745_v63 = vpop.f32.mrf.mxu0  ;;  %v6681_v1 = vsel %vm6671_vm7, %v6548_v50, %v6680_v56 }
 0x2a6   : > { %v5484_v3 = vrot.slane %v5483_v62, 2  ;;  %v1746_v10 = vadd.f32 %v8491_v47, %v1745_v63  ;;  %v5157_v18 = vmax.f32 %v4563_v5, 0.0 }
 0x2a8   : > { %7468 = vmatmul.msk.bf16.gmra.mxu0 %vm1182_vm1, %v7889_v60  ;;  %v5485_v15 = vmax.f32 %v5483_v62, %v5484_v3  ;;  %v2286_v22 = vmax.f32 %v1746_v10, 0.0 }
 0x2a9   : > { %v3156_v4 = vpop.f32.mrf.mxu1 }
 0x2aa   : > { %v3157_v6 = vadd.f32 %v8525_v46, %v3156_v4  ;;  %v5486_v26 = vrot.slane %v5485_v15, 1 }
 0x2ab   : > { %v4564_v8 = vpop.f32.mrf.mxu2 }
 0x2ac   : > { %v3723_v11 = vmax.f32 %v3157_v6, 0.0  ;;  %v4565_v13 = vadd.f32 %v8587_v12, %v4564_v8  ;;  %v5487_v35 = vmax.f32 %v5485_v15, %v5486_v26 }
 0x2ad   : > { %v1747_v17 = vpop.f32.mrf.mxu0 }
 0x2ae   : > { %v3954_v44 = vpack.c.bf16 %v3723_v11, %v3722_v9  ;;  %v5158_v19 = vmax.f32 %v4565_v13, 0.0  ;;  %v1748_v20 = vadd.f32 %v8491_v47, %v1747_v17  ;;  %v6293_v42 = vpack.c.bf16 %v5487_v35, %v5487_v35  ;;  %v7891_v13 = vld [vmem:[%s8223_s19 + $0x158] sm:$0xff] }
 0x2b0   : > { %v5488_v23 = vmax.f32 %v5157_v18, %v5158_v19  ;;  %v2287_v24 = vmax.f32 %v1748_v20, 0.0  ;;  %7739 = vmatmul.msk.bf16.gmra.mxu2 %vm2640_vm2, %v3954_v44  ;;  %v6549_v57 = vunpack.c.l.b16 %v6293_v42 }
 0x2b1   : > { %v3159_v27 = vpop.f32.mrf.mxu1 }
 0x2b2   : > { %v5489_v28 = vrot.slane %v5488_v23, 4  ;;  %v2509_v30 = vpack.c.bf16 %v2287_v24, %v2286_v22  ;;  %v3160_v39 = vadd.f32 %v8525_v46, %v3159_v27  ;;  %v6682_v0 = vsel %vm6673_vm8, %v6549_v57, %v6681_v1 }
 0x2b3   : > { %v4567_v16 = vpop.f32.mrf.mxu2 }
 0x2b4   : > { %v5490_v32 = vmax.f32 %v5488_v23, %v5489_v28  ;;  %7604 = vmatmul.msk.bf16.gmra.mxu1 %vm2640_vm2, %v2509_v30  ;;  %v4568_v43 = vadd.f32 %v8587_v12, %v4567_v16  ;;  %v3724_v51 = vmax.f32 %v3160_v39, 0.0 }
 0x2b5   : > { %v1750_v36 = vpop.f32.mrf.mxu0 }
 0x2b6   : > { %v5491_v37 = vrot.slane %v5490_v32, 2  ;;  %v1751_v53 = vadd.f32 %v8491_v47, %v1750_v36  ;;  %v5159_v59 = vmax.f32 %v4568_v43, 0.0 }
 0x2b8   : > { %v5492_v40 = vmax.f32 %v5490_v32, %v5491_v37  ;;  %7469 = vmatmul.msk.bf16.gmra.mxu0 %vm1182_vm1, %v7890_v33  ;;  %v2288_v3 = vmax.f32 %v1751_v53, 0.0 }
 0x2b9   : > { %v3161_v45 = vpop.f32.mrf.mxu1 }
 0x2ba   : > { %v5493_v48 = vrot.slane %v5492_v40, 1  ;;  %v3162_v49 = vadd.f32 %v8525_v46, %v3161_v45 }
 0x2bb   : > { %v4569_v52 = vpop.f32.mrf.mxu2 }
 0x2bc   : > { %v5494_v29 = vmax.f32 %v5492_v40, %v5493_v48  ;;  %v3725_v54 = vmax.f32 %v3162_v49, 0.0  ;;  %v4570_v55 = vadd.f32 %v8587_v12, %v4569_v52 }
 0x2bd   : > { %v1752_v60 = vpop.f32.mrf.mxu0 }
 0x2be   : > { %v6294_v61 = vpack.c.bf16 %v5494_v29, %v5494_v29  ;;  %v3955_v62 = vpack.c.bf16 %v3725_v54, %v3724_v51  ;;  %v5160_v63 = vmax.f32 %v4570_v55, 0.0  ;;  %v1753_v58 = vadd.f32 %v8491_v47, %v1752_v60 }
 0x2c0   : > { %v6550_v2 = vunpack.c.l.b16 %v6294_v61  ;;  %v5495_v4 = vmax.f32 %v5159_v59, %v5160_v63  ;;  %v2289_v5 = vmax.f32 %v1753_v58, 0.0  ;;  %7740 = vmatmul.msk.bf16.gmra.mxu2 %vm2640_vm2, %v3955_v62 }
 0x2c1   : > { %v3164_v6 = vpop.f32.mrf.mxu1 }
 0x2c2   : > { %v6683_v7 = vsel %vm6675_vm9, %v6550_v2, %v6682_v0  ;;  %v2510_v8 = vpack.c.bf16 %v2289_v5, %v2288_v3  ;;  %v5496_v10 = vrot.slane %v5495_v4, 4  ;;  %v3165_v17 = vadd.f32 %v8525_v46, %v3164_v6 }
 0x2c3   : > { %v6783_v9 = vpack.c.b16 %v6683_v7, %v6683_v7  ;;  %v4572_v11 = vpop.f32.mrf.mxu2 }
 0x2c4   : > { %7605 = vmatmul.msk.bf16.gmra.mxu1 %vm2640_vm2, %v2510_v8  ;;  %v5497_v15 = vmax.f32 %v5495_v4, %v5496_v10  ;;  %v4573_v44 = vadd.f32 %v8587_v12, %v4572_v11  ;;  %v3726_v22 = vmax.f32 %v3165_v17, 0.0 }
 0x2c5   : > { %6815 = vst [vmem:[%s8506_s20 + $0x4] sm:$0xf] %v6783_v9  ;;  %v1755_v14 = vpop.f32.mrf.mxu0 }
 0x2c6   : > { %v5498_v20 = vrot.slane %v5497_v15, 2  ;;  %v1756_v23 = vadd.f32 %v8491_v47, %v1755_v14  ;;  %v5161_v27 = vmax.f32 %v4573_v44, 0.0  ;;  %v7893_v14 = vld [vmem:[%s8223_s19 + $0x168] sm:$0xff] }
 0x2c8   : > { %7470 = vmatmul.msk.bf16.gmra.mxu0 %vm1182_vm1, %v7891_v13  ;;  %v5499_v16 = vmax.f32 %v5497_v15, %v5498_v20  ;;  %v2290_v32 = vmax.f32 %v1756_v23, 0.0 }
 0x2c9   : > { %v3166_v18 = vpop.f32.mrf.mxu1 }
 0x2ca   : > { %v3167_v19 = vadd.f32 %v8525_v46, %v3166_v18  ;;  %v5500_v38 = vrot.slane %v5499_v16, 1 }
 0x2cb   : > { %v4574_v21 = vpop.f32.mrf.mxu2 }
 0x2cc   : > { %v3727_v24 = vmax.f32 %v3167_v19, 0.0  ;;  %v4575_v25 = vadd.f32 %v8587_v12, %v4574_v21  ;;  %v5501_v45 = vmax.f32 %v5499_v16, %v5500_v38 }
 0x2cd   : > { %v1757_v26 = vpop.f32.mrf.mxu0 }
 0x2ce   : > { %v3956_v28 = vpack.c.bf16 %v3727_v24, %v3726_v22  ;;  %v5162_v30 = vmax.f32 %v4575_v25, 0.0  ;;  %v1758_v31 = vadd.f32 %v8491_v47, %v1757_v26  ;;  %v6295_v53 = vpack.c.bf16 %v5501_v45, %v5501_v45 }
 0x2d0   : > { %v5502_v33 = vmax.f32 %v5161_v27, %v5162_v30  ;;  %v2291_v34 = vmax.f32 %v1758_v31, 0.0  ;;  %7741 = vmatmul.msk.bf16.gmra.mxu2 %vm2640_vm2, %v3956_v28  ;;  %v6551_v3 = vunpack.c.l.b16 %v6295_v53 }
 0x2d1   : > { %v3169_v35 = vpop.f32.mrf.mxu1 }
 0x2d2   : > { %v5503_v36 = vrot.slane %v5502_v33, 4  ;;  %v2511_v37 = vpack.c.bf16 %v2291_v34, %v2290_v32  ;;  %v3170_v48 = vadd.f32 %v8525_v46, %v3169_v35 }
 0x2d3   : > { %v4577_v39 = vpop.f32.mrf.mxu2 }
 0x2d4   : > { %v5504_v40 = vmax.f32 %v5502_v33, %v5503_v36  ;;  %7606 = vmatmul.msk.bf16.gmra.mxu1 %vm2640_vm2, %v2511_v37  ;;  %v4578_v50 = vadd.f32 %v8587_v12, %v4577_v39  ;;  %v3728_v54 = vmax.f32 %v3170_v48, 0.0  ;;  %v7894_v48 = vld [vmem:[%s8223_s19 + $0x170] sm:$0xff] }
 0x2d5   : > { %v1760_v42 = vpop.f32.mrf.mxu0 }
 0x2d6   : > { %v5505_v43 = vrot.slane %v5504_v40, 2  ;;  %v1761_v57 = vadd.f32 %v8491_v47, %v1760_v42  ;;  %v5163_v61 = vmax.f32 %v4578_v50, 0.0 }
 0x2d8   : > { %v5506_v49 = vmax.f32 %v5504_v40, %v5505_v43  ;;  %7471 = vmatmul.msk.bf16.gmra.mxu0 %vm1182_vm1, %v7892_v41  ;;  %v2292_v5 = vmax.f32 %v1761_v57, 0.0 }
 0x2d9   : > { %v3171_v51 = vpop.f32.mrf.mxu1 }
 0x2da   : > { %v5507_v52 = vrot.slane %v5506_v49, 1  ;;  %v3172_v29 = vadd.f32 %v8525_v46, %v3171_v51 }
 0x2db   : > { %v4579_v55 = vpop.f32.mrf.mxu2 }
 0x2dc   : > { %v5508_v56 = vmax.f32 %v5506_v49, %v5507_v52  ;;  %v3729_v59 = vmax.f32 %v3172_v29, 0.0  ;;  %v4580_v60 = vadd.f32 %v8587_v12, %v4579_v55 }
 0x2dd   : > { %v1762_v62 = vpop.f32.mrf.mxu0 }
 0x2de   : > { %v6296_v63 = vpack.c.bf16 %v5508_v56, %v5508_v56  ;;  %v3957_v58 = vpack.c.bf16 %v3729_v59, %v3728_v54  ;;  %v5164_v1 = vmax.f32 %v4580_v60, 0.0  ;;  %v1763_v2 = vadd.f32 %v8491_v47, %v1762_v62 }
 0x2e0   : > { %v6552_v4 = vunpack.c.l.b16 %v6296_v63  ;;  %v5509_v0 = vmax.f32 %v5163_v61, %v5164_v1  ;;  %v2293_v6 = vmax.f32 %v1763_v2, 0.0  ;;  %7742 = vmatmul.msk.bf16.gmra.mxu2 %vm2640_vm2, %v3957_v58 }
 0x2e1   : > { %v3174_v7 = vpop.f32.mrf.mxu1 }
 0x2e2   : > { %v6684_v8 = vsel %vm6663_vm3, %v6552_v4, %v6551_v3  ;;  %v5510_v9 = vrot.slane %v5509_v0, 4  ;;  %v2512_v10 = vpack.c.bf16 %v2293_v6, %v2292_v5  ;;  %v3175_v18 = vadd.f32 %v8525_v46, %v3174_v7  ;;  %v7895_v7 = vld [vmem:[%s8223_s19 + $0x178] sm:$0xff] }
 0x2e3   : > { %v4582_v11 = vpop.f32.mrf.mxu2 }
 0x2e4   : > { %v5511_v13 = vmax.f32 %v5509_v0, %v5510_v9  ;;  %7607 = vmatmul.msk.bf16.gmra.mxu1 %vm2640_vm2, %v2512_v10  ;;  %v4583_v19 = vadd.f32 %v8587_v12, %v4582_v11  ;;  %v3730_v23 = vmax.f32 %v3175_v18, 0.0 }
 0x2e5   : > { %v1765_v15 = vpop.f32.mrf.mxu0 }
 0x2e6   : > { %v5512_v17 = vrot.slane %v5511_v13, 2  ;;  %v1766_v26 = vadd.f32 %v8491_v47, %v1765_v15  ;;  %v5165_v30 = vmax.f32 %v4583_v19, 0.0 }
 0x2e8   : > { %v5513_v44 = vmax.f32 %v5511_v13, %v5512_v17  ;;  %7472 = vmatmul.msk.bf16.gmra.mxu0 %vm1182_vm1, %v7893_v14  ;;  %v2294_v36 = vmax.f32 %v1766_v26, 0.0 }
 0x2e9   : > { %v3176_v20 = vpop.f32.mrf.mxu1 }
 0x2ea   : > { %v5514_v21 = vrot.slane %v5513_v44, 1  ;;  %v3177_v22 = vadd.f32 %v8525_v46, %v3176_v20 }
 0x2eb   : > { %v4584_v24 = vpop.f32.mrf.mxu2 }
 0x2ec   : > { %v5515_v25 = vmax.f32 %v5513_v44, %v5514_v21  ;;  %v3731_v27 = vmax.f32 %v3177_v22, 0.0  ;;  %v4585_v28 = vadd.f32 %v8587_v12, %v4584_v24 }
 0x2ed   : > { %v1767_v31 = vpop.f32.mrf.mxu0 }
 0x2ee   : > { %v6297_v16 = vpack.c.bf16 %v5515_v25, %v5515_v25  ;;  %v3958_v32 = vpack.c.bf16 %v3731_v27, %v3730_v23  ;;  %v5166_v33 = vmax.f32 %v4585_v28, 0.0  ;;  %v1768_v34 = vadd.f32 %v8491_v47, %v1767_v31  ;;  %v7896_v28 = vld [vmem:[%s8223_s19 + $0x180] sm:$0xff] }
 0x2f0   : > { %v6553_v35 = vunpack.c.l.b16 %v6297_v16  ;;  %v5516_v37 = vmax.f32 %v5165_v30, %v5166_v33  ;;  %v2295_v38 = vmax.f32 %v1768_v34, 0.0  ;;  %7743 = vmatmul.msk.bf16.gmra.mxu2 %vm2640_vm2, %v3958_v32 }
 0x2f1   : > { %v3179_v39 = vpop.f32.mrf.mxu1 }
 0x2f2   : > { %v6685_v40 = vsel %vm6665_vm4, %v6553_v35, %v6684_v8  ;;  %v5517_v41 = vrot.slane %v5516_v37, 4  ;;  %v2513_v42 = vpack.c.bf16 %v2295_v38, %v2294_v36  ;;  %v3180_v52 = vadd.f32 %v8525_v46, %v3179_v39 }
 0x2f3   : > { %v4587_v43 = vpop.f32.mrf.mxu2 }
 0x2f4   : > { %v5518_v45 = vmax.f32 %v5516_v37, %v5517_v41  ;;  %7608 = vmatmul.msk.bf16.gmra.mxu1 %vm2640_vm2, %v2513_v42  ;;  %v3732_v57 = vmax.f32 %v3180_v52, 0.0  ;;  %v4588_v25 = vadd.f32 %v8587_v12, %v4587_v43 }
 0x2f5   : > { %v1770_v49 = vpop.f32.mrf.mxu0 }
 0x2f6   : > { %v5519_v50 = vrot.slane %v5518_v45, 2  ;;  %v1771_v59 = vadd.f32 %v8491_v47, %v1770_v49  ;;  %v5167_v32 = vmax.f32 %v4588_v25, 0.0  ;;  %v8684_v25 = vld [vmem:[%s10085_s2] ss:$0 sm:$0xff] }
 0x2f8   : > { %v5520_v51 = vmax.f32 %v5518_v45, %v5519_v50  ;;  %7473 = vmatmul.msk.bf16.gmra.mxu0 %vm1182_vm1, %v7894_v48  ;;  %v2296_v2 = vmax.f32 %v1771_v59, 0.0 }
 0x2f9   : > { %v3181_v29 = vpop.f32.mrf.mxu1 }
 0x2fa   : > { %v5521_v53 = vrot.slane %v5520_v51, 1  ;;  %v3182_v54 = vadd.f32 %v8525_v46, %v3181_v29 }
 0x2fb   : > { %v4589_v55 = vpop.f32.mrf.mxu2 }
 0x2fc   : > { %v5522_v56 = vmax.f32 %v5520_v51, %v5521_v53  ;;  %v3733_v60 = vmax.f32 %v3182_v54, 0.0  ;;  %v4590_v22 = vadd.f32 %v8587_v12, %v4589_v55 }
 0x2fd   : > { %v1772_v61 = vpop.f32.mrf.mxu0 }
 0x2fe   : > { %v6298_v62 = vpack.c.bf16 %v5522_v56, %v5522_v56  ;;  %v3959_v63 = vpack.c.bf16 %v3733_v60, %v3732_v57  ;;  %v1773_v58 = vadd.f32 %v8491_v47, %v1772_v61  ;;  %v5168_v30 = vmax.f32 %v4590_v22, 0.0 }
 0x300   : > { %v6554_v1 = vunpack.c.l.b16 %v6298_v62  ;;  %v2297_v3 = vmax.f32 %v1773_v58, 0.0  ;;  %7744 = vmatmul.msk.bf16.gmra.mxu2 %vm2640_vm2, %v3959_v63  ;;  %v5523_v35 = vmax.f32 %v5167_v32, %v5168_v30 }
 0x301   : > { %v3184_v4 = vpop.f32.mrf.mxu1 }
 0x302   : > { %v8649_v5 = vsel %vm6667_vm5, %v6554_v1, %v6685_v40  ;;  %v2514_v0 = vpack.c.bf16 %v2297_v3, %v2296_v2  ;;  %v3185_v9 = vadd.f32 %v8525_v46, %v3184_v4  ;;  %v5524_v49 = vrot.slane %v5523_v35, 4  ;;  %v7897_v1 = vld [vmem:[%s8223_s19 + $0x188] sm:$0xff] }
 0x303   : > { %v4592_v6 = vpop.f32.mrf.mxu2 }
 0x304   : > { %7609 = vmatmul.msk.bf16.gmra.mxu1 %vm2640_vm2, %v2514_v0  ;;  %v3734_v14 = vmax.f32 %v3185_v9, 0.0  ;;  %v4593_v31 = vadd.f32 %v8587_v12, %v4592_v6  ;;  %v5525_v59 = vmax.f32 %v5523_v35, %v5524_v49 }
 0x305   : > { %v1775_v8 = vpop.f32.mrf.mxu0 }
 0x306   : > { %v1776_v15 = vadd.f32 %v8491_v47, %v1775_v8  ;;  %v5169_v36 = vmax.f32 %v4593_v31, 0.0  ;;  %v5526_v2 = vrot.slane %v5525_v59, 2 }
 0x308   : > { %7474 = vmatmul.msk.bf16.gmra.mxu0 %vm1182_vm1, %v7895_v7  ;;  %v2298_v20 = vmax.f32 %v1776_v15, 0.0  ;;  %v5527_v7 = vmax.f32 %v5525_v59, %v5526_v2 }
 0x309   : > { %v3186_v10 = vpop.f32.mrf.mxu1 }
 0x30a   : > { %v3187_v11 = vadd.f32 %v8525_v46, %v3186_v10 }
 0x30b   : > { %v4594_v13 = vpop.f32.mrf.mxu2 }
 0x30c   : > { %v3735_v17 = vmax.f32 %v3187_v11, 0.0  ;;  %v4595_v26 = vadd.f32 %v8587_v12, %v4594_v13 }
 0x30d   : > { %v1777_v18 = vpop.f32.mrf.mxu0 }
 0x30e   : > { %v3960_v44 = vpack.c.bf16 %v3735_v17, %v3734_v14  ;;  %v1778_v19 = vadd.f32 %v8491_v47, %v1777_v18  ;;  %v5170_v33 = vmax.f32 %v4595_v26, 0.0 }
 0x310   : > { %v2299_v21 = vmax.f32 %v1778_v19, 0.0  ;;  %7745 = vmatmul.msk.bf16.gmra.mxu2 %vm2640_vm2, %v3960_v44  ;;  %v5530_v40 = vmax.f32 %v5169_v36, %v5170_v33  ;;  %v5528_v19 = vrot.slane %v5527_v7, 1 }
 0x311   : > { %v3189_v23 = vpop.f32.mrf.mxu1 }
 0x312   : > { %v2515_v24 = vpack.c.bf16 %v2299_v21, %v2298_v20  ;;  %v3190_v34 = vadd.f32 %v8525_v46, %v3189_v23  ;;  %v5531_v54 = vrot.slane %v5530_v40, 4  ;;  %v5529_v31 = vmax.f32 %v5527_v7, %v5528_v19 }
 0x313   : > { %v4597_v27 = vpop.f32.mrf.mxu2 }
 0x314   : > { %7610 = vmatmul.msk.bf16.gmra.mxu1 %vm2640_vm2, %v2515_v24  ;;  %v4598_v38 = vadd.f32 %v8587_v12, %v4597_v27  ;;  %v3736_v42 = vmax.f32 %v3190_v34, 0.0  ;;  %v5532_v63 = vmax.f32 %v5530_v40, %v5531_v54 }
 0x315   : > { %v1780_v16 = vpop.f32.mrf.mxu0 }
 0x316   : > { %v1781_v43 = vadd.f32 %v8491_v47, %v1780_v16  ;;  %v5171_v51 = vmax.f32 %v4598_v38, 0.0  ;;  %v5533_v0 = vrot.slane %v5532_v63, 2  ;;  %v7898_v38 = vld [vmem:[%s8223_s19 + $0x190] sm:$0xff] }
 0x318   : > { %7475 = vmatmul.msk.bf16.gmra.mxu0 %vm1182_vm1, %v7896_v28  ;;  %v2300_v55 = vmax.f32 %v1781_v43, 0.0  ;;  %v5534_v13 = vmax.f32 %v5532_v63, %v5533_v0 }
 0x319   : > { %v3191_v37 = vpop.f32.mrf.mxu1 }
 0x31a   : > { %v3192_v39 = vadd.f32 %v8525_v46, %v3191_v37  ;;  %v5535_v27 = vrot.slane %v5534_v13, 1 }
 0x31b   : > { %v4599_v41 = vpop.f32.mrf.mxu2 }
 0x31c   : > { %v3737_v45 = vmax.f32 %v3192_v39, 0.0  ;;  %v4600_v48 = vadd.f32 %v8587_v12, %v4599_v41  ;;  %v5536_v35 = vmax.f32 %v5534_v13, %v5535_v27  ;;  %v6299_v39 = vpack.c.bf16 %v5529_v31, %v5529_v31 }
 0x31d   : > { %v1782_v50 = vpop.f32.mrf.mxu0 }
 0x31e   : > { %v3961_v52 = vpack.c.bf16 %v3737_v45, %v3736_v42  ;;  %v5172_v29 = vmax.f32 %v4600_v48, 0.0  ;;  %v1783_v53 = vadd.f32 %v8491_v47, %v1782_v50  ;;  %v6300_v43 = vpack.c.bf16 %v5536_v35, %v5536_v35 }
 0x31f   : > { %v6555_v49 = vunpack.c.l.b16 %v6299_v39 }
 0x320   : > { %v5537_v56 = vmax.f32 %v5171_v51, %v5172_v29  ;;  %v2301_v57 = vmax.f32 %v1783_v53, 0.0  ;;  %7746 = vmatmul.msk.bf16.gmra.mxu2 %vm2640_vm2, %v3961_v52  ;;  %v6556_v54 = vunpack.c.l.b16 %v6300_v43 }
 0x321   : > { %v3194_v60 = vpop.f32.mrf.mxu1 }
 0x322   : > { %v5538_v61 = vrot.slane %v5537_v56, 4  ;;  %v2516_v62 = vpack.c.bf16 %v2301_v57, %v2300_v55  ;;  %v3195_v6 = vadd.f32 %v8525_v46, %v3194_v60 }
 0x323   : > { %v4602_v58 = vpop.f32.mrf.mxu2 }
 0x324   : > { %7611 = vmatmul.msk.bf16.gmra.mxu1 %vm2640_vm2, %v2516_v62  ;;  %v5539_v3 = vmax.f32 %v5537_v56, %v5538_v61  ;;  %v4603_v10 = vadd.f32 %v8587_v12, %v4602_v58  ;;  %v3738_v15 = vmax.f32 %v3195_v6, 0.0  ;;  %v6687_v62 = vsel %vm6669_vm6, %v6555_v49, %v8649_v5  ;;  %v7900_v49 = vld [vmem:[%s8223_s19 + $0x1a0] sm:$0xff] }
 0x325   : > { %v1785_v4 = vpop.f32.mrf.mxu0  ;;  %v6688_v6 = vsel %vm6671_vm7, %v6556_v54, %v6687_v62 }
 0x326   : > { %v5540_v8 = vrot.slane %v5539_v3, 2  ;;  %v1786_v17 = vadd.f32 %v8491_v47, %v1785_v4  ;;  %v5173_v22 = vmax.f32 %v4603_v10, 0.0 }
 0x328   : > { %7476 = vmatmul.msk.bf16.gmra.mxu0 %vm1182_vm1, %v7897_v1  ;;  %v5541_v20 = vmax.f32 %v5539_v3, %v5540_v8  ;;  %v2302_v28 = vmax.f32 %v1786_v17, 0.0 }
 0x329   : > { %v3196_v9 = vpop.f32.mrf.mxu1 }
 0x32a   : > { %v3197_v11 = vadd.f32 %v8525_v46, %v3196_v9  ;;  %v5542_v16 = vrot.slane %v5541_v20, 1 }
 0x32b   : > { %v4604_v14 = vpop.f32.mrf.mxu2 }
 0x32c   : > { %v3739_v18 = vmax.f32 %v3197_v11, 0.0  ;;  %v4605_v44 = vadd.f32 %v8587_v12, %v4604_v14  ;;  %v5543_v40 = vmax.f32 %v5541_v20, %v5542_v16 }
 0x32d   : > { %v1787_v21 = vpop.f32.mrf.mxu0 }
 0x32e   : > { %v3962_v23 = vpack.c.bf16 %v3739_v18, %v3738_v15  ;;  %v5174_v24 = vmax.f32 %v4605_v44, 0.0  ;;  %v1788_v26 = vadd.f32 %v8684_v25, %v1787_v21  ;;  %v6301_v50 = vpack.c.bf16 %v5543_v40, %v5543_v40  ;;  %v7899_v44 = vld [vmem:[%s8223_s19 + $0x198] sm:$0xff] }
 0x330   : > { %v5544_v47 = vmax.f32 %v5173_v22, %v5174_v24  ;;  %v2303_v30 = vmax.f32 %v1788_v26, 0.0  ;;  %7747 = vmatmul.msk.bf16.gmra.mxu2 %vm2640_vm2, %v3962_v23  ;;  %v6557_v63 = vunpack.c.l.b16 %v6301_v50  ;;  %v8712_v24 = vld [vmem:[%s10087_s4] ss:$0 sm:$0xff] }
 0x331   : > { %v3199_v32 = vpop.f32.mrf.mxu1 }
 0x332   : > { %v5545_v33 = vrot.slane %v5544_v47, 4  ;;  %v2517_v34 = vpack.c.bf16 %v2303_v30, %v2302_v28  ;;  %v3200_v45 = vadd.f32 %v8525_v46, %v3199_v32  ;;  %v6689_v5 = vsel %vm6673_vm8, %v6557_v63, %v6688_v6 }
 0x333   : > { %v4607_v36 = vpop.f32.mrf.mxu2 }
 0x334   : > { %v5546_v37 = vmax.f32 %v5544_v47, %v5545_v33  ;;  %7612 = vmatmul.msk.bf16.gmra.mxu1 %vm2640_vm2, %v2517_v34  ;;  %v4608_v51 = vadd.f32 %v8587_v12, %v4607_v36  ;;  %v3740_v55 = vmax.f32 %v3200_v45, 0.0 }
 0x335   : > { %v1790_v41 = vpop.f32.mrf.mxu0 }
 0x336   : > { %v5547_v42 = vrot.slane %v5546_v37, 2  ;;  %v1791_v59 = vadd.f32 %v8684_v25, %v1790_v41  ;;  %v5175_v58 = vmax.f32 %v4608_v51, 0.0 }
 0x338   : > { %v5548_v48 = vmax.f32 %v5546_v37, %v5547_v42  ;;  %7477 = vmatmul.msk.bf16.gmra.mxu0 %vm1182_vm1, %v7898_v38  ;;  %v2304_v8 = vmax.f32 %v1791_v59, 0.0 }
 0x339   : > { %v3201_v52 = vpop.f32.mrf.mxu1 }
 0x33a   : > { %v5549_v29 = vrot.slane %v5548_v48, 1  ;;  %v3202_v53 = vadd.f32 %v8525_v46, %v3201_v52 }
 0x33b   : > { %v4609_v56 = vpop.f32.mrf.mxu2 }
 0x33c   : > { %v5550_v57 = vmax.f32 %v5548_v48, %v5549_v29  ;;  %v3741_v60 = vmax.f32 %v3202_v53, 0.0  ;;  %v4610_v61 = vadd.f32 %v8587_v12, %v4609_v56 }
 0x33d   : > { %v1792_v1 = vpop.f32.mrf.mxu0 }
 0x33e   : > { %v6302_v2 = vpack.c.bf16 %v5550_v57, %v5550_v57  ;;  %v3963_v3 = vpack.c.bf16 %v3741_v60, %v3740_v55  ;;  %v5176_v4 = vmax.f32 %v4610_v61, 0.0  ;;  %v1793_v0 = vadd.f32 %v8684_v25, %v1792_v1 }
 0x340   : > { %v6558_v7 = vunpack.c.l.b16 %v6302_v2  ;;  %v5551_v9 = vmax.f32 %v5175_v58, %v5176_v4  ;;  %v2305_v10 = vmax.f32 %v1793_v0, 0.0  ;;  %7748 = vmatmul.msk.bf16.gmra.mxu2 %vm2640_vm2, %v3963_v3 }
 0x341   : > { %v3204_v11 = vpop.f32.mrf.mxu1 }
 0x342   : > { %v6690_v13 = vsel %vm6675_vm9, %v6558_v7, %v6689_v5  ;;  %v2518_v14 = vpack.c.bf16 %v2305_v10, %v2304_v8  ;;  %v5552_v17 = vrot.slane %v5551_v9, 4  ;;  %v3205_v21 = vadd.f32 %v8525_v46, %v3204_v11 }
 0x343   : > { %v6784_v15 = vpack.c.b16 %v6690_v13, %v6690_v13  ;;  %v4612_v18 = vpop.f32.mrf.mxu2 }
 0x344   : > { %7613 = vmatmul.msk.bf16.gmra.mxu1 %vm2640_vm2, %v2518_v14  ;;  %v5553_v20 = vmax.f32 %v5551_v9, %v5552_v17  ;;  %v4613_v23 = vadd.f32 %v8587_v12, %v4612_v18  ;;  %v3742_v47 = vmax.f32 %v3205_v21, 0.0 }
 0x345   : > { %6816 = vst [vmem:[%s8506_s20 + $0x8] sm:$0xf] %v6784_v15  ;;  %v1795_v19 = vpop.f32.mrf.mxu0 }
 0x346   : > { %v5554_v27 = vrot.slane %v5553_v20, 2  ;;  %v1796_v30 = vadd.f32 %v8684_v25, %v1795_v19  ;;  %v5177_v32 = vmax.f32 %v4613_v23, 0.0  ;;  %v7901_v19 = vld [vmem:[%s8223_s19 + $0x1a8] sm:$0xff] }
 0x348   : > { %7478 = vmatmul.msk.bf16.gmra.mxu0 %vm1182_vm1, %v7899_v44  ;;  %v5555_v36 = vmax.f32 %v5553_v20, %v5554_v27  ;;  %v2306_v37 = vmax.f32 %v1796_v30, 0.0 }
 0x349   : > { %v3206_v22 = vpop.f32.mrf.mxu1 }
 0x34a   : > { %v3207_v26 = vadd.f32 %v8712_v24, %v3206_v22  ;;  %v5556_v43 = vrot.slane %v5555_v36, 1 }
 0x34b   : > { %v4614_v28 = vpop.f32.mrf.mxu2 }
 0x34c   : > { %v3743_v31 = vmax.f32 %v3207_v26, 0.0  ;;  %v4615_v46 = vadd.f32 %v8587_v12, %v4614_v28  ;;  %v5557_v52 = vmax.f32 %v5555_v36, %v5556_v43 }
 0x34d   : > { %v1797_v16 = vpop.f32.mrf.mxu0 }
 0x34e   : > { %v3964_v33 = vpack.c.bf16 %v3743_v31, %v3742_v47  ;;  %v5178_v34 = vmax.f32 %v4615_v46, 0.0  ;;  %v1798_v35 = vadd.f32 %v8684_v25, %v1797_v16  ;;  %v6303_v59 = vpack.c.bf16 %v5557_v52, %v5557_v52 }
 0x350   : > { %v5558_v38 = vmax.f32 %v5177_v32, %v5178_v34  ;;  %v2307_v39 = vmax.f32 %v1798_v35, 0.0  ;;  %7749 = vmatmul.msk.bf16.gmra.mxu2 %vm2640_vm2, %v3964_v33  ;;  %v6559_v8 = vunpack.c.l.b16 %v6303_v59 }
 0x351   : > { %v3209_v40 = vpop.f32.mrf.mxu1 }
 0x352   : > { %v5559_v41 = vrot.slane %v5558_v38, 4  ;;  %v2519_v42 = vpack.c.bf16 %v2307_v39, %v2306_v37  ;;  %v3210_v29 = vadd.f32 %v8712_v24, %v3209_v40 }
 0x353   : > { %v4617_v45 = vpop.f32.mrf.mxu2 }
 0x354   : > { %v5560_v48 = vmax.f32 %v5558_v38, %v5559_v41  ;;  %7614 = vmatmul.msk.bf16.gmra.mxu1 %vm2640_vm2, %v2519_v42  ;;  %v4618_v54 = vadd.f32 %v8587_v12, %v4617_v45  ;;  %v3744_v60 = vmax.f32 %v3210_v29, 0.0  ;;  %v7902_v29 = vld [vmem:[%s8223_s19 + $0x1b0] sm:$0xff] }
 0x355   : > { %v1800_v50 = vpop.f32.mrf.mxu0 }
 0x356   : > { %v5561_v51 = vrot.slane %v5560_v48, 2  ;;  %v1801_v63 = vadd.f32 %v8684_v25, %v1800_v50  ;;  %v5179_v2 = vmax.f32 %v4618_v54, 0.0 }
 0x358   : > { %v5562_v53 = vmax.f32 %v5560_v48, %v5561_v51  ;;  %7479 = vmatmul.msk.bf16.gmra.mxu0 %vm1182_vm1, %v7900_v49  ;;  %v2308_v10 = vmax.f32 %v1801_v63, 0.0 }
 0x359   : > { %v3211_v55 = vpop.f32.mrf.mxu1 }
 0x35a   : > { %v5563_v56 = vrot.slane %v5562_v53, 1  ;;  %v3212_v57 = vadd.f32 %v8712_v24, %v3211_v55 }
 0x35b   : > { %v4619_v61 = vpop.f32.mrf.mxu2 }
 0x35c   : > { %v5564_v62 = vmax.f32 %v5562_v53, %v5563_v56  ;;  %v3745_v58 = vmax.f32 %v3212_v57, 0.0  ;;  %v4620_v1 = vadd.f32 %v8587_v12, %v4619_v61 }
 0x35d   : > { %v1802_v3 = vpop.f32.mrf.mxu0 }
 0x35e   : > { %v6304_v4 = vpack.c.bf16 %v5564_v62, %v5564_v62  ;;  %v3965_v0 = vpack.c.bf16 %v3745_v58, %v3744_v60  ;;  %v5180_v6 = vmax.f32 %v4620_v1, 0.0  ;;  %v1803_v7 = vadd.f32 %v8684_v25, %v1802_v3 }
 0x360   : > { %v6560_v9 = vunpack.c.l.b16 %v6304_v4  ;;  %v5565_v5 = vmax.f32 %v5179_v2, %v5180_v6  ;;  %v2309_v11 = vmax.f32 %v1803_v7, 0.0  ;;  %7750 = vmatmul.msk.bf16.gmra.mxu2 %vm2640_vm2, %v3965_v0 }
 0x361   : > { %v3214_v13 = vpop.f32.mrf.mxu1 }
 0x362   : > { %v6691_v14 = vsel %vm6663_vm3, %v6560_v9, %v6559_v8  ;;  %v5566_v15 = vrot.slane %v5565_v5, 4  ;;  %v2520_v17 = vpack.c.bf16 %v2309_v11, %v2308_v10  ;;  %v3215_v22 = vadd.f32 %v8712_v24, %v3214_v13  ;;  %v7903_v13 = vld [vmem:[%s8223_s19 + $0x1b8] sm:$0xff] }
 0x363   : > { %v4622_v18 = vpop.f32.mrf.mxu2 }
 0x364   : > { %v5567_v44 = vmax.f32 %v5565_v5, %v5566_v15  ;;  %7615 = vmatmul.msk.bf16.gmra.mxu1 %vm2640_vm2, %v2520_v17  ;;  %v4623_v26 = vadd.f32 %v8587_v12, %v4622_v18  ;;  %v3746_v30 = vmax.f32 %v3215_v22, 0.0 }
 0x365   : > { %v1805_v20 = vpop.f32.mrf.mxu0 }
 0x366   : > { %v5568_v21 = vrot.slane %v5567_v44, 2  ;;  %v1806_v16 = vadd.f32 %v8684_v25, %v1805_v20  ;;  %v5181_v34 = vmax.f32 %v4623_v26, 0.0 }
 0x368   : > { %v5569_v23 = vmax.f32 %v5567_v44, %v5568_v21  ;;  %7480 = vmatmul.msk.bf16.gmra.mxu0 %vm1182_vm1, %v7901_v19  ;;  %v2310_v41 = vmax.f32 %v1806_v16, 0.0 }
 0x369   : > { %v3216_v27 = vpop.f32.mrf.mxu1 }
 0x36a   : > { %v5570_v28 = vrot.slane %v5569_v23, 1  ;;  %v3217_v47 = vadd.f32 %v8712_v24, %v3216_v27 }
 0x36b   : > { %v4624_v31 = vpop.f32.mrf.mxu2 }
 0x36c   : > { %v5571_v46 = vmax.f32 %v5569_v23, %v5570_v28  ;;  %v3747_v32 = vmax.f32 %v3217_v47, 0.0  ;;  %v4625_v33 = vadd.f32 %v8587_v12, %v4624_v31 }
 0x36d   : > { %v1807_v35 = vpop.f32.mrf.mxu0 }
 0x36e   : > { %v6305_v36 = vpack.c.bf16 %v5571_v46, %v5571_v46  ;;  %v3966_v37 = vpack.c.bf16 %v3747_v32, %v3746_v30  ;;  %v5182_v38 = vmax.f32 %v4625_v33, 0.0  ;;  %v1808_v39 = vadd.f32 %v8684_v25, %v1807_v35  ;;  %v7904_v33 = vld [vmem:[%s8223_s19 + $0x1c0] sm:$0xff] }
 0x370   : > { %v6561_v40 = vunpack.c.l.b16 %v6305_v36  ;;  %v5572_v42 = vmax.f32 %v5181_v34, %v5182_v38  ;;  %v2311_v43 = vmax.f32 %v1808_v39, 0.0  ;;  %7751 = vmatmul.msk.bf16.gmra.mxu2 %vm2640_vm2, %v3966_v37 }
 0x371   : > { %v3219_v45 = vpop.f32.mrf.mxu1 }
 0x372   : > { %v6692_v48 = vsel %vm6665_vm4, %v6561_v40, %v6691_v14  ;;  %v5573_v49 = vrot.slane %v5572_v42, 4  ;;  %v2521_v50 = vpack.c.bf16 %v2311_v43, %v2310_v41  ;;  %v3220_v56 = vadd.f32 %v8712_v24, %v3219_v45 }
 0x373   : > { %v4627_v51 = vpop.f32.mrf.mxu2 }
 0x374   : > { %v5574_v52 = vmax.f32 %v5572_v42, %v5573_v49  ;;  %7616 = vmatmul.msk.bf16.gmra.mxu1 %vm2640_vm2, %v2521_v50  ;;  %v3748_v63 = vmax.f32 %v3220_v56, 0.0  ;;  %v4628_v46 = vadd.f32 %v8587_v12, %v4627_v51 }
 0x375   : > { %v1810_v53 = vpop.f32.mrf.mxu0 }
 0x376   : > { %v5575_v54 = vrot.slane %v5574_v52, 2  ;;  %v1811_v58 = vadd.f32 %v8684_v25, %v1810_v53  ;;  %v5183_v37 = vmax.f32 %v4628_v46, 0.0 }
 0x378   : > { %v5576_v55 = vmax.f32 %v5574_v52, %v5575_v54  ;;  %7481 = vmatmul.msk.bf16.gmra.mxu0 %vm1182_vm1, %v7902_v29  ;;  %v2312_v7 = vmax.f32 %v1811_v58, 0.0 }
 0x379   : > { %v3221_v57 = vpop.f32.mrf.mxu1 }
 0x37a   : > { %v5577_v59 = vrot.slane %v5576_v55, 1  ;;  %v3222_v60 = vadd.f32 %v8712_v24, %v3221_v57 }
 0x37b   : > { %v4629_v61 = vpop.f32.mrf.mxu2 }
 0x37c   : > { %v5578_v62 = vmax.f32 %v5576_v55, %v5577_v59  ;;  %v3749_v1 = vmax.f32 %v3222_v60, 0.0  ;;  %v4630_v47 = vadd.f32 %v8587_v12, %v4629_v61 }
 0x37d   : > { %v1812_v2 = vpop.f32.mrf.mxu0 }
 0x37e   : > { %v6306_v3 = vpack.c.bf16 %v5578_v62, %v5578_v62  ;;  %v3967_v4 = vpack.c.bf16 %v3749_v1, %v3748_v63  ;;  %v1813_v0 = vadd.f32 %v8684_v25, %v1812_v2  ;;  %v5184_v34 = vmax.f32 %v4630_v47, 0.0 }
 0x380   : > { %v6562_v6 = vunpack.c.l.b16 %v6306_v3  ;;  %v2313_v8 = vmax.f32 %v1813_v0, 0.0  ;;  %7752 = vmatmul.msk.bf16.gmra.mxu2 %vm2640_vm2, %v3967_v4  ;;  %v5579_v40 = vmax.f32 %v5183_v37, %v5184_v34  ;;  %v7905_v0 = vld [vmem:[%s8223_s19 + $0x1c8] sm:$0xff] }
 0x381   : > { %v3224_v9 = vpop.f32.mrf.mxu1 }
 0x382   : > { %v8750_v10 = vsel %vm6667_vm5, %v6562_v6, %v6692_v48  ;;  %v2522_v5 = vpack.c.bf16 %v2313_v8, %v2312_v7  ;;  %v3225_v15 = vadd.f32 %v8712_v24, %v3224_v9  ;;  %v5580_v53 = vrot.slane %v5579_v40, 4 }
 0x383   : > { %v4632_v11 = vpop.f32.mrf.mxu2 }
 0x384   : > { %7617 = vmatmul.msk.bf16.gmra.mxu1 %vm2640_vm2, %v2522_v5  ;;  %v3750_v19 = vmax.f32 %v3225_v15, 0.0  ;;  %v4633_v35 = vadd.f32 %v8587_v12, %v4632_v11  ;;  %v5581_v58 = vmax.f32 %v5579_v40, %v5580_v53  ;;  %v8781_v15 = vld [vmem:[%s10089_s6] ss:$0 sm:$0xff] }
 0x385   : > { %v1815_v14 = vpop.f32.mrf.mxu0 }
 0x386   : > { %v1816_v20 = vadd.f32 %v8684_v25, %v1815_v14  ;;  %v5185_v41 = vmax.f32 %v4633_v35, 0.0  ;;  %v5582_v6 = vrot.slane %v5581_v58, 2 }
 0x388   : > { %7482 = vmatmul.msk.bf16.gmra.mxu0 %vm1182_vm1, %v7903_v13  ;;  %v2314_v27 = vmax.f32 %v1816_v20, 0.0  ;;  %v5583_v11 = vmax.f32 %v5581_v58, %v5582_v6 }
 0x389   : > { %v3226_v17 = vpop.f32.mrf.mxu1 }
 0x38a   : > { %v3227_v18 = vadd.f32 %v8712_v24, %v3226_v17 }
 0x38b   : > { %v4634_v44 = vpop.f32.mrf.mxu2 }
 0x38c   : > { %v3751_v21 = vmax.f32 %v3227_v18, 0.0  ;;  %v4635_v16 = vadd.f32 %v8587_v12, %v4634_v44 }
 0x38d   : > { %v1817_v22 = vpop.f32.mrf.mxu0 }
 0x38e   : > { %v3968_v23 = vpack.c.bf16 %v3751_v21, %v3750_v19  ;;  %v1818_v26 = vadd.f32 %v8684_v25, %v1817_v22  ;;  %v5186_v38 = vmax.f32 %v4635_v16, 0.0 }
 0x390   : > { %v2315_v28 = vmax.f32 %v1818_v26, 0.0  ;;  %7753 = vmatmul.msk.bf16.gmra.mxu2 %vm2640_vm2, %v3968_v23  ;;  %v5586_v48 = vmax.f32 %v5185_v41, %v5186_v38  ;;  %v5584_v26 = vrot.slane %v5583_v11, 1 }
 0x391   : > { %v3229_v30 = vpop.f32.mrf.mxu1 }
 0x392   : > { %v2523_v31 = vpack.c.bf16 %v2315_v28, %v2314_v27  ;;  %v3230_v39 = vadd.f32 %v8712_v24, %v3229_v30  ;;  %v5587_v60 = vrot.slane %v5586_v48, 4  ;;  %v5585_v35 = vmax.f32 %v5583_v11, %v5584_v26 }
 0x393   : > { %v4637_v32 = vpop.f32.mrf.mxu2 }
 0x394   : > { %7618 = vmatmul.msk.bf16.gmra.mxu1 %vm2640_vm2, %v2523_v31  ;;  %v4638_v43 = vadd.f32 %v8587_v12, %v4637_v32  ;;  %v3752_v50 = vmax.f32 %v3230_v39, 0.0  ;;  %v5588_v4 = vmax.f32 %v5586_v48, %v5587_v60 }
 0x395   : > { %v1820_v36 = vpop.f32.mrf.mxu0 }
 0x396   : > { %v1821_v51 = vadd.f32 %v8684_v25, %v1820_v36  ;;  %v5187_v55 = vmax.f32 %v4638_v43, 0.0  ;;  %v5589_v9 = vrot.slane %v5588_v4, 2  ;;  %v7906_v43 = vld [vmem:[%s8223_s19 + $0x1d0] sm:$0xff] }
 0x398   : > { %7483 = vmatmul.msk.bf16.gmra.mxu0 %vm1182_vm1, %v7904_v33  ;;  %v2316_v61 = vmax.f32 %v1821_v51, 0.0  ;;  %v5590_v44 = vmax.f32 %v5588_v4, %v5589_v9 }
 0x399   : > { %v3231_v42 = vpop.f32.mrf.mxu1 }
 0x39a   : > { %v3232_v45 = vadd.f32 %v8712_v24, %v3231_v42  ;;  %v5591_v16 = vrot.slane %v5590_v44, 1 }
 0x39b   : > { %v4639_v49 = vpop.f32.mrf.mxu2 }
 0x39c   : > { %v3753_v52 = vmax.f32 %v3232_v45, 0.0  ;;  %v4640_v29 = vadd.f32 %v8587_v12, %v4639_v49  ;;  %v5592_v40 = vmax.f32 %v5590_v44, %v5591_v16  ;;  %v6307_v45 = vpack.c.bf16 %v5585_v35, %v5585_v35 }
 0x39d   : > { %v1822_v54 = vpop.f32.mrf.mxu0 }
 0x39e   : > { %v3969_v56 = vpack.c.bf16 %v3753_v52, %v3752_v50  ;;  %v5188_v57 = vmax.f32 %v4640_v29, 0.0  ;;  %v1823_v59 = vadd.f32 %v8684_v25, %v1822_v54  ;;  %v6308_v51 = vpack.c.bf16 %v5592_v40, %v5592_v40 }
 0x39f   : > { %v6563_v53 = vunpack.c.l.b16 %v6307_v45 }
 0x3a0   : > { %v5593_v62 = vmax.f32 %v5187_v55, %v5188_v57  ;;  %v2317_v63 = vmax.f32 %v1823_v59, 0.0  ;;  %7754 = vmatmul.msk.bf16.gmra.mxu2 %vm2640_vm2, %v3969_v56  ;;  %v6564_v60 = vunpack.c.l.b16 %v6308_v51 }
 0x3a1   : > { %v3234_v1 = vpop.f32.mrf.mxu1 }
 0x3a2   : > { %v5594_v2 = vrot.slane %v5593_v62, 4  ;;  %v2524_v3 = vpack.c.bf16 %v2317_v63, %v2316_v61  ;;  %v3235_v5 = vadd.f32 %v8712_v24, %v3234_v1 }
 0x3a3   : > { %v4642_v12 = vpop.f32.mrf.mxu2 }
 0x3a4   : > { %7619 = vmatmul.msk.bf16.gmra.mxu1 %vm2640_vm2, %v2524_v3  ;;  %v5595_v7 = vmax.f32 %v5593_v62, %v5594_v2  ;;  %v4643_v17 = vadd.f32 %v8781_v15, %v4642_v12  ;;  %v3754_v20 = vmax.f32 %v3235_v5, 0.0  ;;  %v6694_v3 = vsel %vm6669_vm6, %v6563_v53, %v8750_v10  ;;  %v7908_v53 = vld [vmem:[%s8223_s19 + $0x1e0] sm:$0xff] }
 0x3a5   : > { %v1825_v8 = vpop.f32.mrf.mxu0  ;;  %v6695_v5 = vsel %vm6671_vm7, %v6564_v60, %v6694_v3 }
 0x3a6   : > { %v5596_v13 = vrot.slane %v5595_v7, 2  ;;  %v1826_v21 = vadd.f32 %v8684_v25, %v1825_v8  ;;  %v5189_v47 = vmax.f32 %v4643_v17, 0.0 }
 0x3a8   : > { %7484 = vmatmul.msk.bf16.gmra.mxu0 %vm1182_vm1, %v7905_v0  ;;  %v5597_v27 = vmax.f32 %v5595_v7, %v5596_v13  ;;  %v2318_v32 = vmax.f32 %v1826_v21, 0.0 }
 0x3a9   : > { %v3236_v14 = vpop.f32.mrf.mxu1 }
 0x3aa   : > { %v3237_v18 = vadd.f32 %v8712_v24, %v3236_v14  ;;  %v5598_v36 = vrot.slane %v5597_v27, 1 }
 0x3ab   : > { %v4644_v19 = vpop.f32.mrf.mxu2 }
 0x3ac   : > { %v3755_v22 = vmax.f32 %v3237_v18, 0.0  ;;  %v4645_v23 = vadd.f32 %v8781_v15, %v4644_v19  ;;  %v5599_v48 = vmax.f32 %v5597_v27, %v5598_v36 }
 0x3ad   : > { %v1827_v28 = vpop.f32.mrf.mxu0 }
 0x3ae   : > { %v3970_v30 = vpack.c.bf16 %v3755_v22, %v3754_v20  ;;  %v5190_v31 = vmax.f32 %v4645_v23, 0.0  ;;  %v1828_v46 = vadd.f32 %v8684_v25, %v1827_v28  ;;  %v6309_v54 = vpack.c.bf16 %v5599_v48, %v5599_v48  ;;  %v7907_v23 = vld [vmem:[%s8223_s19 + $0x1d8] sm:$0xff] }
 0x3b0   : > { %v5600_v33 = vmax.f32 %v5189_v47, %v5190_v31  ;;  %v2319_v34 = vmax.f32 %v1828_v46, 0.0  ;;  %7755 = vmatmul.msk.bf16.gmra.mxu2 %vm2640_vm2, %v3970_v30  ;;  %v6565_v4 = vunpack.c.l.b16 %v6309_v54 }
 0x3b1   : > { %v3239_v37 = vpop.f32.mrf.mxu1 }
 0x3b2   : > { %v5601_v38 = vrot.slane %v5600_v33, 4  ;;  %v2525_v39 = vpack.c.bf16 %v2319_v34, %v2318_v32  ;;  %v3240_v52 = vadd.f32 %v8712_v24, %v3239_v37  ;;  %v6696_v10 = vsel %vm6673_vm8, %v6565_v4, %v6695_v5 }
 0x3b3   : > { %v4647_v41 = vpop.f32.mrf.mxu2 }
 0x3b4   : > { %v5602_v42 = vmax.f32 %v5600_v33, %v5601_v38  ;;  %7620 = vmatmul.msk.bf16.gmra.mxu1 %vm2640_vm2, %v2525_v39  ;;  %v4648_v55 = vadd.f32 %v8781_v15, %v4647_v41  ;;  %v3756_v61 = vmax.f32 %v3240_v52, 0.0 }
 0x3b5   : > { %v1830_v49 = vpop.f32.mrf.mxu0 }
 0x3b6   : > { %v5603_v50 = vrot.slane %v5602_v42, 2  ;;  %v1831_v58 = vadd.f32 %v8684_v25, %v1830_v49  ;;  %v5191_v12 = vmax.f32 %v4648_v55, 0.0 }
 0x3b8   : > { %v5604_v29 = vmax.f32 %v5602_v42, %v5603_v50  ;;  %7485 = vmatmul.msk.bf16.gmra.mxu0 %vm1182_vm1, %v7906_v43  ;;  %v2320_v13 = vmax.f32 %v1831_v58, 0.0 }
 0x3b9   : > { %v3241_v56 = vpop.f32.mrf.mxu1 }
 0x3ba   : > { %v5605_v57 = vrot.slane %v5604_v29, 1  ;;  %v3242_v59 = vadd.f32 %v8712_v24, %v3241_v56 }
 0x3bb   : > { %v4649_v62 = vpop.f32.mrf.mxu2 }
 0x3bc   : > { %v5606_v63 = vmax.f32 %v5604_v29, %v5605_v57  ;;  %v3757_v1 = vmax.f32 %v3242_v59, 0.0  ;;  %v4650_v2 = vadd.f32 %v8781_v15, %v4649_v62 }
 0x3bd   : > { %v1832_v0 = vpop.f32.mrf.mxu0 }
 0x3be   : > { %v6310_v6 = vpack.c.bf16 %v5606_v63, %v5606_v63  ;;  %v3971_v7 = vpack.c.bf16 %v3757_v1, %v3756_v61  ;;  %v5192_v8 = vmax.f32 %v4650_v2, 0.0  ;;  %v1833_v9 = vadd.f32 %v8684_v25, %v1832_v0 }
 0x3c0   : > { %v6566_v11 = vunpack.c.l.b16 %v6310_v6  ;;  %v5607_v14 = vmax.f32 %v5191_v12, %v5192_v8  ;;  %v2321_v17 = vmax.f32 %v1833_v9, 0.0  ;;  %7756 = vmatmul.msk.bf16.gmra.mxu2 %vm2640_vm2, %v3971_v7 }
 0x3c1   : > { %v3244_v18 = vpop.f32.mrf.mxu1 }
 0x3c2   : > { %v6697_v44 = vsel %vm6675_vm9, %v6566_v11, %v6696_v10  ;;  %v2526_v19 = vpack.c.bf16 %v2321_v17, %v2320_v13  ;;  %v5608_v21 = vrot.slane %v5607_v14, 4  ;;  %v3245_v28 = vadd.f32 %v8712_v24, %v3244_v18 }
 0x3c3   : > { %v6785_v20 = vpack.c.b16 %v6697_v44, %v6697_v44  ;;  %v4652_v22 = vpop.f32.mrf.mxu2 }
 0x3c4   : > { %7621 = vmatmul.msk.bf16.gmra.mxu1 %vm2640_vm2, %v2526_v19  ;;  %v5609_v27 = vmax.f32 %v5607_v14, %v5608_v21  ;;  %v4653_v30 = vadd.f32 %v8781_v15, %v4652_v22  ;;  %v3758_v32 = vmax.f32 %v3245_v28, 0.0 }
 0x3c5   : > { %6817 = vst [vmem:[%s8506_s20 + $0xc] sm:$0xf] %v6785_v20  ;;  %v1835_v26 = vpop.f32.mrf.mxu0 }
 0x3c6   : > { %v5610_v46 = vrot.slane %v5609_v27, 2  ;;  %v1836_v33 = vadd.f32 %v8684_v25, %v1835_v26  ;;  %v5193_v37 = vmax.f32 %v4653_v30, 0.0  ;;  %v7909_v26 = vld [vmem:[%s8223_s19 + $0x1e8] sm:$0xff] }
 0x3c8   : > { %7486 = vmatmul.msk.bf16.gmra.mxu0 %vm1182_vm1, %v7907_v23  ;;  %v5611_v41 = vmax.f32 %v5609_v27, %v5610_v46  ;;  %v2322_v42 = vmax.f32 %v1836_v33, 0.0 }
 0x3c9   : > { %v3246_v47 = vpop.f32.mrf.mxu1 }
 0x3ca   : > { %v3247_v31 = vadd.f32 %v8712_v24, %v3246_v47  ;;  %v5612_v51 = vrot.slane %v5611_v41, 1 }
 0x3cb   : > { %v4654_v16 = vpop.f32.mrf.mxu2 }
 0x3cc   : > { %v3759_v34 = vmax.f32 %v3247_v31, 0.0  ;;  %v4655_v35 = vadd.f32 %v8781_v15, %v4654_v16  ;;  %v5613_v56 = vmax.f32 %v5611_v41, %v5612_v51 }
 0x3cd   : > { %v1837_v36 = vpop.f32.mrf.mxu0 }
 0x3ce   : > { %v3972_v38 = vpack.c.bf16 %v3759_v34, %v3758_v32  ;;  %v5194_v39 = vmax.f32 %v4655_v35, 0.0  ;;  %v1838_v40 = vadd.f32 %v8684_v25, %v1837_v36  ;;  %v6311_v58 = vpack.c.bf16 %v5613_v56, %v5613_v56 }
 0x3d0   : > { %v5614_v43 = vmax.f32 %v5193_v37, %v5194_v39  ;;  %v2323_v45 = vmax.f32 %v1838_v40, 0.0  ;;  %7757 = vmatmul.msk.bf16.gmra.mxu2 %vm2640_vm2, %v3972_v38  ;;  %v6567_v13 = vunpack.c.l.b16 %v6311_v58 }
 0x3d1   : > { %v3249_v48 = vpop.f32.mrf.mxu1 }
 0x3d2   : > { %v5615_v49 = vrot.slane %v5614_v43, 4  ;;  %v2527_v50 = vpack.c.bf16 %v2323_v45, %v2322_v42  ;;  %v3250_v57 = vadd.f32 %v8712_v24, %v3249_v48 }
 0x3d3   : > { %v4657_v52 = vpop.f32.mrf.mxu2 }
 0x3d4   : > { %v5616_v29 = vmax.f32 %v5614_v43, %v5615_v49  ;;  %7622 = vmatmul.msk.bf16.gmra.mxu1 %vm2640_vm2, %v2527_v50  ;;  %v4658_v60 = vadd.f32 %v8781_v15, %v4657_v52  ;;  %v3760_v1 = vmax.f32 %v3250_v57, 0.0  ;;  %v7910_v57 = vld [vmem:[%s8223_s19 + $0x1f0] sm:$0xff] }
 0x3d5   : > { %v1840_v54 = vpop.f32.mrf.mxu0 }
 0x3d6   : > { %v5617_v55 = vrot.slane %v5616_v29, 2  ;;  %v1841_v4 = vadd.f32 %v8684_v25, %v1840_v54  ;;  %v5195_v6 = vmax.f32 %v4658_v60, 0.0 }
 0x3d8   : > { %v5618_v59 = vmax.f32 %v5616_v29, %v5617_v55  ;;  %7487 = vmatmul.msk.bf16.gmra.mxu0 %vm1182_vm1, %v7908_v53  ;;  %v2324_v17 = vmax.f32 %v1841_v4, 0.0 }
 0x3d9   : > { %v3251_v61 = vpop.f32.mrf.mxu1 }
 0x3da   : > { %v5619_v62 = vrot.slane %v5618_v59, 1  ;;  %v3252_v63 = vadd.f32 %v8712_v24, %v3251_v61 }
 0x3db   : > { %v4659_v2 = vpop.f32.mrf.mxu2 }
 0x3dc   : > { %v5620_v3 = vmax.f32 %v5618_v59, %v5619_v62  ;;  %v3761_v12 = vmax.f32 %v3252_v63, 0.0  ;;  %v4660_v0 = vadd.f32 %v8781_v15, %v4659_v2 }
 0x3dd   : > { %v1842_v7 = vpop.f32.mrf.mxu0 }
 0x3de   : > { %v6312_v8 = vpack.c.bf16 %v5620_v3, %v5620_v3  ;;  %v3973_v9 = vpack.c.bf16 %v3761_v12, %v3760_v1  ;;  %v5196_v5 = vmax.f32 %v4660_v0, 0.0  ;;  %v1843_v11 = vadd.f32 %v8684_v25, %v1842_v7 }
 0x3e0   : > { %v6568_v14 = vunpack.c.l.b16 %v6312_v8  ;;  %v5621_v10 = vmax.f32 %v5195_v6, %v5196_v5  ;;  %v2325_v18 = vmax.f32 %v1843_v11, 0.0  ;;  %7758 = vmatmul.msk.bf16.gmra.mxu2 %vm2640_vm2, %v3973_v9 }
 0x3e1   : > { %v3254_v44 = vpop.f32.mrf.mxu1 }
 0x3e2   : > { %v6698_v19 = vsel %vm6663_vm3, %v6568_v14, %v6567_v13  ;;  %v5622_v20 = vrot.slane %v5621_v10, 4  ;;  %v2528_v21 = vpack.c.bf16 %v2325_v18, %v2324_v17  ;;  %v3255_v47 = vadd.f32 %v8712_v24, %v3254_v44  ;;  %v7911_v44 = vld [vmem:[%s8223_s19 + $0x1f8] sm:$0xff] }
 0x3e3   : > { %v4662_v22 = vpop.f32.mrf.mxu2 }
 0x3e4   : > { %v5623_v23 = vmax.f32 %v5621_v10, %v5622_v20  ;;  %7623 = vmatmul.msk.bf16.gmra.mxu1 %vm2640_vm2, %v2528_v21  ;;  %v4663_v31 = vadd.f32 %v8781_v15, %v4662_v22  ;;  %v3762_v33 = vmax.f32 %v3255_v47, 0.0 }
 0x3e5   : > { %v1845_v27 = vpop.f32.mrf.mxu0 }
 0x3e6   : > { %v5624_v28 = vrot.slane %v5623_v23, 2  ;;  %v1846_v36 = vadd.f32 %v8684_v25, %v1845_v27  ;;  %v5197_v39 = vmax.f32 %v4663_v31, 0.0 }
 0x3e8   : > { %v5625_v30 = vmax.f32 %v5623_v23, %v5624_v28  ;;  %7488 = vmatmul.msk.bf16.gmra.mxu0 %vm1182_vm1, %v7909_v26  ;;  %v2326_v49 = vmax.f32 %v1846_v36, 0.0 }
 0x3e9   : > { %v3256_v46 = vpop.f32.mrf.mxu1 }
 0x3ea   : > { %v5626_v16 = vrot.slane %v5625_v30, 1  ;;  %v3257_v32 = vadd.f32 %v8712_v24, %v3256_v46 }
 0x3eb   : > { %v4664_v34 = vpop.f32.mrf.mxu2 }
 0x3ec   : > { %v5627_v35 = vmax.f32 %v5625_v30, %v5626_v16  ;;  %v3763_v37 = vmax.f32 %v3257_v32, 0.0  ;;  %v4665_v38 = vadd.f32 %v8781_v15, %v4664_v34 }
 0x3ed   : > { %v1847_v40 = vpop.f32.mrf.mxu0 }
 0x3ee   : > { %v6313_v41 = vpack.c.bf16 %v5627_v35, %v5627_v35  ;;  %v3974_v42 = vpack.c.bf16 %v3763_v37, %v3762_v33  ;;  %v5198_v43 = vmax.f32 %v4665_v38, 0.0  ;;  %v1848_v45 = vadd.f32 %v8684_v25, %v1847_v40  ;;  %v7912_v38 = vld [vmem:[%s8223_s19 + $0x200] sm:$0xff] }
 0x3f0   : > { %v6569_v48 = vunpack.c.l.b16 %v6313_v41  ;;  %v5628_v50 = vmax.f32 %v5197_v39, %v5198_v43  ;;  %v2327_v51 = vmax.f32 %v1848_v45, 0.0  ;;  %7759 = vmatmul.msk.bf16.gmra.mxu2 %vm2640_vm2, %v3974_v42 }
 0x3f1   : > { %v3259_v52 = vpop.f32.mrf.mxu1 }
 0x3f2   : > { %v6699_v29 = vsel %vm6665_vm4, %v6569_v48, %v6698_v19  ;;  %v5629_v53 = vrot.slane %v5628_v50, 4  ;;  %v2529_v54 = vpack.c.bf16 %v2327_v51, %v2326_v49  ;;  %v3260_v62 = vadd.f32 %v8712_v24, %v3259_v52 }
 0x3f3   : > { %v4667_v55 = vpop.f32.mrf.mxu2 }
 0x3f4   : > { %v5630_v56 = vmax.f32 %v5628_v50, %v5629_v53  ;;  %7624 = vmatmul.msk.bf16.gmra.mxu1 %vm2640_vm2, %v2529_v54  ;;  %v3764_v4 = vmax.f32 %v3260_v62, 0.0  ;;  %v4668_v35 = vadd.f32 %v8781_v15, %v4667_v55 }
 0x3f5   : > { %v1850_v59 = vpop.f32.mrf.mxu0 }
 0x3f6   : > { %v5631_v60 = vrot.slane %v5630_v56, 2  ;;  %v1851_v12 = vadd.f32 %v8684_v25, %v1850_v59  ;;  %v5199_v42 = vmax.f32 %v4668_v35, 0.0 }
 0x3f8   : > { %v5632_v61 = vmax.f32 %v5630_v56, %v5631_v60  ;;  %7489 = vmatmul.msk.bf16.gmra.mxu0 %vm1182_vm1, %v7910_v57  ;;  %v2328_v11 = vmax.f32 %v1851_v12, 0.0 }
 0x3f9   : > { %v3261_v63 = vpop.f32.mrf.mxu1 }
 0x3fa   : > { %v5633_v58 = vrot.slane %v5632_v61, 1  ;;  %v3262_v1 = vadd.f32 %v8712_v24, %v3261_v63 }
 0x3fb   : > { %v4669_v2 = vpop.f32.mrf.mxu2 }
 0x3fc   : > { %v5634_v3 = vmax.f32 %v5632_v61, %v5633_v58  ;;  %v3765_v0 = vmax.f32 %v3262_v1, 0.0  ;;  %v4670_v32 = vadd.f32 %v8781_v15, %v4669_v2 }
 0x3fd   : > { %v1852_v6 = vpop.f32.mrf.mxu0 }
 0x3fe   : > { %v6314_v7 = vpack.c.bf16 %v5634_v3, %v5634_v3  ;;  %v3975_v8 = vpack.c.bf16 %v3765_v0, %v3764_v4  ;;  %v1853_v9 = vadd.f32 %v8684_v25, %v1852_v6  ;;  %v5200_v39 = vmax.f32 %v4670_v32, 0.0 }
 0x400   : > { %v6570_v5 = vunpack.c.l.b16 %v6314_v7  ;;  %v2329_v13 = vmax.f32 %v1853_v9, 0.0  ;;  %7760 = vmatmul.msk.bf16.gmra.mxu2 %vm2640_vm2, %v3975_v8  ;;  %v5635_v48 = vmax.f32 %v5199_v42, %v5200_v39 }
 0x401   : > { %v3264_v14 = vpop.f32.mrf.mxu1 }
 0x402   : > { %v8846_v17 = vsel %vm6667_vm5, %v6570_v5, %v6699_v29  ;;  %v2530_v10 = vpack.c.bf16 %v2329_v13, %v2328_v11  ;;  %v3265_v20 = vadd.f32 %v8712_v24, %v3264_v14  ;;  %v5636_v59 = vrot.slane %v5635_v48, 4  ;;  %v7913_v5 = vld [vmem:[%s8223_s19 + $0x208] sm:$0xff] }
 0x403   : > { %v4672_v18 = vpop.f32.mrf.mxu2 }
 0x404   : > { %7625 = vmatmul.msk.bf16.gmra.mxu1 %vm2640_vm2, %v2530_v10  ;;  %v3766_v26 = vmax.f32 %v3265_v20, 0.0  ;;  %v4673_v40 = vadd.f32 %v8781_v15, %v4672_v18  ;;  %v5637_v12 = vmax.f32 %v5635_v48, %v5636_v59 }
 0x405   : > { %v1855_v19 = vpop.f32.mrf.mxu0 }
 0x406   : > { %v1856_v27 = vadd.f32 %v8684_v25, %v1855_v19  ;;  %v5201_v49 = vmax.f32 %v4673_v40, 0.0  ;;  %v5638_v11 = vrot.slane %v5637_v12, 2 }
 0x408   : > { %7490 = vmatmul.msk.bf16.gmra.mxu0 %vm1182_vm1, %v7911_v44  ;;  %v2330_v46 = vmax.f32 %v1856_v27, 0.0  ;;  %v5639_v18 = vmax.f32 %v5637_v12, %v5638_v11  ;;  %v8879_v27 = vld [vmem:[%s10085_s2] ss:$0 sm:$0xff] }
 0x409   : > { %v3266_v21 = vpop.f32.mrf.mxu1 }
 0x40a   : > { %v3267_v22 = vadd.f32 %v8712_v24, %v3266_v21 }
 0x40b   : > { %v4674_v23 = vpop.f32.mrf.mxu2 }
 0x40c   : > { %v3767_v28 = vmax.f32 %v3267_v22, 0.0  ;;  %v4675_v36 = vadd.f32 %v8781_v15, %v4674_v23 }
 0x40d   : > { %v1857_v47 = vpop.f32.mrf.mxu0 }
 0x40e   : > { %v3976_v30 = vpack.c.bf16 %v3767_v28, %v3766_v26  ;;  %v1858_v31 = vadd.f32 %v8684_v25, %v1857_v47  ;;  %v5202_v43 = vmax.f32 %v4675_v36, 0.0 }
 0x410   : > { %v2331_v16 = vmax.f32 %v1858_v31, 0.0  ;;  %7761 = vmatmul.msk.bf16.gmra.mxu2 %vm2640_vm2, %v3976_v30  ;;  %v5642_v29 = vmax.f32 %v5201_v49, %v5202_v43  ;;  %v5640_v31 = vrot.slane %v5639_v18, 1 }
 0x411   : > { %v3269_v33 = vpop.f32.mrf.mxu1 }
 0x412   : > { %v2531_v34 = vpack.c.bf16 %v2331_v16, %v2330_v46  ;;  %v3270_v45 = vadd.f32 %v8712_v24, %v3269_v33  ;;  %v5643_v1 = vrot.slane %v5642_v29, 4  ;;  %v5641_v40 = vmax.f32 %v5639_v18, %v5640_v31 }
 0x413   : > { %v4677_v37 = vpop.f32.mrf.mxu2 }
 0x414   : > { %7626 = vmatmul.msk.bf16.gmra.mxu1 %vm2640_vm2, %v2531_v34  ;;  %v4678_v51 = vadd.f32 %v8781_v15, %v4677_v37  ;;  %v3768_v54 = vmax.f32 %v3270_v45, 0.0  ;;  %v5644_v8 = vmax.f32 %v5642_v29, %v5643_v1 }
 0x415   : > { %v1860_v41 = vpop.f32.mrf.mxu0 }
 0x416   : > { %v1861_v55 = vadd.f32 %v8684_v25, %v1860_v41  ;;  %v5203_v61 = vmax.f32 %v4678_v51, 0.0  ;;  %v5645_v10 = vrot.slane %v5644_v8, 2  ;;  %v7914_v51 = vld [vmem:[%s8223_s19 + $0x210] sm:$0xff] }
 0x418   : > { %7491 = vmatmul.msk.bf16.gmra.mxu0 %vm1182_vm1, %v7912_v38  ;;  %v2332_v2 = vmax.f32 %v1861_v55, 0.0  ;;  %v5646_v22 = vmax.f32 %v5644_v8, %v5645_v10 }
 0x419   : > { %v3271_v50 = vpop.f32.mrf.mxu1 }
 0x41a   : > { %v3272_v52 = vadd.f32 %v8712_v24, %v3271_v50  ;;  %v5647_v36 = vrot.slane %v5646_v22, 1 }
 0x41b   : > { %v4679_v53 = vpop.f32.mrf.mxu2 }
 0x41c   : > { %v3769_v56 = vmax.f32 %v3272_v52, 0.0  ;;  %v4680_v57 = vadd.f32 %v8781_v15, %v4679_v53  ;;  %v5648_v48 = vmax.f32 %v5646_v22, %v5647_v36  ;;  %v6315_v52 = vpack.c.bf16 %v5641_v40, %v5641_v40 }
 0x41d   : > { %v1862_v60 = vpop.f32.mrf.mxu0 }
 0x41e   : > { %v3977_v62 = vpack.c.bf16 %v3769_v56, %v3768_v54  ;;  %v5204_v63 = vmax.f32 %v4680_v57, 0.0  ;;  %v1863_v58 = vadd.f32 %v8684_v25, %v1862_v60  ;;  %v6316_v55 = vpack.c.bf16 %v5648_v48, %v5648_v48 }
 0x41f   : > { %v6571_v59 = vunpack.c.l.b16 %v6315_v52 }
 0x420   : > { %v5649_v3 = vmax.f32 %v5203_v61, %v5204_v63  ;;  %v2333_v4 = vmax.f32 %v1863_v58, 0.0  ;;  %7762 = vmatmul.msk.bf16.gmra.mxu2 %vm2640_vm2, %v3977_v62  ;;  %v6572_v1 = vunpack.c.l.b16 %v6316_v55 }
 0x421   : > { %v3274_v0 = vpop.f32.mrf.mxu1 }
 0x422   : > { %v5650_v6 = vrot.slane %v5649_v3, 4  ;;  %v2532_v7 = vpack.c.bf16 %v2333_v4, %v2332_v2  ;;  %v3275_v25 = vadd.f32 %v8712_v24, %v3274_v0 }
 0x423   : > { %v4682_v9 = vpop.f32.mrf.mxu2 }
 0x424   : > { %7627 = vmatmul.msk.bf16.gmra.mxu1 %vm2640_vm2, %v2532_v7  ;;  %v5651_v13 = vmax.f32 %v5649_v3, %v5650_v6  ;;  %v4683_v20 = vadd.f32 %v8781_v15, %v4682_v9  ;;  %v3770_v26 = vmax.f32 %v3275_v25, 0.0  ;;  %v6701_v7 = vsel %vm6669_vm6, %v6571_v59, %v8846_v17  ;;  %v7916_v59 = vld [vmem:[%s8223_s19 + $0x220] sm:$0xff] }
 0x425   : > { %v1865_v14 = vpop.f32.mrf.mxu0  ;;  %v6702_v10 = vsel %vm6671_vm7, %v6572_v1, %v6701_v7 }
 0x426   : > { %v5652_v44 = vrot.slane %v5651_v13, 2  ;;  %v1866_v28 = vadd.f32 %v8879_v27, %v1865_v14  ;;  %v5205_v32 = vmax.f32 %v4683_v20, 0.0 }
 0x428   : > { %7492 = vmatmul.msk.bf16.gmra.mxu0 %vm1182_vm1, %v7913_v5  ;;  %v5653_v46 = vmax.f32 %v5651_v13, %v5652_v44  ;;  %v2334_v37 = vmax.f32 %v1866_v28, 0.0 }
 0x429   : > { %v3276_v19 = vpop.f32.mrf.mxu1 }
 0x42a   : > { %v3277_v21 = vadd.f32 %v8712_v24, %v3276_v19  ;;  %v5654_v41 = vrot.slane %v5653_v46, 1 }
 0x42b   : > { %v4684_v23 = vpop.f32.mrf.mxu2 }
 0x42c   : > { %v3771_v47 = vmax.f32 %v3277_v21, 0.0  ;;  %v4685_v30 = vadd.f32 %v8781_v15, %v4684_v23  ;;  %v5655_v29 = vmax.f32 %v5653_v46, %v5654_v41  ;;  %v8906_v46 = vld [vmem:[%s10087_s4] ss:$0 sm:$0xff] }
 0x42d   : > { %v1867_v16 = vpop.f32.mrf.mxu0 }
 0x42e   : > { %v3978_v33 = vpack.c.bf16 %v3771_v47, %v3770_v26  ;;  %v5206_v34 = vmax.f32 %v4685_v30, 0.0  ;;  %v1868_v35 = vadd.f32 %v8879_v27, %v1867_v16  ;;  %v6317_v60 = vpack.c.bf16 %v5655_v29, %v5655_v29  ;;  %v7915_v47 = vld [vmem:[%s8223_s19 + $0x218] sm:$0xff] }
 0x430   : > { %v5656_v38 = vmax.f32 %v5205_v32, %v5206_v34  ;;  %v2335_v39 = vmax.f32 %v1868_v35, 0.0  ;;  %7763 = vmatmul.msk.bf16.gmra.mxu2 %vm2640_vm2, %v3978_v33  ;;  %v6573_v8 = vunpack.c.l.b16 %v6317_v60 }
 0x431   : > { %v3279_v42 = vpop.f32.mrf.mxu1 }
 0x432   : > { %v5657_v43 = vrot.slane %v5656_v38, 4  ;;  %v2533_v45 = vpack.c.bf16 %v2335_v39, %v2334_v37  ;;  %v3280_v56 = vadd.f32 %v8712_v24, %v3279_v42  ;;  %v6703_v17 = vsel %vm6673_vm8, %v6573_v8, %v6702_v10 }
 0x433   : > { %v4687_v49 = vpop.f32.mrf.mxu2 }
 0x434   : > { %v5658_v50 = vmax.f32 %v5656_v38, %v5657_v43  ;;  %7628 = vmatmul.msk.bf16.gmra.mxu1 %vm2640_vm2, %v2533_v45  ;;  %v4688_v61 = vadd.f32 %v8781_v15, %v4687_v49  ;;  %v3772_v2 = vmax.f32 %v3280_v56, 0.0 }
 0x435   : > { %v1870_v53 = vpop.f32.mrf.mxu0 }
 0x436   : > { %v5659_v54 = vrot.slane %v5658_v50, 2  ;;  %v1871_v12 = vadd.f32 %v8879_v27, %v1870_v53  ;;  %v5207_v9 = vmax.f32 %v4688_v61, 0.0 }
 0x438   : > { %v5660_v57 = vmax.f32 %v5658_v50, %v5659_v54  ;;  %7493 = vmatmul.msk.bf16.gmra.mxu0 %vm1182_vm1, %v7914_v51  ;;  %v2336_v18 = vmax.f32 %v1871_v12, 0.0 }
 0x439   : > { %v3281_v62 = vpop.f32.mrf.mxu1 }
 0x43a   : > { %v5661_v63 = vrot.slane %v5660_v57, 1  ;;  %v3282_v58 = vadd.f32 %v8712_v24, %v3281_v62 }
 0x43b   : > { %v4689_v3 = vpop.f32.mrf.mxu2 }
 0x43c   : > { %v5662_v4 = vmax.f32 %v5660_v57, %v5661_v63  ;;  %v3773_v0 = vmax.f32 %v3282_v58, 0.0  ;;  %v4690_v6 = vadd.f32 %v8781_v15, %v4689_v3 }
 0x43d   : > { %v1872_v5 = vpop.f32.mrf.mxu0 }
 0x43e   : > { %v6318_v11 = vpack.c.bf16 %v5662_v4, %v5662_v4  ;;  %v3979_v13 = vpack.c.bf16 %v3773_v0, %v3772_v2  ;;  %v5208_v14 = vmax.f32 %v4690_v6, 0.0  ;;  %v1873_v24 = vadd.f32 %v8879_v27, %v1872_v5 }
 0x440   : > { %v6574_v25 = vunpack.c.l.b16 %v6318_v11  ;;  %v5663_v44 = vmax.f32 %v5207_v9, %v5208_v14  ;;  %v2337_v19 = vmax.f32 %v1873_v24, 0.0  ;;  %7764 = vmatmul.msk.bf16.gmra.mxu2 %vm2640_vm2, %v3979_v13 }
 0x441   : > { %v3284_v20 = vpop.f32.mrf.mxu1 }
 0x442   : > { %v6704_v21 = vsel %vm6675_vm9, %v6574_v25, %v6703_v17  ;;  %v2534_v22 = vpack.c.bf16 %v2337_v19, %v2336_v18  ;;  %v5664_v26 = vrot.slane %v5663_v44, 4  ;;  %v3285_v16 = vadd.f32 %v8906_v46, %v3284_v20 }
 0x443   : > { %v6786_v23 = vpack.c.b16 %v6704_v21, %v6704_v21  ;;  %v4692_v28 = vpop.f32.mrf.mxu2 }
 0x444   : > { %7629 = vmatmul.msk.bf16.gmra.mxu1 %vm2640_vm2, %v2534_v22  ;;  %v5665_v31 = vmax.f32 %v5663_v44, %v5664_v26  ;;  %v4693_v33 = vadd.f32 %v8781_v15, %v4692_v28  ;;  %v3774_v37 = vmax.f32 %v3285_v16, 0.0 }
 0x445   : > { %6818 = vst [vmem:[%s8506_s20 + $0x10] sm:$0xf] %v6786_v23  ;;  %v1875_v30 = vpop.f32.mrf.mxu0 }
 0x446   : > { %v5666_v35 = vrot.slane %v5665_v31, 2  ;;  %v1876_v38 = vadd.f32 %v8879_v27, %v1875_v30  ;;  %v5209_v42 = vmax.f32 %v4693_v33, 0.0  ;;  %v7917_v30 = vld [vmem:[%s8223_s19 + $0x228] sm:$0xff] }
 0x448   : > { %7494 = vmatmul.msk.bf16.gmra.mxu0 %vm1182_vm1, %v7915_v47  ;;  %v5667_v49 = vmax.f32 %v5665_v31, %v5666_v35  ;;  %v2338_v50 = vmax.f32 %v1876_v38, 0.0 }
 0x449   : > { %v3286_v32 = vpop.f32.mrf.mxu1 }
 0x44a   : > { %v3287_v34 = vadd.f32 %v8906_v46, %v3286_v32  ;;  %v5668_v55 = vrot.slane %v5667_v49, 1 }
 0x44b   : > { %v4694_v36 = vpop.f32.mrf.mxu2 }
 0x44c   : > { %v3775_v39 = vmax.f32 %v3287_v34, 0.0  ;;  %v4695_v40 = vadd.f32 %v8781_v15, %v4694_v36  ;;  %v5669_v62 = vmax.f32 %v5667_v49, %v5668_v55 }
 0x44d   : > { %v1877_v41 = vpop.f32.mrf.mxu0 }
 0x44e   : > { %v3980_v43 = vpack.c.bf16 %v3775_v39, %v3774_v37  ;;  %v5210_v45 = vmax.f32 %v4695_v40, 0.0  ;;  %v1878_v48 = vadd.f32 %v8879_v27, %v1877_v41  ;;  %v6319_v12 = vpack.c.bf16 %v5669_v62, %v5669_v62 }
 0x450   : > { %v5670_v51 = vmax.f32 %v5209_v42, %v5210_v45  ;;  %v2339_v52 = vmax.f32 %v1878_v48, 0.0  ;;  %7765 = vmatmul.msk.bf16.gmra.mxu2 %vm2640_vm2, %v3980_v43  ;;  %v6575_v18 = vunpack.c.l.b16 %v6319_v12 }
 0x451   : > { %v3289_v29 = vpop.f32.mrf.mxu1 }
 0x452   : > { %v5671_v53 = vrot.slane %v5670_v51, 4  ;;  %v2535_v54 = vpack.c.bf16 %v2339_v52, %v2338_v50  ;;  %v3290_v63 = vadd.f32 %v8906_v46, %v3289_v29 }
 0x453   : > { %v4697_v56 = vpop.f32.mrf.mxu2 }
 0x454   : > { %v5672_v57 = vmax.f32 %v5670_v51, %v5671_v53  ;;  %7630 = vmatmul.msk.bf16.gmra.mxu1 %vm2640_vm2, %v2535_v54  ;;  %v4698_v1 = vadd.f32 %v8781_v15, %v4697_v56  ;;  %v3776_v0 = vmax.f32 %v3290_v63, 0.0  ;;  %v7918_v63 = vld [vmem:[%s8223_s19 + $0x230] sm:$0xff] }
 0x455   : > { %v1880_v60 = vpop.f32.mrf.mxu0 }
 0x456   : > { %v5673_v61 = vrot.slane %v5672_v57, 2  ;;  %v1881_v8 = vadd.f32 %v8879_v27, %v1880_v60  ;;  %v5211_v11 = vmax.f32 %v4698_v1, 0.0 }
 0x458   : > { %v5674_v58 = vmax.f32 %v5672_v57, %v5673_v61  ;;  %7495 = vmatmul.msk.bf16.gmra.mxu0 %vm1182_vm1, %v7916_v59  ;;  %v2340_v19 = vmax.f32 %v1881_v8, 0.0 }
 0x459   : > { %v3291_v2 = vpop.f32.mrf.mxu1 }
 0x45a   : > { %v5675_v3 = vrot.slane %v5674_v58, 1  ;;  %v3292_v4 = vadd.f32 %v8906_v46, %v3291_v2 }
 0x45b   : > { %v4699_v6 = vpop.f32.mrf.mxu2 }
 0x45c   : > { %v5676_v7 = vmax.f32 %v5674_v58, %v5675_v3  ;;  %v3777_v9 = vmax.f32 %v3292_v4, 0.0  ;;  %v4700_v5 = vadd.f32 %v8781_v15, %v4699_v6 }
 0x45d   : > { %v1882_v13 = vpop.f32.mrf.mxu0 }
 0x45e   : > { %v6320_v14 = vpack.c.bf16 %v5676_v7, %v5676_v7  ;;  %v3981_v24 = vpack.c.bf16 %v3777_v9, %v3776_v0  ;;  %v5212_v10 = vmax.f32 %v4700_v5, 0.0  ;;  %v1883_v25 = vadd.f32 %v8879_v27, %v1882_v13 }
 0x460   : > { %v6576_v44 = vunpack.c.l.b16 %v6320_v14  ;;  %v5677_v17 = vmax.f32 %v5211_v11, %v5212_v10  ;;  %v2341_v20 = vmax.f32 %v1883_v25, 0.0  ;;  %7766 = vmatmul.msk.bf16.gmra.mxu2 %vm2640_vm2, %v3981_v24 }
 0x461   : > { %v3294_v21 = vpop.f32.mrf.mxu1 }
 0x462   : > { %v6705_v22 = vsel %vm6663_vm3, %v6576_v44, %v6575_v18  ;;  %v5678_v23 = vrot.slane %v5677_v17, 4  ;;  %v2536_v26 = vpack.c.bf16 %v2341_v20, %v2340_v19  ;;  %v3295_v32 = vadd.f32 %v8906_v46, %v3294_v21  ;;  %v7919_v21 = vld [vmem:[%s8223_s19 + $0x238] sm:$0xff] }
 0x463   : > { %v4702_v28 = vpop.f32.mrf.mxu2 }
 0x464   : > { %v5679_v47 = vmax.f32 %v5677_v17, %v5678_v23  ;;  %7631 = vmatmul.msk.bf16.gmra.mxu1 %vm2640_vm2, %v2536_v26  ;;  %v4703_v34 = vadd.f32 %v8781_v15, %v4702_v28  ;;  %v3778_v38 = vmax.f32 %v3295_v32, 0.0 }
 0x465   : > { %v1885_v31 = vpop.f32.mrf.mxu0 }
 0x466   : > { %v5680_v16 = vrot.slane %v5679_v47, 2  ;;  %v1886_v41 = vadd.f32 %v8879_v27, %v1885_v31  ;;  %v5213_v45 = vmax.f32 %v4703_v34, 0.0  ;;  %v8046_v34 = vld [vmem:[%s10088_s5 + $0x18] sm:$0xff] }
 0x468   : > { %v5681_v33 = vmax.f32 %v5679_v47, %v5680_v16  ;;  %7496 = vmatmul.msk.bf16.gmra.mxu0 %vm1182_vm1, %v7917_v30  ;;  %v2342_v53 = vmax.f32 %v1886_v41, 0.0  ;;  %v7945_v47 = vld [vmem:[%s8223_s19 + $0x308] sm:$0xff]  ;;  %v8047_v41 = vld [vmem:[%s10088_s5 + $0x10] sm:$0xff] }
 0x469   : > { %v3296_v35 = vpop.f32.mrf.mxu1  ;;  %7524 = vmatmul.msk.bf16.vlgmr.msra.gmra.mxu3 %vm1182_vm1, %v7945_v47 }
 0x46a   : > { %v5682_v36 = vrot.slane %v5681_v33, 1  ;;  %v3297_v37 = vadd.f32 %v8906_v46, %v3296_v35  ;;  %7990 = vmatpush.bf16.msra.mxu3 %v8046_v34  ;;  %v7947_v34 = vld [vmem:[%s8223_s19 + $0x318] sm:$0xff] }
 0x46b   : > { %v4704_v39 = vpop.f32.mrf.mxu2 }
 0x46c   : > { %v5683_v40 = vmax.f32 %v5681_v33, %v5682_v36  ;;  %v3779_v42 = vmax.f32 %v3297_v37, 0.0  ;;  %v4705_v43 = vadd.f32 %v8781_v15, %v4704_v39 }
 0x46d   : > { %v1887_v48 = vpop.f32.mrf.mxu0 }
 0x46e   : > { %v6321_v49 = vpack.c.bf16 %v5683_v40, %v5683_v40  ;;  %v3982_v50 = vpack.c.bf16 %v3779_v42, %v3778_v38  ;;  %v5214_v51 = vmax.f32 %v4705_v43, 0.0  ;;  %v1888_v52 = vadd.f32 %v8879_v27, %v1887_v48  ;;  %7991 = vmatpush.bf16.msra.mxu3 %v8047_v41 }
 0x470   : > { %v6577_v29 = vunpack.c.l.b16 %v6321_v49  ;;  %v5684_v54 = vmax.f32 %v5213_v45, %v5214_v51  ;;  %v2343_v55 = vmax.f32 %v1888_v52, 0.0  ;;  %7767 = vmatmul.msk.bf16.gmra.mxu2 %vm2640_vm2, %v3982_v50  ;;  %v7920_v49 = vld [vmem:[%s8223_s19 + $0x240] sm:$0xff] }
 0x471   : > { %v3299_v56 = vpop.f32.mrf.mxu1 }
 0x472   : > { %v6706_v57 = vsel %vm6665_vm4, %v6577_v29, %v6705_v22  ;;  %v5685_v59 = vrot.slane %v5684_v54, 4  ;;  %v2537_v60 = vpack.c.bf16 %v2343_v55, %v2342_v53  ;;  %v3300_v3 = vadd.f32 %v8906_v46, %v3299_v56  ;;  %v8048_v29 = vld [vmem:[%s10088_s5 + $0x8] sm:$0xff] }
 0x473   : > { %v4707_v61 = vpop.f32.mrf.mxu2  ;;  %7992 = vmatpush.bf16.msra.mxu3 %v8048_v29 }
 0x474   : > { %v5686_v62 = vmax.f32 %v5684_v54, %v5685_v59  ;;  %7632 = vmatmul.msk.bf16.gmra.mxu1 %vm2640_vm2, %v2537_v60  ;;  %v3780_v8 = vmax.f32 %v3300_v3, 0.0  ;;  %v4708_v43 = vadd.f32 %v8781_v15, %v4707_v61  ;;  %v8982_v60 = vld [vmem:[%s10089_s6] ss:$0 sm:$0xff] }
 0x475   : > { %v1890_v58 = vpop.f32.mrf.mxu0 }
 0x476   : > { %v5687_v1 = vrot.slane %v5686_v62, 2  ;;  %v1891_v9 = vadd.f32 %v8879_v27, %v1890_v58  ;;  %v5215_v53 = vmax.f32 %v4708_v43, 0.0 }
 0x478   : > { %v5688_v2 = vmax.f32 %v5686_v62, %v5687_v1  ;;  %7497 = vmatmul.msk.bf16.gmra.mxu0 %vm1182_vm1, %v7918_v63  ;;  %v2344_v25 = vmax.f32 %v1891_v9, 0.0  ;;  %v7946_v63 = vld [vmem:[%s8223_s19 + $0x310] sm:$0xff] }
 0x479   : > { %v3301_v4 = vpop.f32.mrf.mxu1  ;;  %7525 = vmatmul.msk.bf16.gmra.mxu3 %vm1182_vm1, %v7946_v63  ;;  %v7922_v63 = vld [vmem:[%s8223_s19 + $0x250] sm:$0xff] }
 0x47a   : > { %v5689_v12 = vrot.slane %v5688_v2, 1  ;;  %v3302_v0 = vadd.f32 %v8906_v46, %v3301_v4 }
 0x47b   : > { %v4709_v6 = vpop.f32.mrf.mxu2 }
 0x47c   : > { %v5690_v7 = vmax.f32 %v5688_v2, %v5689_v12  ;;  %v3781_v5 = vmax.f32 %v3302_v0, 0.0  ;;  %v4710_v39 = vadd.f32 %v8781_v15, %v4709_v6 }
 0x47d   : > { %v1892_v11 = vpop.f32.mrf.mxu0 }
 0x47e   : > { %v6322_v13 = vpack.c.bf16 %v5690_v7, %v5690_v7  ;;  %v3983_v14 = vpack.c.bf16 %v3781_v5, %v3780_v8  ;;  %v1893_v24 = vadd.f32 %v8879_v27, %v1892_v11  ;;  %v5216_v50 = vmax.f32 %v4710_v39, 0.0 }
 0x480   : > { %v6578_v10 = vunpack.c.l.b16 %v6322_v13  ;;  %v2345_v18 = vmax.f32 %v1893_v24, 0.0  ;;  %7768 = vmatmul.msk.bf16.gmra.mxu2 %vm2640_vm2, %v3983_v14  ;;  %v5691_v56 = vmax.f32 %v5215_v53, %v5216_v50 }
 0x481   : > { %v3304_v44 = vpop.f32.mrf.mxu1 }
 0x482   : > { %v8947_v19 = vsel %vm6667_vm5, %v6578_v10, %v6706_v57  ;;  %v2538_v17 = vpack.c.bf16 %v2345_v18, %v2344_v25  ;;  %v3305_v23 = vadd.f32 %v8906_v46, %v3304_v44  ;;  %v5692_v0 = vrot.slane %v5691_v56, 4 }
 0x483   : > { %v4712_v20 = vpop.f32.mrf.mxu2 }
 0x484   : > { %7633 = vmatmul.msk.bf16.gmra.mxu1 %vm2640_vm2, %v2538_v17  ;;  %v3782_v31 = vmax.f32 %v3305_v23, 0.0  ;;  %v4713_v51 = vadd.f32 %v8781_v15, %v4712_v20  ;;  %v5693_v10 = vmax.f32 %v5691_v56, %v5692_v0 }
 0x485   : > { %v1895_v22 = vpop.f32.mrf.mxu0 }
 0x486   : > { %v1896_v16 = vadd.f32 %v8879_v27, %v1895_v22  ;;  %v5217_v57 = vmax.f32 %v4713_v51, 0.0  ;;  %v5694_v22 = vrot.slane %v5693_v10, 2 }
 0x488   : > { %7498 = vmatmul.msk.bf16.gmra.mxu0 %vm1182_vm1, %v7919_v21  ;;  %v2346_v37 = vmax.f32 %v1896_v16, 0.0  ;;  %v7921_v21 = vld [vmem:[%s8223_s19 + $0x248] sm:$0xff] }
 0x489   : > { %v3306_v26 = vpop.f32.mrf.mxu1  ;;  %7526 = vmatmul.msk.bf16.gmra.mxu3 %vm1182_vm1, %v7947_v34 }
 0x48a   : > { %v3307_v28 = vadd.f32 %v8906_v46, %v3306_v26 }
 0x48b   : > { %v4714_v30 = vpop.f32.mrf.mxu2 }
 0x48c   : > { %v3783_v32 = vmax.f32 %v3307_v28, 0.0  ;;  %v4715_v45 = vadd.f32 %v8781_v15, %v4714_v30  ;;  %v8049_v15 = vld [vmem:[%s10088_s5] sm:$0xff]  ;;  %v5695_v30 = vmax.f32 %v5693_v10, %v5694_v22 }
 0x48d   : > { %v1897_v33 = vpop.f32.mrf.mxu0  ;;  %7993 = vmatpush.bf16.msra.mxu3 %v8049_v15 }
 0x48e   : > { %v3984_v35 = vpack.c.bf16 %v3783_v32, %v3782_v31  ;;  %v1898_v36 = vadd.f32 %v8879_v27, %v1897_v33  ;;  %v5218_v54 = vmax.f32 %v4715_v45, 0.0  ;;  %v5696_v41 = vrot.slane %v5695_v30, 1 }
 0x490   : > { %v2347_v38 = vmax.f32 %v1898_v36, 0.0  ;;  %7769 = vmatmul.msk.bf16.gmra.mxu2 %vm2640_vm2, %v3984_v35  ;;  %v5698_v58 = vmax.f32 %v5217_v57, %v5218_v54  ;;  %v5697_v54 = vmax.f32 %v5695_v30, %v5696_v41  ;;  %v7923_v41 = vld [vmem:[%s8223_s19 + $0x258] sm:$0xff] }
 0x491   : > { %v3309_v40 = vpop.f32.mrf.mxu1 }
 0x492   : > { %v2539_v42 = vpack.c.bf16 %v2347_v38, %v2346_v37  ;;  %v3310_v55 = vadd.f32 %v8906_v46, %v3309_v40  ;;  %v5699_v11 = vrot.slane %v5698_v58, 4 }
 0x493   : > { %v4717_v48 = vpop.f32.mrf.mxu2 }
 0x494   : > { %7634 = vmatmul.msk.bf16.gmra.mxu1 %vm2640_vm2, %v2539_v42  ;;  %v4718_v61 = vadd.f32 %v8982_v60, %v4717_v48  ;;  %v3784_v2 = vmax.f32 %v3310_v55, 0.0  ;;  %v5700_v17 = vmax.f32 %v5698_v58, %v5699_v11  ;;  %v6323_v58 = vpack.c.bf16 %v5697_v54, %v5697_v54 }
 0x495   : > { %v1900_v52 = vpop.f32.mrf.mxu0 }
 0x496   : > { %v1901_v3 = vadd.f32 %v8879_v27, %v1900_v52  ;;  %v5219_v7 = vmax.f32 %v4718_v61, 0.0  ;;  %v5701_v28 = vrot.slane %v5700_v17, 2 }
 0x498   : > { %7499 = vmatmul.msk.bf16.gmra.mxu0 %vm1182_vm1, %v7920_v49  ;;  %v2348_v13 = vmax.f32 %v1901_v3, 0.0  ;;  %v5702_v35 = vmax.f32 %v5700_v17, %v5701_v28 }
 0x499   : > { %v3311_v59 = vpop.f32.mrf.mxu1 }
 0x49a   : > { %v3312_v62 = vadd.f32 %v8906_v46, %v3311_v59  ;;  %v5703_v51 = vrot.slane %v5702_v35, 1 }
 0x49b   : > { %v4719_v1 = vpop.f32.mrf.mxu2 }
 0x49c   : > { %v3785_v4 = vmax.f32 %v3312_v62, 0.0  ;;  %v4720_v12 = vadd.f32 %v8982_v60, %v4719_v1  ;;  %v5704_v15 = vmax.f32 %v5702_v35, %v5703_v51  ;;  %v7949_v51 = vld [vmem:[%s8223_s19 + $0x328] sm:$0xff] }
 0x49d   : > { %v1902_v6 = vpop.f32.mrf.mxu0 }
 0x49e   : > { %v3985_v8 = vpack.c.bf16 %v3785_v4, %v3784_v2  ;;  %v5220_v9 = vmax.f32 %v4720_v12, 0.0  ;;  %v1903_v5 = vadd.f32 %v8879_v27, %v1902_v6  ;;  %v6324_v4 = vpack.c.bf16 %v5704_v15, %v5704_v15 }
 0x49f   : > { %v6579_v6 = vunpack.c.l.b16 %v6323_v58 }
 0x4a0   : > { %v5705_v14 = vmax.f32 %v5219_v7, %v5220_v9  ;;  %v2349_v24 = vmax.f32 %v1903_v5, 0.0  ;;  %7770 = vmatmul.msk.bf16.gmra.mxu2 %vm2640_vm2, %v3985_v8 }
 0x4a1   : > { %v3314_v25 = vpop.f32.mrf.mxu1 }
 0x4a2   : > { %v5706_v18 = vrot.slane %v5705_v14, 4  ;;  %v2540_v44 = vpack.c.bf16 %v2349_v24, %v2348_v13  ;;  %v3315_v47 = vadd.f32 %v8906_v46, %v3314_v25  ;;  %v7948_v13 = vld [vmem:[%s8223_s19 + $0x320] sm:$0xff] }
 0x4a3   : > { %v4722_v20 = vpop.f32.mrf.mxu2  ;;  %7527 = vmatmul.msk.bf16.gmra.mxu3 %vm1182_vm1, %v7948_v13 }
 0x4a4   : > { %7635 = vmatmul.msk.bf16.gmra.mxu1 %vm2640_vm2, %v2540_v44  ;;  %v5707_v23 = vmax.f32 %v5705_v14, %v5706_v18  ;;  %v4723_v32 = vadd.f32 %v8982_v60, %v4722_v20  ;;  %v3786_v37 = vmax.f32 %v3315_v47, 0.0  ;;  %v6580_v14 = vunpack.c.l.b16 %v6324_v4 }
 0x4a5   : > { %v1905_v26 = vpop.f32.mrf.mxu0  ;;  %v6708_v20 = vsel %vm6669_vm6, %v6579_v6, %v8947_v19 }
 0x4a6   : > { %v5708_v31 = vrot.slane %v5707_v23, 2  ;;  %v1906_v38 = vadd.f32 %v8879_v27, %v1905_v26  ;;  %v5221_v45 = vmax.f32 %v4723_v32, 0.0 }
 0x4a8   : > { %7500 = vmatmul.msk.bf16.gmra.mxu0 %vm1182_vm1, %v7921_v21  ;;  %v5709_v42 = vmax.f32 %v5707_v23, %v5708_v31  ;;  %v2350_v52 = vmax.f32 %v1906_v38, 0.0  ;;  %v6709_v31 = vsel %vm6671_vm7, %v6580_v14, %v6708_v20 }
 0x4a9   : > { %v3316_v16 = vpop.f32.mrf.mxu1 }
 0x4aa   : > { %v3317_v33 = vadd.f32 %v8906_v46, %v3316_v16  ;;  %v5710_v55 = vrot.slane %v5709_v42, 1 }
 0x4ab   : > { %v4724_v36 = vpop.f32.mrf.mxu2 }
 0x4ac   : > { %v3787_v39 = vmax.f32 %v3317_v33, 0.0  ;;  %v4725_v40 = vadd.f32 %v8982_v60, %v4724_v36  ;;  %v5711_v1 = vmax.f32 %v5709_v42, %v5710_v55 }
 0x4ad   : > { %v1907_v43 = vpop.f32.mrf.mxu0 }
 0x4ae   : > { %v3986_v48 = vpack.c.bf16 %v3787_v39, %v3786_v37  ;;  %v5222_v49 = vmax.f32 %v4725_v40, 0.0  ;;  %v1908_v50 = vadd.f32 %v8879_v27, %v1907_v43  ;;  %v6325_v7 = vpack.c.bf16 %v5711_v1, %v5711_v1 }
 0x4b0   : > { %v5712_v29 = vmax.f32 %v5221_v45, %v5222_v49  ;;  %v2351_v53 = vmax.f32 %v1908_v50, 0.0  ;;  %7771 = vmatmul.msk.bf16.gmra.mxu2 %vm2640_vm2, %v3986_v48  ;;  %v6581_v21 = vunpack.c.l.b16 %v6325_v7 }
 0x4b1   : > { %v3319_v56 = vpop.f32.mrf.mxu1 }
 0x4b2   : > { %v5713_v57 = vrot.slane %v5712_v29, 4  ;;  %v2541_v59 = vpack.c.bf16 %v2351_v53, %v2350_v52  ;;  %v3320_v12 = vadd.f32 %v8906_v46, %v3319_v56  ;;  %v6710_v19 = vsel %vm6673_vm8, %v6581_v21, %v6709_v31 }
 0x4b3   : > { %v4727_v61 = vpop.f32.mrf.mxu2  ;;  %7528 = vmatmul.msk.bf16.gmra.mxu3 %vm1182_vm1, %v7949_v51 }
 0x4b4   : > { %v5714_v62 = vmax.f32 %v5712_v29, %v5713_v57  ;;  %7636 = vmatmul.msk.bf16.gmra.mxu1 %vm2640_vm2, %v2541_v59  ;;  %v4728_v8 = vadd.f32 %v8982_v60, %v4727_v61  ;;  %v3788_v24 = vmax.f32 %v3320_v12, 0.0 }
 0x4b5   : > { %v1910_v2 = vpop.f32.mrf.mxu0 }
 0x4b6   : > { %v5715_v3 = vrot.slane %v5714_v62, 2  ;;  %v1911_v18 = vadd.f32 %v8879_v27, %v1910_v2  ;;  %v5223_v22 = vmax.f32 %v4728_v8, 0.0  ;;  %v7924_v8 = vld [vmem:[%s8223_s19 + $0x260] sm:$0xff] }
 0x4b8   : > { %v5716_v0 = vmax.f32 %v5714_v62, %v5715_v3  ;;  %7501 = vmatmul.msk.bf16.gmra.mxu0 %vm1182_vm1, %v7922_v63  ;;  %v2352_v32 = vmax.f32 %v1911_v18, 0.0 }
 0x4b9   : > { %v3321_v9 = vpop.f32.mrf.mxu1 }
 0x4ba   : > { %v5717_v5 = vrot.slane %v5716_v0, 1  ;;  %v3322_v11 = vadd.f32 %v8906_v46, %v3321_v9 }
 0x4bb   : > { %v4729_v10 = vpop.f32.mrf.mxu2 }
 0x4bc   : > { %v5718_v25 = vmax.f32 %v5716_v0, %v5717_v5  ;;  %v3789_v44 = vmax.f32 %v3322_v11, 0.0  ;;  %v4730_v17 = vadd.f32 %v8982_v60, %v4729_v10 }
 0x4bd   : > { %v1912_v23 = vpop.f32.mrf.mxu0 }
 0x4be   : > { %v6326_v26 = vpack.c.bf16 %v5718_v25, %v5718_v25  ;;  %v3987_v28 = vpack.c.bf16 %v3789_v44, %v3788_v24  ;;  %v5224_v47 = vmax.f32 %v4730_v17, 0.0  ;;  %v1913_v30 = vadd.f32 %v8879_v27, %v1912_v23  ;;  %v7950_v44 = vld [vmem:[%s8223_s19 + $0x330] sm:$0xff] }
 0x4c0   : > { %v6582_v16 = vunpack.c.l.b16 %v6326_v26  ;;  %v5719_v33 = vmax.f32 %v5223_v22, %v5224_v47  ;;  %v2353_v34 = vmax.f32 %v1913_v30, 0.0  ;;  %7772 = vmatmul.msk.bf16.gmra.mxu2 %vm2640_vm2, %v3987_v28 }
 0x4c1   : > { %v3324_v35 = vpop.f32.mrf.mxu1 }
 0x4c2   : > { %v6711_v36 = vsel %vm6675_vm9, %v6582_v16, %v6710_v19  ;;  %v2542_v37 = vpack.c.bf16 %v2353_v34, %v2352_v32  ;;  %v5720_v39 = vrot.slane %v5719_v33, 4  ;;  %v3325_v45 = vadd.f32 %v8906_v46, %v3324_v35 }
 0x4c3   : > { %v6787_v38 = vpack.c.b16 %v6711_v36, %v6711_v36  ;;  %v4732_v40 = vpop.f32.mrf.mxu2  ;;  %7529 = vmatmul.msk.bf16.gmra.mxu3 %vm1182_vm1, %v7950_v44 }
 0x4c4   : > { %7637 = vmatmul.msk.bf16.gmra.mxu1 %vm2640_vm2, %v2542_v37  ;;  %v5721_v43 = vmax.f32 %v5719_v33, %v5720_v39  ;;  %v4733_v49 = vadd.f32 %v8982_v60, %v4732_v40  ;;  %v3790_v53 = vmax.f32 %v3325_v45, 0.0  ;;  %v7925_v45 = vld [vmem:[%s8223_s19 + $0x268] sm:$0xff] }
 0x4c5   : > { %6819 = vst [vmem:[%s8506_s20 + $0x14] sm:$0xf] %v6787_v38  ;;  %v1915_v42 = vpop.f32.mrf.mxu0 }
 0x4c6   : > { %v5722_v52 = vrot.slane %v5721_v43, 2  ;;  %v1916_v54 = vadd.f32 %v8879_v27, %v1915_v42  ;;  %v5225_v59 = vmax.f32 %v4733_v49, 0.0 }
 0x4c8   : > { %7502 = vmatmul.msk.bf16.gmra.mxu0 %vm1182_vm1, %v7923_v41  ;;  %v5723_v63 = vmax.f32 %v5721_v43, %v5722_v52  ;;  %v2354_v58 = vmax.f32 %v1916_v54, 0.0 }
 0x4c9   : > { %v3326_v48 = vpop.f32.mrf.mxu1 }
 0x4ca   : > { %v3327_v50 = vadd.f32 %v8906_v46, %v3326_v48  ;;  %v5724_v0 = vrot.slane %v5723_v63, 1 }
 0x4cb   : > { %v4734_v29 = vpop.f32.mrf.mxu2 }
 0x4cc   : > { %v3791_v55 = vmax.f32 %v3327_v50, 0.0  ;;  %v4735_v56 = vadd.f32 %v8982_v60, %v4734_v29  ;;  %v5725_v11 = vmax.f32 %v5723_v63, %v5724_v0 }
 0x4cd   : > { %v1917_v57 = vpop.f32.mrf.mxu0 }
 0x4ce   : > { %v3988_v15 = vpack.c.bf16 %v3791_v55, %v3790_v53  ;;  %v5226_v61 = vmax.f32 %v4735_v56, 0.0  ;;  %v1918_v62 = vadd.f32 %v8879_v27, %v1917_v57  ;;  %v6327_v17 = vpack.c.bf16 %v5725_v11, %v5725_v11  ;;  %v7951_v55 = vld [vmem:[%s8223_s19 + $0x338] sm:$0xff] }
 0x4d0   : > { %v5726_v1 = vmax.f32 %v5225_v59, %v5226_v61  ;;  %v2355_v2 = vmax.f32 %v1918_v62, 0.0  ;;  %7773 = vmatmul.msk.bf16.gmra.mxu2 %vm2640_vm2, %v3988_v15  ;;  %v6583_v34 = vunpack.c.l.b16 %v6327_v17 }
 0x4d1   : > { %v3329_v3 = vpop.f32.mrf.mxu1 }
 0x4d2   : > { %v5727_v4 = vrot.slane %v5726_v1, 4  ;;  %v2543_v12 = vpack.c.bf16 %v2355_v2, %v2354_v58  ;;  %v3330_v13 = vadd.f32 %v8906_v46, %v3329_v3 }
 0x4d3   : > { %v4737_v6 = vpop.f32.mrf.mxu2  ;;  %7530 = vmatmul.msk.bf16.gmra.mxu3 %vm1182_vm1, %v7951_v55 }
 0x4d4   : > { %v5728_v7 = vmax.f32 %v5726_v1, %v5727_v4  ;;  %7638 = vmatmul.msk.bf16.gmra.mxu1 %vm2640_vm2, %v2543_v12  ;;  %v4738_v24 = vadd.f32 %v8982_v60, %v4737_v6  ;;  %v3792_v20 = vmax.f32 %v3330_v13, 0.0 }
 0x4d5   : > { %v1920_v9 = vpop.f32.mrf.mxu0 }
 0x4d6   : > { %v5729_v5 = vrot.slane %v5728_v7, 2  ;;  %v1921_v23 = vadd.f32 %v8879_v27, %v1920_v9  ;;  %v5227_v47 = vmax.f32 %v4738_v24, 0.0  ;;  %v7926_v24 = vld [vmem:[%s8223_s19 + $0x270] sm:$0xff] }
 0x4d8   : > { %v5730_v14 = vmax.f32 %v5728_v7, %v5729_v5  ;;  %7503 = vmatmul.msk.bf16.gmra.mxu0 %vm1182_vm1, %v7924_v8  ;;  %v2356_v35 = vmax.f32 %v1921_v23, 0.0 }
 0x4d9   : > { %v3331_v10 = vpop.f32.mrf.mxu1 }
 0x4da   : > { %v5731_v25 = vrot.slane %v5730_v14, 1  ;;  %v3332_v18 = vadd.f32 %v8906_v46, %v3331_v10 }
 0x4db   : > { %v4739_v21 = vpop.f32.mrf.mxu2 }
 0x4dc   : > { %v5732_v22 = vmax.f32 %v5730_v14, %v5731_v25  ;;  %v3793_v26 = vmax.f32 %v3332_v18, 0.0  ;;  %v4740_v28 = vadd.f32 %v8982_v60, %v4739_v21 }
 0x4dd   : > { %v1922_v30 = vpop.f32.mrf.mxu0 }
 0x4de   : > { %v6328_v31 = vpack.c.bf16 %v5732_v22, %v5732_v22  ;;  %v3989_v16 = vpack.c.bf16 %v3793_v26, %v3792_v20  ;;  %v5228_v32 = vmax.f32 %v4740_v28, 0.0  ;;  %v1923_v33 = vadd.f32 %v8879_v27, %v1922_v30  ;;  %v7952_v22 = vld [vmem:[%s8223_s19 + $0x340] sm:$0xff] }
 0x4e0   : > { %v6584_v19 = vunpack.c.l.b16 %v6328_v31  ;;  %v5733_v36 = vmax.f32 %v5227_v47, %v5228_v32  ;;  %v2357_v37 = vmax.f32 %v1923_v33, 0.0  ;;  %7774 = vmatmul.msk.bf16.gmra.mxu2 %vm2640_vm2, %v3989_v16 }
 0x4e1   : > { %v3334_v38 = vpop.f32.mrf.mxu1 }
 0x4e2   : > { %v6712_v39 = vsel %vm6663_vm3, %v6584_v19, %v6583_v34  ;;  %v5734_v40 = vrot.slane %v5733_v36, 4  ;;  %v2544_v41 = vpack.c.bf16 %v2357_v37, %v2356_v35  ;;  %v3335_v50 = vadd.f32 %v8906_v46, %v3334_v38 }
 0x4e3   : > { %v4742_v42 = vpop.f32.mrf.mxu2  ;;  %7531 = vmatmul.msk.bf16.gmra.mxu3 %vm1182_vm1, %v7952_v22 }
 0x4e4   : > { %v5735_v43 = vmax.f32 %v5733_v36, %v5734_v40  ;;  %7639 = vmatmul.msk.bf16.gmra.mxu1 %vm2640_vm2, %v2544_v41  ;;  %v4743_v52 = vadd.f32 %v8982_v60, %v4742_v42  ;;  %v3794_v56 = vmax.f32 %v3335_v50, 0.0  ;;  %v7927_v40 = vld [vmem:[%s8223_s19 + $0x278] sm:$0xff] }
 0x4e5   : > { %v1925_v48 = vpop.f32.mrf.mxu0 }
 0x4e6   : > { %v5736_v49 = vrot.slane %v5735_v43, 2  ;;  %v1926_v15 = vadd.f32 %v8879_v27, %v1925_v48  ;;  %v5229_v63 = vmax.f32 %v4743_v52, 0.0  ;;  %v7953_v48 = vld [vmem:[%s8223_s19 + $0x348] sm:$0xff] }
 0x4e8   : > { %v5737_v51 = vmax.f32 %v5735_v43, %v5736_v49  ;;  %7504 = vmatmul.msk.bf16.gmra.mxu0 %vm1182_vm1, %v7925_v45  ;;  %v2358_v0 = vmax.f32 %v1926_v15, 0.0 }
 0x4e9   : > { %v3336_v29 = vpop.f32.mrf.mxu1 }
 0x4ea   : > { %v5738_v53 = vrot.slane %v5737_v51, 1  ;;  %v3337_v54 = vadd.f32 %v8906_v46, %v3336_v29 }
 0x4eb   : > { %v4744_v57 = vpop.f32.mrf.mxu2 }
 0x4ec   : > { %v5739_v59 = vmax.f32 %v5737_v51, %v5738_v53  ;;  %v3795_v61 = vmax.f32 %v3337_v54, 0.0  ;;  %v4745_v62 = vadd.f32 %v8982_v60, %v4744_v57  ;;  %v2065_v55 = vpop.f32.mrf.mxu3 }
 0x4ed   : > { %v1927_v58 = vpop.f32.mrf.mxu0 }
 0x4ee   : > { %v6329_v1 = vpack.c.bf16 %v5739_v59, %v5739_v59  ;;  %v3990_v2 = vpack.c.bf16 %v3795_v61, %v3794_v56  ;;  %v5230_v3 = vmax.f32 %v4745_v62, 0.0  ;;  %v1928_v4 = vadd.f32 %v8879_v27, %v1927_v58 }
 0x4f0   : > { %v6585_v12 = vunpack.c.l.b16 %v6329_v1  ;;  %v5740_v6 = vmax.f32 %v5229_v63, %v5230_v3  ;;  %v2359_v7 = vmax.f32 %v1928_v4, 0.0  ;;  %7775 = vmatmul.msk.bf16.gmra.mxu2 %vm2640_vm2, %v3990_v2  ;;  %v7928_v1 = vld [vmem:[%s8223_s19 + $0x280] sm:$0xff] }
 0x4f1   : > { %v3339_v8 = vpop.f32.mrf.mxu1 }
 0x4f2   : > { %v6713_v9 = vsel %vm6665_vm4, %v6585_v12, %v6712_v39  ;;  %v5741_v5 = vrot.slane %v5740_v6, 4  ;;  %v2545_v11 = vpack.c.bf16 %v2359_v7, %v2358_v0  ;;  %v3340_v44 = vadd.f32 %v8906_v46, %v3339_v8  ;;  %v9094_v7 = vld [vmem:[%s10085_s2] ss:$0 sm:$0xff] }
 0x4f3   : > { %v4747_v13 = vpop.f32.mrf.mxu2  ;;  %7532 = vmatmul.msk.bf16.gmra.mxu3 %vm1182_vm1, %v7953_v48  ;;  %v2066_v8 = vadd.f32 %v9094_v7, %v2065_v55 }
 0x4f4   : > { %v5742_v14 = vmax.f32 %v5740_v6, %v5741_v5  ;;  %7640 = vmatmul.msk.bf16.gmra.mxu1 %vm2640_vm2, %v2545_v11  ;;  %v3796_v28 = vmax.f32 %v3340_v44, 0.0  ;;  %v4748_v62 = vadd.f32 %v8982_v60, %v4747_v13  ;;  %v2067_v6 = vpop.f32.mrf.mxu3 }
 0x4f5   : > { %v1930_v10 = vpop.f32.mrf.mxu0 }
 0x4f6   : > { %v5743_v25 = vrot.slane %v5742_v14, 2  ;;  %v1931_v47 = vadd.f32 %v8879_v27, %v1930_v10  ;;  %v5231_v4 = vmax.f32 %v4748_v62, 0.0  ;;  %v2414_v10 = vmax.f32 %v2066_v8, 0.0 }
 0x4f8   : > { %v5744_v18 = vmax.f32 %v5742_v14, %v5743_v25  ;;  %7505 = vmatmul.msk.bf16.gmra.mxu0 %vm1182_vm1, %v7926_v24  ;;  %v2360_v19 = vmax.f32 %v1931_v47, 0.0 }
 0x4f9   : > { %v3341_v17 = vpop.f32.mrf.mxu1 }
 0x4fa   : > { %v5745_v20 = vrot.slane %v5744_v18, 1  ;;  %v3342_v21 = vadd.f32 %v8906_v46, %v3341_v17 }
 0x4fb   : > { %v4749_v23 = vpop.f32.mrf.mxu2 }
 0x4fc   : > { %v5746_v26 = vmax.f32 %v5744_v18, %v5745_v20  ;;  %v3797_v30 = vmax.f32 %v3342_v21, 0.0  ;;  %v4750_v59 = vadd.f32 %v8982_v60, %v4749_v23  ;;  %v7954_v18 = vld [vmem:[%s8223_s19 + $0x350] sm:$0xff] }
 0x4fd   : > { %v1932_v31 = vpop.f32.mrf.mxu0 }
 0x4fe   : > { %v6330_v16 = vpack.c.bf16 %v5746_v26, %v5746_v26  ;;  %v3991_v32 = vpack.c.bf16 %v3797_v30, %v3796_v28  ;;  %v1933_v33 = vadd.f32 %v8879_v27, %v1932_v31  ;;  %v5232_v2 = vmax.f32 %v4750_v59, 0.0 }
 0x500   : > { %v6586_v34 = vunpack.c.l.b16 %v6330_v16  ;;  %v2361_v35 = vmax.f32 %v1933_v33, 0.0  ;;  %7776 = vmatmul.msk.bf16.gmra.mxu2 %vm2640_vm2, %v3991_v32  ;;  %v5747_v5 = vmax.f32 %v5231_v4, %v5232_v2 }
 0x501   : > { %v3344_v36 = vpop.f32.mrf.mxu1 }
 0x502   : > { %v9071_v37 = vsel %vm6667_vm5, %v6586_v34, %v6713_v9  ;;  %v2546_v38 = vpack.c.bf16 %v2361_v35, %v2360_v19  ;;  %v3345_v42 = vadd.f32 %v8906_v46, %v3344_v36  ;;  %v2068_v9 = vadd.f32 %v9094_v7, %v2067_v6  ;;  %v2070_v34 = vpop.f32.mrf.mxu3 }
 0x503   : > { %v4752_v39 = vpop.f32.mrf.mxu2  ;;  %7533 = vmatmul.msk.bf16.gmra.mxu3 %vm1182_vm1, %v7954_v18  ;;  %v5748_v28 = vrot.slane %v5747_v5, 4 }
 0x504   : > { %7641 = vmatmul.msk.bf16.gmra.mxu1 %vm2640_vm2, %v2546_v38  ;;  %v3798_v50 = vmax.f32 %v3345_v42, 0.0  ;;  %v2415_v25 = vmax.f32 %v2068_v9, 0.0 }
 0x505   : > { %v1935_v41 = vpop.f32.mrf.mxu0  ;;  %v5749_v38 = vmax.f32 %v5747_v5, %v5748_v28 }
 0x506   : > { %v1936_v51 = vadd.f32 %v8879_v27, %v1935_v41  ;;  %v9103_v26 = vpack.c.bf16 %v2415_v25, %v2414_v10 }
 0x507   : > { %v5750_v48 = vrot.slane %v5749_v38, 2 }
 0x508   : > { %7506 = vmatmul.msk.bf16.gmra.mxu0 %vm1182_vm1, %v7927_v40  ;;  %v2362_v56 = vmax.f32 %v1936_v51, 0.0 }
 0x509   : > { %v3346_v43 = vpop.f32.mrf.mxu1  ;;  %v5751_v55 = vmax.f32 %v5749_v38, %v5750_v48 }
 0x50a   : > { %v3347_v45 = vadd.f32 %v8906_v46, %v3346_v43 }
 0x50b   : > { %v4754_v49 = vpop.f32.mrf.mxu2 }
 0x50c   : > { %v3799_v52 = vmax.f32 %v3347_v45, 0.0  ;;  %v4755_v63 = vadd.f32 %v8982_v60, %v4754_v49  ;;  %v7929_v45 = vld [vmem:[%s8223_s19 + $0x288] sm:$0xff] }
 0x50d   : > { %v1937_v29 = vpop.f32.mrf.mxu0 }
 0x50e   : > { %v3992_v53 = vpack.c.bf16 %v3799_v52, %v3798_v50  ;;  %v1938_v54 = vadd.f32 %v8879_v27, %v1937_v29  ;;  %v4753_v27 = vadd.f32 %v8982_v60, %v4752_v39  ;;  %v5234_v12 = vmax.f32 %v4755_v63, 0.0  ;;  %v2072_v29 = vpop.f32.mrf.mxu3  ;;  %v7955_v63 = vld [vmem:[%s8223_s19 + $0x358] sm:$0xff] }
 0x510   : > { %v2363_v57 = vmax.f32 %v1938_v54, 0.0  ;;  %7777 = vmatmul.msk.bf16.gmra.mxu2 %vm2640_vm2, %v3992_v53  ;;  %v5233_v11 = vmax.f32 %v4753_v27, 0.0  ;;  %v2071_v53 = vadd.f32 %v9094_v7, %v2070_v34  ;;  %v2073_v54 = vadd.f32 %v9094_v7, %v2072_v29  ;;  %v9129_v34 = vld [vmem:[%s10087_s4] ss:$0 sm:$0xff] }
 0x511   : > { %v3349_v15 = vpop.f32.mrf.mxu1 }
 0x512   : > { %v2547_v61 = vpack.c.bf16 %v2363_v57, %v2362_v56  ;;  %v3350_v0 = vadd.f32 %v8906_v46, %v3349_v15  ;;  %v5754_v44 = vmax.f32 %v5233_v11, %v5234_v12  ;;  %v2417_v62 = vmax.f32 %v2073_v54, 0.0 }
 0x513   : > { %v4757_v58 = vpop.f32.mrf.mxu2  ;;  %7534 = vmatmul.msk.bf16.gmra.mxu3 %vm1182_vm1, %v7955_v63 }
 0x514   : > { %7642 = vmatmul.msk.bf16.gmra.mxu1 %vm2640_vm2, %v2547_v61  ;;  %v4758_v14 = vadd.f32 %v8982_v60, %v4757_v58  ;;  %v3800_v17 = vmax.f32 %v3350_v0, 0.0  ;;  %v5755_v33 = vrot.slane %v5754_v44, 4  ;;  %v2416_v61 = vmax.f32 %v2071_v53, 0.0 }
 0x515   : > { %v1940_v3 = vpop.f32.mrf.mxu0  ;;  %v5752_v0 = vrot.slane %v5751_v55, 1 }
 0x516   : > { %v1941_v21 = vadd.f32 %v9094_v7, %v1940_v3  ;;  %v5235_v30 = vmax.f32 %v4758_v14, 0.0  ;;  %v5756_v42 = vmax.f32 %v5754_v44, %v5755_v33  ;;  %v9119_v12 = vpack.c.bf16 %v2417_v62, %v2416_v61  ;;  %v2075_v14 = vpop.f32.mrf.mxu3 }
 0x517   : > { %v5753_v18 = vmax.f32 %v5751_v55, %v5752_v0  ;;  %v2076_v38 = vadd.f32 %v9094_v7, %v2075_v14 }
 0x518   : > { %7507 = vmatmul.msk.bf16.gmra.mxu0 %vm1182_vm1, %v7928_v1  ;;  %v2364_v19 = vmax.f32 %v1941_v21, 0.0  ;;  %v5757_v51 = vrot.slane %v5756_v42, 2 }
 0x519   : > { %v3351_v13 = vpop.f32.mrf.mxu1 }
 0x51a   : > { %v3352_v24 = vadd.f32 %v8906_v46, %v3351_v13  ;;  %v5758_v58 = vmax.f32 %v5756_v42, %v5757_v51  ;;  %v7956_v51 = vld [vmem:[%s8223_s19 + $0x360] sm:$0xff] }
 0x51b   : > { %v4759_v20 = vpop.f32.mrf.mxu2 }
 0x51c   : > { %v3801_v22 = vmax.f32 %v3352_v24, 0.0  ;;  %v4760_v23 = vadd.f32 %v8982_v60, %v4759_v20  ;;  %v5759_v13 = vrot.slane %v5758_v58, 1 }
 0x51d   : > { %v1942_v47 = vpop.f32.mrf.mxu0 }
 0x51e   : > { %v3993_v31 = vpack.c.bf16 %v3801_v22, %v3800_v17  ;;  %v5236_v16 = vmax.f32 %v4760_v23, 0.0  ;;  %v1943_v32 = vadd.f32 %v9094_v7, %v1942_v47  ;;  %v5760_v22 = vmax.f32 %v5758_v58, %v5759_v13  ;;  %v7930_v47 = vld [vmem:[%s8223_s19 + $0x290] sm:$0xff] }
 0x520   : > { %v5761_v35 = vmax.f32 %v5235_v30, %v5236_v16  ;;  %v2365_v36 = vmax.f32 %v1943_v32, 0.0  ;;  %7778 = vmatmul.msk.bf16.gmra.mxu2 %vm2640_vm2, %v3993_v31  ;;  %v6331_v30 = vpack.c.bf16 %v5753_v18, %v5753_v18  ;;  %v6332_v33 = vpack.c.bf16 %v5760_v22, %v5760_v22 }
 0x521   : > { %v3354_v39 = vpop.f32.mrf.mxu1 }
 0x522   : > { %v5762_v40 = vrot.slane %v5761_v35, 4  ;;  %v2548_v41 = vpack.c.bf16 %v2365_v36, %v2364_v19  ;;  %v3355_v52 = vadd.f32 %v8906_v46, %v3354_v39 }
 0x523   : > { %v4762_v43 = vpop.f32.mrf.mxu2  ;;  %7535 = vmatmul.msk.bf16.gmra.mxu3 %vm1182_vm1, %v7956_v51 }
 0x524   : > { %7643 = vmatmul.msk.bf16.gmra.mxu1 %vm2640_vm2, %v2548_v41  ;;  %v5763_v49 = vmax.f32 %v5761_v35, %v5762_v40  ;;  %v4763_v59 = vadd.f32 %v8982_v60, %v4762_v43  ;;  %v3802_v1 = vmax.f32 %v3355_v52, 0.0  ;;  %v2077_v35 = vpop.f32.mrf.mxu3  ;;  %v6587_v40 = vunpack.c.l.b16 %v6331_v30 }
 0x525   : > { %v1945_v50 = vpop.f32.mrf.mxu0  ;;  %v2078_v39 = vadd.f32 %v9094_v7, %v2077_v35  ;;  %v6588_v52 = vunpack.c.l.b16 %v6332_v33 }
 0x526   : > { %v5764_v56 = vrot.slane %v5763_v49, 2  ;;  %v1946_v27 = vadd.f32 %v9094_v7, %v1945_v50  ;;  %v5237_v9 = vmax.f32 %v4763_v59, 0.0 }
 0x527   : > { %v2419_v50 = vmax.f32 %v2078_v39, 0.0 }
 0x528   : > { %7508 = vmatmul.msk.bf16.gmra.mxu0 %vm1182_vm1, %v7929_v45  ;;  %v5765_v6 = vmax.f32 %v5763_v49, %v5764_v56  ;;  %v2366_v24 = vmax.f32 %v1946_v27, 0.0  ;;  %v2418_v49 = vmax.f32 %v2076_v38, 0.0 }
 0x529   : > { %v3356_v57 = vpop.f32.mrf.mxu1 }
 0x52a   : > { %v3357_v15 = vadd.f32 %v8906_v46, %v3356_v57  ;;  %v5766_v44 = vrot.slane %v5765_v6, 1  ;;  %v9140_v59 = vpack.c.bf16 %v2419_v50, %v2418_v49 }
 0x52b   : > { %v4764_v2 = vpop.f32.mrf.mxu2 }
 0x52c   : > { %v3803_v3 = vmax.f32 %v3357_v15, 0.0  ;;  %v4765_v4 = vadd.f32 %v8982_v60, %v4764_v2  ;;  %v5767_v31 = vmax.f32 %v5765_v6, %v5766_v44  ;;  %v6715_v15 = vsel %vm6669_vm6, %v6587_v40, %v9071_v37 }
 0x52d   : > { %v1947_v8 = vpop.f32.mrf.mxu0 }
 0x52e   : > { %v3994_v46 = vpack.c.bf16 %v3803_v3, %v3802_v1  ;;  %v5238_v5 = vmax.f32 %v4765_v4, 0.0  ;;  %v1948_v11 = vadd.f32 %v9094_v7, %v1947_v8  ;;  %v6333_v41 = vpack.c.bf16 %v5767_v31, %v5767_v31  ;;  %v2080_v4 = vpop.f32.mrf.mxu3  ;;  %v7957_v31 = vld [vmem:[%s8223_s19 + $0x368] sm:$0xff] }
 0x52f   : > { %v6716_v3 = vsel %vm6671_vm7, %v6588_v52, %v6715_v15 }
 0x530   : > { %v5768_v10 = vmax.f32 %v5237_v9, %v5238_v5  ;;  %v2367_v25 = vmax.f32 %v1948_v11, 0.0  ;;  %7779 = vmatmul.msk.bf16.gmra.mxu2 %vm2640_vm2, %v3994_v46  ;;  %v6589_v61 = vunpack.c.l.b16 %v6333_v41 }
 0x531   : > { %v3359_v17 = vpop.f32.mrf.mxu1 }
 0x532   : > { %v5769_v20 = vrot.slane %v5768_v10, 4  ;;  %v2549_v21 = vpack.c.bf16 %v2367_v25, %v2366_v24  ;;  %v3360_v19 = vadd.f32 %v9129_v34, %v3359_v17  ;;  %v6717_v37 = vsel %vm6673_vm8, %v6589_v61, %v6716_v3 }
 0x533   : > { %v4767_v23 = vpop.f32.mrf.mxu2  ;;  %7536 = vmatmul.msk.bf16.gmra.mxu3 %vm1182_vm1, %v7957_v31 }
 0x534   : > { %v5770_v28 = vmax.f32 %v5768_v10, %v5769_v20  ;;  %7644 = vmatmul.msk.bf16.gmra.mxu1 %vm2640_vm2, %v2549_v21  ;;  %v4768_v42 = vadd.f32 %v8982_v60, %v4767_v23  ;;  %v3804_v29 = vmax.f32 %v3360_v19, 0.0  ;;  %v7931_v10 = vld [vmem:[%s8223_s19 + $0x298] sm:$0xff]  ;;  %v2081_v20 = vadd.f32 %v9094_v7, %v2080_v4 }
 0x535   : > { %v1950_v16 = vpop.f32.mrf.mxu0 }
 0x536   : > { %v5771_v32 = vrot.slane %v5770_v28, 2  ;;  %v1951_v53 = vadd.f32 %v9094_v7, %v1950_v16  ;;  %v5239_v62 = vmax.f32 %v4768_v42, 0.0  ;;  %v2082_v17 = vpop.f32.mrf.mxu3 }
 0x537   : > { %v2083_v21 = vadd.f32 %v9094_v7, %v2082_v17 }
 0x538   : > { %v5772_v36 = vmax.f32 %v5770_v28, %v5771_v32  ;;  %7509 = vmatmul.msk.bf16.gmra.mxu0 %vm1182_vm1, %v7930_v47  ;;  %v2368_v6 = vmax.f32 %v1951_v53, 0.0  ;;  %v2420_v47 = vmax.f32 %v2081_v20, 0.0 }
 0x539   : > { %v3361_v43 = vpop.f32.mrf.mxu1  ;;  %v2421_v30 = vmax.f32 %v2083_v21, 0.0 }
 0x53a   : > { %v5773_v45 = vrot.slane %v5772_v36, 1  ;;  %v3362_v48 = vadd.f32 %v9129_v34, %v3361_v43 }
 0x53b   : > { %v4769_v54 = vpop.f32.mrf.mxu2  ;;  %v9162_v38 = vpack.c.bf16 %v2421_v30, %v2420_v47 }
 0x53c   : > { %v5774_v55 = vmax.f32 %v5772_v36, %v5773_v45  ;;  %v3805_v56 = vmax.f32 %v3362_v48, 0.0  ;;  %v4770_v57 = vadd.f32 %v8982_v60, %v4769_v54 }
 0x53d   : > { %v1952_v63 = vpop.f32.mrf.mxu0 }
 0x53e   : > { %v6334_v58 = vpack.c.bf16 %v5774_v55, %v5774_v55  ;;  %v3995_v1 = vpack.c.bf16 %v3805_v56, %v3804_v29  ;;  %v5240_v2 = vmax.f32 %v4770_v57, 0.0  ;;  %v1953_v27 = vadd.f32 %v9094_v7, %v1952_v63  ;;  %v2085_v48 = vpop.f32.mrf.mxu3  ;;  %v7932_v57 = vld [vmem:[%s8223_s19 + $0x2a0] sm:$0xff] }
 0x540   : > { %v6590_v0 = vunpack.c.l.b16 %v6334_v58  ;;  %v5775_v8 = vmax.f32 %v5239_v62, %v5240_v2  ;;  %v2369_v9 = vmax.f32 %v1953_v27, 0.0  ;;  %7780 = vmatmul.msk.bf16.gmra.mxu2 %vm2640_vm2, %v3995_v1  ;;  %v2086_v2 = vadd.f32 %v9094_v7, %v2085_v48 }
 0x541   : > { %v3364_v46 = vpop.f32.mrf.mxu1 }
 0x542   : > { %v6718_v5 = vsel %vm6675_vm9, %v6590_v0, %v6717_v37  ;;  %v2550_v11 = vpack.c.bf16 %v2369_v9, %v2368_v6  ;;  %v5776_v14 = vrot.slane %v5775_v8, 4  ;;  %v3365_v44 = vadd.f32 %v9129_v34, %v3364_v46  ;;  %v7958_v37 = vld [vmem:[%s8223_s19 + $0x370] sm:$0xff] }
 0x543   : > { %v6788_v13 = vpack.c.b16 %v6718_v5, %v6718_v5  ;;  %v4772_v24 = vpop.f32.mrf.mxu2  ;;  %7537 = vmatmul.msk.bf16.gmra.mxu3 %vm1182_vm1, %v7958_v37 }
 0x544   : > { %7645 = vmatmul.msk.bf16.gmra.mxu1 %vm2640_vm2, %v2550_v11  ;;  %v5777_v18 = vmax.f32 %v5775_v8, %v5776_v14  ;;  %v4773_v23 = vadd.f32 %v8982_v60, %v4772_v24  ;;  %v3806_v32 = vmax.f32 %v3365_v44, 0.0  ;;  %v2422_v8 = vmax.f32 %v2086_v2, 0.0 }
 0x545   : > { %6820 = vst [vmem:[%s8506_s20 + $0x18] sm:$0xf] %v6788_v13  ;;  %v1955_v25 = vpop.f32.mrf.mxu0 }
 0x546   : > { %v5778_v16 = vrot.slane %v5777_v18, 2  ;;  %v1956_v19 = vadd.f32 %v9094_v7, %v1955_v25  ;;  %v5241_v40 = vmax.f32 %v4773_v23, 0.0  ;;  %v2087_v58 = vpop.f32.mrf.mxu3 }
 0x547   : > { %v2088_v27 = vadd.f32 %v9094_v7, %v2087_v58 }
 0x548   : > { %7510 = vmatmul.msk.bf16.gmra.mxu0 %vm1182_vm1, %v7931_v10  ;;  %v5779_v45 = vmax.f32 %v5777_v18, %v5778_v16  ;;  %v2370_v49 = vmax.f32 %v1956_v19, 0.0 }
 0x549   : > { %v3366_v22 = vpop.f32.mrf.mxu1  ;;  %v2423_v9 = vmax.f32 %v2088_v27, 0.0 }
 0x54a   : > { %v3367_v28 = vadd.f32 %v9129_v34, %v3366_v22  ;;  %v5780_v54 = vrot.slane %v5779_v45, 1 }
 0x54b   : > { %v4774_v33 = vpop.f32.mrf.mxu2  ;;  %v9178_v25 = vpack.c.bf16 %v2423_v9, %v2422_v8 }
 0x54c   : > { %v3807_v35 = vmax.f32 %v3367_v28, 0.0  ;;  %v4775_v36 = vadd.f32 %v8982_v60, %v4774_v33  ;;  %v5781_v62 = vmax.f32 %v5779_v45, %v5780_v54 }
 0x54d   : > { %v1957_v39 = vpop.f32.mrf.mxu0 }
 0x54e   : > { %v3996_v41 = vpack.c.bf16 %v3807_v35, %v3806_v32  ;;  %v5242_v42 = vmax.f32 %v4775_v36, 0.0  ;;  %v1958_v43 = vadd.f32 %v9094_v7, %v1957_v39  ;;  %v6335_v46 = vpack.c.bf16 %v5781_v62, %v5781_v62  ;;  %v2090_v28 = vpop.f32.mrf.mxu3  ;;  %v7933_v39 = vld [vmem:[%s8223_s19 + $0x2a8] sm:$0xff] }
 0x54f   : > { %v2091_v48 = vadd.f32 %v9094_v7, %v2090_v28 }
 0x550   : > { %v5782_v50 = vmax.f32 %v5241_v40, %v5242_v42  ;;  %v2371_v51 = vmax.f32 %v1958_v43, 0.0  ;;  %7781 = vmatmul.msk.bf16.gmra.mxu2 %vm2640_vm2, %v3996_v41  ;;  %v6591_v23 = vunpack.c.l.b16 %v6335_v46 }
 0x551   : > { %v3369_v52 = vpop.f32.mrf.mxu1  ;;  %v2424_v54 = vmax.f32 %v2091_v48, 0.0 }
 0x552   : > { %v5783_v29 = vrot.slane %v5782_v50, 4  ;;  %v2551_v53 = vpack.c.bf16 %v2371_v51, %v2370_v49  ;;  %v3370_v63 = vadd.f32 %v9129_v34, %v3369_v52 }
 0x553   : > { %v4777_v55 = vpop.f32.mrf.mxu2 }
 0x554   : > { %v5784_v56 = vmax.f32 %v5782_v50, %v5783_v29  ;;  %7646 = vmatmul.msk.bf16.gmra.mxu1 %vm2640_vm2, %v2551_v53  ;;  %v4778_v3 = vadd.f32 %v8982_v60, %v4777_v55  ;;  %v3808_v5 = vmax.f32 %v3370_v63, 0.0  ;;  %v9193_v50 = vld [vmem:[%s10089_s6] ss:$0 sm:$0xff] }
 0x555   : > { %v1960_v15 = vpop.f32.mrf.mxu0 }
 0x556   : > { %v5785_v61 = vrot.slane %v5784_v56, 2  ;;  %v1961_v11 = vadd.f32 %v9094_v7, %v1960_v15  ;;  %v5243_v18 = vmax.f32 %v4778_v3, 0.0  ;;  %v2092_v43 = vpop.f32.mrf.mxu3 }
 0x557   : > { %v2093_v49 = vadd.f32 %v9094_v7, %v2092_v43 }
 0x558   : > { %v5786_v1 = vmax.f32 %v5784_v56, %v5785_v61  ;;  %7511 = vmatmul.msk.bf16.gmra.mxu0 %vm1182_vm1, %v7932_v57  ;;  %v2372_v30 = vmax.f32 %v1961_v11, 0.0  ;;  %v7959_v56 = vld [vmem:[%s8223_s19 + $0x378] sm:$0xff] }
 0x559   : > { %v3371_v4 = vpop.f32.mrf.mxu1  ;;  %v2425_v55 = vmax.f32 %v2093_v49, 0.0  ;;  %7538 = vmatmul.msk.bf16.gmra.mxu3 %vm1182_vm1, %v7959_v56 }
 0x55a   : > { %v5787_v0 = vrot.slane %v5786_v1, 1  ;;  %v3372_v6 = vadd.f32 %v9129_v34, %v3371_v4 }
 0x55b   : > { %v4779_v13 = vpop.f32.mrf.mxu2 }
 0x55c   : > { %v5788_v14 = vmax.f32 %v5786_v1, %v5787_v0  ;;  %v3809_v24 = vmax.f32 %v3372_v6, 0.0  ;;  %v4780_v10 = vadd.f32 %v8982_v60, %v4779_v13  ;;  %v9200_v1 = vpack.c.bf16 %v2425_v55, %v2424_v54 }
 0x55d   : > { %v1962_v44 = vpop.f32.mrf.mxu0 }
 0x55e   : > { %v6336_v17 = vpack.c.bf16 %v5788_v14, %v5788_v14  ;;  %v3997_v20 = vpack.c.bf16 %v3809_v24, %v3808_v5  ;;  %v5244_v21 = vmax.f32 %v4780_v10, 0.0  ;;  %v1963_v22 = vadd.f32 %v9094_v7, %v1962_v44  ;;  %v2095_v8 = vpop.f32.mrf.mxu3  ;;  %v7934_v44 = vld [vmem:[%s8223_s19 + $0x2b0] sm:$0xff] }
 0x55f   : > { %v2096_v28 = vadd.f32 %v9094_v7, %v2095_v8 }
 0x560   : > { %v6592_v47 = vunpack.c.l.b16 %v6336_v17  ;;  %v5789_v31 = vmax.f32 %v5243_v18, %v5244_v21  ;;  %v2373_v16 = vmax.f32 %v1963_v22, 0.0  ;;  %7782 = vmatmul.msk.bf16.gmra.mxu2 %vm2640_vm2, %v3997_v20 }
 0x561   : > { %v3374_v60 = vpop.f32.mrf.mxu1 }
 0x562   : > { %v6719_v32 = vsel %vm6663_vm3, %v6592_v47, %v6591_v23  ;;  %v5790_v33 = vrot.slane %v5789_v31, 4  ;;  %v2552_v19 = vpack.c.bf16 %v2373_v16, %v2372_v30  ;;  %v3375_v42 = vadd.f32 %v9129_v34, %v3374_v60 }
 0x563   : > { %v4782_v35 = vpop.f32.mrf.mxu2  ;;  %v2426_v60 = vmax.f32 %v2096_v28, 0.0  ;;  %v7936_v28 = vld [vmem:[%s8223_s19 + $0x2c0] sm:$0xff] }
 0x564   : > { %v5791_v36 = vmax.f32 %v5789_v31, %v5790_v33  ;;  %7647 = vmatmul.msk.bf16.gmra.mxu1 %vm2640_vm2, %v2552_v19  ;;  %v4783_v51 = vadd.f32 %v9193_v50, %v4782_v35  ;;  %v3810_v57 = vmax.f32 %v3375_v42, 0.0  ;;  %v7960_v33 = vld [vmem:[%s8223_s19 + $0x380] sm:$0xff] }
 0x565   : > { %v1965_v40 = vpop.f32.mrf.mxu0 }
 0x566   : > { %v5792_v41 = vrot.slane %v5791_v36, 2  ;;  %v1966_v15 = vadd.f32 %v9094_v7, %v1965_v40  ;;  %v5245_v2 = vmax.f32 %v4783_v51, 0.0  ;;  %v2097_v22 = vpop.f32.mrf.mxu3 }
 0x567   : > { %v2098_v47 = vadd.f32 %v9094_v7, %v2097_v22 }
 0x568   : > { %v5793_v45 = vmax.f32 %v5791_v36, %v5792_v41  ;;  %7512 = vmatmul.msk.bf16.gmra.mxu0 %vm1182_vm1, %v7933_v39  ;;  %v2374_v37 = vmax.f32 %v1966_v15, 0.0 }
 0x569   : > { %v3376_v52 = vpop.f32.mrf.mxu1  ;;  %7539 = vmatmul.msk.bf16.gmra.mxu3 %vm1182_vm1, %v7960_v33 }
 0x56a   : > { %v5794_v29 = vrot.slane %v5793_v45, 1  ;;  %v3377_v53 = vadd.f32 %v9129_v34, %v3376_v52 }
 0x56b   : > { %v4784_v61 = vpop.f32.mrf.mxu2 }
 0x56c   : > { %v5795_v62 = vmax.f32 %v5793_v45, %v5794_v29  ;;  %v3811_v63 = vmax.f32 %v3377_v53, 0.0  ;;  %v4785_v58 = vadd.f32 %v9193_v50, %v4784_v61 }
 0x56d   : > { %v1967_v27 = vpop.f32.mrf.mxu0 }
 0x56e   : > { %v6337_v3 = vpack.c.bf16 %v5795_v62, %v5795_v62  ;;  %v3998_v4 = vpack.c.bf16 %v3811_v63, %v3810_v57  ;;  %v5246_v0 = vmax.f32 %v4785_v58, 0.0  ;;  %v1968_v6 = vadd.f32 %v9094_v7, %v1967_v27  ;;  %v2100_v49 = vpop.f32.mrf.mxu3  ;;  %v7935_v57 = vld [vmem:[%s8223_s19 + $0x2b8] sm:$0xff] }
 0x56f   : > { %v2101_v63 = vadd.f32 %v9094_v7, %v2100_v49 }
 0x570   : > { %v6593_v9 = vunpack.c.l.b16 %v6337_v3  ;;  %v5796_v46 = vmax.f32 %v5245_v2, %v5246_v0  ;;  %v2375_v5 = vmax.f32 %v1968_v6, 0.0  ;;  %7783 = vmatmul.msk.bf16.gmra.mxu2 %vm2640_vm2, %v3998_v4  ;;  %v7961_v0 = vld [vmem:[%s8223_s19 + $0x388] sm:$0xff] }
 0x571   : > { %v3379_v11 = vpop.f32.mrf.mxu1  ;;  %v2428_v3 = vmax.f32 %v2101_v63, 0.0 }
 0x572   : > { %v6720_v13 = vsel %vm6665_vm4, %v6593_v9, %v6719_v32  ;;  %v5797_v14 = vrot.slane %v5796_v46, 4  ;;  %v2553_v24 = vpack.c.bf16 %v2375_v5, %v2374_v37  ;;  %v3380_v21 = vadd.f32 %v9129_v34, %v3379_v11 }
 0x573   : > { %v9206_v10 = vpop.f32.mrf.mxu2  ;;  %v2427_v32 = vmax.f32 %v2098_v47, 0.0 }
 0x574   : > { %v5798_v18 = vmax.f32 %v5796_v46, %v5797_v14  ;;  %7648 = vmatmul.msk.bf16.gmra.mxu1 %vm2640_vm2, %v2553_v24  ;;  %v3812_v19 = vmax.f32 %v3380_v21, 0.0  ;;  %v4788_v21 = vadd.f32 %v9193_v50, %v9206_v10 }
 0x575   : > { %v1970_v17 = vpop.f32.mrf.mxu0  ;;  %v9217_v41 = vpack.c.bf16 %v2427_v32, %v2426_v60 }
 0x576   : > { %v5799_v20 = vrot.slane %v5798_v18, 2  ;;  %v1971_v39 = vadd.f32 %v9094_v7, %v1970_v17  ;;  %v2102_v61 = vpop.f32.mrf.mxu3 }
 0x577   : > { %v2103_v58 = vadd.f32 %v9094_v7, %v2102_v61 }
 0x578   : > { %v5800_v23 = vmax.f32 %v5798_v18, %v5799_v20  ;;  %7513 = vmatmul.msk.bf16.gmra.mxu0 %vm1182_vm1, %v7934_v44  ;;  %v2376_v52 = vmax.f32 %v1971_v39, 0.0 }
 0x579   : > { %v3381_v30 = vpop.f32.mrf.mxu1  ;;  %v2429_v4 = vmax.f32 %v2103_v58, 0.0  ;;  %7540 = vmatmul.msk.bf16.gmra.mxu3 %vm1182_vm1, %v7961_v0 }
 0x57a   : > { %v5801_v31 = vrot.slane %v5800_v23, 1  ;;  %v3382_v16 = vadd.f32 %v9129_v34, %v3381_v30 }
 0x57b   : > { %v4789_v35 = vpop.f32.mrf.mxu2  ;;  %v9234_v46 = vpack.c.bf16 %v2429_v4, %v2428_v3 }
 0x57c   : > { %v5802_v36 = vmax.f32 %v5800_v23, %v5801_v31  ;;  %v3813_v40 = vmax.f32 %v3382_v16, 0.0  ;;  %v4790_v44 = vadd.f32 %v9193_v50, %v4789_v35  ;;  %v5247_v16 = vmax.f32 %v4788_v21, 0.0 }
 0x57d   : > { %v1972_v42 = vpop.f32.mrf.mxu0 }
 0x57e   : > { %v6338_v43 = vpack.c.bf16 %v5802_v36, %v5802_v36  ;;  %v3999_v45 = vpack.c.bf16 %v3813_v40, %v3812_v19  ;;  %v1973_v48 = vadd.f32 %v9094_v7, %v1972_v42  ;;  %v2105_v14 = vpop.f32.mrf.mxu3  ;;  %v5248_v47 = vmax.f32 %v4790_v44, 0.0 }
 0x57f   : > { %v2106_v10 = vadd.f32 %v9094_v7, %v2105_v14 }
 0x580   : > { %v6594_v51 = vunpack.c.l.b16 %v6338_v43  ;;  %v2377_v29 = vmax.f32 %v1973_v48, 0.0  ;;  %7784 = vmatmul.msk.bf16.gmra.mxu2 %vm2640_vm2, %v3999_v45  ;;  %v5803_v35 = vmax.f32 %v5247_v16, %v5248_v47  ;;  %v7962_v48 = vld [vmem:[%s8223_s19 + $0x390] sm:$0xff] }
 0x581   : > { %v3384_v53 = vpop.f32.mrf.mxu1  ;;  %v2430_v43 = vmax.f32 %v2106_v10, 0.0 }
 0x582   : > { %v9223_v54 = vsel %vm6667_vm5, %v6594_v51, %v6720_v13  ;;  %v2554_v55 = vpack.c.bf16 %v2377_v29, %v2376_v52  ;;  %v3385_v62 = vadd.f32 %v9129_v34, %v3384_v53 }
 0x583   : > { %v4792_v56 = vpop.f32.mrf.mxu2 }
 0x584   : > { %7649 = vmatmul.msk.bf16.gmra.mxu1 %vm2640_vm2, %v2554_v55  ;;  %v3814_v8 = vmax.f32 %v3385_v62, 0.0  ;;  %v4793_v30 = vadd.f32 %v9193_v50, %v4792_v56 }
 0x585   : > { %v1975_v15 = vpop.f32.mrf.mxu0 }
 0x586   : > { %v1976_v9 = vadd.f32 %v9094_v7, %v1975_v15  ;;  %v2107_v33 = vpop.f32.mrf.mxu3  ;;  %v5249_v36 = vmax.f32 %v4793_v30, 0.0 }
 0x587   : > { %v2108_v19 = vadd.f32 %v9094_v7, %v2107_v33 }
 0x588   : > { %7514 = vmatmul.msk.bf16.gmra.mxu0 %vm1182_vm1, %v7935_v57  ;;  %v2378_v24 = vmax.f32 %v1976_v9, 0.0  ;;  %v5804_v57 = vrot.slane %v5803_v35, 4 }
 0x589   : > { %v3386_v2 = vpop.f32.mrf.mxu1  ;;  %v2431_v45 = vmax.f32 %v2108_v19, 0.0  ;;  %7541 = vmatmul.msk.bf16.gmra.mxu3 %vm1182_vm1, %v7962_v48 }
 0x58a   : > { %v3387_v27 = vadd.f32 %v9129_v34, %v3386_v2 }
 0x58b   : > { %v4794_v6 = vpop.f32.mrf.mxu2  ;;  %v9255_v56 = vpack.c.bf16 %v2431_v45, %v2430_v43 }
 0x58c   : > { %v3815_v37 = vmax.f32 %v3387_v27, 0.0  ;;  %v4795_v22 = vadd.f32 %v9193_v50, %v4794_v6  ;;  %v5805_v6 = vmax.f32 %v5803_v35, %v5804_v57 }
 0x58d   : > { %v1977_v5 = vpop.f32.mrf.mxu0 }
 0x58e   : > { %v4000_v11 = vpack.c.bf16 %v3815_v37, %v3814_v8  ;;  %v1978_v13 = vadd.f32 %v9094_v7, %v1977_v5  ;;  %v5250_v60 = vmax.f32 %v4795_v22, 0.0  ;;  %v2110_v27 = vpop.f32.mrf.mxu3  ;;  %v5806_v14 = vrot.slane %v5805_v6, 2 }
 0x58f   : > { %v2111_v21 = vadd.f32 %v9094_v7, %v2110_v27 }
 0x590   : > { %v2379_v18 = vmax.f32 %v1978_v13, 0.0  ;;  %7785 = vmatmul.msk.bf16.gmra.mxu2 %vm2640_vm2, %v4000_v11  ;;  %v5810_v49 = vmax.f32 %v5249_v36, %v5250_v60  ;;  %v7937_v13 = vld [vmem:[%s8223_s19 + $0x2c8] sm:$0xff] }
 0x591   : > { %v3389_v17 = vpop.f32.mrf.mxu1  ;;  %v2432_v16 = vmax.f32 %v2111_v21, 0.0 }
 0x592   : > { %v2555_v20 = vpack.c.bf16 %v2379_v18, %v2378_v24  ;;  %v3390_v32 = vadd.f32 %v9129_v34, %v3389_v17  ;;  %v5811_v2 = vrot.slane %v5810_v49, 4 }
 0x593   : > { %v4797_v23 = vpop.f32.mrf.mxu2 }
 0x594   : > { %7650 = vmatmul.msk.bf16.gmra.mxu1 %vm2640_vm2, %v2555_v20  ;;  %v4798_v40 = vadd.f32 %v9193_v50, %v4797_v23  ;;  %v3816_v51 = vmax.f32 %v3390_v32, 0.0  ;;  %v5812_v5 = vmax.f32 %v5810_v49, %v5811_v2  ;;  %v5807_v23 = vmax.f32 %v5805_v6, %v5806_v14  ;;  %v7963_v32 = vld [vmem:[%s8223_s19 + $0x398] sm:$0xff] }
 0x595   : > { %v1980_v31 = vpop.f32.mrf.mxu0 }
 0x596   : > { %v1981_v29 = vadd.f32 %v9094_v7, %v1980_v31  ;;  %v5251_v61 = vmax.f32 %v4798_v40, 0.0  ;;  %v5813_v44 = vrot.slane %v5812_v5, 2  ;;  %v2112_v20 = vpop.f32.mrf.mxu3 }
 0x597   : > { %v2113_v22 = vadd.f32 %v9094_v7, %v2112_v20 }
 0x598   : > { %7515 = vmatmul.msk.bf16.gmra.mxu0 %vm1182_vm1, %v7936_v28  ;;  %v2380_v3 = vmax.f32 %v1981_v29, 0.0  ;;  %v5814_v33 = vmax.f32 %v5812_v5, %v5813_v44 }
 0x599   : > { %v3391_v39 = vpop.f32.mrf.mxu1  ;;  %v2433_v60 = vmax.f32 %v2113_v22, 0.0  ;;  %7542 = vmatmul.msk.bf16.gmra.mxu3 %vm1182_vm1, %v7963_v32 }
 0x59a   : > { %v3392_v42 = vadd.f32 %v9129_v34, %v3391_v39  ;;  %v5815_v29 = vrot.slane %v5814_v33, 1 }
 0x59b   : > { %v4799_v52 = vpop.f32.mrf.mxu2  ;;  %v9271_v40 = vpack.c.bf16 %v2433_v60, %v2432_v16 }
 0x59c   : > { %v3817_v53 = vmax.f32 %v3392_v42, 0.0  ;;  %v4800_v55 = vadd.f32 %v9193_v50, %v4799_v52  ;;  %v5808_v42 = vrot.slane %v5807_v23, 1  ;;  %v5816_v27 = vmax.f32 %v5814_v33, %v5815_v29 }
 0x59d   : > { %v1982_v15 = vpop.f32.mrf.mxu0 }
 0x59e   : > { %v4001_v62 = vpack.c.bf16 %v3817_v53, %v3816_v51  ;;  %v5252_v63 = vmax.f32 %v4800_v55, 0.0  ;;  %v1983_v58 = vadd.f32 %v9094_v7, %v1982_v15  ;;  %v2115_v53 = vpop.f32.mrf.mxu3  ;;  %v6340_v5 = vpack.c.bf16 %v5816_v27, %v5816_v27 }
 0x5a0   : > { %v5817_v4 = vmax.f32 %v5251_v61, %v5252_v63  ;;  %v2381_v0 = vmax.f32 %v1983_v58, 0.0  ;;  %7786 = vmatmul.msk.bf16.gmra.mxu2 %vm2640_vm2, %v4001_v62  ;;  %v5809_v61 = vmax.f32 %v5807_v23, %v5808_v42 }
 0x5a1   : > { %v3394_v8 = vpop.f32.mrf.mxu1 }
 0x5a2   : > { %v5818_v9 = vrot.slane %v5817_v4, 4  ;;  %v2556_v37 = vpack.c.bf16 %v2381_v0, %v2380_v3  ;;  %v3395_v17 = vadd.f32 %v9129_v34, %v3394_v8  ;;  %v7938_v0 = vld [vmem:[%s8223_s19 + $0x2d0] sm:$0xff]  ;;  %v6339_v6 = vpack.c.bf16 %v5809_v61, %v5809_v61 }
 0x5a3   : > { %v4802_v11 = vpop.f32.mrf.mxu2 }
 0x5a4   : > { %7651 = vmatmul.msk.bf16.gmra.mxu1 %vm2640_vm2, %v2556_v37  ;;  %v5819_v24 = vmax.f32 %v5817_v4, %v5818_v9  ;;  %v4803_v30 = vadd.f32 %v9193_v50, %v4802_v11  ;;  %v3818_v10 = vmax.f32 %v3395_v17, 0.0  ;;  %v6595_v44 = vunpack.c.l.b16 %v6339_v6 }
 0x5a5   : > { %v1985_v18 = vpop.f32.mrf.mxu0 }
 0x5a6   : > { %v5820_v28 = vrot.slane %v5819_v24, 2  ;;  %v1986_v35 = vadd.f32 %v9094_v7, %v1985_v18  ;;  %v5253_v48 = vmax.f32 %v4803_v30, 0.0  ;;  %v7964_v30 = vld [vmem:[%s8223_s19 + $0x3a0] sm:$0xff] }
 0x5a8   : > { %7516 = vmatmul.msk.bf16.gmra.mxu0 %vm1182_vm1, %v7937_v13  ;;  %v5821_v43 = vmax.f32 %v5819_v24, %v5820_v28  ;;  %v2382_v55 = vmax.f32 %v1986_v35, 0.0  ;;  %v2117_v13 = vpop.f32.mrf.mxu3  ;;  %v2116_v24 = vadd.f32 %v9094_v7, %v2115_v53 }
 0x5a9   : > { %v3396_v47 = vpop.f32.mrf.mxu1  ;;  %v2118_v18 = vadd.f32 %v9094_v7, %v2117_v13  ;;  %7543 = vmatmul.msk.bf16.gmra.mxu3 %vm1182_vm1, %v7964_v30 }
 0x5aa   : > { %v3397_v31 = vadd.f32 %v9129_v34, %v3396_v47  ;;  %v5822_v62 = vrot.slane %v5821_v43, 1  ;;  %v2434_v28 = vmax.f32 %v2116_v24, 0.0 }
 0x5ab   : > { %v4804_v19 = vpop.f32.mrf.mxu2  ;;  %v2435_v47 = vmax.f32 %v2118_v18, 0.0  ;;  %v7965_v18 = vld [vmem:[%s8223_s19 + $0x3a8] sm:$0xff] }
 0x5ac   : > { %v3819_v36 = vmax.f32 %v3397_v31, 0.0  ;;  %v4805_v39 = vadd.f32 %v9193_v50, %v4804_v19  ;;  %v5823_v8 = vmax.f32 %v5821_v43, %v5822_v62  ;;  %v6596_v31 = vunpack.c.l.b16 %v6340_v5 }
 0x5ad   : > { %v1987_v45 = vpop.f32.mrf.mxu0  ;;  %v9287_v35 = vpack.c.bf16 %v2435_v47, %v2434_v28 }
 0x5ae   : > { %v4002_v49 = vpack.c.bf16 %v3819_v36, %v3818_v10  ;;  %v5254_v51 = vmax.f32 %v4805_v39, 0.0  ;;  %v1988_v52 = vadd.f32 %v9094_v7, %v1987_v45  ;;  %v6341_v17 = vpack.c.bf16 %v5823_v8, %v5823_v8 }
 0x5af   : > { %v6722_v36 = vsel %vm6669_vm6, %v6595_v44, %v9223_v54 }
 0x5b0   : > { %v5824_v57 = vmax.f32 %v5253_v48, %v5254_v51  ;;  %v2383_v15 = vmax.f32 %v1988_v52, 0.0  ;;  %7787 = vmatmul.msk.bf16.gmra.mxu2 %vm2640_vm2, %v4002_v49  ;;  %v6597_v39 = vunpack.c.l.b16 %v6341_v17  ;;  %v6723_v52 = vsel %vm6671_vm7, %v6596_v31, %v6722_v36  ;;  %v2120_v29 = vpop.f32.mrf.mxu3 }
 0x5b1   : > { %v3399_v63 = vpop.f32.mrf.mxu1 }
 0x5b2   : > { %v5825_v58 = vrot.slane %v5824_v57, 4  ;;  %v2557_v2 = vpack.c.bf16 %v2383_v15, %v2382_v55  ;;  %v3400_v11 = vadd.f32 %v9129_v34, %v3399_v63  ;;  %v6724_v54 = vsel %vm6673_vm8, %v6597_v39, %v6723_v52 }
 0x5b3   : > { %v4807_v3 = vpop.f32.mrf.mxu2 }
 0x5b4   : > { %v5826_v4 = vmax.f32 %v5824_v57, %v5825_v58  ;;  %7652 = vmatmul.msk.bf16.gmra.mxu1 %vm2640_vm2, %v2557_v2  ;;  %v4808_v20 = vadd.f32 %v9193_v50, %v4807_v3  ;;  %v3820_v16 = vmax.f32 %v3400_v11, 0.0  ;;  %v7939_v3 = vld [vmem:[%s8223_s19 + $0x2d8] sm:$0xff] }
 0x5b5   : > { %v1990_v9 = vpop.f32.mrf.mxu0 }
 0x5b6   : > { %v5827_v37 = vrot.slane %v5826_v4, 2  ;;  %v1991_v60 = vadd.f32 %v9094_v7, %v1990_v9  ;;  %v5255_v42 = vmax.f32 %v4808_v20, 0.0  ;;  %v2121_v9 = vadd.f32 %v9094_v7, %v2120_v29 }
 0x5b8   : > { %v5828_v14 = vmax.f32 %v5826_v4, %v5827_v37  ;;  %7517 = vmatmul.msk.bf16.gmra.mxu0 %vm1182_vm1, %v7938_v0  ;;  %v2384_v55 = vmax.f32 %v1991_v60, 0.0  ;;  %v2122_v8 = vpop.f32.mrf.mxu3 }
 0x5b9   : > { %v3401_v21 = vpop.f32.mrf.mxu1  ;;  %v2123_v37 = vadd.f32 %v9094_v7, %v2122_v8  ;;  %7544 = vmatmul.msk.bf16.gmra.mxu3 %vm1182_vm1, %v7965_v18 }
 0x5ba   : > { %v5829_v22 = vrot.slane %v5828_v14, 1  ;;  %v3402_v23 = vadd.f32 %v9129_v34, %v3401_v21 }
 0x5bb   : > { %v4809_v32 = vpop.f32.mrf.mxu2  ;;  %v2437_v24 = vmax.f32 %v2123_v37, 0.0 }
 0x5bc   : > { %v5830_v33 = vmax.f32 %v5828_v14, %v5829_v22  ;;  %v3821_v10 = vmax.f32 %v3402_v23, 0.0  ;;  %v4810_v19 = vadd.f32 %v9193_v50, %v4809_v32  ;;  %v2436_v14 = vmax.f32 %v2121_v9, 0.0 }
 0x5bd   : > { %v1992_v43 = vpop.f32.mrf.mxu0 }
 0x5be   : > { %v6342_v45 = vpack.c.bf16 %v5830_v33, %v5830_v33  ;;  %v4003_v48 = vpack.c.bf16 %v3821_v10, %v3820_v16  ;;  %v5256_v49 = vmax.f32 %v4810_v19, 0.0  ;;  %v1993_v51 = vadd.f32 %v9094_v7, %v1992_v43 }
 0x5bf   : > { %v9309_v28 = vpack.c.bf16 %v2437_v24, %v2436_v14 }
 0x5c0   : > { %v6598_v53 = vunpack.c.l.b16 %v6342_v45  ;;  %v5831_v57 = vmax.f32 %v5255_v42, %v5256_v49  ;;  %v2385_v15 = vmax.f32 %v1993_v51, 0.0  ;;  %7788 = vmatmul.msk.bf16.gmra.mxu2 %vm2640_vm2, %v4003_v48  ;;  %v2125_v33 = vpop.f32.mrf.mxu3  ;;  %v7940_v51 = vld [vmem:[%s8223_s19 + $0x2e0] sm:$0xff] }
 0x5c1   : > { %v3404_v61 = vpop.f32.mrf.mxu1 }
 0x5c2   : > { %v6725_v62 = vsel %vm6675_vm9, %v6598_v53, %v6724_v54  ;;  %v2558_v63 = vpack.c.bf16 %v2385_v15, %v2384_v55  ;;  %v5832_v2 = vrot.slane %v5831_v57, 4  ;;  %v3405_v6 = vadd.f32 %v9129_v34, %v3404_v61  ;;  %v9321_v15 = vld [vmem:[%s10085_s2] ss:$0 sm:$0xff] }
 0x5c3   : > { %v6789_v58 = vpack.c.b16 %v6725_v62, %v6725_v62  ;;  %v4812_v27 = vpop.f32.mrf.mxu2  ;;  %v2126_v54 = vadd.f32 %v9321_v15, %v2125_v33 }
 0x5c4   : > { %7653 = vmatmul.msk.bf16.gmra.mxu1 %vm2640_vm2, %v2558_v63  ;;  %v5833_v0 = vmax.f32 %v5831_v57, %v5832_v2  ;;  %v4813_v11 = vadd.f32 %v9193_v50, %v4812_v27  ;;  %v3822_v17 = vmax.f32 %v3405_v6, 0.0 }
 0x5c5   : > { %6821 = vst [vmem:[%s8506_s20 + $0x1c] sm:$0xf] %v6789_v58  ;;  %v1995_v4 = vpop.f32.mrf.mxu0  ;;  %v2438_v27 = vmax.f32 %v2126_v54, 0.0  ;;  %v7967_v54 = vld [vmem:[%s8223_s19 + $0x3b8] sm:$0xff] }
 0x5c6   : > { %v5834_v44 = vrot.slane %v5833_v0, 2  ;;  %v1996_v21 = vadd.f32 %v9094_v7, %v1995_v4  ;;  %v5257_v30 = vmax.f32 %v4813_v11, 0.0  ;;  %v7966_v4 = vld [vmem:[%s8223_s19 + $0x3b0] sm:$0xff] }
 0x5c8   : > { %7518 = vmatmul.msk.bf16.gmra.mxu0 %vm1182_vm1, %v7939_v3  ;;  %v5835_v32 = vmax.f32 %v5833_v0, %v5834_v44  ;;  %v2386_v10 = vmax.f32 %v1996_v21, 0.0  ;;  %v2127_v55 = vpop.f32.mrf.mxu3 }
 0x5c9   : > { %v3406_v5 = vpop.f32.mrf.mxu1  ;;  %v2128_v61 = vadd.f32 %v9321_v15, %v2127_v55  ;;  %7545 = vmatmul.msk.bf16.gmra.mxu3 %vm1182_vm1, %v7966_v4 }
 0x5ca   : > { %v3407_v13 = vadd.f32 %v9129_v34, %v3406_v5  ;;  %v5836_v45 = vrot.slane %v5835_v32, 1 }
 0x5cb   : > { %v4814_v20 = vpop.f32.mrf.mxu2  ;;  %v2439_v3 = vmax.f32 %v2128_v61, 0.0 }
 0x5cc   : > { %v3823_v22 = vmax.f32 %v3407_v13, 0.0  ;;  %v4815_v23 = vadd.f32 %v9193_v50, %v4814_v20 }
 0x5cd   : > { %v1997_v47 = vpop.f32.mrf.mxu0  ;;  %v9330_v13 = vpack.c.bf16 %v2439_v3, %v2438_v27 }
 0x5ce   : > { %v4004_v31 = vpack.c.bf16 %v3823_v22, %v3822_v17  ;;  %v5258_v16 = vmax.f32 %v4815_v23, 0.0  ;;  %v1998_v60 = vadd.f32 %v9094_v7, %v1997_v47  ;;  %v5837_v7 = vmax.f32 %v5835_v32, %v5836_v45 }
 0x5d0   : > { %v5838_v19 = vmax.f32 %v5257_v30, %v5258_v16  ;;  %v2387_v36 = vmax.f32 %v1998_v60, 0.0  ;;  %7789 = vmatmul.msk.bf16.gmra.mxu2 %vm2640_vm2, %v4004_v31  ;;  %v6343_v0 = vpack.c.bf16 %v5837_v7, %v5837_v7  ;;  %v2130_v22 = vpop.f32.mrf.mxu3 }
 0x5d1   : > { %v3409_v39 = vpop.f32.mrf.mxu1 }
 0x5d2   : > { %v5839_v42 = vrot.slane %v5838_v19, 4  ;;  %v2559_v43 = vpack.c.bf16 %v2387_v36, %v2386_v10  ;;  %v3410_v53 = vadd.f32 %v9129_v34, %v3409_v39  ;;  %v6599_v21 = vunpack.c.l.b16 %v6343_v0  ;;  %v7941_v36 = vld [vmem:[%s8223_s19 + $0x2e8] sm:$0xff] }
 0x5d3   : > { %v4817_v48 = vpop.f32.mrf.mxu2 }
 0x5d4   : > { %v5840_v49 = vmax.f32 %v5838_v19, %v5839_v42  ;;  %7654 = vmatmul.msk.bf16.gmra.mxu1 %vm2640_vm2, %v2559_v43  ;;  %v4818_v62 = vadd.f32 %v9193_v50, %v4817_v48  ;;  %v3824_v6 = vmax.f32 %v3410_v53, 0.0 }
 0x5d5   : > { %v2000_v52 = vpop.f32.mrf.mxu0 }
 0x5d6   : > { %v5841_v29 = vrot.slane %v5840_v49, 2  ;;  %v2001_v8 = vadd.f32 %v9321_v15, %v2000_v52  ;;  %v5259_v14 = vmax.f32 %v4818_v62, 0.0 }
 0x5d8   : > { %v5842_v57 = vmax.f32 %v5840_v49, %v5841_v29  ;;  %7519 = vmatmul.msk.bf16.gmra.mxu0 %vm1182_vm1, %v7940_v51  ;;  %v2388_v47 = vmax.f32 %v2001_v8, 0.0  ;;  %v2132_v45 = vpop.f32.mrf.mxu3  ;;  %v2131_v49 = vadd.f32 %v9321_v15, %v2130_v22 }
 0x5d9   : > { %v3411_v63 = vpop.f32.mrf.mxu1  ;;  %v2133_v51 = vadd.f32 %v9321_v15, %v2132_v45  ;;  %7546 = vmatmul.msk.bf16.gmra.mxu3 %vm1182_vm1, %v7967_v54  ;;  %v7968_v45 = vld [vmem:[%s8223_s19 + $0x3c0] sm:$0xff] }
 0x5da   : > { %v5843_v58 = vrot.slane %v5842_v57, 1  ;;  %v3412_v2 = vadd.f32 %v9129_v34, %v3411_v63  ;;  %v2440_v55 = vmax.f32 %v2131_v49, 0.0 }
 0x5db   : > { %v4819_v9 = vpop.f32.mrf.mxu2 }
 0x5dc   : > { %v5844_v37 = vmax.f32 %v5842_v57, %v5843_v58  ;;  %v3825_v5 = vmax.f32 %v3412_v2, 0.0  ;;  %v4820_v11 = vadd.f32 %v9193_v50, %v4819_v9  ;;  %v2441_v57 = vmax.f32 %v2133_v51, 0.0 }
 0x5dd   : > { %v2002_v24 = vpop.f32.mrf.mxu0 }
 0x5de   : > { %v6344_v18 = vpack.c.bf16 %v5844_v37, %v5844_v37  ;;  %v4005_v44 = vpack.c.bf16 %v3825_v5, %v3824_v6  ;;  %v5260_v17 = vmax.f32 %v4820_v11, 0.0  ;;  %v2003_v20 = vadd.f32 %v9321_v15, %v2002_v24 }
 0x5df   : > { %v9347_v3 = vpack.c.bf16 %v2441_v57, %v2440_v55 }
 0x5e0   : > { %v6600_v23 = vunpack.c.l.b16 %v6344_v18  ;;  %v5845_v30 = vmax.f32 %v5259_v14, %v5260_v17  ;;  %v2389_v31 = vmax.f32 %v2003_v20, 0.0  ;;  %7790 = vmatmul.msk.bf16.gmra.mxu2 %vm2640_vm2, %v4005_v44  ;;  %v2135_v37 = vpop.f32.mrf.mxu3 }
 0x5e1   : > { %v3414_v16 = vpop.f32.mrf.mxu1 }
 0x5e2   : > { %v6726_v60 = vsel %vm6663_vm3, %v6600_v23, %v6599_v21  ;;  %v5846_v32 = vrot.slane %v5845_v30, 4  ;;  %v2560_v33 = vpack.c.bf16 %v2389_v31, %v2388_v47  ;;  %v3415_v43 = vadd.f32 %v9129_v34, %v3414_v16  ;;  %v7942_v23 = vld [vmem:[%s8223_s19 + $0x2f0] sm:$0xff]  ;;  %v9360_v31 = vld [vmem:[%s10087_s4] ss:$0 sm:$0xff] }
 0x5e3   : > { %v4822_v10 = vpop.f32.mrf.mxu2 }
 0x5e4   : > { %v5847_v19 = vmax.f32 %v5845_v30, %v5846_v32  ;;  %7655 = vmatmul.msk.bf16.gmra.mxu1 %vm2640_vm2, %v2560_v33  ;;  %v4823_v52 = vadd.f32 %v9193_v50, %v4822_v10  ;;  %v3826_v61 = vmax.f32 %v3415_v43, 0.0  ;;  %v2136_v33 = vadd.f32 %v9321_v15, %v2135_v37 }
 0x5e5   : > { %v2005_v39 = vpop.f32.mrf.mxu0 }
 0x5e6   : > { %v5848_v42 = vrot.slane %v5847_v19, 2  ;;  %v2006_v62 = vadd.f32 %v9321_v15, %v2005_v39  ;;  %v5261_v4 = vmax.f32 %v4823_v52, 0.0 }
 0x5e8   : > { %v5849_v48 = vmax.f32 %v5847_v19, %v5848_v42  ;;  %7520 = vmatmul.msk.bf16.gmra.mxu0 %vm1182_vm1, %v7941_v36  ;;  %v2390_v11 = vmax.f32 %v2006_v62, 0.0  ;;  %v2137_v32 = vpop.f32.mrf.mxu3  ;;  %v2442_v42 = vmax.f32 %v2136_v33, 0.0 }
 0x5e9   : > { %v3416_v29 = vpop.f32.mrf.mxu1  ;;  %v2138_v10 = vadd.f32 %v9321_v15, %v2137_v32  ;;  %7547 = vmatmul.msk.bf16.gmra.mxu3 %vm1182_vm1, %v7968_v45 }
 0x5ea   : > { %v5850_v7 = vrot.slane %v5849_v48, 1  ;;  %v3417_v53 = vadd.f32 %v9129_v34, %v3416_v29 }
 0x5eb   : > { %v4824_v63 = vpop.f32.mrf.mxu2  ;;  %v2443_v43 = vmax.f32 %v2138_v10, 0.0 }
 0x5ec   : > { %v5851_v58 = vmax.f32 %v5849_v48, %v5850_v7  ;;  %v3827_v2 = vmax.f32 %v3417_v53, 0.0  ;;  %v4825_v27 = vadd.f32 %v9193_v50, %v4824_v63 }
 0x5ed   : > { %v2007_v0 = vpop.f32.mrf.mxu0  ;;  %v9369_v7 = vpack.c.bf16 %v2443_v43, %v2442_v42 }
 0x5ee   : > { %v6345_v6 = vpack.c.bf16 %v5851_v58, %v5851_v58  ;;  %v4006_v8 = vpack.c.bf16 %v3827_v2, %v3826_v61  ;;  %v5262_v34 = vmax.f32 %v4825_v27, 0.0  ;;  %v2008_v9 = vadd.f32 %v9321_v15, %v2007_v0 }
 0x5f0   : > { %v6601_v5 = vunpack.c.l.b16 %v6345_v6  ;;  %v5852_v14 = vmax.f32 %v5261_v4, %v5262_v34  ;;  %v2391_v24 = vmax.f32 %v2008_v9, 0.0  ;;  %7791 = vmatmul.msk.bf16.gmra.mxu2 %vm2640_vm2, %v4006_v8  ;;  %v2140_v61 = vpop.f32.mrf.mxu3  ;;  %v7943_v6 = vld [vmem:[%s8223_s19 + $0x2f8] sm:$0xff] }
 0x5f1   : > { %v3419_v18 = vpop.f32.mrf.mxu1  ;;  %v2141_v37 = vadd.f32 %v9321_v15, %v2140_v61 }
 0x5f2   : > { %v6727_v44 = vsel %vm6665_vm4, %v6601_v5, %v6726_v60  ;;  %v5853_v17 = vrot.slane %v5852_v14, 4  ;;  %v2561_v20 = vpack.c.bf16 %v2391_v24, %v2390_v11  ;;  %v3420_v16 = vadd.f32 %v9360_v31, %v3419_v18 }
 0x5f3   : > { %v9353_v21 = vpop.f32.mrf.mxu2  ;;  %v2444_v24 = vmax.f32 %v2141_v37, 0.0 }
 0x5f4   : > { %v5854_v22 = vmax.f32 %v5852_v14, %v5853_v17  ;;  %7656 = vmatmul.msk.bf16.gmra.mxu1 %vm2640_vm2, %v2561_v20  ;;  %v3828_v48 = vmax.f32 %v3420_v16, 0.0  ;;  %v4828_v42 = vadd.f32 %v9193_v50, %v9353_v21 }
 0x5f5   : > { %v2010_v47 = vpop.f32.mrf.mxu0 }
 0x5f6   : > { %v5855_v30 = vrot.slane %v5854_v22, 2  ;;  %v2011_v52 = vadd.f32 %v9321_v15, %v2010_v47 }
 0x5f8   : > { %v5856_v60 = vmax.f32 %v5854_v22, %v5855_v30  ;;  %7521 = vmatmul.msk.bf16.gmra.mxu0 %vm1182_vm1, %v7942_v23  ;;  %v2392_v63 = vmax.f32 %v2011_v52, 0.0  ;;  %v2142_v34 = vpop.f32.mrf.mxu3 }
 0x5f9   : > { %v3421_v19 = vpop.f32.mrf.mxu1  ;;  %v2143_v5 = vadd.f32 %v9321_v15, %v2142_v34 }
 0x5fa   : > { %v5857_v36 = vrot.slane %v5856_v60, 1  ;;  %v3422_v39 = vadd.f32 %v9360_v31, %v3421_v19 }
 0x5fb   : > { %v4829_v49 = vpop.f32.mrf.mxu2  ;;  %v2445_v18 = vmax.f32 %v2143_v5, 0.0 }
 0x5fc   : > { %v5858_v51 = vmax.f32 %v5856_v60, %v5857_v36  ;;  %v3829_v29 = vmax.f32 %v3422_v39, 0.0  ;;  %v4830_v19 = vadd.f32 %v9193_v50, %v4829_v49 }
 0x5fd   : > { %v2012_v53 = vpop.f32.mrf.mxu0  ;;  %v9386_v47 = vpack.c.bf16 %v2445_v18, %v2444_v24 }
 0x5fe   : > { %v6346_v55 = vpack.c.bf16 %v5858_v51, %v5858_v51  ;;  %v4007_v57 = vpack.c.bf16 %v3829_v29, %v3828_v48  ;;  %v2013_v54 = vadd.f32 %v9321_v15, %v2012_v53  ;;  %v7944_v48 = vld [vmem:[%s8223_s19 + $0x300] sm:$0xff]  ;;  %v5264_v51 = vmax.f32 %v4830_v19, 0.0 }
 0x5ff   : > { %v5263_v53 = vmax.f32 %v4828_v42, 0.0 }
 0x600   : > { %v6602_v62 = vunpack.c.l.b16 %v6346_v55  ;;  %v2393_v58 = vmax.f32 %v2013_v54, 0.0  ;;  %7792 = vmatmul.msk.bf16.gmra.mxu2 %vm2640_vm2, %v4007_v57  ;;  %v2145_v60 = vpop.f32.mrf.mxu3 }
 0x601   : > { %v3424_v2 = vpop.f32.mrf.mxu1  ;;  %v2146_v21 = vadd.f32 %v9321_v15, %v2145_v60  ;;  %v5859_v61 = vmax.f32 %v5263_v53, %v5264_v51 }
 0x602   : > { %v9375_v27 = vsel %vm6667_vm5, %v6602_v62, %v6727_v44  ;;  %v2562_v4 = vpack.c.bf16 %v2393_v58, %v2392_v63  ;;  %v3425_v9 = vadd.f32 %v9360_v31, %v3424_v2  ;;  %v7969_v44 = vld [vmem:[%s8223_s19 + $0x3c8] sm:$0xff] }
 0x603   : > { %v4832_v0 = vpop.f32.mrf.mxu2  ;;  %7548 = vmatmul.msk.bf16.gmra.mxu3 %vm1182_vm1, %v7969_v44  ;;  %v5860_v24 = vrot.slane %v5859_v61, 4 }
 0x604   : > { %7657 = vmatmul.msk.bf16.gmra.mxu1 %vm2640_vm2, %v2562_v4  ;;  %v3830_v20 = vmax.f32 %v3425_v9, 0.0  ;;  %v4833_v52 = vadd.f32 %v9193_v50, %v4832_v0  ;;  %v2446_v4 = vmax.f32 %v2146_v21, 0.0 }
 0x605   : > { %v2015_v8 = vpop.f32.mrf.mxu0 }
 0x606   : > { %v2016_v22 = vadd.f32 %v9321_v15, %v2015_v8  ;;  %v5265_v62 = vmax.f32 %v4833_v52, 0.0 }
 0x608   : > { %7522 = vmatmul.msk.bf16.gmra.mxu0 %vm1182_vm1, %v7943_v6  ;;  %v2394_v33 = vmax.f32 %v2016_v22, 0.0  ;;  %v2147_v57 = vpop.f32.mrf.mxu3  ;;  %v7970_v6 = vld [vmem:[%s8223_s19 + $0x3d0] sm:$0xff] }
 0x609   : > { %v3426_v11 = vpop.f32.mrf.mxu1  ;;  %v2148_v54 = vadd.f32 %v9321_v15, %v2147_v57 }
 0x60a   : > { %v3427_v14 = vadd.f32 %v9360_v31, %v3426_v11 }
 0x60b   : > { %v4834_v17 = vpop.f32.mrf.mxu2  ;;  %v2447_v0 = vmax.f32 %v2148_v54, 0.0 }
 0x60c   : > { %v3831_v23 = vmax.f32 %v3427_v14, 0.0  ;;  %v4835_v43 = vadd.f32 %v9193_v50, %v4834_v17 }
 0x60d   : > { %v2017_v30 = vpop.f32.mrf.mxu0  ;;  %v9407_v14 = vpack.c.bf16 %v2447_v0, %v2446_v4 }
 0x60e   : > { %v4008_v16 = vpack.c.bf16 %v3831_v23, %v3830_v20  ;;  %v2018_v32 = vadd.f32 %v9321_v15, %v2017_v30  ;;  %v5266_v55 = vmax.f32 %v4835_v43, 0.0 }
 0x610   : > { %v2395_v10 = vmax.f32 %v2018_v32, 0.0  ;;  %7793 = vmatmul.msk.bf16.gmra.mxu2 %vm2640_vm2, %v4008_v16  ;;  %v5866_v8 = vmax.f32 %v5265_v62, %v5266_v55  ;;  %v2150_v30 = vpop.f32.mrf.mxu3 }
 0x611   : > { %v3429_v36 = vpop.f32.mrf.mxu1  ;;  %v2151_v53 = vadd.f32 %v9321_v15, %v2150_v30 }
 0x612   : > { %v2563_v39 = vpack.c.bf16 %v2395_v10, %v2394_v33  ;;  %v3430_v49 = vadd.f32 %v9360_v31, %v3429_v36  ;;  %v5867_v23 = vrot.slane %v5866_v8, 4  ;;  %v5861_v33 = vmax.f32 %v5859_v61, %v5860_v24 }
 0x613   : > { %v4837_v45 = vpop.f32.mrf.mxu2  ;;  %7549 = vmatmul.msk.bf16.gmra.mxu3 %vm1182_vm1, %v7970_v6  ;;  %v2448_v62 = vmax.f32 %v2151_v53, 0.0 }
 0x614   : > { %7658 = vmatmul.msk.bf16.gmra.mxu1 %vm2640_vm2, %v2563_v39  ;;  %v4838_v58 = vadd.f32 %v9193_v50, %v4837_v45  ;;  %v3832_v34 = vmax.f32 %v3430_v49, 0.0  ;;  %v5868_v39 = vmax.f32 %v5866_v8, %v5867_v23  ;;  %v5862_v43 = vrot.slane %v5861_v33, 2 }
 0x615   : > { %v2020_v29 = vpop.f32.mrf.mxu0 }
 0x616   : > { %v2021_v37 = vadd.f32 %v9321_v15, %v2020_v29  ;;  %v5267_v44 = vmax.f32 %v4838_v58, 0.0  ;;  %v5869_v51 = vrot.slane %v5868_v39, 2  ;;  %v5863_v49 = vmax.f32 %v5861_v33, %v5862_v43  ;;  %v7971_v58 = vld [vmem:[%s8223_s19 + $0x3d8] sm:$0xff] }
 0x618   : > { %7523 = vmatmul.msk.bf16.gmra.mxu0 %vm1182_vm1, %v7944_v48  ;;  %v2396_v16 = vmax.f32 %v2021_v37, 0.0  ;;  %v2152_v29 = vpop.f32.mrf.mxu3 }
 0x619   : > { %v3431_v63 = vpop.f32.mrf.mxu1  ;;  %v2153_v55 = vadd.f32 %v9321_v15, %v2152_v29 }
 0x61a   : > { %v3432_v2 = vadd.f32 %v9360_v31, %v3431_v63 }
 0x61b   : > { %v4839_v9 = vpop.f32.mrf.mxu2  ;;  %v2449_v63 = vmax.f32 %v2153_v55, 0.0 }
 0x61c   : > { %v3833_v5 = vmax.f32 %v3432_v2, 0.0  ;;  %v4840_v11 = vadd.f32 %v9193_v50, %v4839_v9  ;;  %v5870_v2 = vmax.f32 %v5868_v39, %v5869_v51 }
 0x61d   : > { %v2022_v18 = vpop.f32.mrf.mxu0  ;;  %v9426_v37 = vpack.c.bf16 %v2449_v63, %v2448_v62 }
 0x61e   : > { %v4009_v17 = vpack.c.bf16 %v3833_v5, %v3832_v34  ;;  %v5268_v20 = vmax.f32 %v4840_v11, 0.0  ;;  %v2023_v22 = vadd.f32 %v9321_v15, %v2022_v18  ;;  %v9423_v34 = vld [vmem:[%s10089_s6] ss:$0 sm:$0xff] }
 0x620   : > { %v5873_v32 = vmax.f32 %v5267_v44, %v5268_v20  ;;  %v2397_v60 = vmax.f32 %v2023_v22, 0.0  ;;  %7794 = vmatmul.msk.bf16.gmra.mxu2 %vm2640_vm2, %v4009_v17  ;;  %v5871_v20 = vrot.slane %v5870_v2, 1  ;;  %v2155_v22 = vpop.f32.mrf.mxu3 }
 0x621   : > { %v3434_v10 = vpop.f32.mrf.mxu1 }
 0x622   : > { %v5874_v19 = vrot.slane %v5873_v32, 4  ;;  %v2564_v36 = vpack.c.bf16 %v2397_v60, %v2396_v16  ;;  %v3435_v52 = vadd.f32 %v9360_v31, %v3434_v10 }
 0x623   : > { %v4842_v42 = vpop.f32.mrf.mxu2  ;;  %7550 = vmatmul.msk.bf16.gmra.mxu3 %vm1182_vm1, %v7971_v58 }
 0x624   : > { %7659 = vmatmul.msk.bf16.gmra.mxu1 %vm2640_vm2, %v2564_v36  ;;  %v5875_v45 = vmax.f32 %v5873_v32, %v5874_v19  ;;  %v4843_v54 = vadd.f32 %v9193_v50, %v4842_v42  ;;  %v3834_v4 = vmax.f32 %v3435_v52, 0.0  ;;  %v5864_v50 = vrot.slane %v5863_v49, 1 }
 0x625   : > { %v2025_v48 = vpop.f32.mrf.mxu0  ;;  %v5872_v36 = vmax.f32 %v5870_v2, %v5871_v20 }
 0x626   : > { %v5876_v57 = vrot.slane %v5875_v45, 2  ;;  %v2026_v6 = vadd.f32 %v9321_v15, %v2025_v48  ;;  %v5269_v24 = vmax.f32 %v4843_v54, 0.0  ;;  %v5865_v32 = vmax.f32 %v5863_v49, %v5864_v50 }
 0x627   : > { %v6348_v52 = vpack.c.bf16 %v5872_v36, %v5872_v36  ;;  %v2156_v49 = vadd.f32 %v9321_v15, %v2155_v22 }
 0x628   : > { %v5877_v5 = vmax.f32 %v5875_v45, %v5876_v57  ;;  %v2398_v23 = vmax.f32 %v2026_v6, 0.0  ;;  %v6347_v43 = vpack.c.bf16 %v5865_v32, %v5865_v32  ;;  %v2157_v53 = vpop.f32.mrf.mxu3 }
 0x629   : > { %v3436_v21 = vpop.f32.mrf.mxu1  ;;  %v2158_v57 = vadd.f32 %v9321_v15, %v2157_v53  ;;  %v2450_v2 = vmax.f32 %v2156_v49, 0.0  ;;  %v6604_v6 = vunpack.c.l.b16 %v6348_v52 }
 0x62a   : > { %v3437_v61 = vadd.f32 %v9360_v31, %v3436_v21  ;;  %v5878_v60 = vrot.slane %v5877_v5, 1  ;;  %v6603_v21 = vunpack.c.l.b16 %v6347_v43 }
 0x62b   : > { %v4844_v0 = vpop.f32.mrf.mxu2 }
 0x62c   : > { %v3835_v8 = vmax.f32 %v3437_v61, 0.0  ;;  %v4845_v9 = vadd.f32 %v9423_v34, %v4844_v0  ;;  %v5879_v45 = vmax.f32 %v5877_v5, %v5878_v60  ;;  %v7972_v0 = vld [vmem:[%s8223_s19 + $0x3e0] sm:$0xff] }
 0x62d   : > { %v2027_v11 = vpop.f32.mrf.mxu0 }
 0x62e   : > { %v4010_v18 = vpack.c.bf16 %v3835_v8, %v3834_v4  ;;  %v5270_v44 = vmax.f32 %v4845_v9, 0.0  ;;  %v2028_v17 = vadd.f32 %v9321_v15, %v2027_v11  ;;  %v6349_v54 = vpack.c.bf16 %v5879_v45, %v5879_v45 }
 0x62f   : > { %v2451_v4 = vmax.f32 %v2158_v57, 0.0 }
 0x630   : > { %v5880_v30 = vmax.f32 %v5269_v24, %v5270_v44  ;;  %v2399_v16 = vmax.f32 %v2028_v17, 0.0  ;;  %7795 = vmatmul.msk.bf16.gmra.mxu2 %vm2640_vm2, %v4010_v18  ;;  %v6729_v44 = vsel %vm6669_vm6, %v6603_v21, %v9375_v27  ;;  %v6605_v17 = vunpack.c.l.b16 %v6349_v54 }
 0x631   : > { %v3439_v33 = vpop.f32.mrf.mxu1  ;;  %v9440_v18 = vpack.c.bf16 %v2451_v4, %v2450_v2  ;;  %v6730_v60 = vsel %vm6671_vm7, %v6604_v6, %v6729_v44 }
 0x632   : > { %v5881_v10 = vrot.slane %v5880_v30, 4  ;;  %v2565_v19 = vpack.c.bf16 %v2399_v16, %v2398_v23  ;;  %v3440_v29 = vadd.f32 %v9360_v31, %v3439_v33  ;;  %v9447_v33 = vpop.f32.mrf.mxu3  ;;  %v6731_v27 = vsel %vm6673_vm8, %v6605_v17, %v6730_v60 }
 0x633   : > { %v4847_v39 = vpop.f32.mrf.mxu2  ;;  %7551 = vmatmul.msk.bf16.gmra.mxu3 %vm1182_vm1, %v7972_v0 }
 0x634   : > { %v5882_v42 = vmax.f32 %v5880_v30, %v5881_v10  ;;  %7660 = vmatmul.msk.bf16.gmra.mxu1 %vm2640_vm2, %v2565_v19  ;;  %v4848_v61 = vadd.f32 %v9423_v34, %v4847_v39  ;;  %v3836_v8 = vmax.f32 %v3440_v29, 0.0 }
 0x635   : > { %v2030_v48 = vpop.f32.mrf.mxu0 }
 0x636   : > { %v5883_v51 = vrot.slane %v5882_v42, 2  ;;  %v2031_v9 = vadd.f32 %v9321_v15, %v2030_v48  ;;  %v5271_v20 = vmax.f32 %v4848_v61, 0.0  ;;  %v7973_v61 = vld [vmem:[%s8223_s19 + $0x3e8] sm:$0xff] }
 0x638   : > { %v5884_v55 = vmax.f32 %v5882_v42, %v5883_v51  ;;  %v2400_v19 = vmax.f32 %v2031_v9, 0.0 }
 0x639   : > { %v3441_v62 = vpop.f32.mrf.mxu1 }
 0x63a   : > { %v5885_v63 = vrot.slane %v5884_v55, 1  ;;  %v3442_v58 = vadd.f32 %v9360_v31, %v3441_v62 }
 0x63b   : > { %v4849_v50 = vpop.f32.mrf.mxu2 }
 0x63c   : > { %v5886_v5 = vmax.f32 %v5884_v55, %v5885_v63  ;;  %v3837_v11 = vmax.f32 %v3442_v58, 0.0  ;;  %v4850_v24 = vadd.f32 %v9423_v34, %v4849_v50  ;;  %v9454_v55 = vpop.f32.mrf.mxu3 }
 0x63d   : > { %v2032_v22 = vpop.f32.mrf.mxu0 }
 0x63e   : > { %v6350_v23 = vpack.c.bf16 %v5886_v5, %v5886_v5  ;;  %v4011_v30 = vpack.c.bf16 %v3837_v11, %v3836_v8  ;;  %v5272_v16 = vmax.f32 %v4850_v24, 0.0  ;;  %v2033_v32 = vadd.f32 %v9321_v15, %v2032_v22 }
 0x640   : > { %v6606_v10 = vunpack.c.l.b16 %v6350_v23  ;;  %v5887_v36 = vmax.f32 %v5271_v20, %v5272_v16  ;;  %v2401_v39 = vmax.f32 %v2033_v32, 0.0  ;;  %7796 = vmatmul.msk.bf16.gmra.mxu2 %vm2640_vm2, %v4011_v30 }
 0x641   : > { %v3444_v42 = vpop.f32.mrf.mxu1 }
 0x642   : > { %v6732_v43 = vsel %vm6675_vm9, %v6606_v10, %v6731_v27  ;;  %v2566_v45 = vpack.c.bf16 %v2401_v39, %v2400_v19  ;;  %v5888_v51 = vrot.slane %v5887_v36, 4  ;;  %v3445_v49 = vadd.f32 %v9360_v31, %v3444_v42 }
 0x643   : > { %v6790_v48 = vpack.c.b16 %v6732_v43, %v6732_v43  ;;  %v4852_v52 = vpop.f32.mrf.mxu2  ;;  %7552 = vmatmul.msk.bf16.gmra.mxu3 %vm1182_vm1, %v7973_v61 }
 0x644   : > { %7661 = vmatmul.msk.bf16.gmra.mxu1 %vm2640_vm2, %v2566_v45  ;;  %v5889_v53 = vmax.f32 %v5887_v36, %v5888_v51  ;;  %v4853_v21 = vadd.f32 %v9423_v34, %v4852_v52  ;;  %v3838_v58 = vmax.f32 %v3445_v49, 0.0  ;;  %v9464_v24 = vpop.f32.mrf.mxu3  ;;  %v7974_v52 = vld [vmem:[%s8223_s19 + $0x3f0] sm:$0xff] }
 0x645   : > { %6822 = vst [vmem:[%s8506_s20 + $0x20] sm:$0xf] %v6790_v48  ;;  %v2035_v29 = vpop.f32.mrf.mxu0 }
 0x646   : > { %v5890_v62 = vrot.slane %v5889_v53, 2  ;;  %v2036_v2 = vadd.f32 %v9321_v15, %v2035_v29  ;;  %v5273_v8 = vmax.f32 %v4853_v21, 0.0 }
 0x648   : > { %v5891_v11 = vmax.f32 %v5889_v53, %v5890_v62  ;;  %v2402_v44 = vmax.f32 %v2036_v2, 0.0 }
 0x649   : > { %v3446_v57 = vpop.f32.mrf.mxu1 }
 0x64a   : > { %v3447_v54 = vadd.f32 %v9360_v31, %v3446_v57  ;;  %v5892_v16 = vrot.slane %v5891_v11, 1 }
 0x64b   : > { %v4854_v63 = vpop.f32.mrf.mxu2 }
 0x64c   : > { %v3839_v4 = vmax.f32 %v3447_v54, 0.0  ;;  %v4855_v0 = vadd.f32 %v9423_v34, %v4854_v63  ;;  %v5893_v36 = vmax.f32 %v5891_v11, %v5892_v16  ;;  %v9469_v27 = vpop.f32.mrf.mxu3 }
 0x64d   : > { %v2037_v6 = vpop.f32.mrf.mxu0 }
 0x64e   : > { %v4012_v9 = vpack.c.bf16 %v3839_v4, %v3838_v58  ;;  %v5274_v50 = vmax.f32 %v4855_v0, 0.0  ;;  %v2038_v5 = vadd.f32 %v9321_v15, %v2037_v6  ;;  %v6351_v29 = vpack.c.bf16 %v5893_v36, %v5893_v36 }
 0x650   : > { %v5894_v17 = vmax.f32 %v5273_v8, %v5274_v50  ;;  %v2403_v20 = vmax.f32 %v2038_v5, 0.0  ;;  %7797 = vmatmul.msk.bf16.gmra.mxu2 %vm2640_vm2, %v4012_v9  ;;  %v6607_v6 = vunpack.c.l.b16 %v6351_v29 }
 0x651   : > { %v3449_v22 = vpop.f32.mrf.mxu1 }
 0x652   : > { %v5895_v23 = vrot.slane %v5894_v17, 4  ;;  %v2567_v30 = vpack.c.bf16 %v2403_v20, %v2402_v44  ;;  %v3450_v39 = vadd.f32 %v9360_v31, %v3449_v22 }
 0x653   : > { %v4857_v32 = vpop.f32.mrf.mxu2  ;;  %7553 = vmatmul.msk.bf16.gmra.mxu3 %vm1182_vm1, %v7974_v52 }
 0x654   : > { %v5896_v60 = vmax.f32 %v5894_v17, %v5895_v23  ;;  %7662 = vmatmul.msk.bf16.gmra.mxu1 %vm2640_vm2, %v2567_v30  ;;  %v4858_v43 = vadd.f32 %v9423_v34, %v4857_v32  ;;  %v3840_v53 = vmax.f32 %v3450_v39, 0.0  ;;  %v9479_v44 = vpop.f32.mrf.mxu3 }
 0x655   : > { %v2040_v10 = vpop.f32.mrf.mxu0 }
 0x656   : > { %v5897_v19 = vrot.slane %v5896_v60, 2  ;;  %v2041_v21 = vadd.f32 %v9321_v15, %v2040_v10  ;;  %v5275_v62 = vmax.f32 %v4858_v43, 0.0  ;;  %v7975_v43 = vld [vmem:[%s8223_s19 + $0x3f8] sm:$0xff] }
 0x658   : > { %v5898_v42 = vmax.f32 %v5896_v60, %v5897_v19  ;;  %v2404_v9 = vmax.f32 %v2041_v21, 0.0 }
 0x659   : > { %v3451_v45 = vpop.f32.mrf.mxu1 }
 0x65a   : > { %v5899_v48 = vrot.slane %v5898_v42, 1  ;;  %v3452_v51 = vadd.f32 %v9360_v31, %v3451_v45 }
 0x65b   : > { %v4859_v49 = vpop.f32.mrf.mxu2 }
 0x65c   : > { %v5900_v57 = vmax.f32 %v5898_v42, %v5899_v48  ;;  %v3841_v54 = vmax.f32 %v3452_v51, 0.0  ;;  %v4860_v61 = vadd.f32 %v9423_v34, %v4859_v49  ;;  %v9487_v51 = vpop.f32.mrf.mxu3 }
 0x65d   : > { %v2042_v63 = vpop.f32.mrf.mxu0 }
 0x65e   : > { %v6352_v58 = vpack.c.bf16 %v5900_v57, %v5900_v57  ;;  %v4013_v2 = vpack.c.bf16 %v3841_v54, %v3840_v53  ;;  %v5276_v4 = vmax.f32 %v4860_v61, 0.0  ;;  %v2043_v0 = vadd.f32 %v9321_v15, %v2042_v63 }
 0x660   : > { %v6608_v8 = vunpack.c.l.b16 %v6352_v58  ;;  %v5901_v50 = vmax.f32 %v5275_v62, %v5276_v4  ;;  %v2405_v5 = vmax.f32 %v2043_v0, 0.0  ;;  %7798 = vmatmul.msk.bf16.gmra.mxu2 %vm2640_vm2, %v4013_v2 }
 0x661   : > { %v3454_v11 = vpop.f32.mrf.mxu1 }
 0x662   : > { %v6733_v17 = vsel %vm6663_vm3, %v6608_v8, %v6607_v6  ;;  %v5902_v20 = vrot.slane %v5901_v50, 4  ;;  %v2568_v22 = vpack.c.bf16 %v2405_v5, %v2404_v9  ;;  %v3455_v60 = vadd.f32 %v9360_v31, %v3454_v11 }
 0x663   : > { %v4862_v23 = vpop.f32.mrf.mxu2  ;;  %7554 = vmatmul.msk.bf16.gmra.mxu3 %vm1182_vm1, %v7975_v43 }
 0x664   : > { %v5903_v30 = vmax.f32 %v5901_v50, %v5902_v20  ;;  %7663 = vmatmul.msk.bf16.gmra.mxu1 %vm2640_vm2, %v2568_v22  ;;  %v4863_v19 = vadd.f32 %v9423_v34, %v4862_v23  ;;  %v3842_v45 = vmax.f32 %v3455_v60, 0.0  ;;  %v9496_v22 = vpop.f32.mrf.mxu3 }
 0x665   : > { %v2045_v16 = vpop.f32.mrf.mxu0 }
 0x666   : > { %v5904_v32 = vrot.slane %v5903_v30, 2  ;;  %v2046_v29 = vadd.f32 %v9321_v15, %v2045_v16  ;;  %v5277_v57 = vmax.f32 %v4863_v19, 0.0 }
 0x668   : > { %v5905_v10 = vmax.f32 %v5903_v30, %v5904_v32  ;;  %v2406_v2 = vmax.f32 %v2046_v29, 0.0 }
 0x669   : > { %v3456_v36 = vpop.f32.mrf.mxu1 }
 0x66a   : > { %v5906_v39 = vrot.slane %v5905_v10, 1  ;;  %v3457_v42 = vadd.f32 %v9360_v31, %v3456_v36 }
 0x66b   : > { %v4864_v48 = vpop.f32.mrf.mxu2 }
 0x66c   : > { %v5907_v52 = vmax.f32 %v5905_v10, %v5906_v39  ;;  %v3843_v53 = vmax.f32 %v3457_v42, 0.0  ;;  %v4865_v49 = vadd.f32 %v9423_v34, %v4864_v48  ;;  %v9502_v29 = vpop.f32.mrf.mxu3 }
 0x66d   : > { %v2047_v21 = vpop.f32.mrf.mxu0 }
 0x66e   : > { %v6353_v54 = vpack.c.bf16 %v5907_v52, %v5907_v52  ;;  %v4014_v61 = vpack.c.bf16 %v3843_v53, %v3842_v45  ;;  %v5278_v62 = vmax.f32 %v4865_v49, 0.0  ;;  %v2048_v63 = vadd.f32 %v9321_v15, %v2047_v21 }
 0x670   : > { %v6609_v58 = vunpack.c.l.b16 %v6353_v54  ;;  %v5908_v4 = vmax.f32 %v5277_v57, %v5278_v62  ;;  %v2407_v0 = vmax.f32 %v2048_v63, 0.0  ;;  %7799 = vmatmul.msk.bf16.gmra.mxu2 %vm2640_vm2, %v4014_v61 }
 0x671   : > { %v3459_v6 = vpop.f32.mrf.mxu1 }
 0x672   : > { %v6734_v8 = vsel %vm6665_vm4, %v6609_v58, %v6733_v17  ;;  %v5909_v9 = vrot.slane %v5908_v4, 4  ;;  %v2569_v50 = vpack.c.bf16 %v2407_v0, %v2406_v2  ;;  %v3460_v16 = vadd.f32 %v9360_v31, %v3459_v6 }
 0x673   : > { %v4867_v5 = vpop.f32.mrf.mxu2 }
 0x674   : > { %v5910_v11 = vmax.f32 %v5908_v4, %v5909_v9  ;;  %7664 = vmatmul.msk.bf16.gmra.mxu1 %vm2640_vm2, %v2569_v50  ;;  %v3844_v17 = vmax.f32 %v3460_v16, 0.0  ;;  %v9510_v4 = vpop.f32.mrf.mxu3 }
 0x675   : > { %v2050_v20 = vpop.f32.mrf.mxu0 }
 0x676   : > { %v5911_v23 = vrot.slane %v5910_v11, 2  ;;  %v2051_v39 = vadd.f32 %v9321_v15, %v2050_v20 }
 0x678   : > { %v5912_v30 = vmax.f32 %v5910_v11, %v5911_v23  ;;  %v2408_v49 = vmax.f32 %v2051_v39, 0.0 }
 0x679   : > { %v3461_v32 = vpop.f32.mrf.mxu1 }
 0x67a   : > { %v5913_v60 = vrot.slane %v5912_v30, 1  ;;  %v3462_v10 = vadd.f32 %v9360_v31, %v3461_v32 }
 0x67b   : > { %v4869_v19 = vpop.f32.mrf.mxu2 }
 0x67c   : > { %v5914_v36 = vmax.f32 %v5912_v30, %v5913_v60  ;;  %v3845_v42 = vmax.f32 %v3462_v10, 0.0  ;;  %v4870_v10 = vadd.f32 %v9423_v34, %v4869_v19  ;;  %v9518_v39 = vpop.f32.mrf.mxu3 }
 0x67d   : > { %v2052_v43 = vpop.f32.mrf.mxu0 }
 0x67e   : > { %v6354_v45 = vpack.c.bf16 %v5914_v36, %v5914_v36  ;;  %v4015_v48 = vpack.c.bf16 %v3845_v42, %v3844_v17  ;;  %v2053_v52 = vadd.f32 %v9321_v15, %v2052_v43  ;;  %v4868_v42 = vadd.f32 %v9423_v34, %v4867_v5 }
 0x680   : > { %v6610_v53 = vunpack.c.l.b16 %v6354_v45  ;;  %v2409_v57 = vmax.f32 %v2053_v52, 0.0  ;;  %7800 = vmatmul.msk.bf16.gmra.mxu2 %vm2640_vm2, %v4015_v48  ;;  %v5280_v48 = vmax.f32 %v4870_v10, 0.0 }
 0x681   : > { %v3464_v21 = vpop.f32.mrf.mxu1 }
 0x682   : > { %v9506_v54 = vsel %vm6667_vm5, %v6610_v53, %v6734_v8  ;;  %v2570_v61 = vpack.c.bf16 %v2409_v57, %v2408_v49  ;;  %v3465_v58 = vadd.f32 %v9360_v31, %v3464_v21  ;;  %v5279_v49 = vmax.f32 %v4868_v42, 0.0 }
 0x683   : > { %v4872_v62 = vpop.f32.mrf.mxu2 }
 0x684   : > { %7665 = vmatmul.msk.bf16.gmra.mxu1 %vm2640_vm2, %v2570_v61  ;;  %v3846_v9 = vmax.f32 %v3465_v58, 0.0  ;;  %v4873_v43 = vadd.f32 %v9423_v34, %v4872_v62 }
 0x685   : > { %v2055_v63 = vpop.f32.mrf.mxu0 }
 0x686   : > { %v2056_v50 = vadd.f32 %v9321_v15, %v2055_v63  ;;  %v5281_v57 = vmax.f32 %v4873_v43, 0.0  ;;  %v5915_v63 = vmax.f32 %v5279_v49, %v5280_v48 }
 0x688   : > { %v2410_v30 = vmax.f32 %v2056_v50, 0.0  ;;  %v9528_v50 = vpop.f32.mrf.mxu3 }
 0x689   : > { %v3466_v2 = vpop.f32.mrf.mxu1 }
 0x68a   : > { %v3467_v0 = vadd.f32 %v9360_v31, %v3466_v2 }
 0x68b   : > { %v4874_v6 = vpop.f32.mrf.mxu2 }
 0x68c   : > { %v3847_v11 = vmax.f32 %v3467_v0, 0.0  ;;  %v4875_v36 = vadd.f32 %v9423_v34, %v4874_v6 }
 0x68d   : > { %v2057_v20 = vpop.f32.mrf.mxu0 }
 0x68e   : > { %v4016_v8 = vpack.c.bf16 %v3847_v11, %v3846_v9  ;;  %v2058_v23 = vadd.f32 %v9321_v15, %v2057_v20  ;;  %v5282_v52 = vmax.f32 %v4875_v36, 0.0 }
 0x690   : > { %v2411_v16 = vmax.f32 %v2058_v23, 0.0  ;;  %7801 = vmatmul.msk.bf16.gmra.mxu2 %vm2640_vm2, %v4016_v8  ;;  %v5922_v58 = vmax.f32 %v5281_v57, %v5282_v52  ;;  %v9533_v57 = vpop.f32.mrf.mxu3 }
 0x691   : > { %v3469_v32 = vpop.f32.mrf.mxu1 }
 0x692   : > { %v2571_v60 = vpack.c.bf16 %v2411_v16, %v2410_v30  ;;  %v3470_v53 = vadd.f32 %v9360_v31, %v3469_v32  ;;  %v5916_v30 = vrot.slane %v5915_v63, 4  ;;  %v5923_v16 = vrot.slane %v5922_v58, 4 }
 0x693   : > { %v4877_v17 = vpop.f32.mrf.mxu2 }
 0x694   : > { %7666 = vmatmul.msk.bf16.gmra.mxu1 %vm2640_vm2, %v2571_v60  ;;  %v4878_v19 = vadd.f32 %v9423_v34, %v4877_v17  ;;  %v3848_v0 = vmax.f32 %v3470_v53, 0.0  ;;  %v5917_v43 = vmax.f32 %v5915_v63, %v5916_v30 }
 0x695   : > { %v2060_v45 = vpop.f32.mrf.mxu0 }
 0x696   : > { %v2061_v5 = vadd.f32 %v9321_v15, %v2060_v45  ;;  %v5283_v11 = vmax.f32 %v4878_v19, 0.0  ;;  %v5924_v45 = vmax.f32 %v5922_v58, %v5923_v16  ;;  %v5918_v53 = vrot.slane %v5917_v43, 2 }
 0x698   : > { %v2412_v32 = vmax.f32 %v2061_v5, 0.0  ;;  %v5925_v49 = vrot.slane %v5924_v45, 2 }
 0x699   : > { %v3471_v21 = vpop.f32.mrf.mxu1 }
 0x69a   : > { %v3472_v61 = vadd.f32 %v9360_v31, %v3471_v21  ;;  %v5926_v5 = vmax.f32 %v5924_v45, %v5925_v49 }
 0x69b   : > { %v4879_v2 = vpop.f32.mrf.mxu2 }
 0x69c   : > { %v3849_v6 = vmax.f32 %v3472_v61, 0.0  ;;  %v4880_v62 = vadd.f32 %v9423_v34, %v4879_v2  ;;  %v5927_v30 = vrot.slane %v5926_v5, 1 }
 0x69d   : > { %v2062_v9 = vpop.f32.mrf.mxu0 }
 0x69e   : > { %v4017_v20 = vpack.c.bf16 %v3849_v6, %v3848_v0  ;;  %v5284_v8 = vmax.f32 %v4880_v62, 0.0  ;;  %v2063_v23 = vadd.f32 %v9321_v15, %v2062_v9  ;;  %v5919_v0 = vmax.f32 %v5917_v43, %v5918_v53 }
 0x6a0   : > { %v5929_v60 = vmax.f32 %v5283_v11, %v5284_v8  ;;  %v2413_v10 = vmax.f32 %v2063_v23, 0.0  ;;  %7802 = vmatmul.msk.bf16.gmra.mxu2 %vm2640_vm2, %v4017_v20  ;;  %v5920_v23 = vrot.slane %v5919_v0, 1 }
 0x6a1   : > { %v3474_v36 = vpop.f32.mrf.mxu1 }
 0x6a2   : > { %v5930_v17 = vrot.slane %v5929_v60, 4  ;;  %v2572_v42 = vpack.c.bf16 %v2413_v10, %v2412_v32  ;;  %v3475_v15 = vadd.f32 %v9360_v31, %v3474_v36  ;;  %v9540_v10 = vpop.f32.mrf.mxu3 }
 0x6a3   : > { %v4882_v48 = vpop.f32.mrf.mxu2 }
 0x6a4   : > { %7667 = vmatmul.msk.bf16.vlgmr.msrb.gmra.mxu3 %vm2640_vm2, %v2572_v42  ;;  %v5931_v52 = vmax.f32 %v5929_v60, %v5930_v17  ;;  %v4883_v61 = vadd.f32 %v9423_v34, %v4882_v48  ;;  %v3850_v58 = vmax.f32 %v3475_v15, 0.0  ;;  %v5921_v17 = vmax.f32 %v5919_v0, %v5920_v23 }
 0x6a5   : > { %v5928_v42 = vmax.f32 %v5926_v5, %v5927_v30 }
 0x6a6   : > { %v5932_v21 = vrot.slane %v5931_v52, 2  ;;  %v5285_v11 = vmax.f32 %v4883_v61, 0.0  ;;  %v6355_v53 = vpack.c.bf16 %v5921_v17, %v5921_v17 }
 0x6a7   : > { %v6356_v49 = vpack.c.bf16 %v5928_v42, %v5928_v42 }
 0x6a8   : > { %v5933_v9 = vmax.f32 %v5931_v52, %v5932_v21  ;;  %v6611_v5 = vunpack.c.l.b16 %v6355_v53 }
 0x6a9   : > { %v3476_v19 = vpop.f32.mrf.mxu1 }
 0x6aa   : > { %v3477_v2 = vadd.f32 %v9360_v31, %v3476_v19  ;;  %v5934_v32 = vrot.slane %v5933_v9, 1 }
 0x6ab   : > { %v4884_v63 = vpop.f32.mrf.mxu2 }
 0x6ac   : > { %v3851_v6 = vmax.f32 %v3477_v2, 0.0  ;;  %v4885_v62 = vadd.f32 %v9423_v34, %v4884_v63  ;;  %v5935_v48 = vmax.f32 %v5933_v9, %v5934_v32 }
 0x6ae   : > { %v4018_v20 = vpack.c.bf16 %v3851_v6, %v3850_v58  ;;  %v5286_v8 = vmax.f32 %v4885_v62, 0.0  ;;  %v6357_v19 = vpack.c.bf16 %v5935_v48, %v5935_v48  ;;  %v6612_v58 = vunpack.c.l.b16 %v6356_v49  ;;  %v9547_v62 = vpop.f32.mrf.mxu3 }
 0x6b0   : > { %v5936_v16 = vmax.f32 %v5285_v11, %v5286_v8  ;;  %7803 = vmatmul.msk.bf16.gmra.mxu2 %vm2640_vm2, %v4018_v20  ;;  %v6613_v8 = vunpack.c.l.b16 %v6357_v19 }
 0x6b1   : > { %v3479_v60 = vpop.f32.mrf.mxu1 }
 0x6b2   : > { %v5937_v36 = vrot.slane %v5936_v16, 4  ;;  %v3480_v21 = vadd.f32 %v9360_v31, %v3479_v60  ;;  %v6736_v60 = vsel %vm6669_vm6, %v6611_v5, %v9506_v54 }
 0x6b3   : > { %v4887_v43 = vpop.f32.mrf.mxu2 }
 0x6b4   : > { %v5938_v45 = vmax.f32 %v5936_v16, %v5937_v36  ;;  %7668 = vmatmul.msk.bf16.gmra.mxu3 %vm2640_vm2, %v9103_v26  ;;  %v4888_v63 = vadd.f32 %v9423_v34, %v4887_v43  ;;  %v3852_v9 = vmax.f32 %v3480_v21, 0.0  ;;  %v6737_v36 = vsel %vm6671_vm7, %v6612_v58, %v6736_v60 }
 0x6b5   : > { %v6738_v43 = vsel %vm6673_vm8, %v6613_v8, %v6737_v36 }
 0x6b6   : > { %v5939_v52 = vrot.slane %v5938_v45, 2  ;;  %v5287_v30 = vmax.f32 %v4888_v63, 0.0 }
 0x6b8   : > { %v5940_v15 = vmax.f32 %v5938_v45, %v5939_v52 }
 0x6b9   : > { %v3481_v61 = vpop.f32.mrf.mxu1 }
 0x6ba   : > { %v5941_v2 = vrot.slane %v5940_v15, 1  ;;  %v3482_v0 = vadd.f32 %v9360_v31, %v3481_v61 }
 0x6bb   : > { %v4889_v6 = vpop.f32.mrf.mxu2 }
 0x6bc   : > { %v5942_v26 = vmax.f32 %v5940_v15, %v5941_v2  ;;  %v3853_v11 = vmax.f32 %v3482_v0, 0.0  ;;  %v4890_v20 = vadd.f32 %v9423_v34, %v4889_v6  ;;  %v9559_v15 = vpop.f32.mrf.mxu3 }
 0x6be   : > { %v6358_v23 = vpack.c.bf16 %v5942_v26, %v5942_v26  ;;  %v4019_v16 = vpack.c.bf16 %v3853_v11, %v3852_v9  ;;  %v5288_v32 = vmax.f32 %v4890_v20, 0.0 }
 0x6c0   : > { %v6614_v17 = vunpack.c.l.b16 %v6358_v23  ;;  %v5943_v42 = vmax.f32 %v5287_v30, %v5288_v32  ;;  %7804 = vmatmul.msk.bf16.gmra.mxu2 %vm2640_vm2, %v4019_v16 }
 0x6c1   : > { %v3484_v45 = vpop.f32.mrf.mxu1 }
 0x6c2   : > { %v6739_v48 = vsel %vm6675_vm9, %v6614_v17, %v6738_v43  ;;  %v5944_v53 = vrot.slane %v5943_v42, 4  ;;  %v3485_v21 = vadd.f32 %v9360_v31, %v3484_v45 }
 0x6c3   : > { %v6791_v52 = vpack.c.b16 %v6739_v48, %v6739_v48  ;;  %v4892_v49 = vpop.f32.mrf.mxu2 }
 0x6c4   : > { %7669 = vmatmul.msk.bf16.gmra.mxu3 %vm2640_vm2, %v9119_v12  ;;  %v5945_v54 = vmax.f32 %v5943_v42, %v5944_v53  ;;  %v4893_v61 = vadd.f32 %v9423_v34, %v4892_v49  ;;  %v3854_v5 = vmax.f32 %v3485_v21, 0.0  ;;  %v9565_v20 = vpop.f32.mrf.mxu3 }
 0x6c5   : > { %6823 = vst [vmem:[%s8506_s20 + $0x24] sm:$0xf] %v6791_v52 }
 0x6c6   : > { %v5946_v63 = vrot.slane %v5945_v54, 2  ;;  %v5289_v26 = vmax.f32 %v4893_v61, 0.0 }
 0x6c8   : > { %v5947_v11 = vmax.f32 %v5945_v54, %v5946_v63 }
 0x6c9   : > { %v3486_v19 = vpop.f32.mrf.mxu1 }
 0x6ca   : > { %v3487_v2 = vadd.f32 %v9360_v31, %v3486_v19  ;;  %v5948_v16 = vrot.slane %v5947_v11, 1 }
 0x6cb   : > { %v4894_v0 = vpop.f32.mrf.mxu2 }
 0x6cc   : > { %v3855_v58 = vmax.f32 %v3487_v2, 0.0  ;;  %v4895_v6 = vadd.f32 %v9423_v34, %v4894_v0  ;;  %v5949_v17 = vmax.f32 %v5947_v11, %v5948_v16  ;;  %v9571_v48 = vpop.f32.mrf.mxu3 }
 0x6ce   : > { %v4020_v9 = vpack.c.bf16 %v3855_v58, %v3854_v5  ;;  %v5290_v12 = vmax.f32 %v4895_v6, 0.0  ;;  %v6359_v54 = vpack.c.bf16 %v5949_v17, %v5949_v17 }
 0x6d0   : > { %v5950_v8 = vmax.f32 %v5289_v26, %v5290_v12  ;;  %7805 = vmatmul.msk.bf16.gmra.mxu2 %vm2640_vm2, %v4020_v9  ;;  %v6615_v6 = vunpack.c.l.b16 %v6359_v54 }
 0x6d1   : > { %v3489_v23 = vpop.f32.mrf.mxu1 }
 0x6d2   : > { %v5951_v30 = vrot.slane %v5950_v8, 4  ;;  %v3490_v43 = vadd.f32 %v9360_v31, %v3489_v23 }
 0x6d3   : > { %v4897_v32 = vpop.f32.mrf.mxu2 }
 0x6d4   : > { %v5952_v60 = vmax.f32 %v5950_v8, %v5951_v30  ;;  %7670 = vmatmul.msk.bf16.gmra.mxu3 %vm2640_vm2, %v9140_v59  ;;  %v4898_v53 = vadd.f32 %v9423_v34, %v4897_v32  ;;  %v3856_v61 = vmax.f32 %v3490_v43, 0.0  ;;  %v9578_v23 = vpop.f32.mrf.mxu3 }
 0x6d6   : > { %v5953_v36 = vrot.slane %v5952_v60, 2  ;;  %v5291_v0 = vmax.f32 %v4898_v53, 0.0 }
 0x6d8   : > { %v5954_v42 = vmax.f32 %v5952_v60, %v5953_v36  ;;  %v9585_v60 = vld [vmem:[%s10087_s4] ss:$0 sm:$0xff] }
 0x6d9   : > { %v3491_v45 = vpop.f32.mrf.mxu1 }
 0x6da   : > { %v5955_v52 = vrot.slane %v5954_v42, 1  ;;  %v3492_v49 = vadd.f32 %v9360_v31, %v3491_v45 }
 0x6db   : > { %v4899_v21 = vpop.f32.mrf.mxu2 }
 0x6dc   : > { %v5956_v19 = vmax.f32 %v5954_v42, %v5955_v52  ;;  %v3857_v2 = vmax.f32 %v3492_v49, 0.0  ;;  %v4900_v59 = vadd.f32 %v9423_v34, %v4899_v21  ;;  %v9591_v21 = vpop.f32.mrf.mxu3 }
 0x6de   : > { %v6360_v63 = vpack.c.bf16 %v5956_v19, %v5956_v19  ;;  %v4021_v5 = vpack.c.bf16 %v3857_v2, %v3856_v61  ;;  %v5292_v58 = vmax.f32 %v4900_v59, 0.0 }
 0x6e0   : > { %v6616_v26 = vunpack.c.l.b16 %v6360_v63  ;;  %v5957_v9 = vmax.f32 %v5291_v0, %v5292_v58  ;;  %7806 = vmatmul.msk.bf16.gmra.mxu2 %vm2640_vm2, %v4021_v5 }
 0x6e1   : > { %v3494_v12 = vpop.f32.mrf.mxu1 }
 0x6e2   : > { %v6740_v11 = vsel %vm6663_vm3, %v6616_v26, %v6615_v6  ;;  %v5958_v31 = vrot.slane %v5957_v9, 4  ;;  %v3495_v36 = vadd.f32 %v9585_v60, %v3494_v12 }
 0x6e3   : > { %v4902_v8 = vpop.f32.mrf.mxu2 }
 0x6e4   : > { %v5959_v30 = vmax.f32 %v5957_v9, %v5958_v31  ;;  %7671 = vmatmul.msk.bf16.gmra.mxu3 %vm2640_vm2, %v9162_v38  ;;  %v4903_v43 = vadd.f32 %v9423_v34, %v4902_v8  ;;  %v3858_v49 = vmax.f32 %v3495_v36, 0.0  ;;  %v9597_v31 = vpop.f32.mrf.mxu3 }
 0x6e6   : > { %v5960_v16 = vrot.slane %v5959_v30, 2  ;;  %v5293_v61 = vmax.f32 %v4903_v43, 0.0 }
 0x6e8   : > { %v5961_v32 = vmax.f32 %v5959_v30, %v5960_v16 }
 0x6e9   : > { %v3496_v17 = vpop.f32.mrf.mxu1 }
 0x6ea   : > { %v5962_v42 = vrot.slane %v5961_v32, 1  ;;  %v3497_v45 = vadd.f32 %v9585_v60, %v3496_v17 }
 0x6eb   : > { %v4904_v52 = vpop.f32.mrf.mxu2 }
 0x6ec   : > { %v5963_v53 = vmax.f32 %v5961_v32, %v5962_v42  ;;  %v3859_v54 = vmax.f32 %v3497_v45, 0.0  ;;  %v4905_v38 = vadd.f32 %v9423_v34, %v4904_v52 }
 0x6ee   : > { %v6361_v19 = vpack.c.bf16 %v5963_v53, %v5963_v53  ;;  %v4022_v2 = vpack.c.bf16 %v3859_v54, %v3858_v49  ;;  %v5294_v59 = vmax.f32 %v4905_v38, 0.0 }
 0x6f0   : > { %v6617_v63 = vunpack.c.l.b16 %v6361_v19  ;;  %v5964_v0 = vmax.f32 %v5293_v61, %v5294_v59  ;;  %7807 = vmatmul.msk.bf16.gmra.mxu2 %vm2640_vm2, %v4022_v2 }
 0x6f1   : > { %v3499_v5 = vpop.f32.mrf.mxu1 }
 0x6f2   : > { %v6741_v58 = vsel %vm6665_vm4, %v6617_v63, %v6740_v11  ;;  %v5965_v6 = vrot.slane %v5964_v0, 4  ;;  %v3500_v30 = vadd.f32 %v9585_v60, %v3499_v5 }
 0x6f3   : > { %v4907_v26 = vpop.f32.mrf.mxu2 }
 0x6f4   : > { %v5966_v9 = vmax.f32 %v5964_v0, %v5965_v6  ;;  %7672 = vmatmul.msk.bf16.gmra.mxu3 %vm2640_vm2, %v9178_v25  ;;  %v3860_v43 = vmax.f32 %v3500_v30, 0.0  ;;  %v9602_v25 = vpop.f32.mrf.mxu3 }
 0x6f6   : > { %v5967_v12 = vrot.slane %v5966_v9, 2 }
 0x6f8   : > { %v5968_v8 = vmax.f32 %v5966_v9, %v5967_v12 }
 0x6f9   : > { %v3501_v16 = vpop.f32.mrf.mxu1 }
 0x6fa   : > { %v5969_v32 = vrot.slane %v5968_v8, 1  ;;  %v3502_v36 = vadd.f32 %v9585_v60, %v3501_v16 }
 0x6fb   : > { %v4909_v17 = vpop.f32.mrf.mxu2 }
 0x6fc   : > { %v5970_v42 = vmax.f32 %v5968_v8, %v5969_v32  ;;  %v3861_v11 = vmax.f32 %v3502_v36, 0.0  ;;  %v9611_v59 = vpop.f32.mrf.mxu3 }
 0x6fe   : > { %v6362_v45 = vpack.c.bf16 %v5970_v42, %v5970_v42  ;;  %v4023_v52 = vpack.c.bf16 %v3861_v11, %v3860_v43 }
 0x700   : > { %v6618_v53 = vunpack.c.l.b16 %v6362_v45  ;;  %7808 = vmatmul.msk.bf16.gmra.mxu2 %vm2640_vm2, %v4023_v52 }
 0x701   : > { %v3504_v49 = vpop.f32.mrf.mxu1 }
 0x702   : > { %v9605_v54 = vsel %vm6667_vm5, %v6618_v53, %v6741_v58  ;;  %v3505_v19 = vadd.f32 %v9585_v60, %v3504_v49  ;;  %v4910_v58 = vadd.f32 %v9423_v34, %v4909_v17 }
 0x703   : > { %v4912_v38 = vpop.f32.mrf.mxu2 }
 0x704   : > { %7673 = vmatmul.msk.bf16.gmra.mxu3 %vm2640_vm2, %v9200_v1  ;;  %v3862_v0 = vmax.f32 %v3505_v19, 0.0  ;;  %v4908_v1 = vadd.f32 %v9423_v34, %v4907_v26  ;;  %v9619_v30 = vpop.f32.mrf.mxu3  ;;  %v4913_v16 = vadd.f32 %v9423_v34, %v4912_v38  ;;  %v5296_v32 = vmax.f32 %v4910_v58, 0.0 }
 0x706   : > { %v5295_v43 = vmax.f32 %v4908_v1, 0.0  ;;  %v5297_v45 = vmax.f32 %v4913_v16, 0.0 }
 0x708   : > { %v5971_v53 = vmax.f32 %v5295_v43, %v5296_v32 }
 0x709   : > { %v3506_v61 = vpop.f32.mrf.mxu1 }
 0x70a   : > { %v3507_v2 = vadd.f32 %v9585_v60, %v3506_v61 }
 0x70b   : > { %v4914_v63 = vpop.f32.mrf.mxu2 }
 0x70c   : > { %v3863_v5 = vmax.f32 %v3507_v2, 0.0  ;;  %v4915_v8 = vadd.f32 %v9423_v34, %v4914_v63 }
 0x70e   : > { %v4024_v6 = vpack.c.bf16 %v3863_v5, %v3862_v0  ;;  %v5298_v36 = vmax.f32 %v4915_v8, 0.0  ;;  %v5972_v0 = vrot.slane %v5971_v53, 4  ;;  %v9626_v5 = vpop.f32.mrf.mxu3 }
 0x710   : > { %7809 = vmatmul.msk.bf16.gmra.mxu2 %vm2640_vm2, %v4024_v6 }
 0x711   : > { %v3509_v9 = vpop.f32.mrf.mxu1 }
 0x712   : > { %v3510_v42 = vadd.f32 %v9585_v60, %v3509_v9 }
 0x713   : > { %v4917_v12 = vpop.f32.mrf.mxu2 }
 0x714   : > { %7674 = vmatmul.msk.bf16.gmra.mxu3 %vm2640_vm2, %v9217_v41  ;;  %v4918_v17 = vadd.f32 %v9423_v34, %v4917_v12  ;;  %v5978_v41 = vmax.f32 %v5297_v45, %v5298_v36  ;;  %v3864_v19 = vmax.f32 %v3510_v42, 0.0  ;;  %v5973_v12 = vmax.f32 %v5971_v53, %v5972_v0 }
 0x716   : > { %v5299_v2 = vmax.f32 %v4918_v17, 0.0  ;;  %v5979_v6 = vrot.slane %v5978_v41, 4  ;;  %v5974_v32 = vrot.slane %v5973_v12, 2 }
 0x718   : > { %v5980_v1 = vmax.f32 %v5978_v41, %v5979_v6  ;;  %v5975_v45 = vmax.f32 %v5973_v12, %v5974_v32 }
 0x719   : > { %v3511_v11 = vpop.f32.mrf.mxu1 }
 0x71a   : > { %v3512_v52 = vadd.f32 %v9585_v60, %v3511_v11  ;;  %v5981_v42 = vrot.slane %v5980_v1, 2 }
 0x71b   : > { %v4919_v49 = vpop.f32.mrf.mxu2 }
 0x71c   : > { %v3865_v26 = vmax.f32 %v3512_v52, 0.0  ;;  %v4920_v61 = vadd.f32 %v9423_v34, %v4919_v49  ;;  %v5982_v52 = vmax.f32 %v5980_v1, %v5981_v42 }
 0x71e   : > { %v4025_v38 = vpack.c.bf16 %v3865_v26, %v3864_v19  ;;  %v5300_v63 = vmax.f32 %v4920_v61, 0.0  ;;  %v5976_v61 = vrot.slane %v5975_v45, 1 }
 0x720   : > { %v5985_v9 = vmax.f32 %v5299_v2, %v5300_v63  ;;  %7810 = vmatmul.msk.bf16.gmra.mxu2 %vm2640_vm2, %v4025_v38  ;;  %v5977_v12 = vmax.f32 %v5975_v45, %v5976_v61  ;;  %v9642_v45 = vld [vmem:[%s10089_s6] ss:$0 sm:$0xff] }
 0x722   : > { %v5986_v58 = vrot.slane %v5985_v9, 4  ;;  %v6363_v42 = vpack.c.bf16 %v5977_v12, %v5977_v12 }
 0x723   : > { %v4922_v8 = vpop.f32.mrf.mxu2 }
 0x724   : > { %7675 = vmatmul.msk.bf16.gmra.mxu3 %vm2640_vm2, %v9234_v46  ;;  %v5987_v16 = vmax.f32 %v5985_v9, %v5986_v58  ;;  %v4923_v11 = vadd.f32 %v9423_v34, %v4922_v8  ;;  %v5983_v46 = vrot.slane %v5982_v52, 1 }
 0x726   : > { %v5988_v43 = vrot.slane %v5987_v16, 2  ;;  %v5301_v26 = vmax.f32 %v4923_v11, 0.0  ;;  %v5984_v1 = vmax.f32 %v5982_v52, %v5983_v46 }
 0x727   : > { %v3514_v36 = vpop.f32.mrf.mxu3 }
 0x728   : > { %v5989_v19 = vmax.f32 %v5987_v16, %v5988_v43  ;;  %v3515_v53 = vadd.f32 %v9585_v60, %v3514_v36  ;;  %v6364_v11 = vpack.c.bf16 %v5984_v1, %v5984_v1 }
 0x72a   : > { %v5990_v0 = vrot.slane %v5989_v19, 1  ;;  %v3866_v6 = vmax.f32 %v3515_v53, 0.0  ;;  %v6619_v53 = vunpack.c.l.b16 %v6363_v42  ;;  %v6620_v61 = vunpack.c.l.b16 %v6364_v11 }
 0x72b   : > { %v4924_v17 = vpop.f32.mrf.mxu2 }
 0x72c   : > { %v4925_v49 = vadd.f32 %v9423_v34, %v4924_v17  ;;  %v5991_v16 = vmax.f32 %v5989_v19, %v5990_v0 }
 0x72e   : > { %v5302_v41 = vmax.f32 %v4925_v49, 0.0  ;;  %v6365_v49 = vpack.c.bf16 %v5991_v16, %v5991_v16 }
 0x72f   : > { %v3516_v2 = vpop.f32.mrf.mxu3 }
 0x730   : > { %v5992_v38 = vmax.f32 %v5301_v26, %v5302_v41  ;;  %v3517_v63 = vadd.f32 %v9585_v60, %v3516_v2  ;;  %v6621_v19 = vunpack.c.l.b16 %v6365_v49 }
 0x732   : > { %v5993_v9 = vrot.slane %v5992_v38, 4  ;;  %v3867_v58 = vmax.f32 %v3517_v63, 0.0 }
 0x733   : > { %v4927_v8 = vpop.f32.mrf.mxu2 }
 0x734   : > { %v5994_v32 = vmax.f32 %v5992_v38, %v5993_v9  ;;  %v9635_v34 = vpack.c.bf16 %v3867_v58, %v3866_v6  ;;  %7676 = vmatmul.msk.bf16.gmra.mxu3 %vm2640_vm2, %v9255_v56  ;;  %v4928_v52 = vadd.f32 %v9642_v45, %v4927_v8  ;;  %v6743_v6 = vsel %vm6669_vm6, %v6619_v53, %v9605_v54 }
 0x735   : > { %v6744_v58 = vsel %vm6671_vm7, %v6620_v61, %v6743_v6 }
 0x736   : > { %v5995_v36 = vrot.slane %v5994_v32, 2  ;;  %v5303_v38 = vmax.f32 %v4928_v52, 0.0 }
 0x737   : > { %v3519_v43 = vpop.f32.mrf.mxu3 }
 0x738   : > { %v5996_v17 = vmax.f32 %v5994_v32, %v5995_v36  ;;  %v3520_v63 = vadd.f32 %v9585_v60, %v3519_v43  ;;  %v6745_v32 = vsel %vm6673_vm8, %v6621_v19, %v6744_v58 }
 0x73a   : > { %v5997_v26 = vrot.slane %v5996_v17, 1  ;;  %v3868_v36 = vmax.f32 %v3520_v63, 0.0 }
 0x73b   : > { %v4929_v41 = vpop.f32.mrf.mxu2 }
 0x73c   : > { %v5998_v2 = vmax.f32 %v5996_v17, %v5997_v26  ;;  %v4930_v56 = vadd.f32 %v9642_v45, %v4929_v41 }
 0x73e   : > { %v6366_v46 = vpack.c.bf16 %v5998_v2, %v5998_v2  ;;  %v5304_v0 = vmax.f32 %v4930_v56, 0.0 }
 0x73f   : > { %v3521_v9 = vpop.f32.mrf.mxu3 }
 0x740   : > { %v6622_v12 = vunpack.c.l.b16 %v6366_v46  ;;  %v5999_v8 = vmax.f32 %v5303_v38, %v5304_v0  ;;  %v3522_v1 = vadd.f32 %v9585_v60, %v3521_v9 }
 0x742   : > { %v6746_v16 = vsel %vm6675_vm9, %v6622_v12, %v6745_v32  ;;  %v3869_v42 = vmax.f32 %v3522_v1, 0.0  ;;  %v6000_v17 = vrot.slane %v5999_v8, 4 }
 0x743   : > { %v6792_v11 = vpack.c.b16 %v6746_v16, %v6746_v16  ;;  %v4932_v43 = vpop.f32.mrf.mxu2 }
 0x744   : > { %v9653_v49 = vpack.c.bf16 %v3869_v42, %v3868_v36  ;;  %7677 = vmatmul.msk.bf16.gmra.mxu3 %vm2640_vm2, %v9271_v40  ;;  %v6001_v26 = vmax.f32 %v5999_v8, %v6000_v17  ;;  %v4933_v52 = vadd.f32 %v9642_v45, %v4932_v43 }
 0x745   : > { %6824 = vst [vmem:[%s8506_s20 + $0x28] sm:$0xf] %v6792_v11 }
 0x746   : > { %v6002_v41 = vrot.slane %v6001_v26, 2  ;;  %v5305_v2 = vmax.f32 %v4933_v52, 0.0 }
 0x747   : > { %v3524_v54 = vpop.f32.mrf.mxu3 }
 0x748   : > { %v3525_v56 = vadd.f32 %v9585_v60, %v3524_v54  ;;  %v6003_v38 = vmax.f32 %v6001_v26, %v6002_v41 }
 0x74a   : > { %v3870_v6 = vmax.f32 %v3525_v56, 0.0  ;;  %v6004_v12 = vrot.slane %v6003_v38, 1 }
 0x74b   : > { %v4934_v53 = vpop.f32.mrf.mxu2 }
 0x74c   : > { %v4935_v61 = vadd.f32 %v9642_v45, %v4934_v53  ;;  %v6005_v36 = vmax.f32 %v6003_v38, %v6004_v12 }
 0x74e   : > { %v5306_v19 = vmax.f32 %v4935_v61, 0.0  ;;  %v6367_v54 = vpack.c.bf16 %v6005_v36, %v6005_v36 }
 0x74f   : > { %v3526_v46 = vpop.f32.mrf.mxu3 }
 0x750   : > { %v6006_v63 = vmax.f32 %v5305_v2, %v5306_v19  ;;  %v3527_v0 = vadd.f32 %v9585_v60, %v3526_v46  ;;  %v6623_v19 = vunpack.c.l.b16 %v6367_v54 }
 0x752   : > { %v6007_v40 = vrot.slane %v6006_v63, 4  ;;  %v3871_v9 = vmax.f32 %v3527_v0, 0.0 }
 0x753   : > { %v4937_v58 = vpop.f32.mrf.mxu2 }
 0x754   : > { %v6008_v8 = vmax.f32 %v6006_v63, %v6007_v40  ;;  %v9662_v1 = vpack.c.bf16 %v3871_v9, %v3870_v6  ;;  %7678 = vmatmul.msk.bf16.gmra.mxu3 %vm2640_vm2, %v9287_v35  ;;  %v4938_v43 = vadd.f32 %v9642_v45, %v4937_v58 }
 0x756   : > { %v6009_v32 = vrot.slane %v6008_v8, 2  ;;  %v5307_v41 = vmax.f32 %v4938_v43, 0.0 }
 0x757   : > { %v3529_v16 = vpop.f32.mrf.mxu3 }
 0x758   : > { %v6010_v42 = vmax.f32 %v6008_v8, %v6009_v32  ;;  %v3530_v61 = vadd.f32 %v9585_v60, %v3529_v16 }
 0x75a   : > { %v6011_v11 = vrot.slane %v6010_v42, 1  ;;  %v3872_v0 = vmax.f32 %v3530_v61, 0.0 }
 0x75b   : > { %v4939_v17 = vpop.f32.mrf.mxu2 }
 0x75c   : > { %v6012_v26 = vmax.f32 %v6010_v42, %v6011_v11  ;;  %v4940_v52 = vadd.f32 %v9642_v45, %v4939_v17 }
 0x75e   : > { %v6368_v53 = vpack.c.bf16 %v6012_v26, %v6012_v26  ;;  %v5308_v2 = vmax.f32 %v4940_v52, 0.0 }
 0x75f   : > { %v3531_v56 = vpop.f32.mrf.mxu3 }
 0x760   : > { %v6624_v35 = vunpack.c.l.b16 %v6368_v53  ;;  %v6013_v46 = vmax.f32 %v5307_v41, %v5308_v2  ;;  %v3532_v38 = vadd.f32 %v9585_v60, %v3531_v56 }
 0x762   : > { %v6747_v63 = vsel %vm6663_vm3, %v6624_v35, %v6623_v19  ;;  %v6014_v6 = vrot.slane %v6013_v46, 4  ;;  %v3873_v40 = vmax.f32 %v3532_v38, 0.0 }
 0x763   : > { %v4942_v9 = vpop.f32.mrf.mxu2 }
 0x764   : > { %v6015_v58 = vmax.f32 %v6013_v46, %v6014_v6  ;;  %v9671_v12 = vpack.c.bf16 %v3873_v40, %v3872_v0  ;;  %7679 = vmatmul.msk.bf16.gmra.mxu3 %vm2640_vm2, %v9309_v28  ;;  %v4943_v42 = vadd.f32 %v9642_v45, %v4942_v9 }
 0x766   : > { %v6016_v8 = vrot.slane %v6015_v58, 2  ;;  %v5309_v26 = vmax.f32 %v4943_v42, 0.0 }
 0x767   : > { %v3534_v32 = vpop.f32.mrf.mxu3 }
 0x768   : > { %v6017_v16 = vmax.f32 %v6015_v58, %v6016_v8  ;;  %v3535_v52 = vadd.f32 %v9585_v60, %v3534_v32 }
 0x76a   : > { %v6018_v36 = vrot.slane %v6017_v16, 1  ;;  %v3874_v19 = vmax.f32 %v3535_v52, 0.0 }
 0x76b   : > { %v4944_v11 = vpop.f32.mrf.mxu2 }
 0x76c   : > { %v6019_v43 = vmax.f32 %v6017_v16, %v6018_v36  ;;  %v4945_v17 = vadd.f32 %v9642_v45, %v4944_v11 }
 0x76e   : > { %v6369_v54 = vpack.c.bf16 %v6019_v43, %v6019_v43  ;;  %v5310_v53 = vmax.f32 %v4945_v17, 0.0 }
 0x76f   : > { %v3536_v41 = vpop.f32.mrf.mxu3 }
 0x770   : > { %v6625_v61 = vunpack.c.l.b16 %v6369_v54  ;;  %v6020_v2 = vmax.f32 %v5309_v26, %v5310_v53  ;;  %v3537_v28 = vadd.f32 %v9585_v60, %v3536_v41 }
 0x772   : > { %v6748_v56 = vsel %vm6665_vm4, %v6625_v61, %v6747_v63  ;;  %v6021_v35 = vrot.slane %v6020_v2, 4  ;;  %v3875_v46 = vmax.f32 %v3537_v28, 0.0 }
 0x773   : > { %v4947_v38 = vpop.f32.mrf.mxu2 }
 0x774   : > { %v6022_v0 = vmax.f32 %v6020_v2, %v6021_v35  ;;  %v9680_v6 = vpack.c.bf16 %v3875_v46, %v3874_v19  ;;  %7680 = vmatmul.msk.bf16.gmra.mxu3 %vm2640_vm2, %v9330_v13 }
 0x776   : > { %v6023_v40 = vrot.slane %v6022_v0, 2 }
 0x777   : > { %v3539_v9 = vpop.f32.mrf.mxu3 }
 0x778   : > { %v6024_v58 = vmax.f32 %v6022_v0, %v6023_v40  ;;  %v3540_v42 = vadd.f32 %v9585_v60, %v3539_v9 }
 0x77a   : > { %v6025_v8 = vrot.slane %v6024_v58, 1  ;;  %v3876_v54 = vmax.f32 %v3540_v42, 0.0 }
 0x77b   : > { %v4949_v32 = vpop.f32.mrf.mxu2 }
 0x77c   : > { %v6026_v16 = vmax.f32 %v6024_v58, %v6025_v8 }
 0x77e   : > { %v6370_v36 = vpack.c.bf16 %v6026_v16, %v6026_v16 }
 0x77f   : > { %v3541_v63 = vpop.f32.mrf.mxu3 }
 0x780   : > { %v6626_v11 = vunpack.c.l.b16 %v6370_v36  ;;  %v3542_v43 = vadd.f32 %v9585_v60, %v3541_v63 }
 0x782   : > { %v9687_v17 = vsel %vm6667_vm5, %v6626_v11, %v6748_v56  ;;  %v3877_v26 = vmax.f32 %v3542_v43, 0.0  ;;  %v4950_v56 = vadd.f32 %v9642_v45, %v4949_v32 }
 0x783   : > { %v4952_v52 = vpop.f32.mrf.mxu2 }
 0x784   : > { %v9689_v13 = vpack.c.bf16 %v3877_v26, %v3876_v54  ;;  %7681 = vmatmul.msk.bf16.gmra.mxu3 %vm2640_vm2, %v9347_v3  ;;  %v4948_v3 = vadd.f32 %v9642_v45, %v4947_v38  ;;  %v4953_v9 = vadd.f32 %v9642_v45, %v4952_v52  ;;  %v5312_v58 = vmax.f32 %v4950_v56, 0.0 }
 0x786   : > { %v5311_v36 = vmax.f32 %v4948_v3, 0.0  ;;  %v5313_v42 = vmax.f32 %v4953_v9, 0.0 }
 0x787   : > { %v3544_v53 = vpop.f32.mrf.mxu3 }
 0x788   : > { %v3545_v61 = vadd.f32 %v9585_v60, %v3544_v53  ;;  %v6027_v32 = vmax.f32 %v5311_v36, %v5312_v58 }
 0x78a   : > { %v3878_v19 = vmax.f32 %v3545_v61, 0.0 }
 0x78b   : > { %v4954_v41 = vpop.f32.mrf.mxu2 }
 0x78c   : > { %v4955_v0 = vadd.f32 %v9642_v45, %v4954_v41  ;;  %v6028_v41 = vrot.slane %v6027_v32, 4 }
 0x78e   : > { %v5314_v16 = vmax.f32 %v4955_v0, 0.0  ;;  %v6029_v56 = vmax.f32 %v6027_v32, %v6028_v41 }
 0x78f   : > { %v3546_v2 = vpop.f32.mrf.mxu3 }
 0x790   : > { %v3547_v28 = vadd.f32 %v9585_v60, %v3546_v2  ;;  %v6034_v43 = vmax.f32 %v5313_v42, %v5314_v16  ;;  %v6030_v58 = vrot.slane %v6029_v56, 2 }
 0x792   : > { %v3879_v35 = vmax.f32 %v3547_v28, 0.0  ;;  %v6035_v61 = vrot.slane %v6034_v43, 4 }
 0x793   : > { %v4957_v46 = vpop.f32.mrf.mxu2 }
 0x794   : > { %v9697_v40 = vpack.c.bf16 %v3879_v35, %v3878_v19  ;;  %7682 = vmatmul.msk.bf16.gmra.mxu3 %vm2640_vm2, %v9369_v7  ;;  %v4958_v63 = vadd.f32 %v9642_v45, %v4957_v46  ;;  %v6036_v0 = vmax.f32 %v6034_v43, %v6035_v61 }
 0x796   : > { %v5315_v26 = vmax.f32 %v4958_v63, 0.0  ;;  %v6037_v16 = vrot.slane %v6036_v0, 2  ;;  %v6031_v63 = vmax.f32 %v6029_v56, %v6030_v58 }
 0x797   : > { %v3549_v8 = vpop.f32.mrf.mxu3 }
 0x798   : > { %v3550_v53 = vadd.f32 %v9585_v60, %v3549_v8  ;;  %v6032_v41 = vrot.slane %v6031_v63, 1 }
 0x79a   : > { %v3880_v28 = vmax.f32 %v3550_v53, 0.0  ;;  %v6033_v56 = vmax.f32 %v6031_v63, %v6032_v41 }
 0x79b   : > { %v4959_v11 = vpop.f32.mrf.mxu2 }
 0x79c   : > { %v4960_v54 = vadd.f32 %v9642_v45, %v4959_v11 }
 0x79e   : > { %v5316_v7 = vmax.f32 %v4960_v54, 0.0  ;;  %v6038_v54 = vmax.f32 %v6036_v0, %v6037_v16  ;;  %v6371_v16 = vpack.c.bf16 %v6033_v56, %v6033_v56 }
 0x79f   : > { %v3551_v38 = vpop.f32.mrf.mxu3 }
 0x7a0   : > { %v6041_v52 = vmax.f32 %v5315_v26, %v5316_v7  ;;  %v3552_v2 = vadd.f32 %v9585_v60, %v3551_v38 }
 0x7a2   : > { %v6042_v19 = vrot.slane %v6041_v52, 4  ;;  %v3881_v35 = vmax.f32 %v3552_v2, 0.0 }
 0x7a3   : > { %v4962_v46 = vpop.f32.mrf.mxu2 }
 0x7a4   : > { %v9707_v3 = vpack.c.bf16 %v3881_v35, %v3880_v28  ;;  %7683 = vmatmul.msk.bf16.gmra.mxu3 %vm2640_vm2, %v9386_v47  ;;  %v6043_v9 = vmax.f32 %v6041_v52, %v6042_v19  ;;  %v4963_v42 = vadd.f32 %v9642_v45, %v4962_v46  ;;  %v6039_v47 = vrot.slane %v6038_v54, 1 }
 0x7a6   : > { %v6044_v36 = vrot.slane %v6043_v9, 2  ;;  %v5317_v53 = vmax.f32 %v4963_v42, 0.0  ;;  %v6040_v46 = vmax.f32 %v6038_v54, %v6039_v47 }
 0x7a7   : > { %v3554_v8 = vpop.f32.mrf.mxu3 }
 0x7a8   : > { %v6045_v32 = vmax.f32 %v6043_v9, %v6044_v36  ;;  %v3555_v43 = vadd.f32 %v9585_v60, %v3554_v8  ;;  %v6372_v42 = vpack.c.bf16 %v6040_v46, %v6040_v46 }
 0x7aa   : > { %v6046_v2 = vrot.slane %v6045_v32, 1  ;;  %v3882_v28 = vmax.f32 %v3555_v43, 0.0  ;;  %v6628_v43 = vunpack.c.l.b16 %v6372_v42 }
 0x7ab   : > { %v4964_v11 = vpop.f32.mrf.mxu2 }
 0x7ac   : > { %v4965_v26 = vadd.f32 %v9642_v45, %v4964_v11  ;;  %v6047_v9 = vmax.f32 %v6045_v32, %v6046_v2 }
 0x7ae   : > { %v5318_v7 = vmax.f32 %v4965_v26, 0.0  ;;  %v6373_v26 = vpack.c.bf16 %v6047_v9, %v6047_v9 }
 0x7af   : > { %v3556_v38 = vpop.f32.mrf.mxu3 }
 0x7b0   : > { %v6048_v61 = vmax.f32 %v5317_v53, %v5318_v7  ;;  %v3557_v52 = vadd.f32 %v9585_v60, %v3556_v38  ;;  %v6627_v7 = vunpack.c.l.b16 %v6371_v16  ;;  %v6629_v63 = vunpack.c.l.b16 %v6373_v26  ;;  %v9740_v26 = vld [vmem:[%s10085_s2] ss:$0 sm:$0xff] }
 0x7b2   : > { %v6049_v19 = vrot.slane %v6048_v61, 4  ;;  %v3883_v35 = vmax.f32 %v3557_v52, 0.0  ;;  %v6750_v47 = vsel %vm6669_vm6, %v6627_v7, %v9687_v17 }
 0x7b3   : > { %v6751_v32 = vsel %vm6671_vm7, %v6628_v43, %v6750_v47 }
 0x7b4   : > { %v6050_v0 = vmax.f32 %v6048_v61, %v6049_v19  ;;  %v9715_v58 = vpack.c.bf16 %v3883_v35, %v3882_v28  ;;  %7684 = vmatmul.msk.bf16.gmra.mxu3 %vm2640_vm2, %v9407_v14  ;;  %v6752_v2 = vsel %vm6673_vm8, %v6629_v63, %v6751_v32 }
 0x7b6   : > { %v6051_v8 = vrot.slane %v6050_v0, 2 }
 0x7b7   : > { %v3559_v36 = vpop.f32.mrf.mxu3 }
 0x7b8   : > { %v6052_v11 = vmax.f32 %v6050_v0, %v6051_v8  ;;  %v3560_v41 = vadd.f32 %v9585_v60, %v3559_v36 }
 0x7ba   : > { %v6053_v53 = vrot.slane %v6052_v11, 1  ;;  %v3884_v19 = vmax.f32 %v3560_v41, 0.0 }
 0x7bc   : > { %v6054_v38 = vmax.f32 %v6052_v11, %v6053_v53  ;;  %v2163_v53 = vadd.f32 %v9740_v26, %v9454_v55  ;;  %v2168_v55 = vadd.f32 %v9740_v26, %v9469_v27  ;;  %v2173_v27 = vadd.f32 %v9740_v26, %v9487_v51 }
 0x7bd   : > { %v2178_v51 = vadd.f32 %v9740_v26, %v9502_v29  ;;  %v2183_v29 = vadd.f32 %v9740_v26, %v9518_v39  ;;  %v2188_v39 = vadd.f32 %v9740_v26, %v9533_v57  ;;  %v2193_v57 = vadd.f32 %v9740_v26, %v9547_v62 }
 0x7be   : > { %v6374_v54 = vpack.c.bf16 %v6054_v38, %v6054_v38  ;;  %v2453_v43 = vmax.f32 %v2163_v53, 0.0  ;;  %v2198_v62 = vadd.f32 %v9740_v26, %v9565_v20  ;;  %v2203_v20 = vadd.f32 %v9740_v26, %v9578_v23 }
 0x7bf   : > { %v3561_v14 = vpop.f32.mrf.mxu3  ;;  %v2208_v23 = vadd.f32 %v9740_v26, %v9597_v31  ;;  %v2213_v31 = vadd.f32 %v9740_v26, %v9611_v59  ;;  %v2218_v59 = vadd.f32 %v9740_v26, %v9626_v5 }
 0x7c0   : > { %v6630_v61 = vunpack.c.l.b16 %v6374_v54  ;;  %v3562_v52 = vadd.f32 %v9585_v60, %v3561_v14 }
 0x7c2   : > { %v6753_v28 = vsel %vm6675_vm9, %v6630_v61, %v6752_v2  ;;  %v3885_v35 = vmax.f32 %v3562_v52, 0.0  ;;  %v2455_v52 = vmax.f32 %v2168_v55, 0.0 }
 0x7c3   : > { %v6793_v56 = vpack.c.b16 %v6753_v28, %v6753_v28 }
 0x7c4   : > { %v9726_v46 = vpack.c.bf16 %v3885_v35, %v3884_v19  ;;  %7685 = vmatmul.msk.bf16.gmra.mxu3 %vm2640_vm2, %v9426_v37  ;;  %v2161_v37 = vadd.f32 %v9740_v26, %v9447_v33  ;;  %v2166_v33 = vadd.f32 %v9740_v26, %v9464_v24  ;;  %v2171_v24 = vadd.f32 %v9740_v26, %v9479_v44 }
 0x7c5   : > { %6825 = vst [vmem:[%s8506_s20 + $0x2c] sm:$0xf] %v6793_v56  ;;  %v2176_v44 = vadd.f32 %v9740_v26, %v9496_v22  ;;  %v2181_v22 = vadd.f32 %v9740_v26, %v9510_v4  ;;  %v2186_v4 = vadd.f32 %v9740_v26, %v9528_v50  ;;  %v2191_v50 = vadd.f32 %v9740_v26, %v9540_v10 }
 0x7c6   : > { %v2452_v7 = vmax.f32 %v2161_v37, 0.0  ;;  %v2454_v61 = vmax.f32 %v2166_v33, 0.0  ;;  %v2196_v10 = vadd.f32 %v9740_v26, %v9559_v15  ;;  %v2201_v15 = vadd.f32 %v9740_v26, %v9571_v48 }
 0x7c7   : > { %v3564_v17 = vpop.f32.mrf.mxu3  ;;  %v2206_v48 = vadd.f32 %v9740_v26, %v9591_v21  ;;  %v2211_v21 = vadd.f32 %v9740_v26, %v9602_v25  ;;  %v2216_v25 = vadd.f32 %v9740_v26, %v9619_v30 }
 0x7c8   : > { %v3565_v0 = vadd.f32 %v9585_v60, %v3564_v17  ;;  %v2593_v35 = vpack.c.bf16 %v2455_v52, %v2454_v61 }
 0x7ca   : > { %v3886_v16 = vmax.f32 %v3565_v0, 0.0 }
 0x7cf   : > { %v3566_v9 = vpop.f32.mrf.mxu3 }
 0x7d0   : > { %v3567_v8 = vadd.f32 %v9585_v60, %v3566_v9 }
 0x7d2   : > { %v3887_v36 = vmax.f32 %v3567_v8, 0.0  ;;  %v2456_v8 = vmax.f32 %v2171_v24, 0.0 }
 0x7d4   : > { %v9733_v42 = vpack.c.bf16 %v3887_v36, %v3886_v16  ;;  %7686 = vmatmul.msk.bf16.gmra.mxu3 %vm2640_vm2, %v9440_v18  ;;  %v2592_v18 = vpack.c.bf16 %v2453_v43, %v2452_v7  ;;  %v2457_v16 = vmax.f32 %v2173_v27, 0.0 }
 0x7d6   : > { %v2594_v53 = vpack.c.bf16 %v2457_v16, %v2456_v8 }
 0x7d7   : > { %v3569_v11 = vpop.f32.mrf.mxu3 }
 0x7d8   : > { %v3570_v38 = vadd.f32 %v9585_v60, %v3569_v11 }
 0x7da   : > { %v3888_v41 = vmax.f32 %v3570_v38, 0.0 }
 0x7df   : > { %v3571_v63 = vpop.f32.mrf.mxu3 }
 0x7e0   : > { %v3572_v54 = vadd.f32 %v9585_v60, %v3571_v63 }
 0x7e2   : > { %v3889_v47 = vmax.f32 %v3572_v54, 0.0  ;;  %v2458_v54 = vmax.f32 %v2176_v44, 0.0 }
 0x7e4   : > { %v9748_v14 = vpack.c.bf16 %v3889_v47, %v3888_v41  ;;  %7687 = vmatmul.msk.bf16.gmra.mxu3 %vm2640_vm2, %v2592_v18  ;;  %v2459_v18 = vmax.f32 %v2178_v51, 0.0 }
 0x7e6   : > { %v2595_v33 = vpack.c.bf16 %v2459_v18, %v2458_v54  ;;  %v2464_v18 = vmax.f32 %v2191_v50, 0.0  ;;  %v2470_v50 = vmax.f32 %v2206_v48, 0.0 }
 0x7e7   : > { %v3574_v32 = vpop.f32.mrf.mxu3 }
 0x7e8   : > { %v3575_v2 = vadd.f32 %v9585_v60, %v3574_v32 }
 0x7ea   : > { %v3890_v56 = vmax.f32 %v3575_v2, 0.0 }
 0x7ef   : > { %v3576_v28 = vpop.f32.mrf.mxu3 }
 0x7f0   : > { %v3577_v19 = vadd.f32 %v9585_v60, %v3576_v28  ;;  %v2460_v28 = vmax.f32 %v2181_v22, 0.0 }
 0x7f2   : > { %v3891_v17 = vmax.f32 %v3577_v19, 0.0  ;;  %v2461_v19 = vmax.f32 %v2183_v29, 0.0 }
 0x7f4   : > { %v9757_v0 = vpack.c.bf16 %v3891_v17, %v3890_v56  ;;  %7688 = vmatmul.msk.bf16.gmra.mxu3 %vm2640_vm2, %v2593_v35 }
 0x7f7   : > { %v3579_v9 = vpop.f32.mrf.mxu3 }
 0x7f8   : > { %v3580_v36 = vadd.f32 %v9585_v60, %v3579_v9  ;;  %v2596_v9 = vpack.c.bf16 %v2461_v19, %v2460_v28  ;;  %v2466_v28 = vmax.f32 %v2196_v10, 0.0  ;;  %v2467_v19 = vmax.f32 %v2198_v62, 0.0 }
 0x7f9   : > { %v2473_v10 = vmax.f32 %v2213_v31, 0.0 }
 0x7fa   : > { %v3892_v7 = vmax.f32 %v3580_v36, 0.0  ;;  %v2462_v36 = vmax.f32 %v2186_v4, 0.0 }
 0x7ff   : > { %v3581_v11 = vpop.f32.mrf.mxu3 }
 0x800   : > { %v3582_v37 = vadd.f32 %v9585_v60, %v3581_v11  ;;  %v2463_v11 = vmax.f32 %v2188_v39, 0.0  ;;  %v2468_v39 = vmax.f32 %v2201_v15, 0.0 }
 0x802   : > { %v3893_v43 = vmax.f32 %v3582_v37, 0.0 }
 0x804   : > { %v9766_v38 = vpack.c.bf16 %v3893_v43, %v3892_v7  ;;  %7689 = vmatmul.msk.bf16.gmra.mxu3 %vm2640_vm2, %v2594_v53  ;;  %v2597_v43 = vpack.c.bf16 %v2463_v11, %v2462_v36  ;;  %v2469_v36 = vmax.f32 %v2203_v20, 0.0 }
 0x807   : > { %v3584_v63 = vpop.f32.mrf.mxu3 }
 0x808   : > { %v3585_v41 = vadd.f32 %v9585_v60, %v3584_v63 }
 0x80a   : > { %v3894_v55 = vmax.f32 %v3585_v41, 0.0  ;;  %v2465_v41 = vmax.f32 %v2193_v57, 0.0  ;;  %v2471_v57 = vmax.f32 %v2208_v23, 0.0 }
 0x80f   : > { %v3586_v47 = vpop.f32.mrf.mxu3 }
 0x810   : > { %v3587_v32 = vadd.f32 %v9585_v60, %v3586_v47 }
 0x812   : > { %v3895_v61 = vmax.f32 %v3587_v32, 0.0 }
 0x814   : > { %v9775_v52 = vpack.c.bf16 %v3895_v61, %v3894_v55  ;;  %7690 = vmatmul.msk.bf16.gmra.mxu3 %vm2640_vm2, %v2595_v33  ;;  %v2598_v55 = vpack.c.bf16 %v2465_v41, %v2464_v18 }
 0x817   : > { %v3589_v2 = vpop.f32.mrf.mxu3 }
 0x818   : > { %v3590_v35 = vadd.f32 %v9585_v60, %v3589_v2 }
 0x81a   : > { %v3896_v24 = vmax.f32 %v3590_v35, 0.0 }
 0x81f   : > { %v3591_v56 = vpop.f32.mrf.mxu3 }
 0x820   : > { %v3592_v17 = vadd.f32 %v9585_v60, %v3591_v56 }
 0x822   : > { %v3897_v27 = vmax.f32 %v3592_v17, 0.0 }
 0x824   : > { %v9784_v8 = vpack.c.bf16 %v3897_v27, %v3896_v24  ;;  %7691 = vmatmul.msk.bf16.gmra.mxu3 %vm2640_vm2, %v2596_v9  ;;  %v2599_v9 = vpack.c.bf16 %v2467_v19, %v2466_v28 }
 0x827   : > { %v3594_v16 = vpop.f32.mrf.mxu3 }
 0x828   : > { %v3595_v37 = vadd.f32 %v9585_v60, %v3594_v16 }
 0x82a   : > { %v3898_v63 = vmax.f32 %v3595_v37, 0.0 }
 0x82f   : > { %v3596_v53 = vpop.f32.mrf.mxu3 }
 0x830   : > { %v3597_v7 = vadd.f32 %v9585_v60, %v3596_v53 }
 0x832   : > { %v3899_v44 = vmax.f32 %v3597_v7, 0.0  ;;  %v2600_v7 = vpack.c.bf16 %v2469_v36, %v2468_v39 }
 0x834   : > { %v9793_v51 = vpack.c.bf16 %v3899_v44, %v3898_v63  ;;  %7692 = vmatmul.msk.bf16.gmra.mxu3 %vm2640_vm2, %v2597_v43 }
 0x837   : > { %v3599_v54 = vpop.f32.mrf.mxu3 }
 0x838   : > { %v3600_v47 = vadd.f32 %v9585_v60, %v3599_v54 }
 0x83a   : > { %v3900_v61 = vmax.f32 %v3600_v47, 0.0 }
 0x83f   : > { %v3601_v32 = vpop.f32.mrf.mxu3 }
 0x840   : > { %v3602_v33 = vadd.f32 %v9585_v60, %v3601_v32  ;;  %v2601_v32 = vpack.c.bf16 %v2471_v57, %v2470_v50 }
 0x842   : > { %v3901_v2 = vmax.f32 %v3602_v33, 0.0 }
 0x844   : > { %v9802_v22 = vpack.c.bf16 %v3901_v2, %v3900_v61  ;;  %7693 = vmatmul.msk.bf16.gmra.mxu3 %vm2640_vm2, %v2598_v55 }
 0x847   : > { %v3604_v29 = vpop.f32.mrf.mxu3 }
 0x848   : > { %v3605_v35 = vadd.f32 %v9585_v60, %v3604_v29  ;;  %v2472_v29 = vmax.f32 %v2211_v21, 0.0 }
 0x84a   : > { %v3902_v24 = vmax.f32 %v3605_v35, 0.0  ;;  %v2602_v35 = vpack.c.bf16 %v2473_v10, %v2472_v29 }
 0x84f   : > { %v3606_v56 = vpop.f32.mrf.mxu3 }
 0x850   : > { %v3607_v17 = vadd.f32 %v9585_v60, %v3606_v56 }
 0x852   : > { %v3903_v27 = vmax.f32 %v3607_v17, 0.0 }
 0x854   : > { %v9811_v16 = vpack.c.bf16 %v3903_v27, %v3902_v24  ;;  %7694 = vmatmul.msk.bf16.gmra.mxu3 %vm2640_vm2, %v2599_v9  ;;  %v2474_v27 = vmax.f32 %v2216_v25, 0.0 }
 0x857   : > { %v3609_v4 = vpop.f32.mrf.mxu3 }
 0x858   : > { %v3610_v11 = vadd.f32 %v9585_v60, %v3609_v4  ;;  %v2475_v4 = vmax.f32 %v2218_v59, 0.0 }
 0x85a   : > { %v3904_v43 = vmax.f32 %v3610_v11, 0.0  ;;  %v2603_v36 = vpack.c.bf16 %v2475_v4, %v2474_v27 }
 0x85f   : > { %v3611_v37 = vpop.f32.mrf.mxu3 }
 0x860   : > { %v3612_v53 = vadd.f32 %v9585_v60, %v3611_v37 }
 0x862   : > { %v3905_v63 = vmax.f32 %v3612_v53, 0.0 }
 0x864   : > { %v9820_v44 = vpack.c.bf16 %v3905_v63, %v3904_v43  ;;  %7695 = vmatmul.msk.bf16.gmra.mxu3 %vm2640_vm2, %v2600_v7 }
 0x867   : > { %v3614_v54 = vpop.f32.mrf.mxu3 }
 0x868   : > { %v3615_v18 = vadd.f32 %v9585_v60, %v3614_v54 }
 0x86a   : > { %v3906_v33 = vmax.f32 %v3615_v18, 0.0 }
 0x86f   : > { %v3616_v41 = vpop.f32.mrf.mxu3 }
 0x870   : > { %v3617_v47 = vadd.f32 %v9585_v60, %v3616_v41 }
 0x872   : > { %v3907_v55 = vmax.f32 %v3617_v47, 0.0 }
 0x874   : > { %v9829_v61 = vpack.c.bf16 %v3907_v55, %v3906_v33  ;;  %7696 = vmatmul.msk.bf16.gmra.mxu3 %vm2640_vm2, %v2601_v32  ;;  %v8060_v33 = vld [vmem:[%s10087_s4] ss:$0 sm:$0xff] }
 0x877   : > { %v3619_v2 = vpop.f32.mrf.mxu3 }
 0x878   : > { %v3620_v62 = vadd.f32 %v9585_v60, %v3619_v2 }
 0x87a   : > { %v3908_v56 = vmax.f32 %v3620_v62, 0.0 }
 0x87f   : > { %v3621_v28 = vpop.f32.mrf.mxu3 }
 0x880   : > { %v3622_v19 = vadd.f32 %v9585_v60, %v3621_v28 }
 0x882   : > { %v3909_v17 = vmax.f32 %v3622_v19, 0.0 }
 0x884   : > { %v9838_v9 = vpack.c.bf16 %v3909_v17, %v3908_v56  ;;  %7697 = vmatmul.msk.bf16.gmra.mxu3 %vm2640_vm2, %v2602_v35 }
 0x887   : > { %v3624_v24 = vpop.f32.mrf.mxu3 }
 0x888   : > { %v3625_v15 = vadd.f32 %v9585_v60, %v3624_v24 }
 0x88a   : > { %v3910_v11 = vmax.f32 %v3625_v15, 0.0 }
 0x88f   : > { %v3626_v20 = vpop.f32.mrf.mxu3 }
 0x890   : > { %v3627_v39 = vadd.f32 %v9585_v60, %v3626_v20 }
 0x892   : > { %v3911_v37 = vmax.f32 %v3627_v39, 0.0 }
 0x894   : > { %v9847_v53 = vpack.c.bf16 %v3911_v37, %v3910_v11  ;;  %7698 = vmatmul.msk.bf16.gmra.mxu3 %vm2640_vm2, %v2603_v36 }
 0x897   : > { %v3629_v7 = vpop.f32.mrf.mxu3 }
 0x898   : > { %v3630_v30 = vadd.f32 %v9585_v60, %v3629_v7 }
 0x89a   : > { %v3912_v26 = vmax.f32 %v3630_v30, 0.0 }
 0x89f   : > { %v3631_v43 = vpop.f32.mrf.mxu3 }
 0x8a0   : > { %v3632_v5 = vadd.f32 %v9585_v60, %v3631_v43 }
 0x8a2   : > { %v3913_v63 = vmax.f32 %v3632_v5, 0.0 }
 0x8a4   : > { %v9852_v54 = vpack.c.bf16 %v3913_v63, %v3912_v26  ;;  %7811 = vmatmul.msk.bf16.vlgmr.msra.gmra.mxu3 %vm2640_vm2, %v9635_v34 }
 0x8a7   : > { %v3634_v48 = vpop.f32.mrf.mxu3 }
 0x8a8   : > { %v3635_v23 = vadd.f32 %v9585_v60, %v3634_v48 }
 0x8aa   : > { %v3914_v18 = vmax.f32 %v3635_v23, 0.0 }
 0x8af   : > { %v3636_v50 = vpop.f32.mrf.mxu3 }
 0x8b0   : > { %v3637_v57 = vadd.f32 %v9585_v60, %v3636_v50 }
 0x8b2   : > { %v3915_v41 = vmax.f32 %v3637_v57, 0.0 }
 0x8b4   : > { %v9858_v47 = vpack.c.bf16 %v3915_v41, %v3914_v18  ;;  %7812 = vmatmul.msk.bf16.gmra.mxu3 %vm2640_vm2, %v9653_v49 }
 0x8b7   : > { %v3639_v32 = vpop.f32.mrf.mxu3 }
 0x8b8   : > { %v3640_v55 = vadd.f32 %v8060_v33, %v3639_v32 }
 0x8ba   : > { %v3916_v21 = vmax.f32 %v3640_v55, 0.0 }
 0x8bf   : > { %v3641_v34 = vpop.f32.mrf.mxu3 }
 0x8c0   : > { %v3642_v2 = vadd.f32 %v8060_v33, %v3641_v34 }
 0x8c2   : > { %v3917_v31 = vmax.f32 %v3642_v2, 0.0 }
 0x8c4   : > { %v9865_v29 = vpack.c.bf16 %v3917_v31, %v3916_v21  ;;  %7813 = vmatmul.msk.bf16.gmra.mxu3 %vm2640_vm2, %v9662_v1 }
 0x8c7   : > { %v3644_v60 = vpop.f32.mrf.mxu3 }
 0x8c8   : > { %v3645_v10 = vadd.f32 %v8060_v33, %v3644_v60 }
 0x8ca   : > { %v3918_v49 = vmax.f32 %v3645_v10, 0.0 }
 0x8cf   : > { %v3646_v62 = vpop.f32.mrf.mxu3 }
 0x8d0   : > { %v3647_v28 = vadd.f32 %v8060_v33, %v3646_v62 }
 0x8d2   : > { %v3919_v19 = vmax.f32 %v3647_v28, 0.0 }
 0x8d4   : > { %v9869_v35 = vpack.c.bf16 %v3919_v19, %v3918_v49  ;;  %7814 = vmatmul.msk.bf16.gmra.mxu3 %vm2640_vm2, %v9671_v12 }
 0x8d7   : > { %v3649_v56 = vpop.f32.mrf.mxu3 }
 0x8d8   : > { %v3650_v17 = vadd.f32 %v8060_v33, %v3649_v56 }
 0x8da   : > { %v3920_v59 = vmax.f32 %v3650_v17, 0.0 }
 0x8df   : > { %v3651_v24 = vpop.f32.mrf.mxu3 }
 0x8e0   : > { %v3652_v25 = vadd.f32 %v8060_v33, %v3651_v24 }
 0x8e2   : > { %v3921_v27 = vmax.f32 %v3652_v25, 0.0 }
 0x8e4   : > { %v9873_v4 = vpack.c.bf16 %v3921_v27, %v3920_v59  ;;  %7815 = vmatmul.msk.bf16.gmra.mxu3 %vm2640_vm2, %v9680_v6 }
 0x8e7   : > { %v3654_v1 = vpop.f32.mrf.mxu3 }
 0x8e8   : > { %v3655_v15 = vadd.f32 %v8060_v33, %v3654_v1 }
 0x8ea   : > { %v3922_v36 = vmax.f32 %v3655_v15, 0.0 }
 0x8ef   : > { %v3656_v20 = vpop.f32.mrf.mxu3 }
 0x8f0   : > { %v3657_v39 = vadd.f32 %v8060_v33, %v3656_v20 }
 0x8f2   : > { %v3923_v11 = vmax.f32 %v3657_v39, 0.0 }
 0x8f4   : > { %v9877_v37 = vpack.c.bf16 %v3923_v11, %v3922_v36  ;;  %7816 = vmatmul.msk.bf16.gmra.mxu3 %vm2640_vm2, %v9689_v13 }
 0x8f7   : > { %v3659_v12 = vpop.f32.mrf.mxu3 }
 0x8f8   : > { %v3660_v7 = vadd.f32 %v8060_v33, %v3659_v12 }
 0x8fa   : > { %v3924_v5 = vmax.f32 %v3660_v7, 0.0 }
 0x8ff   : > { %v3661_v30 = vpop.f32.mrf.mxu3 }
 0x900   : > { %v3662_v43 = vadd.f32 %v8060_v33, %v3661_v30 }
 0x902   : > { %v3925_v26 = vmax.f32 %v3662_v43, 0.0 }
 0x904   : > { %v9881_v63 = vpack.c.bf16 %v3925_v26, %v3924_v5  ;;  %7817 = vmatmul.msk.bf16.gmra.mxu3 %vm2640_vm2, %v9697_v40 }
 0x907   : > { %v3664_v6 = vpop.f32.mrf.mxu3 }
 0x908   : > { %v3665_v48 = vadd.f32 %v8060_v33, %v3664_v6 }
 0x90a   : > { %v3926_v57 = vmax.f32 %v3665_v48, 0.0 }
 0x90f   : > { %v3666_v23 = vpop.f32.mrf.mxu3 }
 0x910   : > { %v3667_v50 = vadd.f32 %v8060_v33, %v3666_v23 }
 0x912   : > { %v3927_v18 = vmax.f32 %v3667_v50, 0.0 }
 0x914   : > { %v9885_v41 = vpack.c.bf16 %v3927_v18, %v3926_v57  ;;  %7818 = vmatmul.msk.bf16.gmra.mxu3 %vm2640_vm2, %v9707_v3 }
 0x917   : > { %v3669_v13 = vpop.f32.mrf.mxu3 }
 0x918   : > { %v3670_v32 = vadd.f32 %v8060_v33, %v3669_v13 }
 0x91a   : > { %v3928_v2 = vmax.f32 %v3670_v32, 0.0 }
 0x91f   : > { %v3671_v55 = vpop.f32.mrf.mxu3 }
 0x920   : > { %v3672_v34 = vadd.f32 %v8060_v33, %v3671_v55 }
 0x922   : > { %v3929_v21 = vmax.f32 %v3672_v34, 0.0 }
 0x924   : > { %v9889_v31 = vpack.c.bf16 %v3929_v21, %v3928_v2  ;;  %7819 = vmatmul.msk.bf16.gmra.mxu3 %vm2640_vm2, %v9715_v58 }
 0x927   : > { %v4967_v40 = vpop.f32.mrf.mxu3 }
 0x928   : > { %v4968_v60 = vadd.f32 %v9642_v45, %v4967_v40 }
 0x92a   : > { %v5319_v28 = vmax.f32 %v4968_v60, 0.0 }
 0x92f   : > { %v4969_v10 = vpop.f32.mrf.mxu3 }
 0x930   : > { %v4970_v62 = vadd.f32 %v9642_v45, %v4969_v10 }
 0x932   : > { %v5320_v49 = vmax.f32 %v4970_v62, 0.0 }
 0x934   : > { %v6055_v3 = vmax.f32 %v5319_v28, %v5320_v49  ;;  %7820 = vmatmul.msk.bf16.gmra.mxu3 %vm2640_vm2, %v9726_v46 }
 0x936   : > { %v6056_v19 = vrot.slane %v6055_v3, 4 }
 0x937   : > { %v4972_v33 = vpop.f32.mrf.mxu3 }
 0x938   : > { %v6057_v56 = vmax.f32 %v6055_v3, %v6056_v19  ;;  %v4973_v17 = vadd.f32 %v9642_v45, %v4972_v33 }
 0x93a   : > { %v6058_v25 = vrot.slane %v6057_v56, 2  ;;  %v5321_v59 = vmax.f32 %v4973_v17, 0.0 }
 0x93c   : > { %v6059_v1 = vmax.f32 %v6057_v56, %v6058_v25 }
 0x93e   : > { %v6060_v36 = vrot.slane %v6059_v1, 1 }
 0x93f   : > { %v4974_v24 = vpop.f32.mrf.mxu3 }
 0x940   : > { %v4975_v58 = vadd.f32 %v9642_v45, %v4974_v24  ;;  %v6061_v12 = vmax.f32 %v6059_v1, %v6060_v36 }
 0x942   : > { %v5322_v27 = vmax.f32 %v4975_v58, 0.0  ;;  %v6375_v26 = vpack.c.bf16 %v6061_v12, %v6061_v12 }
 0x944   : > { %v6062_v15 = vmax.f32 %v5321_v59, %v5322_v27  ;;  %7821 = vmatmul.msk.bf16.gmra.mxu3 %vm2640_vm2, %v9733_v42  ;;  %v6631_v18 = vunpack.c.l.b16 %v6375_v26 }
 0x946   : > { %v6063_v20 = vrot.slane %v6062_v15, 4 }
 0x947   : > { %v4977_v39 = vpop.f32.mrf.mxu3 }
 0x948   : > { %v6064_v46 = vmax.f32 %v6062_v15, %v6063_v20  ;;  %v4978_v43 = vadd.f32 %v9642_v45, %v4977_v39 }
 0x94a   : > { %v6065_v11 = vrot.slane %v6064_v46, 2  ;;  %v5323_v50 = vmax.f32 %v4978_v43, 0.0 }
 0x94c   : > { %v6066_v7 = vmax.f32 %v6064_v46, %v6065_v11  ;;  %v9921_v11 = vld [vmem:[%s10089_s6] ss:$0 sm:$0xff] }
 0x94e   : > { %v6067_v30 = vrot.slane %v6066_v7, 1 }
 0x94f   : > { %v4979_v5 = vpop.f32.mrf.mxu3 }
 0x950   : > { %v6068_v6 = vmax.f32 %v6066_v7, %v6067_v30  ;;  %v4980_v48 = vadd.f32 %v9642_v45, %v4979_v5 }
 0x952   : > { %v6376_v23 = vpack.c.bf16 %v6068_v6, %v6068_v6  ;;  %v5324_v57 = vmax.f32 %v4980_v48, 0.0 }
 0x954   : > { %v6632_v42 = vunpack.c.l.b16 %v6376_v23  ;;  %v6069_v13 = vmax.f32 %v5323_v50, %v5324_v57  ;;  %7822 = vmatmul.msk.bf16.gmra.mxu3 %vm2640_vm2, %v9748_v14 }
 0x956   : > { %v6754_v32 = vsel %vm6663_vm3, %v6632_v42, %v6631_v18  ;;  %v6070_v55 = vrot.slane %v6069_v13, 4 }
 0x957   : > { %v4982_v34 = vpop.f32.mrf.mxu3 }
 0x958   : > { %v6071_v2 = vmax.f32 %v6069_v13, %v6070_v55  ;;  %v4983_v10 = vadd.f32 %v9642_v45, %v4982_v34 }
 0x95a   : > { %v6072_v21 = vrot.slane %v6071_v2, 2  ;;  %v5325_v33 = vmax.f32 %v4983_v10, 0.0 }
 0x95c   : > { %v6073_v40 = vmax.f32 %v6071_v2, %v6072_v21 }
 0x95e   : > { %v6074_v60 = vrot.slane %v6073_v40, 1 }
 0x95f   : > { %v4984_v62 = vpop.f32.mrf.mxu3 }
 0x960   : > { %v6075_v28 = vmax.f32 %v6073_v40, %v6074_v60  ;;  %v4985_v49 = vadd.f32 %v9642_v45, %v4984_v62 }
 0x962   : > { %v6377_v3 = vpack.c.bf16 %v6075_v28, %v6075_v28  ;;  %v5326_v19 = vmax.f32 %v4985_v49, 0.0 }
 0x964   : > { %v6633_v56 = vunpack.c.l.b16 %v6377_v3  ;;  %v6076_v17 = vmax.f32 %v5325_v33, %v5326_v19  ;;  %7823 = vmatmul.msk.bf16.gmra.mxu3 %vm2640_vm2, %v9757_v0 }
 0x966   : > { %v6755_v14 = vsel %vm6665_vm4, %v6633_v56, %v6754_v32  ;;  %v6077_v24 = vrot.slane %v6076_v17, 4 }
 0x967   : > { %v4987_v25 = vpop.f32.mrf.mxu3 }
 0x968   : > { %v6078_v58 = vmax.f32 %v6076_v17, %v6077_v24 }
 0x96a   : > { %v6079_v59 = vrot.slane %v6078_v58, 2 }
 0x96c   : > { %v6080_v27 = vmax.f32 %v6078_v58, %v6079_v59 }
 0x96e   : > { %v6081_v1 = vrot.slane %v6080_v27, 1 }
 0x96f   : > { %v4989_v15 = vpop.f32.mrf.mxu3 }
 0x970   : > { %v6082_v20 = vmax.f32 %v6080_v27, %v6081_v1  ;;  %v4990_v12 = vadd.f32 %v9921_v11, %v4989_v15 }
 0x972   : > { %v6378_v39 = vpack.c.bf16 %v6082_v20, %v6082_v20  ;;  %v5328_v5 = vmax.f32 %v4990_v12, 0.0 }
 0x974   : > { %v6634_v45 = vunpack.c.l.b16 %v6378_v39  ;;  %7824 = vmatmul.msk.bf16.gmra.mxu3 %vm2640_vm2, %v9766_v38  ;;  %v4988_v38 = vadd.f32 %v9921_v11, %v4987_v25 }
 0x976   : > { %v9914_v36 = vsel %vm6667_vm5, %v6634_v45, %v6755_v14  ;;  %v5327_v6 = vmax.f32 %v4988_v38, 0.0 }
 0x977   : > { %v4992_v46 = vpop.f32.mrf.mxu3 }
 0x978   : > { %v4993_v43 = vadd.f32 %v9921_v11, %v4992_v46  ;;  %v6083_v23 = vmax.f32 %v5327_v6, %v5328_v5 }
 0x97a   : > { %v5329_v48 = vmax.f32 %v4993_v43, 0.0  ;;  %v6084_v32 = vrot.slane %v6083_v23, 4 }
 0x97c   : > { %v6085_v21 = vmax.f32 %v6083_v23, %v6084_v32 }
 0x97e   : > { %v6086_v62 = vrot.slane %v6085_v21, 2 }
 0x97f   : > { %v4994_v0 = vpop.f32.mrf.mxu3 }
 0x980   : > { %v4995_v30 = vadd.f32 %v9921_v11, %v4994_v0  ;;  %v6087_v33 = vmax.f32 %v6085_v21, %v6086_v62 }
 0x982   : > { %v5330_v26 = vmax.f32 %v4995_v30, 0.0  ;;  %v6088_v58 = vrot.slane %v6087_v33, 1 }
 0x984   : > { %7825 = vmatmul.msk.bf16.gmra.mxu3 %vm2640_vm2, %v9775_v52  ;;  %v6090_v57 = vmax.f32 %v5329_v48, %v5330_v26  ;;  %v6089_v15 = vmax.f32 %v6087_v33, %v6088_v58 }
 0x986   : > { %v6091_v55 = vrot.slane %v6090_v57, 4  ;;  %v6379_v12 = vpack.c.bf16 %v6089_v15, %v6089_v15 }
 0x987   : > { %v4997_v7 = vpop.f32.mrf.mxu3 }
 0x988   : > { %v4998_v52 = vadd.f32 %v9921_v11, %v4997_v7  ;;  %v6092_v60 = vmax.f32 %v6090_v57, %v6091_v55  ;;  %v6635_v26 = vunpack.c.l.b16 %v6379_v12 }
 0x98a   : > { %v5331_v42 = vmax.f32 %v4998_v52, 0.0  ;;  %v6093_v28 = vrot.slane %v6092_v60, 2 }
 0x98c   : > { %v6094_v56 = vmax.f32 %v6092_v60, %v6093_v28 }
 0x98f   : > { %v4999_v50 = vpop.f32.mrf.mxu3 }
 0x990   : > { %v5000_v18 = vadd.f32 %v9921_v11, %v4999_v50 }
 0x992   : > { %v5332_v13 = vmax.f32 %v5000_v18, 0.0 }
 0x994   : > { %v6097_v34 = vmax.f32 %v5331_v42, %v5332_v13  ;;  %7826 = vmatmul.msk.bf16.gmra.mxu3 %vm2640_vm2, %v9784_v8  ;;  %v6095_v8 = vrot.slane %v6094_v56, 1  ;;  %v6757_v42 = vsel %vm6669_vm6, %v6635_v26, %v9914_v36 }
 0x996   : > { %v6098_v2 = vrot.slane %v6097_v34, 4  ;;  %v6096_v39 = vmax.f32 %v6094_v56, %v6095_v8 }
 0x997   : > { %v5002_v40 = vpop.f32.mrf.mxu3 }
 0x998   : > { %v6099_v10 = vmax.f32 %v6097_v34, %v6098_v2  ;;  %v5003_v3 = vadd.f32 %v9921_v11, %v5002_v40  ;;  %v6380_v7 = vpack.c.bf16 %v6096_v39, %v6096_v39 }
 0x99a   : > { %v6100_v49 = vrot.slane %v6099_v10, 2  ;;  %v5333_v24 = vmax.f32 %v5003_v3, 0.0  ;;  %v6636_v48 = vunpack.c.l.b16 %v6380_v7 }
 0x99c   : > { %v6101_v14 = vmax.f32 %v6099_v10, %v6100_v49  ;;  %v6758_v13 = vsel %vm6671_vm7, %v6636_v48, %v6757_v42 }
 0x99e   : > { %v6102_v27 = vrot.slane %v6101_v14, 1 }
 0x99f   : > { %v5004_v19 = vpop.f32.mrf.mxu3 }
 0x9a0   : > { %v5005_v17 = vadd.f32 %v9921_v11, %v5004_v19  ;;  %v6103_v46 = vmax.f32 %v6101_v14, %v6102_v27 }
 0x9a2   : > { %v5334_v25 = vmax.f32 %v5005_v17, 0.0  ;;  %v6381_v38 = vpack.c.bf16 %v6103_v46, %v6103_v46 }
 0x9a4   : > { %v6104_v59 = vmax.f32 %v5333_v24, %v5334_v25  ;;  %7827 = vmatmul.msk.bf16.gmra.mxu3 %vm2640_vm2, %v9793_v51  ;;  %v6637_v23 = vunpack.c.l.b16 %v6381_v38 }
 0x9a6   : > { %v6105_v1 = vrot.slane %v6104_v59, 4  ;;  %v6759_v34 = vsel %vm6673_vm8, %v6637_v23, %v6758_v13 }
 0x9a7   : > { %v5007_v20 = vpop.f32.mrf.mxu3 }
 0x9a8   : > { %v6106_v45 = vmax.f32 %v6104_v59, %v6105_v1  ;;  %v5008_v5 = vadd.f32 %v9921_v11, %v5007_v20 }
 0x9aa   : > { %v6107_v0 = vrot.slane %v6106_v45, 2  ;;  %v5335_v57 = vmax.f32 %v5008_v5, 0.0 }
 0x9ac   : > { %v6108_v30 = vmax.f32 %v6106_v45, %v6107_v0 }
 0x9ae   : > { %v6109_v43 = vrot.slane %v6108_v30, 1 }
 0x9af   : > { %v5009_v6 = vpop.f32.mrf.mxu3 }
 0x9b0   : > { %v6110_v52 = vmax.f32 %v6108_v30, %v6109_v43  ;;  %v5010_v51 = vadd.f32 %v9921_v11, %v5009_v6 }
 0x9b2   : > { %v6382_v50 = vpack.c.bf16 %v6110_v52, %v6110_v52  ;;  %v5336_v18 = vmax.f32 %v5010_v51, 0.0 }
 0x9b4   : > { %v6638_v32 = vunpack.c.l.b16 %v6382_v50  ;;  %v6111_v55 = vmax.f32 %v5335_v57, %v5336_v18  ;;  %7828 = vmatmul.msk.bf16.gmra.mxu3 %vm2640_vm2, %v9802_v22 }
 0x9b6   : > { %v6760_v2 = vsel %vm6675_vm9, %v6638_v32, %v6759_v34  ;;  %v6112_v60 = vrot.slane %v6111_v55, 4 }
 0x9b7   : > { %v6794_v21 = vpack.c.b16 %v6760_v2, %v6760_v2  ;;  %v5012_v40 = vpop.f32.mrf.mxu3 }
 0x9b8   : > { %v6113_v10 = vmax.f32 %v6111_v55, %v6112_v60  ;;  %v5013_v62 = vadd.f32 %v9921_v11, %v5012_v40 }
 0x9b9   : > { %6826 = vst [vmem:[%s8506_s20 + $0x30] sm:$0xf] %v6794_v21 }
 0x9ba   : > { %v6114_v36 = vrot.slane %v6113_v10, 2  ;;  %v5337_v3 = vmax.f32 %v5013_v62, 0.0 }
 0x9bc   : > { %v6115_v19 = vmax.f32 %v6113_v10, %v6114_v36 }
 0x9be   : > { %v6116_v14 = vrot.slane %v6115_v19, 1 }
 0x9bf   : > { %v5014_v28 = vpop.f32.mrf.mxu3 }
 0x9c0   : > { %v5015_v49 = vadd.f32 %v9921_v11, %v5014_v28  ;;  %v6117_v58 = vmax.f32 %v6115_v19, %v6116_v14 }
 0x9c2   : > { %v5338_v33 = vmax.f32 %v5015_v49, 0.0  ;;  %v6383_v15 = vpack.c.bf16 %v6117_v58, %v6117_v58 }
 0x9c4   : > { %v6118_v56 = vmax.f32 %v5337_v3, %v5338_v33  ;;  %7829 = vmatmul.msk.bf16.gmra.mxu3 %vm2640_vm2, %v9811_v16  ;;  %v6639_v12 = vunpack.c.l.b16 %v6383_v15 }
 0x9c6   : > { %v6119_v22 = vrot.slane %v6118_v56, 4 }
 0x9c7   : > { %v5017_v17 = vpop.f32.mrf.mxu3 }
 0x9c8   : > { %v6120_v24 = vmax.f32 %v6118_v56, %v6119_v22  ;;  %v5018_v27 = vadd.f32 %v9921_v11, %v5017_v17 }
 0x9ca   : > { %v6121_v25 = vrot.slane %v6120_v24, 2  ;;  %v5339_v46 = vmax.f32 %v5018_v27, 0.0 }
 0x9cc   : > { %v6122_v8 = vmax.f32 %v6120_v24, %v6121_v25 }
 0x9ce   : > { %v6123_v59 = vrot.slane %v6122_v8, 1 }
 0x9cf   : > { %v5019_v1 = vpop.f32.mrf.mxu3 }
 0x9d0   : > { %v6124_v20 = vmax.f32 %v6122_v8, %v6123_v59  ;;  %v5020_v39 = vadd.f32 %v9921_v11, %v5019_v1 }
 0x9d2   : > { %v6384_v45 = vpack.c.bf16 %v6124_v20, %v6124_v20  ;;  %v5340_v0 = vmax.f32 %v5020_v39, 0.0 }
 0x9d4   : > { %v6640_v16 = vunpack.c.l.b16 %v6384_v45  ;;  %v6125_v7 = vmax.f32 %v5339_v46, %v5340_v0  ;;  %7830 = vmatmul.msk.bf16.gmra.mxu3 %vm2640_vm2, %v9820_v44 }
 0x9d6   : > { %v6761_v30 = vsel %vm6663_vm3, %v6640_v16, %v6639_v12  ;;  %v6126_v38 = vrot.slane %v6125_v7, 4 }
 0x9d7   : > { %v5022_v43 = vpop.f32.mrf.mxu3 }
 0x9d8   : > { %v6127_v5 = vmax.f32 %v6125_v7, %v6126_v38  ;;  %v5023_v52 = vadd.f32 %v9921_v11, %v5022_v43 }
 0x9da   : > { %v6128_v26 = vrot.slane %v6127_v5, 2  ;;  %v5341_v18 = vmax.f32 %v5023_v52, 0.0 }
 0x9dc   : > { %v6129_v6 = vmax.f32 %v6127_v5, %v6128_v26 }
 0x9de   : > { %v6130_v48 = vrot.slane %v6129_v6, 1 }
 0x9df   : > { %v5024_v51 = vpop.f32.mrf.mxu3 }
 0x9e0   : > { %v6131_v23 = vmax.f32 %v6129_v6, %v6130_v48  ;;  %v5025_v50 = vadd.f32 %v9921_v11, %v5024_v51 }
 0x9e2   : > { %v6385_v57 = vpack.c.bf16 %v6131_v23, %v6131_v23  ;;  %v5342_v42 = vmax.f32 %v5025_v50, 0.0 }
 0x9e4   : > { %v6641_v13 = vunpack.c.l.b16 %v6385_v57  ;;  %v6132_v32 = vmax.f32 %v5341_v18, %v5342_v42  ;;  %7831 = vmatmul.msk.bf16.gmra.mxu3 %vm2640_vm2, %v9829_v61 }
 0x9e6   : > { %v6762_v44 = vsel %vm6665_vm4, %v6641_v13, %v6761_v30  ;;  %v6133_v55 = vrot.slane %v6132_v32, 4 }
 0x9e7   : > { %v5027_v34 = vpop.f32.mrf.mxu3 }
 0x9e8   : > { %v6134_v2 = vmax.f32 %v6132_v32, %v6133_v55  ;;  %v5028_v22 = vadd.f32 %v9921_v11, %v5027_v34 }
 0x9ea   : > { %v6135_v21 = vrot.slane %v6134_v2, 2 }
 0x9ec   : > { %v6136_v40 = vmax.f32 %v6134_v2, %v6135_v21 }
 0x9ee   : > { %v6137_v60 = vrot.slane %v6136_v40, 1 }
 0x9ef   : > { %v5029_v10 = vpop.f32.mrf.mxu3 }
 0x9f0   : > { %v6138_v62 = vmax.f32 %v6136_v40, %v6137_v60  ;;  %v5030_v33 = vadd.f32 %v9921_v11, %v5029_v10 }
 0x9f2   : > { %v6386_v28 = vpack.c.bf16 %v6138_v62, %v6138_v62  ;;  %v5344_v14 = vmax.f32 %v5030_v33, 0.0 }
 0x9f4   : > { %v6642_v36 = vunpack.c.l.b16 %v6386_v28  ;;  %7832 = vmatmul.msk.bf16.gmra.mxu3 %vm2640_vm2, %v9838_v9  ;;  %v5343_v9 = vmax.f32 %v5028_v22, 0.0 }
 0x9f6   : > { %v9962_v49 = vsel %vm6667_vm5, %v6642_v36, %v6762_v44  ;;  %v6139_v8 = vmax.f32 %v5343_v9, %v5344_v14 }
 0x9f7   : > { %v5032_v3 = vpop.f32.mrf.mxu3 }
 0x9f8   : > { %v5033_v17 = vadd.f32 %v9921_v11, %v5032_v3  ;;  %v6140_v20 = vrot.slane %v6139_v8, 4 }
 0x9fa   : > { %v5345_v25 = vmax.f32 %v5033_v17, 0.0  ;;  %v6141_v0 = vmax.f32 %v6139_v8, %v6140_v20 }
 0x9fc   : > { %v6142_v30 = vrot.slane %v6141_v0, 2 }
 0x9fe   : > { %v6143_v26 = vmax.f32 %v6141_v0, %v6142_v30 }
 0x9ff   : > { %v5034_v61 = vpop.f32.mrf.mxu3 }
 0xa00   : > { %v5035_v56 = vadd.f32 %v9921_v11, %v5034_v61  ;;  %v6144_v57 = vrot.slane %v6143_v26, 1 }
 0xa02   : > { %v5346_v24 = vmax.f32 %v5035_v56, 0.0  ;;  %v6145_v32 = vmax.f32 %v6143_v26, %v6144_v57 }
 0xa04   : > { %7833 = vmatmul.msk.bf16.gmra.mxu3 %vm2640_vm2, %v9847_v53  ;;  %v6146_v27 = vmax.f32 %v5345_v25, %v5346_v24  ;;  %v6387_v40 = vpack.c.bf16 %v6145_v32, %v6145_v32 }
 0xa06   : > { %v6147_v39 = vrot.slane %v6146_v27, 4  ;;  %v6643_v3 = vunpack.c.l.b16 %v6387_v40 }
 0xa07   : > { %v5037_v19 = vpop.f32.mrf.mxu3 }
 0xa08   : > { %v5038_v58 = vadd.f32 %v9921_v11, %v5037_v19  ;;  %v6148_v16 = vmax.f32 %v6146_v27, %v6147_v39  ;;  %v6764_v24 = vsel %vm6669_vm6, %v6643_v3, %v9962_v49 }
 0xa0a   : > { %v5347_v1 = vmax.f32 %v5038_v58, 0.0  ;;  %v6149_v38 = vrot.slane %v6148_v16, 2 }
 0xa0c   : > { %v6150_v48 = vmax.f32 %v6148_v16, %v6149_v38 }
 0xa0f   : > { %v5039_v59 = vpop.f32.mrf.mxu3 }
 0xa10   : > { %v5040_v53 = vadd.f32 %v9921_v11, %v5039_v59 }
 0xa12   : > { %v5348_v15 = vmax.f32 %v5040_v53, 0.0 }
 0xa14   : > { %v6153_v45 = vmax.f32 %v5347_v1, %v5348_v15  ;;  %7834 = vmatmul.msk.bf16.gmra.mxu3 %vm2640_vm2, %v9852_v54  ;;  %v6151_v54 = vrot.slane %v6150_v48, 1 }
 0xa16   : > { %v6154_v46 = vrot.slane %v6153_v45, 4  ;;  %v6152_v55 = vmax.f32 %v6150_v48, %v6151_v54 }
 0xa17   : > { %v5042_v12 = vpop.f32.mrf.mxu3 }
 0xa18   : > { %v6155_v7 = vmax.f32 %v6153_v45, %v6154_v46  ;;  %v5043_v5 = vadd.f32 %v9921_v11, %v5042_v12  ;;  %v6388_v60 = vpack.c.bf16 %v6152_v55, %v6152_v55 }
 0xa1a   : > { %v6156_v43 = vrot.slane %v6155_v7, 2  ;;  %v5349_v23 = vmax.f32 %v5043_v5, 0.0  ;;  %v6644_v33 = vunpack.c.l.b16 %v6388_v60 }
 0xa1c   : > { %v6157_v51 = vmax.f32 %v6155_v7, %v6156_v43  ;;  %v6765_v9 = vsel %vm6671_vm7, %v6644_v33, %v6764_v24 }
 0xa1e   : > { %v6158_v42 = vrot.slane %v6157_v51, 1 }
 0xa1f   : > { %v5044_v6 = vpop.f32.mrf.mxu3 }
 0xa20   : > { %v5045_v52 = vadd.f32 %v9921_v11, %v5044_v6  ;;  %v6159_v2 = vmax.f32 %v6157_v51, %v6158_v42 }
 0xa22   : > { %v5350_v50 = vmax.f32 %v5045_v52, 0.0  ;;  %v6389_v62 = vpack.c.bf16 %v6159_v2, %v6159_v2 }
 0xa24   : > { %v6160_v18 = vmax.f32 %v5349_v23, %v5350_v50  ;;  %7835 = vmatmul.msk.bf16.gmra.mxu3 %vm2640_vm2, %v9858_v47  ;;  %v6645_v56 = vunpack.c.l.b16 %v6389_v62 }
 0xa26   : > { %v6161_v13 = vrot.slane %v6160_v18, 4  ;;  %v6766_v8 = vsel %vm6673_vm8, %v6645_v56, %v6765_v9 }
 0xa27   : > { %v5047_v44 = vpop.f32.mrf.mxu3 }
 0xa28   : > { %v6162_v34 = vmax.f32 %v6160_v18, %v6161_v13  ;;  %v5048_v36 = vadd.f32 %v9921_v11, %v5047_v44 }
 0xa2a   : > { %v6163_v21 = vrot.slane %v6162_v34, 2  ;;  %v5351_v17 = vmax.f32 %v5048_v36, 0.0 }
 0xa2c   : > { %v6164_v10 = vmax.f32 %v6162_v34, %v6163_v21 }
 0xa2e   : > { %v6165_v28 = vrot.slane %v6164_v10, 1 }
 0xa2f   : > { %v5049_v61 = vpop.f32.mrf.mxu3 }
 0xa30   : > { %v6166_v19 = vmax.f32 %v6164_v10, %v6165_v28  ;;  %v5050_v47 = vadd.f32 %v9921_v11, %v5049_v61 }
 0xa32   : > { %v6390_v22 = vpack.c.bf16 %v6166_v19, %v6166_v19  ;;  %v5352_v14 = vmax.f32 %v5050_v47, 0.0 }
 0xa34   : > { %v6646_v25 = vunpack.c.l.b16 %v6390_v22  ;;  %v6167_v58 = vmax.f32 %v5351_v17, %v5352_v14  ;;  %7836 = vmatmul.msk.bf16.gmra.mxu3 %vm2640_vm2, %v9865_v29 }
 0xa36   : > { %v6767_v59 = vsel %vm6675_vm9, %v6646_v25, %v6766_v8  ;;  %v6168_v1 = vrot.slane %v6167_v58, 4 }
 0xa37   : > { %v6795_v27 = vpack.c.b16 %v6767_v59, %v6767_v59  ;;  %v5052_v53 = vpop.f32.mrf.mxu3 }
 0xa38   : > { %v6169_v15 = vmax.f32 %v6167_v58, %v6168_v1  ;;  %v5053_v20 = vadd.f32 %v9921_v11, %v5052_v53 }
 0xa39   : > { %6827 = vst [vmem:[%s8506_s20 + $0x34] sm:$0xf] %v6795_v27 }
 0xa3a   : > { %v6170_v49 = vrot.slane %v6169_v15, 2  ;;  %v5353_v46 = vmax.f32 %v5053_v20, 0.0 }
 0xa3c   : > { %v6171_v12 = vmax.f32 %v6169_v15, %v6170_v49 }
 0xa3e   : > { %v6172_v30 = vrot.slane %v6171_v12, 1 }
 0xa3f   : > { %v5054_v39 = vpop.f32.mrf.mxu3 }
 0xa40   : > { %v5055_v45 = vadd.f32 %v9921_v11, %v5054_v39  ;;  %v6173_v5 = vmax.f32 %v6171_v12, %v6172_v30 }
 0xa42   : > { %v5354_v0 = vmax.f32 %v5055_v45, 0.0  ;;  %v6391_v51 = vpack.c.bf16 %v6173_v5, %v6173_v5 }
 0xa44   : > { %v6174_v16 = vmax.f32 %v5353_v46, %v5354_v0  ;;  %7837 = vmatmul.msk.bf16.gmra.mxu3 %vm2640_vm2, %v9869_v35  ;;  %v6647_v42 = vunpack.c.l.b16 %v6391_v51 }
 0xa46   : > { %v6175_v29 = vrot.slane %v6174_v16, 4 }
 0xa47   : > { %v5057_v7 = vpop.f32.mrf.mxu3 }
 0xa48   : > { %v6176_v38 = vmax.f32 %v6174_v16, %v6175_v29  ;;  %v5058_v48 = vadd.f32 %v9921_v11, %v5057_v7 }
 0xa4a   : > { %v6177_v43 = vrot.slane %v6176_v38, 2  ;;  %v5355_v54 = vmax.f32 %v5058_v48, 0.0 }
 0xa4c   : > { %v6178_v26 = vmax.f32 %v6176_v38, %v6177_v43 }
 0xa4e   : > { %v6179_v6 = vrot.slane %v6178_v26, 1 }
 0xa4f   : > { %v5059_v52 = vpop.f32.mrf.mxu3 }
 0xa50   : > { %v6180_v23 = vmax.f32 %v6178_v26, %v6179_v6  ;;  %v5060_v50 = vadd.f32 %v9921_v11, %v5059_v52 }
 0xa52   : > { %v6392_v57 = vpack.c.bf16 %v6180_v23, %v6180_v23  ;;  %v5356_v18 = vmax.f32 %v5060_v50, 0.0 }
 0xa54   : > { %v6648_v35 = vunpack.c.l.b16 %v6392_v57  ;;  %v6181_v13 = vmax.f32 %v5355_v54, %v5356_v18  ;;  %7838 = vmatmul.msk.bf16.gmra.mxu3 %vm2640_vm2, %v9873_v4 }
 0xa56   : > { %v6768_v32 = vsel %vm6663_vm3, %v6648_v35, %v6647_v42  ;;  %v6182_v44 = vrot.slane %v6181_v13, 4 }
 0xa57   : > { %v5062_v55 = vpop.f32.mrf.mxu3 }
 0xa58   : > { %v6183_v34 = vmax.f32 %v6181_v13, %v6182_v44  ;;  %v5063_v60 = vadd.f32 %v9921_v11, %v5062_v55 }
 0xa5a   : > { %v6184_v2 = vrot.slane %v6183_v34, 2  ;;  %v5357_v3 = vmax.f32 %v5063_v60, 0.0 }
 0xa5c   : > { %v6185_v21 = vmax.f32 %v6183_v34, %v6184_v2 }
 0xa5e   : > { %v6186_v40 = vrot.slane %v6185_v21, 1 }
 0xa5f   : > { %v5064_v10 = vpop.f32.mrf.mxu3 }
 0xa60   : > { %v6187_v62 = vmax.f32 %v6185_v21, %v6186_v40  ;;  %v5065_v28 = vadd.f32 %v9921_v11, %v5064_v10 }
 0xa62   : > { %v6393_v36 = vpack.c.bf16 %v6187_v62, %v6187_v62  ;;  %v5358_v61 = vmax.f32 %v5065_v28, 0.0 }
 0xa64   : > { %v6649_v33 = vunpack.c.l.b16 %v6393_v36  ;;  %v6188_v19 = vmax.f32 %v5357_v3, %v5358_v61  ;;  %7839 = vmatmul.msk.bf16.gmra.mxu3 %vm2640_vm2, %v9877_v37 }
 0xa66   : > { %v6769_v4 = vsel %vm6665_vm4, %v6649_v33, %v6768_v32  ;;  %v6189_v47 = vrot.slane %v6188_v19, 4 }
 0xa67   : > { %v5067_v56 = vpop.f32.mrf.mxu3 }
 0xa68   : > { %v6190_v22 = vmax.f32 %v6188_v19, %v6189_v47  ;;  %v5068_v20 = vadd.f32 %v9921_v11, %v5067_v56 }
 0xa6a   : > { %v6191_v17 = vrot.slane %v6190_v22, 2 }
 0xa6c   : > { %v6192_v14 = vmax.f32 %v6190_v22, %v6191_v17 }
 0xa6e   : > { %v6193_v24 = vrot.slane %v6192_v14, 1 }
 0xa6f   : > { %v5069_v9 = vpop.f32.mrf.mxu3 }
 0xa70   : > { %v6194_v25 = vmax.f32 %v6192_v14, %v6193_v24  ;;  %v5070_v53 = vadd.f32 %v9921_v11, %v5069_v9 }
 0xa72   : > { %v6394_v58 = vpack.c.bf16 %v6194_v25, %v6194_v25  ;;  %v5360_v49 = vmax.f32 %v5070_v53, 0.0 }
 0xa74   : > { %v6650_v8 = vunpack.c.l.b16 %v6394_v58  ;;  %7840 = vmatmul.msk.bf16.gmra.mxu3 %vm2640_vm2, %v9881_v63  ;;  %v5359_v63 = vmax.f32 %v5068_v20, 0.0 }
 0xa76   : > { %v10005_v59 = vsel %vm6667_vm5, %v6650_v8, %v6769_v4  ;;  %v6195_v12 = vmax.f32 %v5359_v63, %v5360_v49 }
 0xa77   : > { %v5072_v27 = vpop.f32.mrf.mxu3 }
 0xa78   : > { %v5073_v39 = vadd.f32 %v9921_v11, %v5072_v27  ;;  %v6196_v38 = vrot.slane %v6195_v12, 4 }
 0xa7a   : > { %v5361_v46 = vmax.f32 %v5073_v39, 0.0  ;;  %v6197_v6 = vmax.f32 %v6195_v12, %v6196_v38 }
 0xa7c   : > { %v6198_v23 = vrot.slane %v6197_v6, 2 }
 0xa7e   : > { %v6199_v18 = vmax.f32 %v6197_v6, %v6198_v23 }
 0xa7f   : > { %v5074_v37 = vpop.f32.mrf.mxu3 }
 0xa80   : > { %v5075_v15 = vadd.f32 %v9921_v11, %v5074_v37  ;;  %v6200_v34 = vrot.slane %v6199_v18, 1 }
 0xa82   : > { %v5362_v45 = vmax.f32 %v5075_v15, 0.0  ;;  %v6201_v60 = vmax.f32 %v6199_v18, %v6200_v34 }
 0xa84   : > { %7841 = vmatmul.msk.bf16.gmra.mxu3 %vm2640_vm2, %v9885_v41  ;;  %v6202_v29 = vmax.f32 %v5361_v46, %v5362_v45  ;;  %v6395_v61 = vpack.c.bf16 %v6201_v60, %v6201_v60 }
 0xa86   : > { %v6203_v43 = vrot.slane %v6202_v29, 4  ;;  %v6651_v22 = vunpack.c.l.b16 %v6395_v61 }
 0xa87   : > { %v5077_v1 = vpop.f32.mrf.mxu3 }
 0xa88   : > { %v5078_v0 = vadd.f32 %v9921_v11, %v5077_v1  ;;  %v6204_v52 = vmax.f32 %v6202_v29, %v6203_v43  ;;  %v6771_v37 = vsel %vm6669_vm6, %v6651_v22, %v10005_v59 }
 0xa8a   : > { %v5363_v7 = vmax.f32 %v5078_v0, 0.0  ;;  %v6205_v50 = vrot.slane %v6204_v52, 2 }
 0xa8c   : > { %v6206_v35 = vmax.f32 %v6204_v52, %v6205_v50 }
 0xa8f   : > { %v5079_v16 = vpop.f32.mrf.mxu3 }
 0xa90   : > { %v5080_v41 = vadd.f32 %v9921_v11, %v5079_v16 }
 0xa92   : > { %v5364_v30 = vmax.f32 %v5080_v41, 0.0 }
 0xa94   : > { %v6209_v5 = vmax.f32 %v5363_v7, %v5364_v30  ;;  %7842 = vmatmul.msk.bf16.gmra.mxu3 %vm2640_vm2, %v9889_v31  ;;  %v6207_v31 = vrot.slane %v6206_v35, 1 }
 0xa96   : > { %v6210_v26 = vrot.slane %v6209_v5, 4  ;;  %v6208_v62 = vmax.f32 %v6206_v35, %v6207_v31 }
 0xa97   : > { %v5082_v48 = vpop.f32.mrf.mxu3 }
 0xa98   : > { %v6211_v51 = vmax.f32 %v6209_v5, %v6210_v26  ;;  %v5083_v54 = vadd.f32 %v9921_v11, %v5082_v48  ;;  %v6396_v33 = vpack.c.bf16 %v6208_v62, %v6208_v62 }
 0xa9a   : > { %v6212_v57 = vrot.slane %v6211_v51, 2  ;;  %v5365_v44 = vmax.f32 %v5083_v54, 0.0  ;;  %v6652_v14 = vunpack.c.l.b16 %v6396_v33 }
 0xa9c   : > { %v6213_v32 = vmax.f32 %v6211_v51, %v6212_v57  ;;  %v6772_v53 = vsel %vm6671_vm7, %v6652_v14, %v6771_v37 }
 0xa9e   : > { %v6214_v21 = vrot.slane %v6213_v32, 1 }
 0xa9f   : > { %v5084_v42 = vpop.f32.mrf.mxu3 }
 0xaa0   : > { %v5085_v13 = vadd.f32 %v9921_v11, %v5084_v42  ;;  %v6215_v36 = vmax.f32 %v6213_v32, %v6214_v21 }
 0xaa2   : > { %v5366_v55 = vmax.f32 %v5085_v13, 0.0  ;;  %v6397_v4 = vpack.c.bf16 %v6215_v36, %v6215_v36 }
 0xaa4   : > { %v6216_v2 = vmax.f32 %v5365_v44, %v5366_v55  ;;  %v6653_v25 = vunpack.c.l.b16 %v6397_v4 }
 0xaa6   : > { %v6217_v40 = vrot.slane %v6216_v2, 4  ;;  %v6773_v20 = vsel %vm6673_vm8, %v6653_v25, %v6772_v53 }
 0xaa7   : > { %v5087_v10 = vpop.f32.mrf.mxu3 }
 0xaa8   : > { %v6218_v28 = vmax.f32 %v6216_v2, %v6217_v40  ;;  %v5088_v56 = vadd.f32 %v9921_v11, %v5087_v10 }
 0xaaa   : > { %v6219_v3 = vrot.slane %v6218_v28, 2  ;;  %v5367_v8 = vmax.f32 %v5088_v56, 0.0 }
 0xaac   : > { %v6220_v19 = vmax.f32 %v6218_v28, %v6219_v3 }
 0xaae   : > { %v6221_v47 = vrot.slane %v6220_v19, 1 }
 0xaaf   : > { %v5089_v17 = vpop.f32.mrf.mxu3 }
 0xab0   : > { %v6222_v24 = vmax.f32 %v6220_v19, %v6221_v47  ;;  %v5090_v9 = vadd.f32 %v9921_v11, %v5089_v17 }
 0xab2   : > { %v6398_v58 = vpack.c.bf16 %v6222_v24, %v6222_v24  ;;  %v5368_v27 = vmax.f32 %v5090_v9, 0.0 }
 0xab4   : > { %v6654_v1 = vunpack.c.l.b16 %v6398_v58  ;;  %v6223_v15 = vmax.f32 %v5367_v8, %v5368_v27 }
 0xab6   : > { %v6774_v39 = vsel %vm6675_vm9, %v6654_v1, %v6773_v20  ;;  %v6224_v63 = vrot.slane %v6223_v15, 4 }
 0xab7   : > { %v6796_v49 = vpack.c.b16 %v6774_v39, %v6774_v39  ;;  %v5092_v45 = vpop.f32.mrf.mxu3 }
 0xab8   : > { %v6225_v46 = vmax.f32 %v6223_v15, %v6224_v63  ;;  %v5093_v0 = vadd.f32 %v9921_v11, %v5092_v45 }
 0xab9   : > { %6828 = vst [vmem:[%s8506_s20 + $0x38] sm:$0xf] %v6796_v49 }
 0xaba   : > { %v6226_v16 = vrot.slane %v6225_v46, 2  ;;  %v5369_v59 = vmax.f32 %v5093_v0, 0.0 }
 0xabc   : > { %v6227_v7 = vmax.f32 %v6225_v46, %v6226_v16 }
 0xabe   : > { %v6228_v5 = vrot.slane %v6227_v7, 1 }
 0xabf   : > { %v5094_v12 = vpop.f32.mrf.mxu3 }
 0xac0   : > { %v5095_v29 = vadd.f32 %v9921_v11, %v5094_v12  ;;  %v6229_v48 = vmax.f32 %v6227_v7, %v6228_v5 }
 0xac2   : > { %v5370_v41 = vmax.f32 %v5095_v29, 0.0  ;;  %v6399_v57 = vpack.c.bf16 %v6229_v48, %v6229_v48 }
 0xac4   : > { %v6230_v30 = vmax.f32 %v5369_v59, %v5370_v41  ;;  %v6655_v32 = vunpack.c.l.b16 %v6399_v57 }
 0xac6   : > { %v6231_v38 = vrot.slane %v6230_v30, 4 }
 0xac7   : > { %v5097_v43 = vpop.f32.mrf.mxu3 }
 0xac8   : > { %v6232_v26 = vmax.f32 %v6230_v30, %v6231_v38  ;;  %v5098_v23 = vadd.f32 %v9921_v11, %v5097_v43 }
 0xaca   : > { %v6233_v6 = vrot.slane %v6232_v26, 2  ;;  %v5371_v35 = vmax.f32 %v5098_v23, 0.0 }
 0xacc   : > { %v6234_v52 = vmax.f32 %v6232_v26, %v6233_v6 }
 0xace   : > { %v6235_v51 = vrot.slane %v6234_v52, 1 }
 0xacf   : > { %v5099_v50 = vpop.f32.mrf.mxu3 }
 0xad0   : > { %v6236_v54 = vmax.f32 %v6234_v52, %v6235_v51  ;;  %v5100_v18 = vadd.f32 %v9921_v11, %v5099_v50 }
 0xad2   : > { %v6400_v42 = vpack.c.bf16 %v6236_v54, %v6236_v54  ;;  %v5372_v13 = vmax.f32 %v5100_v18, 0.0 }
 0xad4   : > { %v6656_v44 = vunpack.c.l.b16 %v6400_v42  ;;  %v6237_v55 = vmax.f32 %v5371_v35, %v5372_v13 }
 0xad6   : > { %v6775_v34 = vsel %vm6663_vm3, %v6656_v44, %v6655_v32  ;;  %v6238_v31 = vrot.slane %v6237_v55, 4 }
 0xad7   : > { %v5102_v2 = vpop.f32.mrf.mxu3 }
 0xad8   : > { %v6239_v21 = vmax.f32 %v6237_v55, %v6238_v31  ;;  %v5103_v62 = vadd.f32 %v9921_v11, %v5102_v2 }
 0xada   : > { %v6240_v40 = vrot.slane %v6239_v21, 2  ;;  %v5373_v33 = vmax.f32 %v5103_v62, 0.0 }
 0xadc   : > { %v6241_v60 = vmax.f32 %v6239_v21, %v6240_v40 }
 0xade   : > { %v6242_v10 = vrot.slane %v6241_v60, 1 }
 0xadf   : > { %v5104_v28 = vpop.f32.mrf.mxu3 }
 0xae0   : > { %v6243_v36 = vmax.f32 %v6241_v60, %v6242_v10  ;;  %v5105_v3 = vadd.f32 %v9921_v11, %v5104_v28 }
 0xae2   : > { %v6401_v61 = vpack.c.bf16 %v6243_v36, %v6243_v36  ;;  %v5374_v19 = vmax.f32 %v5105_v3, 0.0 }
 0xae4   : > { %v6657_v4 = vunpack.c.l.b16 %v6401_v61  ;;  %v6244_v47 = vmax.f32 %v5373_v33, %v5374_v19 }
 0xae6   : > { %v6776_v56 = vsel %vm6665_vm4, %v6657_v4, %v6775_v34  ;;  %v6245_v22 = vrot.slane %v6244_v47, 4 }
 0xae7   : > { %v5107_v17 = vpop.f32.mrf.mxu3 }
 0xae8   : > { %v6246_v14 = vmax.f32 %v6244_v47, %v6245_v22  ;;  %v5108_v45 = vadd.f32 %v9921_v11, %v5107_v17 }
 0xaea   : > { %v6247_v24 = vrot.slane %v6246_v14, 2  ;;  %v5375_v12 = vmax.f32 %v5108_v45, 0.0 }
 0xaec   : > { %v6248_v9 = vmax.f32 %v6246_v14, %v6247_v24 }
 0xaee   : > { %v6249_v25 = vrot.slane %v6248_v9, 1 }
 0xaef   : > { %v5109_v58 = vpop.f32.mrf.mxu3 }
 0xaf0   : > { %v6250_v8 = vmax.f32 %v6248_v9, %v6249_v25  ;;  %v5110_v20 = vadd.f32 %v9921_v11, %v5109_v58 }
 0xaf2   : > { %v6402_v27 = vpack.c.bf16 %v6250_v8, %v6250_v8  ;;  %v5376_v46 = vmax.f32 %v5110_v20, 0.0 }
 0xaf4   : > { %v6658_v37 = vunpack.c.l.b16 %v6402_v27  ;;  %v6251_v59 = vmax.f32 %v5375_v12, %v5376_v46 }
 0xaf6   : > { %v6777_v53 = vsel %vm6667_vm5, %v6658_v37, %v6776_v56  ;;  %v6252_v5 = vrot.slane %v6251_v59, 4 }
 0xaf7   : > { %v5112_v1 = vpop.f32.mrf.mxu3 }
 0xaf8   : > { %v5113_v63 = vadd.f32 %v9921_v11, %v5112_v1  ;;  %v6253_v52 = vmax.f32 %v6251_v59, %v6252_v5 }
 0xafa   : > { %v5377_v16 = vmax.f32 %v5113_v63, 0.0  ;;  %v6254_v57 = vrot.slane %v6253_v52, 2 }
 0xafc   : > { %v6255_v35 = vmax.f32 %v6253_v52, %v6254_v57 }
 0xafe   : > { %v6256_v2 = vrot.slane %v6255_v35, 1 }
 0xaff   : > { %v5114_v15 = vpop.f32.mrf.mxu3 }
 0xb00   : > { %v5115_v49 = vadd.f32 %v9921_v11, %v5114_v15  ;;  %v6257_v62 = vmax.f32 %v6255_v35, %v6256_v2 }
 0xb02   : > { %v5378_v0 = vmax.f32 %v5115_v49, 0.0  ;;  %v6403_v33 = vpack.c.bf16 %v6257_v62, %v6257_v62 }
 0xb04   : > { %v6258_v7 = vmax.f32 %v5377_v16, %v5378_v0  ;;  %v6659_v56 = vunpack.c.l.b16 %v6403_v33 }
 0xb06   : > { %v6259_v26 = vrot.slane %v6258_v7, 4  ;;  %v6778_v9 = vsel %vm6669_vm6, %v6659_v56, %v6777_v53 }
 0xb07   : > { %v5117_v39 = vpop.f32.mrf.mxu3 }
 0xb08   : > { %v5118_v29 = vadd.f32 %v9921_v11, %v5117_v39  ;;  %v6260_v23 = vmax.f32 %v6258_v7, %v6259_v26 }
 0xb0a   : > { %v5379_v38 = vmax.f32 %v5118_v29, 0.0  ;;  %v6261_v54 = vrot.slane %v6260_v23, 2 }
 0xb0c   : > { %v6262_v32 = vmax.f32 %v6260_v23, %v6261_v54 }
 0xb0e   : > { %v6263_v21 = vrot.slane %v6262_v32, 1 }
 0xb0f   : > { %v5119_v41 = vpop.f32.mrf.mxu3 }
 0xb10   : > { %v5120_v30 = vadd.f32 %v9921_v11, %v5119_v41  ;;  %v6264_v28 = vmax.f32 %v6262_v32, %v6263_v21 }
 0xb12   : > { %v5380_v43 = vmax.f32 %v5120_v30, 0.0  ;;  %v6404_v19 = vpack.c.bf16 %v6264_v28, %v6264_v28 }
 0xb14   : > { %v6265_v6 = vmax.f32 %v5379_v38, %v5380_v43  ;;  %v6660_v22 = vunpack.c.l.b16 %v6404_v19 }
 0xb16   : > { %v6266_v48 = vrot.slane %v6265_v6, 4  ;;  %v6779_v25 = vsel %vm6671_vm7, %v6660_v22, %v6778_v9 }
 0xb17   : > { %v5122_v51 = vpop.f32.mrf.mxu3 }
 0xb18   : > { %v6267_v50 = vmax.f32 %v6265_v6, %v6266_v48  ;;  %v5123_v42 = vadd.f32 %v9921_v11, %v5122_v51 }
 0xb1a   : > { %v6268_v18 = vrot.slane %v6267_v50, 2  ;;  %v5381_v34 = vmax.f32 %v5123_v42, 0.0 }
 0xb1c   : > { %v6269_v55 = vmax.f32 %v6267_v50, %v6268_v18 }
 0xb1e   : > { %v6270_v60 = vrot.slane %v6269_v55, 1 }
 0xb1f   : > { %v5124_v13 = vpop.f32.mrf.mxu3 }
 0xb20   : > { %v5125_v44 = vadd.f32 %v9921_v11, %v5124_v13  ;;  %v6271_v3 = vmax.f32 %v6269_v55, %v6270_v60 }
 0xb22   : > { %v5382_v31 = vmax.f32 %v5125_v44, 0.0  ;;  %v6405_v47 = vpack.c.bf16 %v6271_v3, %v6271_v3 }
 0xb24   : > { %v6272_v40 = vmax.f32 %v5381_v34, %v5382_v31  ;;  %v6661_v14 = vunpack.c.l.b16 %v6405_v47 }
 0xb26   : > { %v6273_v10 = vrot.slane %v6272_v40, 4  ;;  %v6780_v8 = vsel %vm6673_vm8, %v6661_v14, %v6779_v25 }
 0xb28   : > { %v6274_v36 = vmax.f32 %v6272_v40, %v6273_v10 }
 0xb2a   : > { %v6275_v61 = vrot.slane %v6274_v36, 2 }
 0xb2c   : > { %v6276_v4 = vmax.f32 %v6274_v36, %v6275_v61 }
 0xb2e   : > { %v6277_v11 = vrot.slane %v6276_v4, 1 }
 0xb30   : > { %v6278_v17 = vmax.f32 %v6276_v4, %v6277_v11 }
 0xb32   : > { %v6406_v24 = vpack.c.bf16 %v6278_v17, %v6278_v17 }
 0xb34   : > { %v6662_v58 = vunpack.c.l.b16 %v6406_v24 }
 0xb36   : > { %v6781_v27 = vsel %vm6675_vm9, %v6662_v58, %v6780_v8 }
 0xb37   : > { %v6797_v37 = vpack.c.b16 %v6781_v27, %v6781_v27 }
 0xb39   : > { %6829 = vst [vmem:[%s8506_s20 + $0x3c] sm:$0xf] %v6797_v37 }
 0xb3a   : > { %8089 = shalt.err (!%p8086_p3)
}
 0xb3b   : > { %s8126_s15 = smov 64   ;;  %s8127_s20 = smov 4  }
 0xb3c   : > { %7994 = dma.vmem_to_hbm [thread:$0]  (%p8206_p5), %s6844_s8, 1024, %s6846_s9, %s6831_s28, %s8126_s15, %s8126_s15, %s8127_s20  }
 0xb3d PF: > { %p8000_p4 = scmp.ge.s32.totalorder %s8124_s27, 2  ;;  %s6860_s23 = sand.u32 1, %s8112_s24  }
 0xb3e   : > { %s6861_s19 = scalar_lea.sflag [#allocation3], %s6860_s23 }
 0xb3f   : > { %p7997_p7 = pnand %p8000_p4, %p8210_p6 }
 0xb41   : > { %p7998_p8 = pneg %p7997_p7 }
 0xb43   : > { %8107 = dma.done.wait (%p7998_p8), %s6861_s19, 1024  }
 0xb44   : > { %8109 = vsyncadd (%p7998_p8), %s6861_s19, 4294966272  ;;  %p17_p9 = scmp.ge.s32.totalorder %s8193_s30, 4   ;;  %s10093_s24 = smov %s8116_s25 }
 0xb45   : > { %s10094_s25 = smov %s8120_s26  ;;  %s10095_s26 = smov %s8204_s10 }
 0xb46   : > { %s10096_s27 = smov %s8193_s30  ;;  %19 = sbr.rel (!%p17_p9) target bundleno = 3 (0x3), region = 83 }
 0xb4b   :  { %6867 = vsyncpa [#allocation3], 1 }
 0xb4c   :  { %6869 = vsyncpa [#allocation3 + $0x1], 1 }

</bundles_post_ra>
